<compile_context>
chip_gen: v7x
topology: tpu7x:2x2x1
jax: 0.10.0
libtpu: 0.0.40
codegen_flags: <defaults>
</compile_context>

<pallas_src>
import jax
import jax.numpy as jnp
from jax.experimental import pallas as pl
from jax.experimental.pallas import tpu as pltpu


_LAYER_SIZES = [4096, 2048, 1024, 512, 256, 128, 64, 32, 1]
_TN = 512   # fc2 output-column slab == fc3 reduction slab (2048 / 512 = 4 grid steps)


# ------------------------------ fused forward kernel ------------------------------

def _fused_mlp_kernel(x_ref, w1_ref, b1_ref, w2_ref, b2_ref, w3_ref, b3_ref,
                      w4_ref, b4_ref, w5_ref, b5_ref, w6_ref, b6_ref,
                      w7_ref, b7_ref, w8_ref, b8_ref, w9_ref, b9_ref,
                      o_ref, h1_ref, acc_ref):
    j = pl.program_id(0)

    @pl.when(j == 0)
    def _():
        # fc1: computed once, kept resident in VMEM as bf16 for every fc2 slab.
        h1 = jnp.dot(x_ref[...].astype(jnp.bfloat16), w1_ref[...],
                     preferred_element_type=jnp.float32)
        h1_ref[...] = jnp.maximum(h1 + b1_ref[...], 0.0).astype(jnp.bfloat16)
        acc_ref[...] = jnp.zeros_like(acc_ref)

    # fc2: slab j of the output columns (streamed W2 tile), bias + ReLU.
    h2 = jnp.dot(h1_ref[...], w2_ref[...], preferred_element_type=jnp.float32)
    h2 = jnp.maximum(h2 + b2_ref[...], 0.0).astype(jnp.bfloat16)

    # fc3: partial product for this slab (streamed W3 tile), f32 accumulation.
    acc_ref[...] += jnp.dot(h2, w3_ref[...], preferred_element_type=jnp.float32)

    @pl.when(j == pl.num_programs(0) - 1)
    def _():
        # fc3 bias/ReLU + fused tail fc4..fc9 (whole-block VMEM residents).
        h = jnp.maximum(acc_ref[...] + b3_ref[...], 0.0).astype(jnp.bfloat16)
        tail = ((w4_ref, b4_ref), (w5_ref, b5_ref), (w6_ref, b6_ref),
                (w7_ref, b7_ref), (w8_ref, b8_ref), (w9_ref, b9_ref))
        y = None
        for idx, (w_ref, b_ref) in enumerate(tail):
            y = jnp.dot(h, w_ref[...], preferred_element_type=jnp.float32) + b_ref[...]
            if idx < len(tail) - 1:               # no ReLU after the final layer
                h = jnp.maximum(y, 0.0).astype(jnp.bfloat16)
        o_ref[...] = y


def pallas_simple_nn(x, params, *, tn=_TN):
    """Full SimpleNN forward as one fused pallas_call.

    x: (M, input_size) f32; params: list of 9 (w, b) with w (in, out) bf16, b (out,) f32.
    """
    assert len(params) == 9
    M, k_in = x.shape
    (w1, b1), (w2, b2), (w3, b3) = params[0], params[1], params[2]
    n1, n2, n3 = w1.shape[1], w2.shape[1], w3.shape[1]
    assert w1.shape == (k_in, n1) and w2.shape == (n1, n2) and w3.shape == (n2, n3)
    assert n2 % tn == 0
    n_out = params[-1][0].shape[1]

    def row(b):
        return b.reshape(1, -1).astype(jnp.float32)

    def whole(arr):
        return pl.BlockSpec(arr.shape, lambda j: (0, 0))

    args = [x.astype(jnp.float32), w1, row(b1), w2, row(b2), w3, row(b3)]
    in_specs = [
        whole(args[0]),                               # x
        whole(args[1]), whole(args[2]),               # W1, b1 (residents)
        pl.BlockSpec((n1, tn), lambda j: (0, j)),     # W2 column slab (streamed)
        pl.BlockSpec((1, tn), lambda j: (0, j)),      # b2 slab
        pl.BlockSpec((tn, n3), lambda j: (j, 0)),     # W3 row slab (streamed)
        whole(args[6]),                               # b3 (resident)
    ]
    for w, b in params[3:]:                           # fc4..fc9 tail (residents)
        args += [w, row(b)]
        in_specs += [whole(args[-2]), whole(args[-1])]

    return pl.pallas_call(
        _fused_mlp_kernel,
        out_shape=jax.ShapeDtypeStruct((M, n_out), jnp.float32),
        grid_spec=pltpu.PrefetchScalarGridSpec(
            num_scalar_prefetch=0,
            grid=(n2 // tn,),
            in_specs=in_specs,
            out_specs=pl.BlockSpec((M, n_out), lambda j: (0, 0)),
            scratch_shapes=[
                pltpu.VMEM((M, n1), jnp.bfloat16),    # fc1 activations (resident)
                pltpu.VMEM((M, n3), jnp.float32),     # fc3 accumulator
            ],
        ),
        compiler_params=pltpu.CompilerParams(
            dimension_semantics=("arbitrary",),       # scratch-carried sequential dep
            vmem_limit_bytes=32 * 1024 * 1024,        # ~15 MiB used; safe on v5e/v6e/v7x
        ),
    )(*args)


# ------------------------------ params / forward ------------------------------

def init_params(input_size, key):
    """PyTorch nn.Linear-style init (U[-1/sqrt(fan_in), 1/sqrt(fan_in)]).

    Weights stored as (in_features, out_features) in bf16; biases in f32."""
    params = []
    fan_in = input_size
    for out_features in _LAYER_SIZES:
        key, kw, kb = jax.random.split(key, 3)
        bound = float(fan_in) ** -0.5
        w = jax.random.uniform(kw, (fan_in, out_features), jnp.float32, -bound, bound)
        b = jax.random.uniform(kb, (out_features,), jnp.float32, -bound, bound)
        params.append((w.astype(jnp.bfloat16), b))
        fan_in = out_features
    return params


@jax.jit
def simple_nn_forward(x, params):
    """8x (Linear + ReLU) followed by a final Linear, fused into one kernel."""
    return pallas_simple_nn(x, params)


def reference_forward(x, params):
    """Pure-JAX reference with identical numerics (bf16 matmuls, f32 accumulate)."""
    h = x.astype(jnp.float32)
    n = len(params)
    for i, (w, b) in enumerate(params):
        h = jnp.dot(h.astype(w.dtype), w, preferred_element_type=jnp.float32) + b
        if i < n - 1:
            h = jnp.maximum(h, 0.0)
    return h


if __name__ == "__main__":
    batch = 8
    input_size = 128

    key = jax.random.PRNGKey(0)
    key_x, key_p = jax.random.split(key)

    x = jax.random.normal(key_x, (batch, input_size), dtype=jnp.float32)
    params = init_params(input_size, key_p)

    out = jax.block_until_ready(simple_nn_forward(x, params))
    assert out.shape == (batch, 1), out.shape

    ref = reference_forward(x, params)
    assert jnp.allclose(out, ref, atol=2e-3, rtol=2e-3), (
        "Pallas output mismatch vs reference"
    )

    print("KERNEL_OK")
</pallas_src>

<mosaic_0001>
module attributes {stable_mosaic.version = 11 : i64} {
  func.func @_fused_mlp_kernel(%arg0: i32, %arg1: memref<8x128xf32, #tpu.memory_space<vmem>>, %arg2: memref<128x4096xbf16, #tpu.memory_space<vmem>>, %arg3: memref<1x4096xf32, #tpu.memory_space<vmem>>, %arg4: memref<4096x512xbf16, #tpu.memory_space<vmem>>, %arg5: memref<1x512xf32, #tpu.memory_space<vmem>>, %arg6: memref<512x1024xbf16, #tpu.memory_space<vmem>>, %arg7: memref<1x1024xf32, #tpu.memory_space<vmem>>, %arg8: memref<1024x512xbf16, #tpu.memory_space<vmem>>, %arg9: memref<1x512xf32, #tpu.memory_space<vmem>>, %arg10: memref<512x256xbf16, #tpu.memory_space<vmem>>, %arg11: memref<1x256xf32, #tpu.memory_space<vmem>>, %arg12: memref<256x128xbf16, #tpu.memory_space<vmem>>, %arg13: memref<1x128xf32, #tpu.memory_space<vmem>>, %arg14: memref<128x64xbf16, #tpu.memory_space<vmem>>, %arg15: memref<1x64xf32, #tpu.memory_space<vmem>>, %arg16: memref<64x32xbf16, #tpu.memory_space<vmem>>, %arg17: memref<1x32xf32, #tpu.memory_space<vmem>>, %arg18: memref<32x1xbf16, #tpu.memory_space<vmem>>, %arg19: memref<1x1xf32, #tpu.memory_space<vmem>>, %arg20: memref<8x1xf32, #tpu.memory_space<vmem>>, %arg21: memref<8x4096xbf16, #tpu.memory_space<vmem>>, %arg22: memref<8x1024xf32, #tpu.memory_space<vmem>>) attributes {dimension_semantics = [#tpu.dimension_semantics<arbitrary>], iteration_bounds = array<i64: 4>, scalar_prefetch = 0 : i64, scratch_operands = 2 : i64, tpu.core_type = #tpu.core_type<tc>, window_params = [{pipeline_mode = #tpu.pipeline_mode<synchronous>, transform_indices = @transform_0, window_bounds = array<i64: 8, 128>}, {pipeline_mode = #tpu.pipeline_mode<synchronous>, transform_indices = @transform_1, window_bounds = array<i64: 128, 4096>}, {pipeline_mode = #tpu.pipeline_mode<synchronous>, transform_indices = @transform_2, window_bounds = array<i64: 1, 4096>}, {transform_indices = @transform_3, window_bounds = array<i64: 4096, 512>}, {transform_indices = @transform_4, window_bounds = array<i64: 1, 512>}, {transform_indices = @transform_5, window_bounds = array<i64: 512, 1024>}, {pipeline_mode = #tpu.pipeline_mode<synchronous>, transform_indices = @transform_6, window_bounds = array<i64: 1, 1024>}, {pipeline_mode = #tpu.pipeline_mode<synchronous>, transform_indices = @transform_7, window_bounds = array<i64: 1024, 512>}, {pipeline_mode = #tpu.pipeline_mode<synchronous>, transform_indices = @transform_8, window_bounds = array<i64: 1, 512>}, {pipeline_mode = #tpu.pipeline_mode<synchronous>, transform_indices = @transform_9, window_bounds = array<i64: 512, 256>}, {pipeline_mode = #tpu.pipeline_mode<synchronous>, transform_indices = @transform_10, window_bounds = array<i64: 1, 256>}, {pipeline_mode = #tpu.pipeline_mode<synchronous>, transform_indices = @transform_11, window_bounds = array<i64: 256, 128>}, {pipeline_mode = #tpu.pipeline_mode<synchronous>, transform_indices = @transform_12, window_bounds = array<i64: 1, 128>}, {pipeline_mode = #tpu.pipeline_mode<synchronous>, transform_indices = @transform_13, window_bounds = array<i64: 128, 64>}, {pipeline_mode = #tpu.pipeline_mode<synchronous>, transform_indices = @transform_14, window_bounds = array<i64: 1, 64>}, {pipeline_mode = #tpu.pipeline_mode<synchronous>, transform_indices = @transform_15, window_bounds = array<i64: 64, 32>}, {pipeline_mode = #tpu.pipeline_mode<synchronous>, transform_indices = @transform_16, window_bounds = array<i64: 1, 32>}, {pipeline_mode = #tpu.pipeline_mode<synchronous>, transform_indices = @transform_17, window_bounds = array<i64: 32, 1>}, {pipeline_mode = #tpu.pipeline_mode<synchronous>, transform_indices = @transform_18, window_bounds = array<i64: 1, 1>}, {pipeline_mode = #tpu.pipeline_mode<synchronous>, transform_indices = @transform_19, window_bounds = array<i64: 8, 1>}]} {
    %c0_i32 = arith.constant 0 : i32
    %0 = arith.cmpi eq, %arg0, %c0_i32 : i32
    %1 = arith.extui %0 : i1 to i32
    %c0_i32_0 = arith.constant 0 : i32
    %2 = arith.cmpi ne, %1, %c0_i32_0 : i32
    scf.if %2 {
      %c0_15 = arith.constant 0 : index
      %c0_16 = arith.constant 0 : index
      %20 = vector.load %arg1[%c0_15, %c0_16] : memref<8x128xf32, #tpu.memory_space<vmem>>, vector<8x128xf32>
      %21 = arith.truncf %20 : vector<8x128xf32> to vector<8x128xbf16>
      %c0_17 = arith.constant 0 : index
      %c0_18 = arith.constant 0 : index
      %22 = vector.load %arg2[%c0_17, %c0_18] : memref<128x4096xbf16, #tpu.memory_space<vmem>>, vector<128x4096xbf16>
      %cst_19 = arith.constant dense<0.000000e+00> : vector<8x4096xf32>
      %23 = tpu.matmul %21, %22, %cst_19 {dimension_numbers = #tpu.dot_dimension_numbers<[1], [0], [0], [1], [0, 0, 1, 1], [], []>} : vector<8x128xbf16>, vector<128x4096xbf16>, vector<8x4096xf32> -> vector<8x4096xf32>
      %c0_20 = arith.constant 0 : index
      %c0_21 = arith.constant 0 : index
      %24 = vector.load %arg3[%c0_20, %c0_21] : memref<1x4096xf32, #tpu.memory_space<vmem>>, vector<1x4096xf32>
      %25 = vector.broadcast %24 : vector<1x4096xf32> to vector<8x4096xf32>
      %26 = arith.addf %23, %25 : vector<8x4096xf32>
      %cst_22 = arith.constant 0.000000e+00 : f32
      %27 = vector.broadcast %cst_22 : f32 to vector<8x4096xf32>
      %28 = arith.maximumf %26, %27 : vector<8x4096xf32>
      %29 = arith.truncf %28 : vector<8x4096xf32> to vector<8x4096xbf16>
      %c0_23 = arith.constant 0 : index
      %c0_24 = arith.constant 0 : index
      %30 = vector.load %arg21[%c0_23, %c0_24] : memref<8x4096xbf16, #tpu.memory_space<vmem>>, vector<8x4096xbf16>
      tpu.vector_store %arg21[%c0_23, %c0_24], %29 {strides = array<i32>} : memref<8x4096xbf16, #tpu.memory_space<vmem>>, vector<8x4096xbf16>,
      %cst_25 = arith.constant 0.000000e+00 : f32
      %31 = vector.broadcast %cst_25 : f32 to vector<8x1024xf32>
      %c0_26 = arith.constant 0 : index
      %c0_27 = arith.constant 0 : index
      %32 = vector.load %arg22[%c0_26, %c0_27] : memref<8x1024xf32, #tpu.memory_space<vmem>>, vector<8x1024xf32>
      tpu.vector_store %arg22[%c0_26, %c0_27], %31 {strides = array<i32>} : memref<8x1024xf32, #tpu.memory_space<vmem>>, vector<8x1024xf32>,
    } else {
    }
    %c0 = arith.constant 0 : index
    %c0_1 = arith.constant 0 : index
    %3 = vector.load %arg21[%c0, %c0_1] : memref<8x4096xbf16, #tpu.memory_space<vmem>>, vector<8x4096xbf16>
    %c0_2 = arith.constant 0 : index
    %c0_3 = arith.constant 0 : index
    %4 = vector.load %arg4[%c0_2, %c0_3] : memref<4096x512xbf16, #tpu.memory_space<vmem>>, vector<4096x512xbf16>
    %cst = arith.constant dense<0.000000e+00> : vector<8x512xf32>
    %5 = tpu.matmul %3, %4, %cst {dimension_numbers = #tpu.dot_dimension_numbers<[1], [0], [0], [1], [0, 0, 1, 1], [], []>} : vector<8x4096xbf16>, vector<4096x512xbf16>, vector<8x512xf32> -> vector<8x512xf32>
    %c0_4 = arith.constant 0 : index
    %c0_5 = arith.constant 0 : index
    %6 = vector.load %arg5[%c0_4, %c0_5] : memref<1x512xf32, #tpu.memory_space<vmem>>, vector<1x512xf32>
    %7 = vector.broadcast %6 : vector<1x512xf32> to vector<8x512xf32>
    %8 = arith.addf %5, %7 : vector<8x512xf32>
    %cst_6 = arith.constant 0.000000e+00 : f32
    %9 = vector.broadcast %cst_6 : f32 to vector<8x512xf32>
    %10 = arith.maximumf %8, %9 : vector<8x512xf32>
    %11 = arith.truncf %10 : vector<8x512xf32> to vector<8x512xbf16>
    %c0_7 = arith.constant 0 : index
    %c0_8 = arith.constant 0 : index
    %12 = vector.load %arg22[%c0_7, %c0_8] : memref<8x1024xf32, #tpu.memory_space<vmem>>, vector<8x1024xf32>
    %c0_9 = arith.constant 0 : index
    %c0_10 = arith.constant 0 : index
    %13 = vector.load %arg6[%c0_9, %c0_10] : memref<512x1024xbf16, #tpu.memory_space<vmem>>, vector<512x1024xbf16>
    %cst_11 = arith.constant dense<0.000000e+00> : vector<8x1024xf32>
    %14 = tpu.matmul %11, %13, %cst_11 {dimension_numbers = #tpu.dot_dimension_numbers<[1], [0], [0], [1], [0, 0, 1, 1], [], []>} : vector<8x512xbf16>, vector<512x1024xbf16>, vector<8x1024xf32> -> vector<8x1024xf32>
    %15 = arith.addf %12, %14 : vector<8x1024xf32>
    %c0_12 = arith.constant 0 : index
    %c0_13 = arith.constant 0 : index
    %16 = vector.load %arg22[%c0_12, %c0_13] : memref<8x1024xf32, #tpu.memory_space<vmem>>, vector<8x1024xf32>
    tpu.vector_store %arg22[%c0_12, %c0_13], %15 {strides = array<i32>} : memref<8x1024xf32, #tpu.memory_space<vmem>>, vector<8x1024xf32>,
    %c3_i32 = arith.constant 3 : i32
    %17 = arith.cmpi eq, %arg0, %c3_i32 : i32
    %18 = arith.extui %17 : i1 to i32
    %c0_i32_14 = arith.constant 0 : i32
    %19 = arith.cmpi ne, %18, %c0_i32_14 : i32
    scf.if %19 {
      %c0_15 = arith.constant 0 : index
      %c0_16 = arith.constant 0 : index
      %20 = vector.load %arg22[%c0_15, %c0_16] : memref<8x1024xf32, #tpu.memory_space<vmem>>, vector<8x1024xf32>
      %c0_17 = arith.constant 0 : index
      %c0_18 = arith.constant 0 : index
      %21 = vector.load %arg7[%c0_17, %c0_18] : memref<1x1024xf32, #tpu.memory_space<vmem>>, vector<1x1024xf32>
      %22 = vector.broadcast %21 : vector<1x1024xf32> to vector<8x1024xf32>
      %23 = arith.addf %20, %22 : vector<8x1024xf32>
      %cst_19 = arith.constant 0.000000e+00 : f32
      %24 = vector.broadcast %cst_19 : f32 to vector<8x1024xf32>
      %25 = arith.maximumf %23, %24 : vector<8x1024xf32>
      %26 = arith.truncf %25 : vector<8x1024xf32> to vector<8x1024xbf16>
      %c0_20 = arith.constant 0 : index
      %c0_21 = arith.constant 0 : index
      %27 = vector.load %arg8[%c0_20, %c0_21] : memref<1024x512xbf16, #tpu.memory_space<vmem>>, vector<1024x512xbf16>
      %cst_22 = arith.constant dense<0.000000e+00> : vector<8x512xf32>
      %28 = tpu.matmul %26, %27, %cst_22 {dimension_numbers = #tpu.dot_dimension_numbers<[1], [0], [0], [1], [0, 0, 1, 1], [], []>} : vector<8x1024xbf16>, vector<1024x512xbf16>, vector<8x512xf32> -> vector<8x512xf32>
      %c0_23 = arith.constant 0 : index
      %c0_24 = arith.constant 0 : index
      %29 = vector.load %arg9[%c0_23, %c0_24] : memref<1x512xf32, #tpu.memory_space<vmem>>, vector<1x512xf32>
      %30 = vector.broadcast %29 : vector<1x512xf32> to vector<8x512xf32>
      %31 = arith.addf %28, %30 : vector<8x512xf32>
      %cst_25 = arith.constant 0.000000e+00 : f32
      %32 = vector.broadcast %cst_25 : f32 to vector<8x512xf32>
      %33 = arith.maximumf %31, %32 : vector<8x512xf32>
      %34 = arith.truncf %33 : vector<8x512xf32> to vector<8x512xbf16>
      %c0_26 = arith.constant 0 : index
      %c0_27 = arith.constant 0 : index
      %35 = vector.load %arg10[%c0_26, %c0_27] : memref<512x256xbf16, #tpu.memory_space<vmem>>, vector<512x256xbf16>
      %cst_28 = arith.constant dense<0.000000e+00> : vector<8x256xf32>
      %36 = tpu.matmul %34, %35, %cst_28 {dimension_numbers = #tpu.dot_dimension_numbers<[1], [0], [0], [1], [0, 0, 1, 1], [], []>} : vector<8x512xbf16>, vector<512x256xbf16>, vector<8x256xf32> -> vector<8x256xf32>
      %c0_29 = arith.constant 0 : index
      %c0_30 = arith.constant 0 : index
      %37 = vector.load %arg11[%c0_29, %c0_30] : memref<1x256xf32, #tpu.memory_space<vmem>>, vector<1x256xf32>
      %38 = vector.broadcast %37 : vector<1x256xf32> to vector<8x256xf32>
      %39 = arith.addf %36, %38 : vector<8x256xf32>
      %cst_31 = arith.constant 0.000000e+00 : f32
      %40 = vector.broadcast %cst_31 : f32 to vector<8x256xf32>
      %41 = arith.maximumf %39, %40 : vector<8x256xf32>
      %42 = arith.truncf %41 : vector<8x256xf32> to vector<8x256xbf16>
      %c0_32 = arith.constant 0 : index
      %c0_33 = arith.constant 0 : index
      %43 = vector.load %arg12[%c0_32, %c0_33] : memref<256x128xbf16, #tpu.memory_space<vmem>>, vector<256x128xbf16>
      %cst_34 = arith.constant dense<0.000000e+00> : vector<8x128xf32>
      %44 = tpu.matmul %42, %43, %cst_34 {dimension_numbers = #tpu.dot_dimension_numbers<[1], [0], [0], [1], [0, 0, 1, 1], [], []>} : vector<8x256xbf16>, vector<256x128xbf16>, vector<8x128xf32> -> vector<8x128xf32>
      %c0_35 = arith.constant 0 : index
      %c0_36 = arith.constant 0 : index
      %45 = vector.load %arg13[%c0_35, %c0_36] : memref<1x128xf32, #tpu.memory_space<vmem>>, vector<1x128xf32>
      %46 = vector.broadcast %45 : vector<1x128xf32> to vector<8x128xf32>
      %47 = arith.addf %44, %46 : vector<8x128xf32>
      %cst_37 = arith.constant 0.000000e+00 : f32
      %48 = vector.broadcast %cst_37 : f32 to vector<8x128xf32>
      %49 = arith.maximumf %47, %48 : vector<8x128xf32>
      %50 = arith.truncf %49 : vector<8x128xf32> to vector<8x128xbf16>
      %c0_38 = arith.constant 0 : index
      %c0_39 = arith.constant 0 : index
      %51 = vector.load %arg14[%c0_38, %c0_39] : memref<128x64xbf16, #tpu.memory_space<vmem>>, vector<128x64xbf16>
      %cst_40 = arith.constant dense<0.000000e+00> : vector<8x64xf32>
      %52 = tpu.matmul %50, %51, %cst_40 {dimension_numbers = #tpu.dot_dimension_numbers<[1], [0], [0], [1], [0, 0, 1, 1], [], []>} : vector<8x128xbf16>, vector<128x64xbf16>, vector<8x64xf32> -> vector<8x64xf32>
      %c0_41 = arith.constant 0 : index
      %c0_42 = arith.constant 0 : index
      %53 = vector.load %arg15[%c0_41, %c0_42] : memref<1x64xf32, #tpu.memory_space<vmem>>, vector<1x64xf32>
      %54 = vector.broadcast %53 : vector<1x64xf32> to vector<8x64xf32>
      %55 = arith.addf %52, %54 : vector<8x64xf32>
      %cst_43 = arith.constant 0.000000e+00 : f32
      %56 = vector.broadcast %cst_43 : f32 to vector<8x64xf32>
      %57 = arith.maximumf %55, %56 : vector<8x64xf32>
      %58 = arith.truncf %57 : vector<8x64xf32> to vector<8x64xbf16>
      %c0_44 = arith.constant 0 : index
      %c0_45 = arith.constant 0 : index
      %59 = vector.load %arg16[%c0_44, %c0_45] : memref<64x32xbf16, #tpu.memory_space<vmem>>, vector<64x32xbf16>
      %cst_46 = arith.constant dense<0.000000e+00> : vector<8x32xf32>
      %60 = tpu.matmul %58, %59, %cst_46 {dimension_numbers = #tpu.dot_dimension_numbers<[1], [0], [0], [1], [0, 0, 1, 1], [], []>} : vector<8x64xbf16>, vector<64x32xbf16>, vector<8x32xf32> -> vector<8x32xf32>
      %c0_47 = arith.constant 0 : index
      %c0_48 = arith.constant 0 : index
      %61 = vector.load %arg17[%c0_47, %c0_48] : memref<1x32xf32, #tpu.memory_space<vmem>>, vector<1x32xf32>
      %62 = vector.broadcast %61 : vector<1x32xf32> to vector<8x32xf32>
      %63 = arith.addf %60, %62 : vector<8x32xf32>
      %cst_49 = arith.constant 0.000000e+00 : f32
      %64 = vector.broadcast %cst_49 : f32 to vector<8x32xf32>
      %65 = arith.maximumf %63, %64 : vector<8x32xf32>
      %66 = arith.truncf %65 : vector<8x32xf32> to vector<8x32xbf16>
      %c0_50 = arith.constant 0 : index
      %c0_51 = arith.constant 0 : index
      %67 = vector.load %arg18[%c0_50, %c0_51] : memref<32x1xbf16, #tpu.memory_space<vmem>>, vector<32x1xbf16>
      %cst_52 = arith.constant dense<0.000000e+00> : vector<8x1xf32>
      %68 = tpu.matmul %66, %67, %cst_52 {dimension_numbers = #tpu.dot_dimension_numbers<[1], [0], [0], [1], [0, 0, 1, 1], [], []>} : vector<8x32xbf16>, vector<32x1xbf16>, vector<8x1xf32> -> vector<8x1xf32>
      %c0_53 = arith.constant 0 : index
      %c0_54 = arith.constant 0 : index
      %69 = vector.load %arg19[%c0_53, %c0_54] : memref<1x1xf32, #tpu.memory_space<vmem>>, vector<1x1xf32>
      %70 = vector.broadcast %69 : vector<1x1xf32> to vector<8x1xf32>
      %71 = arith.addf %68, %70 : vector<8x1xf32>
      %c0_55 = arith.constant 0 : index
      %c0_56 = arith.constant 0 : index
      %72 = vector.load %arg20[%c0_55, %c0_56] : memref<8x1xf32, #tpu.memory_space<vmem>>, vector<8x1xf32>
      tpu.vector_store %arg20[%c0_55, %c0_56], %71 {strides = array<i32>} : memref<8x1xf32, #tpu.memory_space<vmem>>, vector<8x1xf32>,
    } else {
    }
    return
  }
  func.func @transform_0(%arg0: i32) -> (i32, i32) {
    %c0_i32 = arith.constant 0 : i32
    %c0_i32_0 = arith.constant 0 : i32
    %c0_i32_1 = arith.constant 0 : i32
    return %c0_i32, %c0_i32_0 : i32, i32
  }
  func.func @transform_1(%arg0: i32) -> (i32, i32) {
    %c0_i32 = arith.constant 0 : i32
    %c0_i32_0 = arith.constant 0 : i32
    %c0_i32_1 = arith.constant 0 : i32
    return %c0_i32, %c0_i32_0 : i32, i32
  }
  func.func @transform_2(%arg0: i32) -> (i32, i32) {
    %c0_i32 = arith.constant 0 : i32
    %c0_i32_0 = arith.constant 0 : i32
    %c0_i32_1 = arith.constant 0 : i32
    return %c0_i32, %c0_i32_0 : i32, i32
  }
  func.func @transform_3(%arg0: i32) -> (i32, i32) {
    %c0_i32 = arith.constant 0 : i32
    %c0_i32_0 = arith.constant 0 : i32
    return %c0_i32, %arg0 : i32, i32
  }
  func.func @transform_4(%arg0: i32) -> (i32, i32) {
    %c0_i32 = arith.constant 0 : i32
    %c0_i32_0 = arith.constant 0 : i32
    return %c0_i32, %arg0 : i32, i32
  }
  func.func @transform_5(%arg0: i32) -> (i32, i32) {
    %c0_i32 = arith.constant 0 : i32
    %c0_i32_0 = arith.constant 0 : i32
    return %arg0, %c0_i32 : i32, i32
  }
  func.func @transform_6(%arg0: i32) -> (i32, i32) {
    %c0_i32 = arith.constant 0 : i32
    %c0_i32_0 = arith.constant 0 : i32
    %c0_i32_1 = arith.constant 0 : i32
    return %c0_i32, %c0_i32_0 : i32, i32
  }
  func.func @transform_7(%arg0: i32) -> (i32, i32) {
    %c0_i32 = arith.constant 0 : i32
    %c0_i32_0 = arith.constant 0 : i32
    %c0_i32_1 = arith.constant 0 : i32
    return %c0_i32, %c0_i32_0 : i32, i32
  }
  func.func @transform_8(%arg0: i32) -> (i32, i32) {
    %c0_i32 = arith.constant 0 : i32
    %c0_i32_0 = arith.constant 0 : i32
    %c0_i32_1 = arith.constant 0 : i32
    return %c0_i32, %c0_i32_0 : i32, i32
  }
  func.func @transform_9(%arg0: i32) -> (i32, i32) {
    %c0_i32 = arith.constant 0 : i32
    %c0_i32_0 = arith.constant 0 : i32
    %c0_i32_1 = arith.constant 0 : i32
    return %c0_i32, %c0_i32_0 : i32, i32
  }
  func.func @transform_10(%arg0: i32) -> (i32, i32) {
    %c0_i32 = arith.constant 0 : i32
    %c0_i32_0 = arith.constant 0 : i32
    %c0_i32_1 = arith.constant 0 : i32
    return %c0_i32, %c0_i32_0 : i32, i32
  }
  func.func @transform_11(%arg0: i32) -> (i32, i32) {
    %c0_i32 = arith.constant 0 : i32
    %c0_i32_0 = arith.constant 0 : i32
    %c0_i32_1 = arith.constant 0 : i32
    return %c0_i32, %c0_i32_0 : i32, i32
  }
  func.func @transform_12(%arg0: i32) -> (i32, i32) {
    %c0_i32 = arith.constant 0 : i32
    %c0_i32_0 = arith.constant 0 : i32
    %c0_i32_1 = arith.constant 0 : i32
    return %c0_i32, %c0_i32_0 : i32, i32
  }
  func.func @transform_13(%arg0: i32) -> (i32, i32) {
    %c0_i32 = arith.constant 0 : i32
    %c0_i32_0 = arith.constant 0 : i32
    %c0_i32_1 = arith.constant 0 : i32
    return %c0_i32, %c0_i32_0 : i32, i32
  }
  func.func @transform_14(%arg0: i32) -> (i32, i32) {
    %c0_i32 = arith.constant 0 : i32
    %c0_i32_0 = arith.constant 0 : i32
    %c0_i32_1 = arith.constant 0 : i32
    return %c0_i32, %c0_i32_0 : i32, i32
  }
  func.func @transform_15(%arg0: i32) -> (i32, i32) {
    %c0_i32 = arith.constant 0 : i32
    %c0_i32_0 = arith.constant 0 : i32
    %c0_i32_1 = arith.constant 0 : i32
    return %c0_i32, %c0_i32_0 : i32, i32
  }
  func.func @transform_16(%arg0: i32) -> (i32, i32) {
    %c0_i32 = arith.constant 0 : i32
    %c0_i32_0 = arith.constant 0 : i32
    %c0_i32_1 = arith.constant 0 : i32
    return %c0_i32, %c0_i32_0 : i32, i32
  }
  func.func @transform_17(%arg0: i32) -> (i32, i32) {
    %c0_i32 = arith.constant 0 : i32
    %c0_i32_0 = arith.constant 0 : i32
    %c0_i32_1 = arith.constant 0 : i32
    return %c0_i32, %c0_i32_0 : i32, i32
  }
  func.func @transform_18(%arg0: i32) -> (i32, i32) {
    %c0_i32 = arith.constant 0 : i32
    %c0_i32_0 = arith.constant 0 : i32
    %c0_i32_1 = arith.constant 0 : i32
    return %c0_i32, %c0_i32_0 : i32, i32
  }
  func.func @transform_19(%arg0: i32) -> (i32, i32) {
    %c0_i32 = arith.constant 0 : i32
    %c0_i32_0 = arith.constant 0 : i32
    %c0_i32_1 = arith.constant 0 : i32
    return %c0_i32, %c0_i32_0 : i32, i32
  }
}

</mosaic_0001>

<bundles_post_ra>
// kernel: simple_nn_forward.1
= control target key start
LH: loop header
LB: loop body
LE: loop exit
PB: predicated region body
PF: predicated region fallthrough
CT: control target
= control target key end

     0   :  { %s23224_s0 = inlined_call_operand.hbm [shape: f32[8,128], index: 0, kind: input, shape index: {}]   ;;  %s23225_s1 = inlined_call_operand.hbm [shape: bf16[128,4096], index: 1, kind: input, shape index: {}]   ;;  %s23226_s2 = inlined_call_operand.hbm [shape: f32[1,4096], index: 2, kind: input, shape index: {}]   ;;  %s23227_s3 = inlined_call_operand.hbm [shape: bf16[4096,2048], index: 3, kind: input, shape index: {}]   ;;  %s23228_s4 = inlined_call_operand.hbm [shape: f32[1,2048], index: 4, kind: input, shape index: {}]   ;;  %s23229_s5 = inlined_call_operand.hbm [shape: bf16[2048,1024], index: 5, kind: input, shape index: {}]   ;;  %s23230_s6 = inlined_call_operand.hbm [shape: f32[1,1024], index: 6, kind: input, shape index: {}]   ;;  %s23231_s7 = inlined_call_operand.hbm [shape: bf16[1024,512], index: 7, kind: input, shape index: {}]   ;;  %s23232_s8 = inlined_call_operand.hbm [shape: f32[1,512], index: 8, kind: input, shape index: {}]   ;;  %s23233_s9 = inlined_call_operand.hbm [shape: bf16[512,256], index: 9, kind: input, shape index: {}]   ;;  %s23234_s10 = inlined_call_operand.hbm [shape: f32[1,256], index: 10, kind: input, shape index: {}]   ;;  %s23235_s11 = inlined_call_operand.hbm [shape: bf16[256,128], index: 11, kind: input, shape index: {}]   ;;  %s23236_s12 = inlined_call_operand.hbm [shape: f32[1,128], index: 12, kind: input, shape index: {}]   ;;  %s23237_s13 = inlined_call_operand.vmem [shape: bf16[128,64], index: 13, kind: input, shape index: {}]   ;;  %s23238_s14 = inlined_call_operand.hbm [shape: f32[1,64], index: 14, kind: input, shape index: {}]   ;;  %s23239_s15 = inlined_call_operand.vmem [shape: bf16[64,32], index: 15, kind: input, shape index: {}]   ;;  %s23240_s16 = inlined_call_operand.hbm [shape: f32[1,32], index: 16, kind: input, shape index: {}]   ;;  %s23241_s17 = inlined_call_operand.vmem [shape: bf16[32,1], index: 17, kind: input, shape index: {}]   ;;  %s23242_s18 = inlined_call_operand.<no memory space> [shape: f32[1,1], index: 18, kind: input, shape index: {}]   ;;  %s23243_s19 = inlined_call_operand.vmem [shape: f32[8,1], index: 19, kind: output, shape index: {}]  }
   0x1   :  { %23274 = sst [smem:[#allocation41_spill]] %s23224_s0  ;;  %v24_v0 = vstv %s23242_s18 }
   0x2   :  { %23275 = sst [smem:[#allocation42_spill]] %s23225_s1  ;;  %25 = vst [vmem:[#allocation4] sm:$0x1] %v24_v0 }
   0x3   :  { %23276 = sst [smem:[#allocation43_spill]] %s23226_s2 }
   0x4   :  { %23277 = sst [smem:[#allocation44_spill]] %s23227_s3 }
   0x5   :  { %23278 = sst [smem:[#allocation45_spill]] %s23228_s4 }
   0x6   :  { %23279 = sst [smem:[#allocation46_spill]] %s23229_s5 }
   0x7   :  { %23280 = sst [smem:[#allocation47_spill]] %s23230_s6 }
   0x8   :  { %23281 = sst [smem:[#allocation48_spill]] %s23231_s7 }
   0x9   :  { %23282 = sst [smem:[#allocation49_spill]] %s23233_s9 }
   0xa   :  { %23283 = sst [smem:[#allocation50_spill]] %s23235_s11 }
   0xb   :  { %23284 = sst [smem:[#allocation51_spill]] %s23237_s13 }
   0xc   :  { %23285 = sst [smem:[#allocation52_spill]] %s23238_s14 }
   0xd   :  { %23286 = sst [smem:[#allocation53_spill]] %s23239_s15 }
   0xe   :  { %23287 = sst [smem:[#allocation54_spill]] %s23241_s17 }
   0xf   :  { %23288 = sst [smem:[#allocation55_spill]] %s23243_s19 }
  0x10   :  { %26 = vsyncpa [#allocation6], 0 }
  0x11   :  { %27 = vsyncpa [#allocation8], 0 }
  0x12   :  { %28 = vsyncpa [#allocation11], 0 }
  0x13   :  { %30 = vsyncpa [#allocation11 + $0x1], 0 }
  0x14   :  { %31 = vsyncpa [#allocation14], 0 }
  0x15   :  { %33 = vsyncpa [#allocation14 + $0x1], 0 }
  0x16   :  { %34 = vsyncpa [#allocation17], 0 }
  0x17   :  { %35 = vsyncpa [#allocation20], 0 }
  0x18   :  { %36 = vsyncpa [#allocation23], 0 }
  0x19   :  { %37 = vsyncpa [#allocation26], 0  ;;  %s21127_s20 = smov 0   ;;  %s21129_s21 = smov 0  }
  0x1a   :  { %s21131_s1 = smov 0   ;;  %s21133_s22 = smov 0  }
  0x1b LB: > { %23289 = sst [smem:[#allocation37_spill]] %s20989_s1  ;;  %s20995_s18 = smov [#allocation7]   ;;  %s20993_s22 = sphi %s21133_s22, %s23342_s22   ;;  %s20989_s1 = sphi %s21131_s1, %s23344_s1   ;;  %s20985_s21 = sphi %s21129_s21, %s23346_s21   ;;  %s20981_s20 = sphi %s21127_s20, %s23345_s20  }
  0x1c   : > { %s506_s2 = sshll.u32 %s20995_s18, 4  ;;  %s21148_s23 = sadd.s32 4294967295, %s20993_s22   ;;  %s21154_s2 = int_to_ptr.vmem [resolvable:$true] %s506_s2 }
  0x1d   : > { %p15997_p0 = scmp.ge.s32.totalorder %s20993_s22, 1  ;;  %p23255_p1 = scmp.eq.s32.totalorder %s21148_s23, 0 }
  0x1e   : > { %p483_p2 = scmp.lt.s32.totalorder %s20993_s22, 5  ;;  %s20996_s25 = smov [#allocation15]  }
  0x1f   : > { %s531_s3 = sshll.u32 %s20996_s25, 4  ;;  %s20997_s27 = smov [#allocation16]   ;;  %s21168_s3 = int_to_ptr.vmem [resolvable:$true] %s531_s3 }
  0x20   : > { %p21156_p4 = pnand %p15997_p0, %p483_p2  ;;  %s541_s28 = sshll.u32 %s20997_s27, 4  ;;  %s21170_s28 = int_to_ptr.vmem [resolvable:$true] %s541_s28 }
  0x21   : > { %s23293_s30 = sld [smem:[#allocation42_spill]] }
  0x22   : > { %s23290_s24 = scalar_select %p21156_p4, 1, 0 }
  0x23   : > { %p18292_p5 = pneg %p21156_p4 }
  0x24   : > { %23291 = sst [smem:[#allocation38_spill]] %s23290_s24 }
  0x25   : > { %p21164_p6 = pnand %p18292_p5, %p23255_p1 }
  0x27   : > { %s23292_s26 = scalar_select %p21164_p6, 1, 0 }
  0x28   : > { %s20501_s18 = scalar_lea.hbm %s23293_s30, 32768  ;;  %p21180_p8 = pneg %p21164_p6 }
  0x29   : > { %p20502_p7 = scmp.ne.s32.totalorder %s23293_s30, %s20501_s18  ;;  %p20508_p11 = scmp.lt.u32.totalorder %s20501_s18, %s23293_s30 }
  0x2a   : > { %s23294_s25 = scalar_select %p21180_p8, 1, 0 }
  0x2b   : > { %p20504_p9 = pnand %p21180_p8, %p20502_p7 }
  0x2d   : > { %p20505_p10 = pneg %p20504_p9 }
  0x2f   : > { %p20510_p12 = pnand %p20508_p11, %p20505_p10 }
  0x31   : > { %20513 = shalt.err (!%p20510_p12)
}
  0x32   : > { %s20514_s17 = scalar_lea.vmem %s21154_s2, 32768  ;;  %p20522_p5 = scmp.lt.s32.totalorder %s21154_s2, %s21154_s2 }
  0x33   : > { %p20515_p13 = scmp.ne.s32.totalorder %s21154_s2, %s20514_s17  ;;  %p20523_p3 = scmp.lt.s32.totalorder %s20514_s17, %s20514_s17 }
  0x35   : > { %p20517_p0 = pnand %p20515_p13, %p21180_p8  ;;  %p20524_p7 = por %p20523_p3, %p20522_p5 }
  0x37   : > { %p20518_p2 = pneg %p20517_p0 }
  0x39   : > { %p20525_p9 = pnand %p20524_p7, %p20518_p2 }
  0x3b   : > { %20528 = shalt.err (!%p20525_p9)
}
  0x3c   : > { %s20998_s19 = smov 2048   ;;  %s23254_s15 = smov 128  }
  0x3d   : > { %18298 = dma.hbm_to_vmem [thread:$0]  (!%p21164_p6), %s23293_s30, 32768, %s21154_s2, [#allocation8], %s20998_s19, %s20998_s19, %s23254_s15  }
  0x3e   : > { %s23295_s6 = sld [smem:[#allocation47_spill]] }
  0x44   : > { %s20529_s13 = scalar_lea.hbm %s23295_s6, 128 }
  0x45   : > { %p20530_p3 = scmp.ne.s32.totalorder %s23295_s6, %s20529_s13  ;;  %p20536_p12 = scmp.lt.u32.totalorder %s20529_s13, %s23295_s6 }
  0x47   : > { %p20532_p10 = pnand %p20530_p3, %p21180_p8 }
  0x49   : > { %p20533_p11 = pneg %p20532_p10 }
  0x4b   : > { %p20538_p13 = pnand %p20536_p12, %p20533_p11 }
  0x4d   : > { %20541 = shalt.err (!%p20538_p13)
}
  0x4e   : > { %s20542_s2 = scalar_lea.vmem %s21168_s3, 128  ;;  %p20550_p7 = scmp.lt.s32.totalorder %s21168_s3, %s21168_s3 }
  0x4f   : > { %p20543_p0 = scmp.ne.s32.totalorder %s21168_s3, %s20542_s2  ;;  %p20551_p9 = scmp.lt.s32.totalorder %s20542_s2, %s20542_s2 }
  0x51   : > { %p20545_p2 = pnand %p20543_p0, %p21180_p8  ;;  %p20552_p3 = por %p20551_p9, %p20550_p7 }
  0x53   : > { %p20546_p5 = pneg %p20545_p2 }
  0x55   : > { %p20553_p10 = pnand %p20552_p3, %p20546_p5 }
  0x57   : > { %20556 = shalt.err (!%p20553_p10)
}
  0x58   : > { %18304 = dma.hbm_to_vmem [thread:$0]  (!%p21164_p6), %s23295_s6, 128, %s21168_s3, [#allocation14]  }
  0x59   : > { %s23296_s7 = sld [smem:[#allocation48_spill]] }
  0x5f   : > { %s20557_s19 = scalar_lea.hbm %s23296_s7, 32768 }
  0x60   : > { %p20558_p11 = scmp.ne.s32.totalorder %s23296_s7, %s20557_s19  ;;  %p20564_p0 = scmp.lt.u32.totalorder %s20557_s19, %s23296_s7 }
  0x62   : > { %p20560_p12 = pnand %p20558_p11, %p21180_p8 }
  0x64   : > { %p20561_p13 = pneg %p20560_p12 }
  0x66   : > { %p20566_p2 = pnand %p20564_p0, %p20561_p13 }
  0x68   : > { %20569 = shalt.err (!%p20566_p2)
}
  0x69   : > { %s20570_s3 = scalar_lea.vmem %s21170_s28, 32768  ;;  %p20578_p3 = scmp.lt.s32.totalorder %s21170_s28, %s21170_s28 }
  0x6a   : > { %p20571_p5 = scmp.ne.s32.totalorder %s21170_s28, %s20570_s3  ;;  %p20579_p10 = scmp.lt.s32.totalorder %s20570_s3, %s20570_s3 }
  0x6c   : > { %p20573_p7 = pnand %p20571_p5, %p21180_p8  ;;  %p20580_p11 = por %p20579_p10, %p20578_p3 }
  0x6e   : > { %p20574_p9 = pneg %p20573_p7 }
  0x70   : > { %p20581_p12 = pnand %p20580_p11, %p20574_p9 }
  0x72   : > { %20584 = shalt.err (!%p20581_p12)
}
  0x73   : > { %s23257_s17 = smov 256   ;;  %s23258_s2 = smov 16  }
  0x74   : > { %18307 = dma.hbm_to_vmem [thread:$0]  (!%p21164_p6), %s23296_s7, 32768, %s21170_s28, [#allocation17], %s23257_s17, %s23257_s17, %s23258_s2  }
  0x75   : > { %s21002_s13 = smov [#allocation19]   ;;  %s23297_s9 = sld [smem:[#allocation49_spill]] }
  0x76   : > { %s565_s24 = sshll.u32 %s21002_s13, 4  ;;  %s566_s24 = int_to_ptr.vmem [resolvable:$true] %s565_s24 }
  0x7b   : > { %s20585_s0 = scalar_lea.hbm %s23297_s9, 8192 }
  0x7c   : > { %p20586_p13 = scmp.ne.s32.totalorder %s23297_s9, %s20585_s0  ;;  %p20592_p5 = scmp.lt.u32.totalorder %s20585_s0, %s23297_s9 }
  0x7e   : > { %p20588_p0 = pnand %p20586_p13, %p21180_p8 }
  0x80   : > { %p20589_p2 = pneg %p20588_p0 }
  0x82   : > { %p20594_p7 = pnand %p20592_p5, %p20589_p2 }
  0x84   : > { %20597 = shalt.err (!%p20594_p7)
}
  0x85   : > { %s20598_s28 = scalar_lea.vmem %s566_s24, 8192  ;;  %p20606_p11 = scmp.lt.s32.totalorder %s566_s24, %s566_s24 }
  0x86   : > { %p20599_p9 = scmp.ne.s32.totalorder %s566_s24, %s20598_s28  ;;  %p20607_p12 = scmp.lt.s32.totalorder %s20598_s28, %s20598_s28 }
  0x88   : > { %p20601_p3 = pnand %p20599_p9, %p21180_p8  ;;  %p20608_p1 = por %p20607_p12, %p20606_p11 }
  0x8a   : > { %p20602_p10 = pneg %p20601_p3 }
  0x8c   : > { %p20609_p4 = pnand %p20608_p1, %p20602_p10 }
  0x8e   : > { %20612 = shalt.err (!%p20609_p4)
}
  0x8f   : > { %s21003_s4 = smov 8   ;;  %s23298_s5 = smov 128  }
  0x90   : > { %18313 = dma.hbm_to_vmem [thread:$0]  (!%p21164_p6), %s23297_s9, 8192, %s566_s24, [#allocation20], %s23298_s5, %s23298_s5, %s21003_s4  }
  0x91   : > { %s21004_s19 = smov [#allocation22]   ;;  %s23299_s11 = sld [smem:[#allocation50_spill]] }
  0x92   : > { %s589_s29 = sshll.u32 %s21004_s19, 4  ;;  %s590_s29 = int_to_ptr.vmem [resolvable:$true] %s589_s29 }
  0x97   : > { %s20613_s27 = scalar_lea.hbm %s23299_s11, 2048 }
  0x98   : > { %p20614_p1 = scmp.ne.s32.totalorder %s23299_s11, %s20613_s27  ;;  %p20620_p0 = scmp.lt.u32.totalorder %s20613_s27, %s23299_s11 }
  0x9a   : > { %p20616_p4 = pnand %p20614_p1, %p21180_p8 }
  0x9c   : > { %p20617_p13 = pneg %p20616_p4 }
  0x9e   : > { %p20622_p2 = pnand %p20620_p0, %p20617_p13 }
  0xa0   : > { %20625 = shalt.err (!%p20622_p2)
}
  0xa1   : > { %s20626_s24 = scalar_lea.vmem %s590_s29, 2048  ;;  %p20634_p3 = scmp.lt.s32.totalorder %s590_s29, %s590_s29 }
  0xa2   : > { %p20627_p5 = scmp.ne.s32.totalorder %s590_s29, %s20626_s24  ;;  %p20635_p10 = scmp.lt.s32.totalorder %s20626_s24, %s20626_s24 }
  0xa4   : > { %p20629_p7 = pnand %p20627_p5, %p21180_p8  ;;  %p20636_p11 = por %p20635_p10, %p20634_p3 }
  0xa6   : > { %p20630_p9 = pneg %p20629_p7 }
  0xa8   : > { %p20637_p12 = pnand %p20636_p11, %p20630_p9 }
  0xaa   : > { %20640 = shalt.err (!%p20637_p12)
}
  0xab   : > { %s21005_s4 = smov 64   ;;  %s21006_s5 = smov 4  }
  0xac   : > { %18319 = dma.hbm_to_vmem [thread:$0]  (!%p21164_p6), %s23299_s11, 2048, %s590_s29, [#allocation23], %s21005_s4, %s21005_s4, %s21006_s5  }
  0xad   : > { %s21007_s15 = smov [#allocation25]   ;;  %s23300_s14 = sld [smem:[#allocation52_spill]] }
  0xae   : > { %s617_s13 = sshll.u32 %s21007_s15, 4  ;;  %s618_s13 = int_to_ptr.vmem [resolvable:$true] %s617_s13 }
  0xb3   : > { %s20641_s18 = scalar_lea.hbm %s23300_s14, 16 }
  0xb4   : > { %p20642_p1 = scmp.ne.s32.totalorder %s23300_s14, %s20641_s18  ;;  %p20648_p0 = scmp.lt.u32.totalorder %s20641_s18, %s23300_s14 }
  0xb6   : > { %p20644_p4 = pnand %p20642_p1, %p21180_p8 }
  0xb8   : > { %p20645_p13 = pneg %p20644_p4 }
  0xba   : > { %p20650_p2 = pnand %p20648_p0, %p20645_p13 }
  0xbc   : > { %20653 = shalt.err (!%p20650_p2)
}
  0xbd   : > { %s20654_s29 = scalar_lea.vmem %s618_s13, 16  ;;  %s20661_s4 = scalar_lea.vmem %s618_s13, 32 }
  0xbe   : > { %p20655_p5 = scmp.ne.s32.totalorder %s618_s13, %s20654_s29  ;;  %p20662_p3 = scmp.lt.s32.totalorder %s618_s13, %s618_s13 }
  0xbf   : > { %p20663_p10 = scmp.lt.s32.totalorder %s20661_s4, %s20654_s29 }
  0xc0   : > { %p20657_p7 = pnand %p20655_p5, %p21180_p8 }
  0xc1   : > { %p20664_p11 = por %p20663_p10, %p20662_p3 }
  0xc2   : > { %p20658_p9 = pneg %p20657_p7 }
  0xc4   : > { %p20665_p12 = pnand %p20664_p11, %p20658_p9 }
  0xc6   : > { %20668 = shalt.err (!%p20665_p12)
}
  0xc7   : > { %18325 = dma.hbm_to_vmem [thread:$0]  (!%p21164_p6), %s23300_s14, 16, %s618_s13, [#allocation26]  }
  0xc8   : > { %s21308_s2 = sadd.s32 1, %s20993_s22   ;;  %s113_s19 = sadd.s32 1, %s20989_s1 }
  0xc9   : > { %23301 = sst [smem:[#allocation39_spill]] %s21308_s2  ;;  %s110_s15 = ssub.s32 %s20993_s22, %s21308_s2 }
  0xca   : > { %p111_p1 = scmp.eq.s32.totalorder %s110_s15, 0  ;;  %p120_p4 = scmp.ne.s32.totalorder %s20989_s1, %s20985_s21 }
  0xcb   : > { %p121_p13 = scmp.eq.s32.totalorder %s20993_s22, 0  ;;  %p126_p0 = scmp.ne.s32.totalorder %s20985_s21, %s20981_s20 }
  0xcc   : > { %s21319_s0 = scalar_select %p111_p1, %s20989_s1, %s113_s19  }
  0xcd   : > { %p122_p2 = por %p121_p13, %p120_p4  ;;  %p23303_p5 = scmp.eq.s32.totalorder %s21148_s23, 0 }
  0xce   : > { %23302 = sst [smem:[#allocation40_spill]] %s21319_s0  ;;  %p18351_p9 = scmp.lt.s32.totalorder %s20993_s22, 4 }
  0xcf   : > { %p21323_p7 = por %p23303_p5, %p126_p0  ;;  %s23259_s13 = sand.u32 1, %s20993_s22  }
  0xd0   : > { %s21330_s27 = sand.u32 1, %s20989_s1   ;;  %s17981_s28 = sshll.u32 %s20993_s22, 8 }
  0xd1   : > { %s23304_s18 = scalar_select %p21323_p7, 1, 0 }
  0xd2   : > { %s16011_s3 = sshll.u32 %s21330_s27, 13  ;;  %s23305_s4 = sld [smem:[#allocation44_spill]] }
  0xd3   : > { %s652_s20 = scalar_lea.vmem [#allocation10], %s16011_s3  ;;  %p21339_p3 = pnand %p18351_p9, %p122_p2 }
  0xd4   : > { %s659_s17 = sshll.u32 %s652_s20, 4  ;;  %s21347_s19 = scalar_lea.sflag [#allocation11], %s23259_s13  ;;  %s21343_s17 = int_to_ptr.vmem [resolvable:$true] %s659_s17 }
  0xd5   : > { %s23306_s15 = scalar_select %p21339_p3, 1, 0 }
  0xd6   : > { %p21353_p11 = pneg %p21339_p3 }
  0xd8   : > { %s21337_s5 = scalar_lea.hbm %s23305_s4, %s17981_s28  ;;  %s20674_s29 = scalar_lea.hbm %s23305_s4, 524288 }
  0xd9   : > { %s20669_s6 = scalar_lea.hbm %s21337_s5, 131072  ;;  %p20675_p4 = scmp.lt.u32.totalorder %s21337_s5, %s23305_s4 }
  0xda   : > { %p20670_p10 = scmp.ne.s32.totalorder %s21337_s5, %s20669_s6  ;;  %p20676_p13 = scmp.lt.u32.totalorder %s20674_s29, %s20669_s6 }
  0xdb   : > { %s23307_s28 = scalar_select %p21353_p11, 1, 0 }
  0xdc   : > { %p20672_p12 = pnand %p21353_p11, %p20670_p10  ;;  %p20677_p0 = por %p20676_p13, %p20675_p4 }
  0xdd   : > { %p20678_p2 = scmp.lt.u32.totalorder %s20669_s6, %s21337_s5 }
  0xde   : > { %p20673_p1 = pneg %p20672_p12 }
  0xdf   : > { %p20679_p5 = por %p20678_p2, %p20677_p0 }
  0xe1   : > { %p20680_p9 = pnand %p20679_p5, %p20673_p1 }
  0xe3   : > { %20683 = shalt.err (!%p20680_p9)
}
  0xe4   : > { %s20684_s13 = scalar_lea.vmem %s21343_s17, 131072  ;;  %s21008_s3 = smov [#allocation10]  }
  0xe5   : > { %p20685_p10 = scmp.ne.s32.totalorder %s21343_s17, %s20684_s13  ;;  %s20689_s24 = sshll.u32 %s21008_s3, 4  ;;  %s20690_s24 = int_to_ptr.vmem [resolvable:$false] %s20689_s24 }
  0xe6   : > { %s20691_s7 = scalar_lea.vmem %s20690_s24, 262144  ;;  %p20692_p6 = scmp.lt.s32.totalorder %s21343_s17, %s20690_s24 }
  0xe7   : > { %p20687_p12 = pnand %p20685_p10, %p21353_p11  ;;  %p20693_p8 = scmp.lt.s32.totalorder %s20691_s7, %s20684_s13 }
  0xe9   : > { %p20688_p7 = pneg %p20687_p12  ;;  %p20694_p4 = por %p20693_p8, %p20692_p6 }
  0xeb   : > { %p20695_p13 = pnand %p20694_p4, %p20688_p7 }
  0xed   : > { %20698 = shalt.err (!%p20695_p13)
}
  0xee   : > { %s21009_s6 = smov 1024   ;;  %s23308_s29 = smov 16  }
  0xef   : > { %s23309_s20 = smov 256   ;;  %s21010_s4 = smov [#allocation5]  }
  0xf0   : > { %18332 = dma.hbm_to_vmem [thread:$0]  (!%p21339_p3), %s21337_s5, 131072, %s21343_s17, %s21347_s19, %s21009_s6, %s23309_s20, %s23308_s29  }
  0xf1   : > { %s496_s9 = sshll.u32 %s21010_s4, 4  ;;  %s21011_s3 = smov [#allocation9]   ;;  %s497_s9 = int_to_ptr.vmem [resolvable:$true] %s496_s9 }
  0xf2   : > { %s520_s11 = sshll.u32 %s21011_s3, 4  ;;  %s23310_s7 = sld [smem:[#allocation41_spill]]  ;;  %s521_s11 = int_to_ptr.vmem [resolvable:$true] %s520_s11 }
  0xf3   : > { %p23311_p8 = scmp.ne.s32.totalorder %s23294_s25, 0 }
  0xf8   : > { %s20699_s14 = scalar_lea.hbm %s23310_s7, 128 }
  0xf9   : > { %p20700_p6 = scmp.ne.s32.totalorder %s23310_s7, %s20699_s14  ;;  %p20706_p0 = scmp.lt.u32.totalorder %s20699_s14, %s23310_s7 }
  0xfb   : > { %p20702_p7 = pnand %p20700_p6, %p23311_p8 }
  0xfd   : > { %p20703_p1 = pneg %p20702_p7 }
  0xff   : > { %p20708_p2 = pnand %p20706_p0, %p20703_p1 }
 0x101   : > { %20711 = shalt.err (!%p20708_p2)
}
 0x102   : > { %s20712_s4 = scalar_lea.vmem %s497_s9, 128  ;;  %p20720_p12 = scmp.lt.s32.totalorder %s497_s9, %s497_s9 }
 0x103   : > { %p20713_p5 = scmp.ne.s32.totalorder %s497_s9, %s20712_s4  ;;  %p20721_p4 = scmp.lt.s32.totalorder %s20712_s4, %s20712_s4 }
 0x105   : > { %p20715_p9 = pnand %p20713_p5, %p23311_p8  ;;  %p20722_p13 = por %p20721_p4, %p20720_p12 }
 0x107   : > { %p20716_p10 = pneg %p20715_p9 }
 0x109   : > { %p20723_p3 = pnand %p20722_p13, %p20716_p10 }
 0x10b   : > { %20726 = shalt.err (!%p20723_p3)
}
 0x10c   : > { %p23312_p6 = scmp.ne.s32.totalorder %s23292_s26, 0  ;;  %s23313_s2 = sld [smem:[#allocation43_spill]] }
 0x10e   : > { %18295 = dma.hbm_to_vmem [thread:$0]  (!%p23312_p6), %s23310_s7, 128, %s497_s9, [#allocation6]  }
 0x112   : > { %s20727_s5 = scalar_lea.hbm %s23313_s2, 512 }
 0x113   : > { %p20728_p7 = scmp.ne.s32.totalorder %s23313_s2, %s20727_s5  ;;  %p20734_p3 = scmp.lt.u32.totalorder %s20727_s5, %s23313_s2 }
 0x115   : > { %p20730_p1 = pnand %p20728_p7, %p23311_p8 }
 0x117   : > { %p20731_p0 = pneg %p20730_p1 }
 0x119   : > { %p20736_p2 = pnand %p20734_p3, %p20731_p0 }
 0x11b   : > { %20739 = shalt.err (!%p20736_p2)
}
 0x11c   : > { %s20740_s3 = scalar_lea.vmem %s521_s11, 512  ;;  %p20748_p12 = scmp.lt.s32.totalorder %s521_s11, %s521_s11 }
 0x11d   : > { %p20741_p5 = scmp.ne.s32.totalorder %s521_s11, %s20740_s3  ;;  %p20749_p4 = scmp.lt.s32.totalorder %s20740_s3, %s20740_s3 }
 0x11f   : > { %p20743_p9 = pnand %p20741_p5, %p23311_p8  ;;  %p20750_p13 = por %p20749_p4, %p20748_p12 }
 0x121   : > { %p20744_p10 = pneg %p20743_p9 }
 0x123   : > { %p20751_p11 = pnand %p20750_p13, %p20744_p10 }
 0x125   : > { %20754 = shalt.err (!%p20751_p11)
}
 0x126   : > { %18301 = dma.hbm_to_vmem [thread:$0]  (!%p23312_p6), %s23313_s2, 512, %s521_s11, [#allocation8]  }
 0x127   : > { %s21012_s13 = smov [#allocation18]   ;;  %s21013_s30 = smov [#allocation21]  }
 0x128   : > { %s555_s4 = sshll.u32 %s21012_s13, 4  ;;  %s579_s0 = sshll.u32 %s21013_s30, 4  ;;  %s556_s4 = int_to_ptr.vmem [resolvable:$true] %s555_s4  ;;  %s580_s0 = int_to_ptr.vmem [resolvable:$true] %s579_s0 }
 0x129   : > { %s20755_s5 = scalar_lea.hbm %s23232_s8, 64 }
 0x12a   : > { %p20756_p11 = scmp.ne.s32.totalorder %s23232_s8, %s20755_s5  ;;  %p20762_p0 = scmp.lt.u32.totalorder %s20755_s5, %s23232_s8 }
 0x12c   : > { %p20758_p7 = pnand %p20756_p11, %p23311_p8 }
 0x12e   : > { %p20759_p1 = pneg %p20758_p7 }
 0x130   : > { %p20764_p3 = pnand %p20762_p0, %p20759_p1 }
 0x132   : > { %20767 = shalt.err (!%p20764_p3)
}
 0x133   : > { %s20768_s11 = scalar_lea.vmem %s556_s4, 64  ;;  %p20776_p10 = scmp.lt.s32.totalorder %s556_s4, %s556_s4 }
 0x134   : > { %p20769_p2 = scmp.ne.s32.totalorder %s556_s4, %s20768_s11  ;;  %p20777_p12 = scmp.lt.s32.totalorder %s20768_s11, %s20768_s11 }
 0x136   : > { %p20771_p5 = pnand %p20769_p2, %p23311_p8  ;;  %p20778_p4 = por %p20777_p12, %p20776_p10 }
 0x138   : > { %p20772_p9 = pneg %p20771_p5 }
 0x13a   : > { %p20779_p13 = pnand %p20778_p4, %p20772_p9 }
 0x13c   : > { %20782 = shalt.err (!%p20779_p13)
}
 0x13d   : > { %18310 = dma.hbm_to_vmem [thread:$0]  (!%p23312_p6), %s23232_s8, 64, %s556_s4, [#allocation17]  }
 0x13e   : > { %s20783_s30 = scalar_lea.hbm %s23234_s10, 32 }
 0x13f   : > { %p20784_p11 = scmp.ne.s32.totalorder %s23234_s10, %s20783_s30  ;;  %p20790_p0 = scmp.lt.u32.totalorder %s20783_s30, %s23234_s10 }
 0x141   : > { %p20786_p7 = pnand %p20784_p11, %p23311_p8 }
 0x143   : > { %p20787_p1 = pneg %p20786_p7 }
 0x145   : > { %p20792_p3 = pnand %p20790_p0, %p20787_p1 }
 0x147   : > { %20795 = shalt.err (!%p20792_p3)
}
 0x148   : > { %s20796_s6 = scalar_lea.vmem %s580_s0, 32  ;;  %p20804_p10 = scmp.lt.s32.totalorder %s580_s0, %s580_s0 }
 0x149   : > { %p20797_p2 = scmp.ne.s32.totalorder %s580_s0, %s20796_s6  ;;  %p20805_p12 = scmp.lt.s32.totalorder %s20796_s6, %s20796_s6 }
 0x14b   : > { %p20799_p5 = pnand %p20797_p2, %p23311_p8  ;;  %p20806_p4 = por %p20805_p12, %p20804_p10 }
 0x14d   : > { %p20800_p9 = pneg %p20799_p5 }
 0x14f   : > { %p20807_p13 = pnand %p20806_p4, %p20800_p9 }
 0x151   : > { %20810 = shalt.err (!%p20807_p13)
}
 0x152   : > { %18316 = dma.hbm_to_vmem [thread:$0]  (!%p23312_p6), %s23234_s10, 32, %s580_s0, [#allocation20]  }
 0x153   : > { %s21014_s20 = smov [#allocation24]   ;;  %s21015_s3 = smov [#allocation27]  }
 0x154   : > { %s603_s11 = sshll.u32 %s21014_s20, 4  ;;  %s631_s9 = sshll.u32 %s21015_s3, 4  ;;  %s604_s11 = int_to_ptr.vmem [resolvable:$true] %s603_s11  ;;  %s632_s9 = int_to_ptr.vmem [resolvable:$true] %s631_s9 }
 0x155   : > { %s20811_s30 = scalar_lea.hbm %s23236_s12, 16 }
 0x156   : > { %p20812_p11 = scmp.ne.s32.totalorder %s23236_s12, %s20811_s30  ;;  %p20818_p0 = scmp.lt.u32.totalorder %s20811_s30, %s23236_s12 }
 0x158   : > { %p20814_p7 = pnand %p20812_p11, %p23311_p8 }
 0x15a   : > { %p20815_p1 = pneg %p20814_p7 }
 0x15c   : > { %p20820_p3 = pnand %p20818_p0, %p20815_p1 }
 0x15e   : > { %20823 = shalt.err (!%p20820_p3)
}
 0x15f   : > { %s20824_s0 = scalar_lea.vmem %s604_s11, 16  ;;  %s20831_s6 = scalar_lea.vmem %s604_s11, 32 }
 0x160   : > { %p20825_p2 = scmp.ne.s32.totalorder %s604_s11, %s20824_s0  ;;  %p20832_p10 = scmp.lt.s32.totalorder %s604_s11, %s604_s11 }
 0x161   : > { %p20833_p12 = scmp.lt.s32.totalorder %s20831_s6, %s20824_s0 }
 0x162   : > { %p20827_p5 = pnand %p20825_p2, %p23311_p8 }
 0x163   : > { %p20834_p4 = por %p20833_p12, %p20832_p10 }
 0x164   : > { %p20828_p9 = pneg %p20827_p5 }
 0x166   : > { %p20835_p13 = pnand %p20834_p4, %p20828_p9 }
 0x168   : > { %20838 = shalt.err (!%p20835_p13)
}
 0x169   : > { %18322 = dma.hbm_to_vmem [thread:$0]  (!%p23312_p6), %s23236_s12, 16, %s604_s11, [#allocation23]  }
 0x16a   : > { %s16014_s20 = sshll.u32 %s21330_s27, 2  ;;  %s20839_s13 = scalar_lea.hbm %s23240_s16, 16 }
 0x16b   : > { %p20840_p11 = scmp.ne.s32.totalorder %s23240_s16, %s20839_s13  ;;  %p20846_p0 = scmp.lt.u32.totalorder %s20839_s13, %s23240_s16 }
 0x16d   : > { %p20842_p7 = pnand %p20840_p11, %p23311_p8 }
 0x16f   : > { %p20843_p1 = pneg %p20842_p7 }
 0x171   : > { %p20848_p3 = pnand %p20846_p0, %p20843_p1 }
 0x173   : > { %20851 = shalt.err (!%p20848_p3)
}
 0x174   : > { %s20852_s11 = scalar_lea.vmem %s632_s9, 16  ;;  %s20859_s17 = scalar_lea.vmem %s632_s9, 32 }
 0x175   : > { %p20853_p2 = scmp.ne.s32.totalorder %s632_s9, %s20852_s11  ;;  %p20860_p10 = scmp.lt.s32.totalorder %s632_s9, %s632_s9 }
 0x176   : > { %p20861_p12 = scmp.lt.s32.totalorder %s20859_s17, %s20852_s11 }
 0x177   : > { %p20855_p5 = pnand %p20853_p2, %p23311_p8 }
 0x178   : > { %p20862_p4 = por %p20861_p12, %p20860_p10 }
 0x179   : > { %p20856_p9 = pneg %p20855_p5 }
 0x17b   : > { %p20863_p13 = pnand %p20862_p4, %p20856_p9 }
 0x17d   : > { %20866 = shalt.err (!%p20863_p13)
}
 0x17e   : > { %18328 = dma.hbm_to_vmem [thread:$0]  (!%p23312_p6), %s23240_s16, 16, %s632_s9, [#allocation26]  }
 0x17f   : > { %s17982_s4 = sshll.u32 %s20993_s22, 6  ;;  %s23314_s25 = sld [smem:[#allocation45_spill]] }
 0x180   : > { %s673_s13 = scalar_lea.vmem [#allocation12], %s16014_s20  ;;  %p23315_p11 = scmp.ne.s32.totalorder %s23307_s28, 0 }
 0x181   : > { %s681_s30 = sshll.u32 %s673_s13, 4  ;;  %s682_s30 = int_to_ptr.vmem [resolvable:$true] %s681_s30 }
 0x185   : > { %s21492_s24 = scalar_lea.hbm %s23314_s25, %s17982_s4  ;;  %s20872_s1 = scalar_lea.hbm %s23314_s25, 256 }
 0x186   : > { %s20867_s26 = scalar_lea.hbm %s21492_s24, 64  ;;  %p20873_p6 = scmp.lt.u32.totalorder %s21492_s24, %s23314_s25 }
 0x187   : > { %p20868_p8 = scmp.ne.s32.totalorder %s21492_s24, %s20867_s26  ;;  %p20874_p0 = scmp.lt.u32.totalorder %s20872_s1, %s20867_s26 }
 0x188   : > { %p20876_p2 = scmp.lt.u32.totalorder %s20867_s26, %s21492_s24 }
 0x189   : > { %p20870_p7 = pnand %p20868_p8, %p23315_p11  ;;  %p20875_p3 = por %p20874_p0, %p20873_p6 }
 0x18b   : > { %p20871_p1 = pneg %p20870_p7  ;;  %p20877_p5 = por %p20876_p2, %p20875_p3 }
 0x18d   : > { %p20878_p9 = pnand %p20877_p5, %p20871_p1 }
 0x18f   : > { %20881 = shalt.err (!%p20878_p9)
}
 0x190   : > { %s20882_s20 = scalar_lea.vmem %s682_s30, 64  ;;  %s21016_s17 = smov [#allocation12]  }
 0x191   : > { %p20883_p10 = scmp.ne.s32.totalorder %s682_s30, %s20882_s20  ;;  %s20887_s0 = sshll.u32 %s21016_s17, 4  ;;  %s20888_s0 = int_to_ptr.vmem [resolvable:$false] %s20887_s0 }
 0x192   : > { %s20889_s6 = scalar_lea.vmem %s20888_s0, 128  ;;  %p20890_p13 = scmp.lt.s32.totalorder %s682_s30, %s20888_s0 }
 0x193   : > { %p20885_p12 = pnand %p20883_p10, %p23315_p11  ;;  %p20891_p8 = scmp.lt.s32.totalorder %s20889_s6, %s20882_s20 }
 0x195   : > { %p20886_p4 = pneg %p20885_p12  ;;  %p20892_p7 = por %p20891_p8, %p20890_p13 }
 0x197   : > { %p20893_p0 = pnand %p20892_p7, %p20886_p4 }
 0x199   : > { %20896 = shalt.err (!%p20893_p0)
}
 0x19a   : > { %p23316_p6 = scmp.ne.s32.totalorder %s23306_s15, 0  ;;  %s16017_s4 = sshll.u32 %s21330_s27, 11 }
 0x19b   : > { %s17984_s29 = sshll.u32 %s20993_s22, 15  ;;  %s23317_s26 = sld [smem:[#allocation46_spill]] }
 0x19c   : > { %18335 = dma.hbm_to_vmem [thread:$0]  (!%p23316_p6), %s21492_s24, 64, %s682_s30, %s21347_s19  }
 0x19d   : > { %s692_s9 = scalar_lea.vmem [#allocation13], %s16017_s4  ;;  %s23318_s5 = sand.u32 1, %s20993_s22  }
 0x19e   : > { %s700_s1 = sshll.u32 %s692_s9, 4  ;;  %s21523_s11 = scalar_lea.sflag [#allocation14], %s23318_s5  ;;  %s21519_s1 = int_to_ptr.vmem [resolvable:$true] %s700_s1 }
 0x1a1   : > { %s21517_s14 = scalar_lea.hbm %s23317_s26, %s17984_s29  ;;  %s20902_s24 = scalar_lea.hbm %s23317_s26, 131072 }
 0x1a2   : > { %s20897_s20 = scalar_lea.hbm %s21517_s14, 32768  ;;  %p20903_p5 = scmp.lt.u32.totalorder %s21517_s14, %s23317_s26 }
 0x1a3   : > { %p20898_p1 = scmp.ne.s32.totalorder %s21517_s14, %s20897_s20  ;;  %p20904_p9 = scmp.lt.u32.totalorder %s20902_s24, %s20897_s20 }
 0x1a4   : > { %p20906_p12 = scmp.lt.u32.totalorder %s20897_s20, %s21517_s14 }
 0x1a5   : > { %p20900_p3 = pnand %p20898_p1, %p23315_p11  ;;  %p20905_p10 = por %p20904_p9, %p20903_p5 }
 0x1a7   : > { %p20901_p2 = pneg %p20900_p3  ;;  %p20907_p4 = por %p20906_p12, %p20905_p10 }
 0x1a9   : > { %p20908_p13 = pnand %p20907_p4, %p20901_p2 }
 0x1ab   : > { %20911 = shalt.err (!%p20908_p13)
}
 0x1ac   : > { %s20912_s22 = scalar_lea.vmem %s21519_s1, 32768  ;;  %s21017_s0 = smov [#allocation13]  }
 0x1ad   : > { %p20913_p8 = scmp.ne.s32.totalorder %s21519_s1, %s20912_s22  ;;  %s20917_s6 = sshll.u32 %s21017_s0, 4  ;;  %s20918_s6 = int_to_ptr.vmem [resolvable:$false] %s20917_s6 }
 0x1ae   : > { %s20919_s4 = scalar_lea.vmem %s20918_s6, 65536  ;;  %p20920_p1 = scmp.lt.s32.totalorder %s21519_s1, %s20918_s6 }
 0x1af   : > { %p20915_p7 = pnand %p20913_p8, %p23315_p11  ;;  %p20921_p3 = scmp.lt.s32.totalorder %s20919_s4, %s20912_s22 }
 0x1b1   : > { %p20916_p0 = pneg %p20915_p7  ;;  %p20922_p5 = por %p20921_p3, %p20920_p1 }
 0x1b3   : > { %p20923_p9 = pnand %p20922_p5, %p20916_p0 }
 0x1b5   : > { %20926 = shalt.err (!%p20923_p9)
}
 0x1b6   : > { %s21018_s29 = smov 512   ;;  %s21019_s3 = smov 32  }
 0x1b7   : > { %18338 = dma.hbm_to_vmem [thread:$0]  (!%p23316_p6), %s21517_s14, 32768, %s21519_s1, %s21523_s11, %s21018_s29, %s21018_s29, %s21019_s3  }
 0x1b8   : > { %s23319_s28 = sld [smem:[#allocation38_spill]] }
 0x1be   : > { %p23320_p11 = scmp.ne.s32.totalorder %s23319_s28, 0 }
 0x1bf   : > { %p23321_p2 = scmp.eq.s32.totalorder (!%p23320_p11), %s21148_s23, 0 }
 0x1c0   : > { %712 = sbr.rel (%p23320_p11) target bundleno = 4203 (0x106b), region = 96 }
 0x1c7   : > { %20944 = dma.done.wait (%p23321_p2), [#allocation6], 128   ;;  %p23322_p10 = pmov %p23321_p2 }
 0x1c8   : > { %p23323_p12 = pmov %p23321_p2 }
 0x1c9   : > { %20946 = vsyncadd (%p23322_p10), [#allocation6], 4294967168 }
 0x1ca   : > { %20948 = dma.done.wait (%p23323_p12), [#allocation8], 33280   ;;  %p23324_p4 = pmov %p23321_p2 }
 0x1cb   : > { %s726_s15 = sand.u32 1, %s21148_s23   ;;  %s728_s13 = sand.u32 1, %s20985_s21  }
 0x1cc   : > { %20950 = vsyncadd (%p23324_p4), [#allocation8], 4294934016  ;;  %s16025_s14 = sshll.u32 %s728_s13, 13  ;;  %s727_s9 = scalar_lea.sflag [#allocation11], %s726_s15 }
 0x1cd   : > { %s21559_s1 = scalar_lea.vmem [#allocation10], %s16025_s14  ;;  %p23325_p6 = scmp.ne.s32.totalorder %s23304_s18, 0 }
 0x1cf   : > { %20952 = dma.done.wait (%p23325_p6), %s727_s9, 131136  }
 0x1d0   : > { %20954 = vsyncadd (%p23325_p6), %s727_s9, 4294836160  ;;  %s16026_s5 = sshll.u32 %s728_s13, 2  ;;  %s16027_s11 = sshll.u32 %s728_s13, 11 }
 0x1d1   : > { %s21565_s20 = scalar_lea.vmem [#allocation12], %s16026_s5  ;;  %s745_s27 = scalar_lea.sflag [#allocation14], %s726_s15 }
 0x1d2   : > { %s21567_s19 = scalar_lea.vmem [#allocation13], %s16027_s11 }
 0x1d3   : > { %20956 = dma.done.wait (%p23325_p6), %s745_s27, 32768  }
 0x1d4   : > { %20958 = vsyncadd (%p23325_p6), %s745_s27, 4294934528  ;;  %p23326_p13 = pmov %p23321_p2 }
 0x1d5   : > { %p23327_p8 = pmov %p23321_p2 }
 0x1d6   : > { %20960 = dma.done.wait (%p23326_p13), [#allocation14], 128  }
 0x1d7   : > { %20962 = vsyncadd (%p23327_p8), [#allocation14], 4294967168  ;;  %p23328_p7 = pmov %p23321_p2 }
 0x1d8   : > { %p23329_p0 = pmov %p23321_p2 }
 0x1d9   : > { %20964 = dma.done.wait (%p23328_p7), [#allocation17], 32832  }
 0x1da   : > { %20966 = vsyncadd (%p23329_p0), [#allocation17], 4294934464  ;;  %p23330_p1 = pmov %p23329_p0 }
 0x1db   : > { %p23331_p3 = pmov %p23329_p0 }
 0x1dc   : > { %20968 = dma.done.wait (%p23330_p1), [#allocation20], 8224  }
 0x1dd   : > { %20970 = vsyncadd (%p23331_p3), [#allocation20], 4294959072  ;;  %p23332_p5 = pmov %p23329_p0 }
 0x1de   : > { %p23333_p9 = pmov %p23329_p0 }
 0x1df   : > { %20972 = dma.done.wait (%p23332_p5), [#allocation23], 2064  }
 0x1e0   : > { %20974 = vsyncadd (%p23333_p9), [#allocation23], 4294965232  ;;  %p23334_p11 = pmov %p23329_p0 }
 0x1e1   : > { %p23335_p2 = pmov %p23329_p0 }
 0x1e2   : > { %20976 = dma.done.wait (%p23334_p11), [#allocation26], 32  }
 0x1e3   : > { %20978 = vsyncadd (%p23335_p2), [#allocation26], 4294967264  ;;  %p23336_p10 = scmp.ne.s32.totalorder %s21148_s23, 0 }
 0x1e4   : > { %v854_v1 = vld [vmem:[#allocation7] sm:$0xff] (!%p23336_p10)  ;;  %v855_v3 = vld [vmem:[#allocation7 + $0x8] sm:$0xff] (!%p23336_p10)  ;;  %v21020_v9 = vmov (!%p23336_p10), 0   ;;  %v856_v0 = vld [vmem:[#allocation7 + $0x10] sm:$0xff] (!%p23336_p10) }
 0x1e5   : > { %851 = sbr.rel (%p23336_p10) target bundleno = 964 (0x3c4), region = 160  ;;  %v870_v2 = vld [vmem:[#allocation7 + $0x80] sm:$0xff] (!%p23336_p10)  ;;  %v871_v5 = vld [vmem:[#allocation7 + $0x88] sm:$0xff] (!%p23336_p10)  ;;  %2590 = vmatprep.mubr.bf16.mxu0 (!%p23336_p10), %v21020_v9  ;;  %2631 = vmatprep.mubr.bf16.mxu1 (!%p23336_p10), %v21020_v9 }
 0x1e6   : > { %v16039_v4 = vcombine.high (!%p23336_p10), %v854_v1, %v870_v2  ;;  %v16038_v6 = vcombine.low (!%p23336_p10), %v854_v1, %v870_v2  ;;  %v886_v7 = vld [vmem:[#allocation7 + $0x100] sm:$0xff] (!%p23336_p10)  ;;  %v16041_v10 = vcombine.high (!%p23336_p10), %v855_v3, %v871_v5  ;;  %v16040_v11 = vcombine.low (!%p23336_p10), %v855_v3, %v871_v5  ;;  %v887_v13 = vld [vmem:[#allocation7 + $0x108] sm:$0xff] (!%p23336_p10)  ;;  %v872_v1 = vld [vmem:[#allocation7 + $0x90] sm:$0xff] (!%p23336_p10) }
 0x1e7   : > { %v902_v8 = vld [vmem:[#allocation7 + $0x180] sm:$0xff] (!%p23336_p10)  ;;  %v903_v14 = vld [vmem:[#allocation7 + $0x188] sm:$0xff] (!%p23336_p10)  ;;  %v857_v2 = vld [vmem:[#allocation7 + $0x18] sm:$0xff] (!%p23336_p10) }
 0x1e8   : > { %v16071_v12 = vcombine.high (!%p23336_p10), %v886_v7, %v902_v8  ;;  %v918_v15 = vld [vmem:[#allocation7 + $0x200] sm:$0xff] (!%p23336_p10)  ;;  %2558 = vmatprep.subr.bf16.mxu0 (!%p23336_p10), %v16039_v4  ;;  %v16073_v16 = vcombine.high (!%p23336_p10), %v887_v13, %v903_v14  ;;  %v919_v18 = vld [vmem:[#allocation7 + $0x208] sm:$0xff] (!%p23336_p10)  ;;  %2599 = vmatprep.subr.bf16.mxu1 (!%p23336_p10), %v16041_v10  ;;  %v16070_v20 = vcombine.low (!%p23336_p10), %v886_v7, %v902_v8  ;;  %v873_v3 = vld [vmem:[#allocation7 + $0x98] sm:$0xff] (!%p23336_p10) }
 0x1e9   : > { %v934_v17 = vld [vmem:[#allocation7 + $0x280] sm:$0xff] (!%p23336_p10)  ;;  %v935_v19 = vld [vmem:[#allocation7 + $0x288] sm:$0xff] (!%p23336_p10)  ;;  %2559 = vmatpush1.bf16.msra.mxu0 (!%p23336_p10), %v16038_v6  ;;  %2600 = vmatpush1.bf16.msra.mxu1 (!%p23336_p10), %v16040_v11  ;;  %v16072_v21 = vcombine.low (!%p23336_p10), %v887_v13, %v903_v14  ;;  %v852_v5 = vld [vmem:[#allocation5] sm:$0xff] (!%p23336_p10)  ;;  %v16043_v7 = vcombine.high (!%p23336_p10), %v856_v0, %v872_v1  ;;  %v16045_v8 = vcombine.high (!%p23336_p10), %v857_v2, %v873_v3 }
 0x1ea   : > { %2560 = vmatprep.subr.bf16.mxu0 (!%p23336_p10), %v16071_v12  ;;  %v16103_v22 = vcombine.high (!%p23336_p10), %v918_v15, %v934_v17  ;;  %2601 = vmatprep.subr.bf16.mxu1 (!%p23336_p10), %v16073_v16  ;;  %v16105_v23 = vcombine.high (!%p23336_p10), %v919_v18, %v935_v19  ;;  %v950_v24 = vld [vmem:[#allocation7 + $0x300] sm:$0xff] (!%p23336_p10)  ;;  %v951_v26 = vld [vmem:[#allocation7 + $0x308] sm:$0xff] (!%p23336_p10)  ;;  %v16102_v28 = vcombine.low (!%p23336_p10), %v918_v15, %v934_v17  ;;  %v888_v10 = vld [vmem:[#allocation7 + $0x110] sm:$0xff] (!%p23336_p10) }
 0x1eb   : > { %v966_v25 = vld [vmem:[#allocation7 + $0x380] sm:$0xff] (!%p23336_p10)  ;;  %v967_v27 = vld [vmem:[#allocation7 + $0x388] sm:$0xff] (!%p23336_p10)  ;;  %v16104_v29 = vcombine.low (!%p23336_p10), %v919_v18, %v935_v19  ;;  %v904_v11 = vld [vmem:[#allocation7 + $0x190] sm:$0xff] (!%p23336_p10)  ;;  %v21597_v12 = vpack.c.bf16 (!%p23336_p10), %v852_v5, %v852_v5  ;;  %v16042_v15 = vcombine.low (!%p23336_p10), %v856_v0, %v872_v1  ;;  %v16044_v16 = vcombine.low (!%p23336_p10), %v857_v2, %v873_v3 }
 0x1ec   : > { %v16135_v30 = vcombine.high %v950_v24, %v966_v25  ;;  %v16137_v31 = vcombine.high %v951_v26, %v967_v27  ;;  %v982_v32 = vld [vmem:[#allocation7 + $0x400] sm:$0xff]  ;;  %v983_v34 = vld [vmem:[#allocation7 + $0x408] sm:$0xff]  ;;  %v16134_v36 = vcombine.low %v950_v24, %v966_v25  ;;  %v16136_v37 = vcombine.low %v951_v26, %v967_v27  ;;  %v889_v13 = vld [vmem:[#allocation7 + $0x118] sm:$0xff] }
 0x1ed   : > { %2561 = vmatpush1.bf16.msra.mxu0 %v16070_v20  ;;  %2602 = vmatpush1.bf16.msra.mxu1 %v16072_v21  ;;  %v998_v33 = vld [vmem:[#allocation7 + $0x480] sm:$0xff]  ;;  %v999_v35 = vld [vmem:[#allocation7 + $0x488] sm:$0xff]  ;;  %v905_v14 = vld [vmem:[#allocation7 + $0x198] sm:$0xff]  ;;  %v16075_v17 = vcombine.high %v888_v10, %v904_v11 }
 0x1ee   : > { %2562 = vmatprep.subr.bf16.mxu0 %v16103_v22  ;;  %2603 = vmatprep.subr.bf16.mxu1 %v16105_v23  ;;  %v16167_v38 = vcombine.high %v982_v32, %v998_v33  ;;  %v16169_v39 = vcombine.high %v983_v34, %v999_v35  ;;  %v1014_v40 = vld [vmem:[#allocation7 + $0x500] sm:$0xff]  ;;  %v1015_v42 = vld [vmem:[#allocation7 + $0x508] sm:$0xff]  ;;  %v16166_v44 = vcombine.low %v982_v32, %v998_v33  ;;  %v920_v19 = vld [vmem:[#allocation7 + $0x210] sm:$0xff] }
 0x1ef   : > { %v1030_v41 = vld [vmem:[#allocation7 + $0x580] sm:$0xff]  ;;  %v1031_v43 = vld [vmem:[#allocation7 + $0x588] sm:$0xff]  ;;  %v16168_v45 = vcombine.low %v983_v34, %v999_v35  ;;  %v16077_v18 = vcombine.high %v889_v13, %v905_v14  ;;  %v936_v20 = vld [vmem:[#allocation7 + $0x290] sm:$0xff]  ;;  %v16074_v23 = vcombine.low %v888_v10, %v904_v11  ;;  %v16076_v24 = vcombine.low %v889_v13, %v905_v14 }
 0x1f0   : > { %v16199_v46 = vcombine.high %v1014_v40, %v1030_v41  ;;  %v16201_v47 = vcombine.high %v1015_v42, %v1031_v43  ;;  %v1046_v48 = vld [vmem:[#allocation7 + $0x600] sm:$0xff]  ;;  %v1047_v50 = vld [vmem:[#allocation7 + $0x608] sm:$0xff]  ;;  %v16198_v52 = vcombine.low %v1014_v40, %v1030_v41  ;;  %v16200_v53 = vcombine.low %v1015_v42, %v1031_v43  ;;  %v921_v21 = vld [vmem:[#allocation7 + $0x218] sm:$0xff] }
 0x1f1   : > { %2563 = vmatpush1.bf16.msra.mxu0 %v16102_v28  ;;  %2604 = vmatpush1.bf16.msra.mxu1 %v16104_v29  ;;  %v1062_v49 = vld [vmem:[#allocation7 + $0x680] sm:$0xff]  ;;  %v1063_v51 = vld [vmem:[#allocation7 + $0x688] sm:$0xff]  ;;  %v937_v22 = vld [vmem:[#allocation7 + $0x298] sm:$0xff]  ;;  %v16107_v25 = vcombine.high %v920_v19, %v936_v20 }
 0x1f2   : > { %2564 = vmatprep.subr.bf16.mxu0 %v16135_v30  ;;  %2605 = vmatprep.subr.bf16.mxu1 %v16137_v31  ;;  %v16231_v54 = vcombine.high %v1046_v48, %v1062_v49  ;;  %v16233_v55 = vcombine.high %v1047_v50, %v1063_v51  ;;  %v1078_v56 = vld [vmem:[#allocation7 + $0x700] sm:$0xff]  ;;  %v1079_v58 = vld [vmem:[#allocation7 + $0x708] sm:$0xff]  ;;  %v16230_v60 = vcombine.low %v1046_v48, %v1062_v49  ;;  %v952_v27 = vld [vmem:[#allocation7 + $0x310] sm:$0xff] }
 0x1f3   : > { %v1094_v57 = vld [vmem:[#allocation7 + $0x780] sm:$0xff]  ;;  %v1095_v59 = vld [vmem:[#allocation7 + $0x788] sm:$0xff]  ;;  %v16232_v61 = vcombine.low %v1047_v50, %v1063_v51  ;;  %v16109_v26 = vcombine.high %v921_v21, %v937_v22  ;;  %v968_v28 = vld [vmem:[#allocation7 + $0x390] sm:$0xff]  ;;  %v16106_v31 = vcombine.low %v920_v19, %v936_v20  ;;  %v16108_v32 = vcombine.low %v921_v21, %v937_v22 }
 0x1f4   : > { %v16263_v62 = vcombine.high %v1078_v56, %v1094_v57  ;;  %v16265_v63 = vcombine.high %v1079_v58, %v1095_v59  ;;  %v16262_v4 = vcombine.low %v1078_v56, %v1094_v57  ;;  %v16264_v6 = vcombine.low %v1079_v58, %v1095_v59  ;;  %v953_v29 = vld [vmem:[#allocation7 + $0x318] sm:$0xff]  ;;  %v984_v35 = vld [vmem:[#allocation7 + $0x410] sm:$0xff]  ;;  %v858_v3 = vld [vmem:[#allocation7 + $0x20] sm:$0xff] }
 0x1f5   : > { %2565 = vmatpush1.bf16.msra.mxu0 %v16134_v36  ;;  %2606 = vmatpush1.bf16.msra.mxu1 %v16136_v37  ;;  %v969_v30 = vld [vmem:[#allocation7 + $0x398] sm:$0xff]  ;;  %v16139_v33 = vcombine.high %v952_v27, %v968_v28  ;;  %v1000_v36 = vld [vmem:[#allocation7 + $0x490] sm:$0xff]  ;;  %v859_v5 = vld [vmem:[#allocation7 + $0x28] sm:$0xff] }
 0x1f6   : > { %2566 = vmatprep.subr.bf16.mxu0 %v16167_v38  ;;  %2607 = vmatprep.subr.bf16.mxu1 %v16169_v39  ;;  %v16141_v34 = vcombine.high %v953_v29, %v969_v30  ;;  %v985_v37 = vld [vmem:[#allocation7 + $0x418] sm:$0xff]  ;;  %v16138_v39 = vcombine.low %v952_v27, %v968_v28  ;;  %v16140_v40 = vcombine.low %v953_v29, %v969_v30  ;;  %v1016_v43 = vld [vmem:[#allocation7 + $0x510] sm:$0xff]  ;;  %v890_v13 = vld [vmem:[#allocation7 + $0x120] sm:$0xff] }
 0x1f7   : > { %v1001_v38 = vld [vmem:[#allocation7 + $0x498] sm:$0xff]  ;;  %v16171_v41 = vcombine.high %v984_v35, %v1000_v36  ;;  %v1048_v51 = vld [vmem:[#allocation7 + $0x610] sm:$0xff]  ;;  %v906_v14 = vld [vmem:[#allocation7 + $0x1a0] sm:$0xff] }
 0x1f8   : > { %v16173_v42 = vcombine.high %v985_v37, %v1001_v38  ;;  %v16172_v48 = vcombine.low %v985_v37, %v1001_v38  ;;  %v1080_v59 = vld [vmem:[#allocation7 + $0x710] sm:$0xff]  ;;  %v16079_v19 = vcombine.high %v890_v13, %v906_v14  ;;  %v922_v21 = vld [vmem:[#allocation7 + $0x220] sm:$0xff] }
 0x1f9   : > { %2567 = vmatpush1.bf16.msra.mxu0 %v16166_v44  ;;  %2608 = vmatpush1.bf16.msra.mxu1 %v16168_v45  ;;  %v1032_v44 = vld [vmem:[#allocation7 + $0x590] sm:$0xff]  ;;  %v1017_v45 = vld [vmem:[#allocation7 + $0x518] sm:$0xff]  ;;  %v938_v22 = vld [vmem:[#allocation7 + $0x2a0] sm:$0xff] }
 0x1fa   : > { %2568 = vmatprep.subr.bf16.mxu0 %v16199_v46  ;;  %2609 = vmatprep.subr.bf16.mxu1 %v16201_v47  ;;  %v1033_v46 = vld [vmem:[#allocation7 + $0x598] sm:$0xff]  ;;  %v16170_v47 = vcombine.low %v984_v35, %v1000_v36  ;;  %v16203_v49 = vcombine.high %v1016_v43, %v1032_v44  ;;  %v16111_v27 = vcombine.high %v922_v21, %v938_v22  ;;  %v954_v29 = vld [vmem:[#allocation7 + $0x320] sm:$0xff] }
 0x1fb   : > { %v16205_v50 = vcombine.high %v1017_v45, %v1033_v46  ;;  %v16204_v56 = vcombine.low %v1017_v45, %v1033_v46  ;;  %v970_v30 = vld [vmem:[#allocation7 + $0x3a0] sm:$0xff] }
 0x1fc   : > { %v16143_v35 = vcombine.high %v954_v29, %v970_v30  ;;  %v986_v37 = vld [vmem:[#allocation7 + $0x420] sm:$0xff] }
 0x1fd   : > { %2569 = vmatpush1.bf16.msra.mxu0 %v16198_v52  ;;  %2610 = vmatpush1.bf16.msra.mxu1 %v16200_v53  ;;  %v1064_v52 = vld [vmem:[#allocation7 + $0x690] sm:$0xff]  ;;  %v1049_v53 = vld [vmem:[#allocation7 + $0x618] sm:$0xff]  ;;  %v1002_v38 = vld [vmem:[#allocation7 + $0x4a0] sm:$0xff] }
 0x1fe   : > { %2570 = vmatprep.subr.bf16.mxu0 %v16231_v54  ;;  %2611 = vmatprep.subr.bf16.mxu1 %v16233_v55  ;;  %v1065_v54 = vld [vmem:[#allocation7 + $0x698] sm:$0xff]  ;;  %v16202_v55 = vcombine.low %v1016_v43, %v1032_v44  ;;  %v16235_v57 = vcombine.high %v1048_v51, %v1064_v52  ;;  %v16175_v43 = vcombine.high %v986_v37, %v1002_v38  ;;  %v1018_v45 = vld [vmem:[#allocation7 + $0x520] sm:$0xff] }
 0x1ff   : > { %v16237_v58 = vcombine.high %v1049_v53, %v1065_v54  ;;  %v16236_v0 = vcombine.low %v1049_v53, %v1065_v54  ;;  %v1034_v46 = vld [vmem:[#allocation7 + $0x5a0] sm:$0xff] }
 0x200   : > { %v1050_v53 = vld [vmem:[#allocation7 + $0x620] sm:$0xff] }
 0x201   : > { %2571 = vmatpush1.bf16.msra.mxu0 %v16230_v60  ;;  %2612 = vmatpush1.bf16.msra.mxu1 %v16232_v61  ;;  %v1096_v60 = vld [vmem:[#allocation7 + $0x790] sm:$0xff]  ;;  %v1081_v61 = vld [vmem:[#allocation7 + $0x718] sm:$0xff]  ;;  %v1066_v54 = vld [vmem:[#allocation7 + $0x6a0] sm:$0xff] }
 0x202   : > { %2572 = vmatprep.subr.bf16.mxu0 %v16263_v62  ;;  %2613 = vmatprep.subr.bf16.mxu1 %v16265_v63  ;;  %v1097_v62 = vld [vmem:[#allocation7 + $0x798] sm:$0xff]  ;;  %v16234_v63 = vcombine.low %v1048_v51, %v1064_v52  ;;  %v16267_v1 = vcombine.high %v1080_v59, %v1096_v60  ;;  %v16207_v51 = vcombine.high %v1018_v45, %v1034_v46 }
 0x203   : > { %v16269_v2 = vcombine.high %v1081_v61, %v1097_v62 }
 0x205   : > { %2573 = vmatpush1.bf16.msra.mxu0 %v16262_v4  ;;  %2614 = vmatpush1.bf16.msra.mxu1 %v16264_v6  ;;  %v874_v4 = vld [vmem:[#allocation7 + $0xa0] sm:$0xff]  ;;  %v875_v6 = vld [vmem:[#allocation7 + $0xa8] sm:$0xff] }
 0x206   : > { %2640 = vmatprep.subr.bf16.mxu0 %v16043_v7  ;;  %2681 = vmatprep.subr.bf16.mxu1 %v16045_v8  ;;  %v16266_v7 = vcombine.low %v1080_v59, %v1096_v60  ;;  %v16268_v8 = vcombine.low %v1081_v61, %v1097_v62  ;;  %v16047_v10 = vcombine.high %v858_v3, %v874_v4  ;;  %v1082_v61 = vld [vmem:[#allocation7 + $0x720] sm:$0xff] }
 0x207   : > { %v16049_v11 = vcombine.high %v859_v5, %v875_v6  ;;  %v16239_v59 = vcombine.high %v1050_v53, %v1066_v54  ;;  %v1098_v62 = vld [vmem:[#allocation7 + $0x7a0] sm:$0xff] }
 0x208   : > { %2591 = vmatmul.mubr.bf16.vlgmr.msra.gmra.mrb[0].mxu0 %v21597_v12  ;;  %2632 = vmatmul.mubr.bf16.vlgmr.msra.gmra.mrb[0].mxu1 %v21597_v12 }
 0x209   : > { %2641 = vmatpush1.bf16.msra.mxu0 %v16042_v15  ;;  %2682 = vmatpush1.bf16.msra.mxu1 %v16044_v16  ;;  %v891_v15 = vld [vmem:[#allocation7 + $0x128] sm:$0xff] }
 0x20a   : > { %2642 = vmatprep.subr.bf16.mxu0 %v16075_v17  ;;  %2683 = vmatprep.subr.bf16.mxu1 %v16077_v18  ;;  %v907_v16 = vld [vmem:[#allocation7 + $0x1a8] sm:$0xff]  ;;  %v16046_v17 = vcombine.low %v858_v3, %v874_v4  ;;  %v16048_v18 = vcombine.low %v859_v5, %v875_v6  ;;  %v16271_v3 = vcombine.high %v1082_v61, %v1098_v62  ;;  %v860_v5 = vld [vmem:[#allocation7 + $0x30] sm:$0xff] }
 0x20b   : > { %2672 = vmatprep.mubr.bf16.mxu0 %v21020_v9  ;;  %2713 = vmatprep.mubr.bf16.mxu1 %v21020_v9  ;;  %v16081_v20 = vcombine.high %v891_v15, %v907_v16  ;;  %v876_v6 = vld [vmem:[#allocation7 + $0xb0] sm:$0xff] }
 0x20d   : > { %2643 = vmatpush1.bf16.msra.mxu0 %v16074_v23  ;;  %2684 = vmatpush1.bf16.msra.mxu1 %v16076_v24  ;;  %v923_v23 = vld [vmem:[#allocation7 + $0x228] sm:$0xff] }
 0x20e   : > { %2644 = vmatprep.subr.bf16.mxu0 %v16107_v25  ;;  %2685 = vmatprep.subr.bf16.mxu1 %v16109_v26  ;;  %v939_v24 = vld [vmem:[#allocation7 + $0x2a8] sm:$0xff]  ;;  %v16078_v25 = vcombine.low %v890_v13, %v906_v14  ;;  %v16080_v26 = vcombine.low %v891_v15, %v907_v16  ;;  %v16051_v13 = vcombine.high %v860_v5, %v876_v6  ;;  %v892_v15 = vld [vmem:[#allocation7 + $0x130] sm:$0xff] }
 0x20f   : > { %v16113_v28 = vcombine.high %v923_v23, %v939_v24  ;;  %v908_v16 = vld [vmem:[#allocation7 + $0x1b0] sm:$0xff] }
 0x211   : > { %2645 = vmatpush1.bf16.msra.mxu0 %v16106_v31  ;;  %2686 = vmatpush1.bf16.msra.mxu1 %v16108_v32  ;;  %v955_v31 = vld [vmem:[#allocation7 + $0x328] sm:$0xff] }
 0x212   : > { %2646 = vmatprep.subr.bf16.mxu0 %v16139_v33  ;;  %2687 = vmatprep.subr.bf16.mxu1 %v16141_v34  ;;  %v971_v32 = vld [vmem:[#allocation7 + $0x3a8] sm:$0xff]  ;;  %v16110_v33 = vcombine.low %v922_v21, %v938_v22  ;;  %v16112_v34 = vcombine.low %v923_v23, %v939_v24  ;;  %v16083_v21 = vcombine.high %v892_v15, %v908_v16  ;;  %v924_v23 = vld [vmem:[#allocation7 + $0x230] sm:$0xff] }
 0x213   : > { %v16145_v36 = vcombine.high %v955_v31, %v971_v32  ;;  %v940_v24 = vld [vmem:[#allocation7 + $0x2b0] sm:$0xff] }
 0x215   : > { %2647 = vmatpush1.bf16.msra.mxu0 %v16138_v39  ;;  %2688 = vmatpush1.bf16.msra.mxu1 %v16140_v40  ;;  %v987_v39 = vld [vmem:[#allocation7 + $0x428] sm:$0xff] }
 0x216   : > { %2648 = vmatprep.subr.bf16.mxu0 %v16171_v41  ;;  %2689 = vmatprep.subr.bf16.mxu1 %v16173_v42  ;;  %v1003_v40 = vld [vmem:[#allocation7 + $0x4a8] sm:$0xff]  ;;  %v16142_v41 = vcombine.low %v954_v29, %v970_v30  ;;  %v16144_v42 = vcombine.low %v955_v31, %v971_v32  ;;  %v16115_v29 = vcombine.high %v924_v23, %v940_v24  ;;  %v956_v31 = vld [vmem:[#allocation7 + $0x330] sm:$0xff] }
 0x217   : > { %v16177_v44 = vcombine.high %v987_v39, %v1003_v40  ;;  %v972_v32 = vld [vmem:[#allocation7 + $0x3b0] sm:$0xff] }
 0x219   : > { %2649 = vmatpush1.bf16.msra.mxu0 %v16170_v47  ;;  %2690 = vmatpush1.bf16.msra.mxu1 %v16172_v48  ;;  %v1019_v47 = vld [vmem:[#allocation7 + $0x528] sm:$0xff] }
 0x21a   : > { %2650 = vmatprep.subr.bf16.mxu0 %v16203_v49  ;;  %2691 = vmatprep.subr.bf16.mxu1 %v16205_v50  ;;  %v1035_v48 = vld [vmem:[#allocation7 + $0x5a8] sm:$0xff]  ;;  %v16174_v49 = vcombine.low %v986_v37, %v1002_v38  ;;  %v16176_v50 = vcombine.low %v987_v39, %v1003_v40  ;;  %v16147_v37 = vcombine.high %v956_v31, %v972_v32  ;;  %v988_v39 = vld [vmem:[#allocation7 + $0x430] sm:$0xff] }
 0x21b   : > { %v16209_v52 = vcombine.high %v1019_v47, %v1035_v48  ;;  %v1004_v40 = vld [vmem:[#allocation7 + $0x4b0] sm:$0xff] }
 0x21d   : > { %2651 = vmatpush1.bf16.msra.mxu0 %v16202_v55  ;;  %2692 = vmatpush1.bf16.msra.mxu1 %v16204_v56  ;;  %v1051_v55 = vld [vmem:[#allocation7 + $0x628] sm:$0xff] }
 0x21e   : > { %2652 = vmatprep.subr.bf16.mxu0 %v16235_v57  ;;  %2693 = vmatprep.subr.bf16.mxu1 %v16237_v58  ;;  %v1067_v56 = vld [vmem:[#allocation7 + $0x6a8] sm:$0xff]  ;;  %v16206_v57 = vcombine.low %v1018_v45, %v1034_v46  ;;  %v16208_v58 = vcombine.low %v1019_v47, %v1035_v48  ;;  %v16179_v45 = vcombine.high %v988_v39, %v1004_v40  ;;  %v1020_v47 = vld [vmem:[#allocation7 + $0x530] sm:$0xff] }
 0x21f   : > { %v16241_v60 = vcombine.high %v1051_v55, %v1067_v56  ;;  %v1036_v48 = vld [vmem:[#allocation7 + $0x5b0] sm:$0xff] }
 0x221   : > { %2653 = vmatpush1.bf16.msra.mxu0 %v16234_v63  ;;  %2694 = vmatpush1.bf16.msra.mxu1 %v16236_v0  ;;  %v1083_v63 = vld [vmem:[#allocation7 + $0x728] sm:$0xff] }
 0x222   : > { %2654 = vmatprep.subr.bf16.mxu0 %v16267_v1  ;;  %2695 = vmatprep.subr.bf16.mxu1 %v16269_v2  ;;  %v1099_v0 = vld [vmem:[#allocation7 + $0x7a8] sm:$0xff]  ;;  %v16238_v1 = vcombine.low %v1050_v53, %v1066_v54  ;;  %v16240_v2 = vcombine.low %v1051_v55, %v1067_v56  ;;  %v16211_v53 = vcombine.high %v1020_v47, %v1036_v48  ;;  %v1052_v55 = vld [vmem:[#allocation7 + $0x630] sm:$0xff] }
 0x223   : > { %v16273_v4 = vcombine.high %v1083_v63, %v1099_v0  ;;  %v1068_v56 = vld [vmem:[#allocation7 + $0x6b0] sm:$0xff] }
 0x225   : > { %2655 = vmatpush1.bf16.msra.mxu0 %v16266_v7  ;;  %2696 = vmatpush1.bf16.msra.mxu1 %v16268_v8  ;;  %v861_v7 = vld [vmem:[#allocation7 + $0x38] sm:$0xff] }
 0x226   : > { %2722 = vmatprep.subr.bf16.mxu0 %v16047_v10  ;;  %2763 = vmatprep.subr.bf16.mxu1 %v16049_v11  ;;  %v877_v8 = vld [vmem:[#allocation7 + $0xb8] sm:$0xff]  ;;  %v16270_v10 = vcombine.low %v1082_v61, %v1098_v62  ;;  %v16272_v11 = vcombine.low %v1083_v63, %v1099_v0  ;;  %v16243_v61 = vcombine.high %v1052_v55, %v1068_v56  ;;  %v1084_v63 = vld [vmem:[#allocation7 + $0x730] sm:$0xff] }
 0x227   : > { %v16053_v14 = vcombine.high %v861_v7, %v877_v8  ;;  %v1100_v0 = vld [vmem:[#allocation7 + $0x7b0] sm:$0xff] }
 0x228   : > { %2673 = vmatmul.mubr.bf16.vlgmr.msra.gmra.mrb[4].mxu0 %v21597_v12  ;;  %2714 = vmatmul.mubr.bf16.vlgmr.msra.gmra.mrb[4].mxu1 %v21597_v12 }
 0x229   : > { %2723 = vmatpush1.bf16.msra.mxu0 %v16046_v17  ;;  %2764 = vmatpush1.bf16.msra.mxu1 %v16048_v18  ;;  %v893_v17 = vld [vmem:[#allocation7 + $0x138] sm:$0xff] }
 0x22a   : > { %2724 = vmatprep.subr.bf16.mxu0 %v16079_v19  ;;  %2765 = vmatprep.subr.bf16.mxu1 %v16081_v20  ;;  %v909_v18 = vld [vmem:[#allocation7 + $0x1b8] sm:$0xff]  ;;  %v16050_v19 = vcombine.low %v860_v5, %v876_v6  ;;  %v16052_v20 = vcombine.low %v861_v7, %v877_v8  ;;  %v16275_v5 = vcombine.high %v1084_v63, %v1100_v0  ;;  %v862_v7 = vld [vmem:[#allocation7 + $0x40] sm:$0xff] }
 0x22b   : > { %2754 = vmatprep.mubr.bf16.mxu0 %v21020_v9  ;;  %2795 = vmatprep.mubr.bf16.mxu1 %v21020_v9  ;;  %v16085_v22 = vcombine.high %v893_v17, %v909_v18  ;;  %v878_v8 = vld [vmem:[#allocation7 + $0xc0] sm:$0xff] }
 0x22d   : > { %2725 = vmatpush1.bf16.msra.mxu0 %v16078_v25  ;;  %2766 = vmatpush1.bf16.msra.mxu1 %v16080_v26  ;;  %v925_v25 = vld [vmem:[#allocation7 + $0x238] sm:$0xff] }
 0x22e   : > { %2726 = vmatprep.subr.bf16.mxu0 %v16111_v27  ;;  %2767 = vmatprep.subr.bf16.mxu1 %v16113_v28  ;;  %v941_v26 = vld [vmem:[#allocation7 + $0x2b8] sm:$0xff]  ;;  %v16082_v27 = vcombine.low %v892_v15, %v908_v16  ;;  %v16084_v28 = vcombine.low %v893_v17, %v909_v18  ;;  %v16055_v15 = vcombine.high %v862_v7, %v878_v8  ;;  %v894_v17 = vld [vmem:[#allocation7 + $0x140] sm:$0xff] }
 0x22f   : > { %v16117_v30 = vcombine.high %v925_v25, %v941_v26  ;;  %v910_v18 = vld [vmem:[#allocation7 + $0x1c0] sm:$0xff] }
 0x231   : > { %2727 = vmatpush1.bf16.msra.mxu0 %v16110_v33  ;;  %2768 = vmatpush1.bf16.msra.mxu1 %v16112_v34  ;;  %v957_v33 = vld [vmem:[#allocation7 + $0x338] sm:$0xff] }
 0x232   : > { %2728 = vmatprep.subr.bf16.mxu0 %v16143_v35  ;;  %2769 = vmatprep.subr.bf16.mxu1 %v16145_v36  ;;  %v973_v34 = vld [vmem:[#allocation7 + $0x3b8] sm:$0xff]  ;;  %v16114_v35 = vcombine.low %v924_v23, %v940_v24  ;;  %v16116_v36 = vcombine.low %v925_v25, %v941_v26  ;;  %v16087_v23 = vcombine.high %v894_v17, %v910_v18  ;;  %v926_v25 = vld [vmem:[#allocation7 + $0x240] sm:$0xff] }
 0x233   : > { %v16149_v38 = vcombine.high %v957_v33, %v973_v34  ;;  %v942_v26 = vld [vmem:[#allocation7 + $0x2c0] sm:$0xff] }
 0x235   : > { %2729 = vmatpush1.bf16.msra.mxu0 %v16142_v41  ;;  %2770 = vmatpush1.bf16.msra.mxu1 %v16144_v42  ;;  %v989_v41 = vld [vmem:[#allocation7 + $0x438] sm:$0xff] }
 0x236   : > { %2730 = vmatprep.subr.bf16.mxu0 %v16175_v43  ;;  %2771 = vmatprep.subr.bf16.mxu1 %v16177_v44  ;;  %v1005_v42 = vld [vmem:[#allocation7 + $0x4b8] sm:$0xff]  ;;  %v16146_v43 = vcombine.low %v956_v31, %v972_v32  ;;  %v16148_v44 = vcombine.low %v957_v33, %v973_v34  ;;  %v16119_v31 = vcombine.high %v926_v25, %v942_v26  ;;  %v958_v33 = vld [vmem:[#allocation7 + $0x340] sm:$0xff] }
 0x237   : > { %v16181_v46 = vcombine.high %v989_v41, %v1005_v42  ;;  %v974_v34 = vld [vmem:[#allocation7 + $0x3c0] sm:$0xff] }
 0x239   : > { %2731 = vmatpush1.bf16.msra.mxu0 %v16174_v49  ;;  %2772 = vmatpush1.bf16.msra.mxu1 %v16176_v50  ;;  %v1021_v49 = vld [vmem:[#allocation7 + $0x538] sm:$0xff] }
 0x23a   : > { %2732 = vmatprep.subr.bf16.mxu0 %v16207_v51  ;;  %2773 = vmatprep.subr.bf16.mxu1 %v16209_v52  ;;  %v1037_v50 = vld [vmem:[#allocation7 + $0x5b8] sm:$0xff]  ;;  %v16178_v51 = vcombine.low %v988_v39, %v1004_v40  ;;  %v16180_v52 = vcombine.low %v989_v41, %v1005_v42  ;;  %v16151_v39 = vcombine.high %v958_v33, %v974_v34  ;;  %v990_v41 = vld [vmem:[#allocation7 + $0x440] sm:$0xff] }
 0x23b   : > { %v16213_v54 = vcombine.high %v1021_v49, %v1037_v50  ;;  %v1006_v42 = vld [vmem:[#allocation7 + $0x4c0] sm:$0xff] }
 0x23d   : > { %2733 = vmatpush1.bf16.msra.mxu0 %v16206_v57  ;;  %2774 = vmatpush1.bf16.msra.mxu1 %v16208_v58  ;;  %v1053_v57 = vld [vmem:[#allocation7 + $0x638] sm:$0xff] }
 0x23e   : > { %2734 = vmatprep.subr.bf16.mxu0 %v16239_v59  ;;  %2775 = vmatprep.subr.bf16.mxu1 %v16241_v60  ;;  %v1069_v58 = vld [vmem:[#allocation7 + $0x6b8] sm:$0xff]  ;;  %v16210_v59 = vcombine.low %v1020_v47, %v1036_v48  ;;  %v16212_v60 = vcombine.low %v1021_v49, %v1037_v50  ;;  %v16183_v47 = vcombine.high %v990_v41, %v1006_v42  ;;  %v1022_v49 = vld [vmem:[#allocation7 + $0x540] sm:$0xff] }
 0x23f   : > { %v16245_v62 = vcombine.high %v1053_v57, %v1069_v58  ;;  %v1038_v50 = vld [vmem:[#allocation7 + $0x5c0] sm:$0xff] }
 0x241   : > { %2735 = vmatpush1.bf16.msra.mxu0 %v16238_v1  ;;  %2776 = vmatpush1.bf16.msra.mxu1 %v16240_v2  ;;  %v1085_v1 = vld [vmem:[#allocation7 + $0x738] sm:$0xff] }
 0x242   : > { %2736 = vmatprep.subr.bf16.mxu0 %v16271_v3  ;;  %2777 = vmatprep.subr.bf16.mxu1 %v16273_v4  ;;  %v1101_v2 = vld [vmem:[#allocation7 + $0x7b8] sm:$0xff]  ;;  %v16242_v3 = vcombine.low %v1052_v55, %v1068_v56  ;;  %v16244_v4 = vcombine.low %v1053_v57, %v1069_v58  ;;  %v16215_v55 = vcombine.high %v1022_v49, %v1038_v50  ;;  %v1054_v57 = vld [vmem:[#allocation7 + $0x640] sm:$0xff] }
 0x243   : > { %v16277_v6 = vcombine.high %v1085_v1, %v1101_v2  ;;  %v1070_v58 = vld [vmem:[#allocation7 + $0x6c0] sm:$0xff] }
 0x245   : > { %2737 = vmatpush1.bf16.msra.mxu0 %v16270_v10  ;;  %2778 = vmatpush1.bf16.msra.mxu1 %v16272_v11  ;;  %v863_v10 = vld [vmem:[#allocation7 + $0x48] sm:$0xff] }
 0x246   : > { %2804 = vmatprep.subr.bf16.mxu0 %v16051_v13  ;;  %2845 = vmatprep.subr.bf16.mxu1 %v16053_v14  ;;  %v879_v11 = vld [vmem:[#allocation7 + $0xc8] sm:$0xff]  ;;  %v16274_v13 = vcombine.low %v1084_v63, %v1100_v0  ;;  %v16276_v14 = vcombine.low %v1085_v1, %v1101_v2  ;;  %v16247_v63 = vcombine.high %v1054_v57, %v1070_v58  ;;  %v1086_v1 = vld [vmem:[#allocation7 + $0x740] sm:$0xff] }
 0x247   : > { %v16057_v16 = vcombine.high %v863_v10, %v879_v11  ;;  %v1102_v2 = vld [vmem:[#allocation7 + $0x7c0] sm:$0xff] }
 0x248   : > { %2755 = vmatmul.mubr.bf16.vlgmr.msra.gmra.mrb[8].mxu0 %v21597_v12  ;;  %2796 = vmatmul.mubr.bf16.vlgmr.msra.gmra.mrb[8].mxu1 %v21597_v12 }
 0x249   : > { %2805 = vmatpush1.bf16.msra.mxu0 %v16050_v19  ;;  %2846 = vmatpush1.bf16.msra.mxu1 %v16052_v20  ;;  %v895_v19 = vld [vmem:[#allocation7 + $0x148] sm:$0xff] }
 0x24a   : > { %2806 = vmatprep.subr.bf16.mxu0 %v16083_v21  ;;  %2847 = vmatprep.subr.bf16.mxu1 %v16085_v22  ;;  %v911_v20 = vld [vmem:[#allocation7 + $0x1c8] sm:$0xff]  ;;  %v16054_v21 = vcombine.low %v862_v7, %v878_v8  ;;  %v16056_v22 = vcombine.low %v863_v10, %v879_v11  ;;  %v16279_v7 = vcombine.high %v1086_v1, %v1102_v2  ;;  %v864_v10 = vld [vmem:[#allocation7 + $0x50] sm:$0xff] }
 0x24b   : > { %2836 = vmatprep.mubr.bf16.mxu0 %v21020_v9  ;;  %2877 = vmatprep.mubr.bf16.mxu1 %v21020_v9  ;;  %v16089_v24 = vcombine.high %v895_v19, %v911_v20  ;;  %v880_v11 = vld [vmem:[#allocation7 + $0xd0] sm:$0xff] }
 0x24d   : > { %2807 = vmatpush1.bf16.msra.mxu0 %v16082_v27  ;;  %2848 = vmatpush1.bf16.msra.mxu1 %v16084_v28  ;;  %v927_v27 = vld [vmem:[#allocation7 + $0x248] sm:$0xff] }
 0x24e   : > { %2808 = vmatprep.subr.bf16.mxu0 %v16115_v29  ;;  %2849 = vmatprep.subr.bf16.mxu1 %v16117_v30  ;;  %v943_v28 = vld [vmem:[#allocation7 + $0x2c8] sm:$0xff]  ;;  %v16086_v29 = vcombine.low %v894_v17, %v910_v18  ;;  %v16088_v30 = vcombine.low %v895_v19, %v911_v20  ;;  %v16059_v17 = vcombine.high %v864_v10, %v880_v11  ;;  %v896_v19 = vld [vmem:[#allocation7 + $0x150] sm:$0xff] }
 0x24f   : > { %v16121_v32 = vcombine.high %v927_v27, %v943_v28  ;;  %v912_v20 = vld [vmem:[#allocation7 + $0x1d0] sm:$0xff] }
 0x251   : > { %2809 = vmatpush1.bf16.msra.mxu0 %v16114_v35  ;;  %2850 = vmatpush1.bf16.msra.mxu1 %v16116_v36  ;;  %v959_v35 = vld [vmem:[#allocation7 + $0x348] sm:$0xff] }
 0x252   : > { %2810 = vmatprep.subr.bf16.mxu0 %v16147_v37  ;;  %2851 = vmatprep.subr.bf16.mxu1 %v16149_v38  ;;  %v975_v36 = vld [vmem:[#allocation7 + $0x3c8] sm:$0xff]  ;;  %v16118_v37 = vcombine.low %v926_v25, %v942_v26  ;;  %v16120_v38 = vcombine.low %v927_v27, %v943_v28  ;;  %v16091_v25 = vcombine.high %v896_v19, %v912_v20  ;;  %v928_v27 = vld [vmem:[#allocation7 + $0x250] sm:$0xff] }
 0x253   : > { %v16153_v40 = vcombine.high %v959_v35, %v975_v36  ;;  %v944_v28 = vld [vmem:[#allocation7 + $0x2d0] sm:$0xff] }
 0x255   : > { %2811 = vmatpush1.bf16.msra.mxu0 %v16146_v43  ;;  %2852 = vmatpush1.bf16.msra.mxu1 %v16148_v44  ;;  %v991_v43 = vld [vmem:[#allocation7 + $0x448] sm:$0xff] }
 0x256   : > { %2812 = vmatprep.subr.bf16.mxu0 %v16179_v45  ;;  %2853 = vmatprep.subr.bf16.mxu1 %v16181_v46  ;;  %v1007_v44 = vld [vmem:[#allocation7 + $0x4c8] sm:$0xff]  ;;  %v16150_v45 = vcombine.low %v958_v33, %v974_v34  ;;  %v16152_v46 = vcombine.low %v959_v35, %v975_v36  ;;  %v16123_v33 = vcombine.high %v928_v27, %v944_v28  ;;  %v960_v35 = vld [vmem:[#allocation7 + $0x350] sm:$0xff] }
 0x257   : > { %v16185_v48 = vcombine.high %v991_v43, %v1007_v44  ;;  %v976_v36 = vld [vmem:[#allocation7 + $0x3d0] sm:$0xff] }
 0x259   : > { %2813 = vmatpush1.bf16.msra.mxu0 %v16178_v51  ;;  %2854 = vmatpush1.bf16.msra.mxu1 %v16180_v52  ;;  %v1023_v51 = vld [vmem:[#allocation7 + $0x548] sm:$0xff] }
 0x25a   : > { %2814 = vmatprep.subr.bf16.mxu0 %v16211_v53  ;;  %2855 = vmatprep.subr.bf16.mxu1 %v16213_v54  ;;  %v1039_v52 = vld [vmem:[#allocation7 + $0x5c8] sm:$0xff]  ;;  %v16182_v53 = vcombine.low %v990_v41, %v1006_v42  ;;  %v16184_v54 = vcombine.low %v991_v43, %v1007_v44  ;;  %v16155_v41 = vcombine.high %v960_v35, %v976_v36  ;;  %v992_v43 = vld [vmem:[#allocation7 + $0x450] sm:$0xff] }
 0x25b   : > { %v16217_v56 = vcombine.high %v1023_v51, %v1039_v52  ;;  %v1008_v44 = vld [vmem:[#allocation7 + $0x4d0] sm:$0xff] }
 0x25d   : > { %2815 = vmatpush1.bf16.msra.mxu0 %v16210_v59  ;;  %2856 = vmatpush1.bf16.msra.mxu1 %v16212_v60  ;;  %v1055_v59 = vld [vmem:[#allocation7 + $0x648] sm:$0xff] }
 0x25e   : > { %2816 = vmatprep.subr.bf16.mxu0 %v16243_v61  ;;  %2857 = vmatprep.subr.bf16.mxu1 %v16245_v62  ;;  %v1071_v60 = vld [vmem:[#allocation7 + $0x6c8] sm:$0xff]  ;;  %v16214_v61 = vcombine.low %v1022_v49, %v1038_v50  ;;  %v16216_v62 = vcombine.low %v1023_v51, %v1039_v52  ;;  %v16187_v49 = vcombine.high %v992_v43, %v1008_v44  ;;  %v1024_v51 = vld [vmem:[#allocation7 + $0x550] sm:$0xff] }
 0x25f   : > { %v16249_v0 = vcombine.high %v1055_v59, %v1071_v60  ;;  %v1040_v52 = vld [vmem:[#allocation7 + $0x5d0] sm:$0xff] }
 0x261   : > { %2817 = vmatpush1.bf16.msra.mxu0 %v16242_v3  ;;  %2858 = vmatpush1.bf16.msra.mxu1 %v16244_v4  ;;  %v1087_v3 = vld [vmem:[#allocation7 + $0x748] sm:$0xff] }
 0x262   : > { %2818 = vmatprep.subr.bf16.mxu0 %v16275_v5  ;;  %2859 = vmatprep.subr.bf16.mxu1 %v16277_v6  ;;  %v1103_v4 = vld [vmem:[#allocation7 + $0x7c8] sm:$0xff]  ;;  %v16246_v5 = vcombine.low %v1054_v57, %v1070_v58  ;;  %v16248_v6 = vcombine.low %v1055_v59, %v1071_v60  ;;  %v16219_v57 = vcombine.high %v1024_v51, %v1040_v52  ;;  %v1056_v59 = vld [vmem:[#allocation7 + $0x650] sm:$0xff] }
 0x263   : > { %v16281_v8 = vcombine.high %v1087_v3, %v1103_v4  ;;  %v1072_v60 = vld [vmem:[#allocation7 + $0x6d0] sm:$0xff] }
 0x265   : > { %2819 = vmatpush1.bf16.msra.mxu0 %v16274_v13  ;;  %2860 = vmatpush1.bf16.msra.mxu1 %v16276_v14  ;;  %v865_v13 = vld [vmem:[#allocation7 + $0x58] sm:$0xff] }
 0x266   : > { %2886 = vmatprep.subr.bf16.mxu0 %v16055_v15  ;;  %2927 = vmatprep.subr.bf16.mxu1 %v16057_v16  ;;  %v881_v14 = vld [vmem:[#allocation7 + $0xd8] sm:$0xff]  ;;  %v16278_v15 = vcombine.low %v1086_v1, %v1102_v2  ;;  %v16280_v16 = vcombine.low %v1087_v3, %v1103_v4  ;;  %v16251_v1 = vcombine.high %v1056_v59, %v1072_v60  ;;  %v1088_v3 = vld [vmem:[#allocation7 + $0x750] sm:$0xff] }
 0x267   : > { %v16061_v18 = vcombine.high %v865_v13, %v881_v14  ;;  %v1104_v4 = vld [vmem:[#allocation7 + $0x7d0] sm:$0xff] }
 0x268   : > { %2837 = vmatmul.mubr.bf16.vlgmr.msra.gmra.mrb[12].mxu0 %v21597_v12  ;;  %2878 = vmatmul.mubr.bf16.vlgmr.msra.gmra.mrb[12].mxu1 %v21597_v12 }
 0x269   : > { %2887 = vmatpush1.bf16.msra.mxu0 %v16054_v21  ;;  %2928 = vmatpush1.bf16.msra.mxu1 %v16056_v22  ;;  %v897_v21 = vld [vmem:[#allocation7 + $0x158] sm:$0xff] }
 0x26a   : > { %2888 = vmatprep.subr.bf16.mxu0 %v16087_v23  ;;  %2929 = vmatprep.subr.bf16.mxu1 %v16089_v24  ;;  %v913_v22 = vld [vmem:[#allocation7 + $0x1d8] sm:$0xff]  ;;  %v16058_v23 = vcombine.low %v864_v10, %v880_v11  ;;  %v16060_v24 = vcombine.low %v865_v13, %v881_v14  ;;  %v16283_v10 = vcombine.high %v1088_v3, %v1104_v4  ;;  %v866_v13 = vld [vmem:[#allocation7 + $0x60] sm:$0xff] }
 0x26b   : > { %2918 = vmatprep.mubr.bf16.mxu0 %v21020_v9  ;;  %2959 = vmatprep.mubr.bf16.mxu1 %v21020_v9  ;;  %v16093_v26 = vcombine.high %v897_v21, %v913_v22  ;;  %v882_v14 = vld [vmem:[#allocation7 + $0xe0] sm:$0xff] }
 0x26d   : > { %2889 = vmatpush1.bf16.msra.mxu0 %v16086_v29  ;;  %2930 = vmatpush1.bf16.msra.mxu1 %v16088_v30  ;;  %v929_v29 = vld [vmem:[#allocation7 + $0x258] sm:$0xff] }
 0x26e   : > { %2890 = vmatprep.subr.bf16.mxu0 %v16119_v31  ;;  %2931 = vmatprep.subr.bf16.mxu1 %v16121_v32  ;;  %v945_v30 = vld [vmem:[#allocation7 + $0x2d8] sm:$0xff]  ;;  %v16090_v31 = vcombine.low %v896_v19, %v912_v20  ;;  %v16092_v32 = vcombine.low %v897_v21, %v913_v22  ;;  %v16063_v19 = vcombine.high %v866_v13, %v882_v14  ;;  %v898_v21 = vld [vmem:[#allocation7 + $0x160] sm:$0xff] }
 0x26f   : > { %v16125_v34 = vcombine.high %v929_v29, %v945_v30  ;;  %v914_v22 = vld [vmem:[#allocation7 + $0x1e0] sm:$0xff] }
 0x271   : > { %2891 = vmatpush1.bf16.msra.mxu0 %v16118_v37  ;;  %2932 = vmatpush1.bf16.msra.mxu1 %v16120_v38  ;;  %v961_v37 = vld [vmem:[#allocation7 + $0x358] sm:$0xff] }
 0x272   : > { %2892 = vmatprep.subr.bf16.mxu0 %v16151_v39  ;;  %2933 = vmatprep.subr.bf16.mxu1 %v16153_v40  ;;  %v977_v38 = vld [vmem:[#allocation7 + $0x3d8] sm:$0xff]  ;;  %v16122_v39 = vcombine.low %v928_v27, %v944_v28  ;;  %v16124_v40 = vcombine.low %v929_v29, %v945_v30  ;;  %v16095_v27 = vcombine.high %v898_v21, %v914_v22  ;;  %v930_v29 = vld [vmem:[#allocation7 + $0x260] sm:$0xff] }
 0x273   : > { %v16157_v42 = vcombine.high %v961_v37, %v977_v38  ;;  %v946_v30 = vld [vmem:[#allocation7 + $0x2e0] sm:$0xff] }
 0x275   : > { %2893 = vmatpush1.bf16.msra.mxu0 %v16150_v45  ;;  %2934 = vmatpush1.bf16.msra.mxu1 %v16152_v46  ;;  %v993_v45 = vld [vmem:[#allocation7 + $0x458] sm:$0xff] }
 0x276   : > { %2894 = vmatprep.subr.bf16.mxu0 %v16183_v47  ;;  %2935 = vmatprep.subr.bf16.mxu1 %v16185_v48  ;;  %v1009_v46 = vld [vmem:[#allocation7 + $0x4d8] sm:$0xff]  ;;  %v16154_v47 = vcombine.low %v960_v35, %v976_v36  ;;  %v16156_v48 = vcombine.low %v961_v37, %v977_v38  ;;  %v16127_v35 = vcombine.high %v930_v29, %v946_v30  ;;  %v962_v37 = vld [vmem:[#allocation7 + $0x360] sm:$0xff] }
 0x277   : > { %v16189_v50 = vcombine.high %v993_v45, %v1009_v46  ;;  %v978_v38 = vld [vmem:[#allocation7 + $0x3e0] sm:$0xff] }
 0x279   : > { %2895 = vmatpush1.bf16.msra.mxu0 %v16182_v53  ;;  %2936 = vmatpush1.bf16.msra.mxu1 %v16184_v54  ;;  %v1025_v53 = vld [vmem:[#allocation7 + $0x558] sm:$0xff] }
 0x27a   : > { %2896 = vmatprep.subr.bf16.mxu0 %v16215_v55  ;;  %2937 = vmatprep.subr.bf16.mxu1 %v16217_v56  ;;  %v1041_v54 = vld [vmem:[#allocation7 + $0x5d8] sm:$0xff]  ;;  %v16186_v55 = vcombine.low %v992_v43, %v1008_v44  ;;  %v16188_v56 = vcombine.low %v993_v45, %v1009_v46  ;;  %v16159_v43 = vcombine.high %v962_v37, %v978_v38  ;;  %v994_v45 = vld [vmem:[#allocation7 + $0x460] sm:$0xff] }
 0x27b   : > { %v16221_v58 = vcombine.high %v1025_v53, %v1041_v54  ;;  %v1010_v46 = vld [vmem:[#allocation7 + $0x4e0] sm:$0xff] }
 0x27d   : > { %2897 = vmatpush1.bf16.msra.mxu0 %v16214_v61  ;;  %2938 = vmatpush1.bf16.msra.mxu1 %v16216_v62  ;;  %v1057_v61 = vld [vmem:[#allocation7 + $0x658] sm:$0xff] }
 0x27e   : > { %2898 = vmatprep.subr.bf16.mxu0 %v16247_v63  ;;  %2939 = vmatprep.subr.bf16.mxu1 %v16249_v0  ;;  %v1073_v62 = vld [vmem:[#allocation7 + $0x6d8] sm:$0xff]  ;;  %v16218_v63 = vcombine.low %v1024_v51, %v1040_v52  ;;  %v16220_v0 = vcombine.low %v1025_v53, %v1041_v54  ;;  %v16191_v51 = vcombine.high %v994_v45, %v1010_v46  ;;  %v1026_v53 = vld [vmem:[#allocation7 + $0x560] sm:$0xff] }
 0x27f   : > { %v16253_v2 = vcombine.high %v1057_v61, %v1073_v62  ;;  %v1042_v54 = vld [vmem:[#allocation7 + $0x5e0] sm:$0xff] }
 0x281   : > { %2899 = vmatpush1.bf16.msra.mxu0 %v16246_v5  ;;  %2940 = vmatpush1.bf16.msra.mxu1 %v16248_v6  ;;  %v1089_v5 = vld [vmem:[#allocation7 + $0x758] sm:$0xff] }
 0x282   : > { %2900 = vmatprep.subr.bf16.mxu0 %v16279_v7  ;;  %2941 = vmatprep.subr.bf16.mxu1 %v16281_v8  ;;  %v1105_v6 = vld [vmem:[#allocation7 + $0x7d8] sm:$0xff]  ;;  %v16250_v7 = vcombine.low %v1056_v59, %v1072_v60  ;;  %v16252_v8 = vcombine.low %v1057_v61, %v1073_v62  ;;  %v16223_v59 = vcombine.high %v1026_v53, %v1042_v54  ;;  %v1058_v61 = vld [vmem:[#allocation7 + $0x660] sm:$0xff] }
 0x283   : > { %v16285_v11 = vcombine.high %v1089_v5, %v1105_v6  ;;  %v1074_v62 = vld [vmem:[#allocation7 + $0x6e0] sm:$0xff] }
 0x285   : > { %2901 = vmatpush1.bf16.msra.mxu0 %v16278_v15  ;;  %2942 = vmatpush1.bf16.msra.mxu1 %v16280_v16  ;;  %v867_v15 = vld [vmem:[#allocation7 + $0x68] sm:$0xff] }
 0x286   : > { %2968 = vmatprep.subr.bf16.mxu0 %v16059_v17  ;;  %3009 = vmatprep.subr.bf16.mxu1 %v16061_v18  ;;  %v883_v16 = vld [vmem:[#allocation7 + $0xe8] sm:$0xff]  ;;  %v16282_v17 = vcombine.low %v1088_v3, %v1104_v4  ;;  %v16284_v18 = vcombine.low %v1089_v5, %v1105_v6  ;;  %v16255_v3 = vcombine.high %v1058_v61, %v1074_v62  ;;  %v1090_v5 = vld [vmem:[#allocation7 + $0x760] sm:$0xff] }
 0x287   : > { %v16065_v20 = vcombine.high %v867_v15, %v883_v16  ;;  %v1106_v6 = vld [vmem:[#allocation7 + $0x7e0] sm:$0xff] }
 0x288   : > { %2919 = vmatmul.mubr.bf16.vlgmr.msra.gmra.mrb[16].mxu0 %v21597_v12  ;;  %2960 = vmatmul.mubr.bf16.vlgmr.msra.gmra.mrb[16].mxu1 %v21597_v12 }
 0x289   : > { %2969 = vmatpush1.bf16.msra.mxu0 %v16058_v23  ;;  %3010 = vmatpush1.bf16.msra.mxu1 %v16060_v24  ;;  %v899_v23 = vld [vmem:[#allocation7 + $0x168] sm:$0xff] }
 0x28a   : > { %2970 = vmatprep.subr.bf16.mxu0 %v16091_v25  ;;  %3011 = vmatprep.subr.bf16.mxu1 %v16093_v26  ;;  %v915_v24 = vld [vmem:[#allocation7 + $0x1e8] sm:$0xff]  ;;  %v16062_v25 = vcombine.low %v866_v13, %v882_v14  ;;  %v16064_v26 = vcombine.low %v867_v15, %v883_v16  ;;  %v16287_v13 = vcombine.high %v1090_v5, %v1106_v6  ;;  %v868_v15 = vld [vmem:[#allocation7 + $0x70] sm:$0xff] }
 0x28b   : > { %3000 = vmatprep.mubr.bf16.mxu0 %v21020_v9  ;;  %3041 = vmatprep.mubr.bf16.mxu1 %v21020_v9  ;;  %v16097_v28 = vcombine.high %v899_v23, %v915_v24  ;;  %v884_v16 = vld [vmem:[#allocation7 + $0xf0] sm:$0xff] }
 0x28d   : > { %2971 = vmatpush1.bf16.msra.mxu0 %v16090_v31  ;;  %3012 = vmatpush1.bf16.msra.mxu1 %v16092_v32  ;;  %v931_v31 = vld [vmem:[#allocation7 + $0x268] sm:$0xff] }
 0x28e   : > { %2972 = vmatprep.subr.bf16.mxu0 %v16123_v33  ;;  %3013 = vmatprep.subr.bf16.mxu1 %v16125_v34  ;;  %v947_v32 = vld [vmem:[#allocation7 + $0x2e8] sm:$0xff]  ;;  %v16094_v33 = vcombine.low %v898_v21, %v914_v22  ;;  %v16096_v34 = vcombine.low %v899_v23, %v915_v24  ;;  %v16067_v21 = vcombine.high %v868_v15, %v884_v16  ;;  %v900_v23 = vld [vmem:[#allocation7 + $0x170] sm:$0xff] }
 0x28f   : > { %v16129_v36 = vcombine.high %v931_v31, %v947_v32  ;;  %v916_v24 = vld [vmem:[#allocation7 + $0x1f0] sm:$0xff] }
 0x291   : > { %2973 = vmatpush1.bf16.msra.mxu0 %v16122_v39  ;;  %3014 = vmatpush1.bf16.msra.mxu1 %v16124_v40  ;;  %v963_v39 = vld [vmem:[#allocation7 + $0x368] sm:$0xff] }
 0x292   : > { %2974 = vmatprep.subr.bf16.mxu0 %v16155_v41  ;;  %3015 = vmatprep.subr.bf16.mxu1 %v16157_v42  ;;  %v979_v40 = vld [vmem:[#allocation7 + $0x3e8] sm:$0xff]  ;;  %v16126_v41 = vcombine.low %v930_v29, %v946_v30  ;;  %v16128_v42 = vcombine.low %v931_v31, %v947_v32  ;;  %v16099_v29 = vcombine.high %v900_v23, %v916_v24  ;;  %v932_v31 = vld [vmem:[#allocation7 + $0x270] sm:$0xff] }
 0x293   : > { %v16161_v44 = vcombine.high %v963_v39, %v979_v40  ;;  %v948_v32 = vld [vmem:[#allocation7 + $0x2f0] sm:$0xff] }
 0x295   : > { %2975 = vmatpush1.bf16.msra.mxu0 %v16154_v47  ;;  %3016 = vmatpush1.bf16.msra.mxu1 %v16156_v48  ;;  %v995_v47 = vld [vmem:[#allocation7 + $0x468] sm:$0xff] }
 0x296   : > { %2976 = vmatprep.subr.bf16.mxu0 %v16187_v49  ;;  %3017 = vmatprep.subr.bf16.mxu1 %v16189_v50  ;;  %v1011_v48 = vld [vmem:[#allocation7 + $0x4e8] sm:$0xff]  ;;  %v16158_v49 = vcombine.low %v962_v37, %v978_v38  ;;  %v16160_v50 = vcombine.low %v963_v39, %v979_v40  ;;  %v16131_v37 = vcombine.high %v932_v31, %v948_v32  ;;  %v964_v39 = vld [vmem:[#allocation7 + $0x370] sm:$0xff] }
 0x297   : > { %v16193_v52 = vcombine.high %v995_v47, %v1011_v48  ;;  %v980_v40 = vld [vmem:[#allocation7 + $0x3f0] sm:$0xff] }
 0x299   : > { %2977 = vmatpush1.bf16.msra.mxu0 %v16186_v55  ;;  %3018 = vmatpush1.bf16.msra.mxu1 %v16188_v56  ;;  %v1027_v55 = vld [vmem:[#allocation7 + $0x568] sm:$0xff] }
 0x29a   : > { %2978 = vmatprep.subr.bf16.mxu0 %v16219_v57  ;;  %3019 = vmatprep.subr.bf16.mxu1 %v16221_v58  ;;  %v1043_v56 = vld [vmem:[#allocation7 + $0x5e8] sm:$0xff]  ;;  %v16190_v57 = vcombine.low %v994_v45, %v1010_v46  ;;  %v16192_v58 = vcombine.low %v995_v47, %v1011_v48  ;;  %v16163_v46 = vcombine.high %v964_v39, %v980_v40  ;;  %v996_v48 = vld [vmem:[#allocation7 + $0x470] sm:$0xff] }
 0x29b   : > { %v16225_v60 = vcombine.high %v1027_v55, %v1043_v56 }
 0x29d   : > { %2979 = vmatpush1.bf16.msra.mxu0 %v16218_v63  ;;  %3020 = vmatpush1.bf16.msra.mxu1 %v16220_v0  ;;  %v1059_v63 = vld [vmem:[#allocation7 + $0x668] sm:$0xff] }
 0x29e   : > { %2980 = vmatprep.subr.bf16.mxu0 %v16251_v1  ;;  %3021 = vmatprep.subr.bf16.mxu1 %v16253_v2  ;;  %v1075_v0 = vld [vmem:[#allocation7 + $0x6e8] sm:$0xff]  ;;  %v16222_v1 = vcombine.low %v1026_v53, %v1042_v54  ;;  %v16224_v2 = vcombine.low %v1027_v55, %v1043_v56  ;;  %v16162_v53 = vcombine.low %v964_v39, %v980_v40  ;;  %v1028_v56 = vld [vmem:[#allocation7 + $0x570] sm:$0xff] }
 0x29f   : > { %v16257_v4 = vcombine.high %v1059_v63, %v1075_v0 }
 0x2a1   : > { %2981 = vmatpush1.bf16.msra.mxu0 %v16250_v7  ;;  %3022 = vmatpush1.bf16.msra.mxu1 %v16252_v8  ;;  %v1091_v7 = vld [vmem:[#allocation7 + $0x768] sm:$0xff] }
 0x2a2   : > { %2982 = vmatprep.subr.bf16.mxu0 %v16283_v10  ;;  %3023 = vmatprep.subr.bf16.mxu1 %v16285_v11  ;;  %v1107_v8 = vld [vmem:[#allocation7 + $0x7e8] sm:$0xff]  ;;  %v16254_v10 = vcombine.low %v1058_v61, %v1074_v62  ;;  %v16256_v11 = vcombine.low %v1059_v63, %v1075_v0  ;;  %v21632_v62 = vld [vmem:[#allocation9] sm:$0xff] }
 0x2a3   : > { %v16289_v14 = vcombine.high %v1091_v7, %v1107_v8 }
 0x2a5   : > { %2983 = vmatpush1.bf16.msra.mxu0 %v16282_v17  ;;  %3024 = vmatpush1.bf16.msra.mxu1 %v16284_v18  ;;  %v869_v17 = vld [vmem:[#allocation7 + $0x78] sm:$0xff] }
 0x2a6   : > { %3050 = vmatprep.subr.bf16.mxu0 %v16063_v19  ;;  %3091 = vmatprep.subr.bf16.mxu1 %v16065_v20  ;;  %v885_v18 = vld [vmem:[#allocation7 + $0xf8] sm:$0xff]  ;;  %v16286_v19 = vcombine.low %v1090_v5, %v1106_v6  ;;  %v16288_v20 = vcombine.low %v1091_v7, %v1107_v8  ;;  %v1060_v5 = vld [vmem:[#allocation7 + $0x670] sm:$0xff] }
 0x2a7   : > { %v16069_v22 = vcombine.high %v869_v17, %v885_v18  ;;  %v1076_v6 = vld [vmem:[#allocation7 + $0x6f0] sm:$0xff]  ;;  %v1061_v8 = vld [vmem:[#allocation7 + $0x678] sm:$0xff] }
 0x2a8   : > { %3001 = vmatmul.mubr.bf16.vlgmr.msra.gmra.mrb[20].mxu0 %v21597_v12  ;;  %3042 = vmatmul.mubr.bf16.vlgmr.msra.gmra.mrb[20].mxu1 %v21597_v12 }
 0x2a9   : > { %3051 = vmatpush1.bf16.msra.mxu0 %v16062_v25  ;;  %3092 = vmatpush1.bf16.msra.mxu1 %v16064_v26  ;;  %v901_v25 = vld [vmem:[#allocation7 + $0x178] sm:$0xff] }
 0x2aa   : > { %3052 = vmatprep.subr.bf16.mxu0 %v16095_v27  ;;  %3093 = vmatprep.subr.bf16.mxu1 %v16097_v28  ;;  %v917_v26 = vld [vmem:[#allocation7 + $0x1f8] sm:$0xff]  ;;  %v16066_v27 = vcombine.low %v868_v15, %v884_v16  ;;  %v16068_v28 = vcombine.low %v869_v17, %v885_v18  ;;  %v16259_v17 = vcombine.high %v1060_v5, %v1076_v6 }
 0x2ab   : > { %3082 = vmatprep.mubr.bf16.mxu0 %v21020_v9  ;;  %3123 = vmatprep.mubr.bf16.mxu1 %v21020_v9  ;;  %v16101_v30 = vcombine.high %v901_v25, %v917_v26 }
 0x2ad   : > { %3053 = vmatpush1.bf16.msra.mxu0 %v16094_v33  ;;  %3094 = vmatpush1.bf16.msra.mxu1 %v16096_v34  ;;  %v933_v33 = vld [vmem:[#allocation7 + $0x278] sm:$0xff] }
 0x2ae   : > { %3054 = vmatprep.subr.bf16.mxu0 %v16127_v35  ;;  %3095 = vmatprep.subr.bf16.mxu1 %v16129_v36  ;;  %v949_v34 = vld [vmem:[#allocation7 + $0x2f8] sm:$0xff]  ;;  %v16098_v35 = vcombine.low %v900_v23, %v916_v24  ;;  %v16100_v36 = vcombine.low %v901_v25, %v917_v26 }
 0x2af   : > { %v16133_v38 = vcombine.high %v933_v33, %v949_v34  ;;  %v16132_v45 = vcombine.low %v933_v33, %v949_v34  ;;  %v1093_v25 = vld [vmem:[#allocation7 + $0x778] sm:$0xff] }
 0x2b0   : > { %v1109_v26 = vld [vmem:[#allocation7 + $0x7f8] sm:$0xff] }
 0x2b1   : > { %3055 = vmatpush1.bf16.msra.mxu0 %v16126_v41  ;;  %3096 = vmatpush1.bf16.msra.mxu1 %v16128_v42  ;;  %v965_v41 = vld [vmem:[#allocation7 + $0x378] sm:$0xff] }
 0x2b2   : > { %3056 = vmatprep.subr.bf16.mxu0 %v16159_v43  ;;  %3097 = vmatprep.subr.bf16.mxu1 %v16161_v44  ;;  %v981_v42 = vld [vmem:[#allocation7 + $0x3f8] sm:$0xff]  ;;  %v1118_v43 = vlaneseq  ;;  %v16130_v44 = vcombine.low %v932_v31, %v948_v32  ;;  %v16258_v31 = vcombine.low %v1060_v5, %v1076_v6 }
 0x2b3   : > { %v16165_v47 = vcombine.high %v965_v41, %v981_v42  ;;  %v16164_v54 = vcombine.low %v965_v41, %v981_v42  ;;  %v16293_v41 = vcombine.high %v1093_v25, %v1109_v26 }
 0x2b5   : > { %3057 = vmatpush1.bf16.msra.mxu0 %v16158_v49  ;;  %3098 = vmatpush1.bf16.msra.mxu1 %v16160_v50  ;;  %v1012_v49 = vld [vmem:[#allocation7 + $0x4f0] sm:$0xff]  ;;  %v997_v50 = vld [vmem:[#allocation7 + $0x478] sm:$0xff] }
 0x2b6   : > { %3058 = vmatprep.subr.bf16.mxu0 %v16191_v51  ;;  %3099 = vmatprep.subr.bf16.mxu1 %v16193_v52  ;;  %v1013_v51 = vld [vmem:[#allocation7 + $0x4f8] sm:$0xff]  ;;  %v21627_v52 = vshrl.u32 %v1118_v43, 7  ;;  %v16194_v61 = vcombine.low %v996_v48, %v1012_v49 }
 0x2b7   : > { %v16197_v55 = vcombine.high %v997_v50, %v1013_v51 }
 0x2b8   : > { %v21635_v63 = vsub.s32 2, %v21627_v52  ;;  %v21638_v0 = vsub.s32 1, %v21627_v52 }
 0x2b9   : > { %3059 = vmatpush1.bf16.msra.mxu0 %v16190_v57  ;;  %3100 = vmatpush1.bf16.msra.mxu1 %v16192_v58  ;;  %v1044_v57 = vld [vmem:[#allocation7 + $0x5f0] sm:$0xff]  ;;  %v21630_v58 = vsub.s32 0, %v21627_v52 }
 0x2ba   : > { %3060 = vmatprep.subr.bf16.mxu0 %v16223_v59  ;;  %3101 = vmatprep.subr.bf16.mxu1 %v16225_v60  ;;  %v1029_v59 = vld [vmem:[#allocation7 + $0x578] sm:$0xff] }
 0x2bb   : > { %v1045_v60 = vld [vmem:[#allocation7 + $0x5f8] sm:$0xff]  ;;  %v1121_v7 = vrot.slane %v21632_v62, %v21630_v58 }
 0x2bc   : > { %v16228_v16 = vcombine.low %v1029_v59, %v1045_v60 }
 0x2bd   : > { %3061 = vmatpush1.bf16.msra.mxu0 %v16222_v1  ;;  %3102 = vmatpush1.bf16.msra.mxu1 %v16224_v2  ;;  %v16196_v1 = vcombine.low %v997_v50, %v1013_v51  ;;  %v21641_v2 = vsub.s32 3, %v21627_v52  ;;  %v21663_v50 = vsub.s32 7, %v21627_v52 }
 0x2be   : > { %3062 = vmatprep.subr.bf16.mxu0 %v16255_v3  ;;  %3103 = vmatprep.subr.bf16.mxu1 %v16257_v4  ;;  %v16227_v3 = vcombine.high %v1028_v56, %v1044_v57  ;;  %v16229_v4 = vcombine.high %v1029_v59, %v1045_v60 }
 0x2bf   : > { %v1133_v15 = vrot.slane %v21632_v62, %v21641_v2 }
 0x2c1   : > { %3063 = vmatpush1.bf16.msra.mxu0 %v16254_v10  ;;  %3104 = vmatpush1.bf16.msra.mxu1 %v16256_v11  ;;  %v1077_v10 = vld [vmem:[#allocation7 + $0x6f8] sm:$0xff]  ;;  %v1129_v11 = vrot.slane %v21632_v62, %v21635_v63 }
 0x2c2   : > { %3064 = vmatprep.subr.bf16.mxu0 %v16287_v13  ;;  %3105 = vmatprep.subr.bf16.mxu1 %v16289_v14  ;;  %v1125_v13 = vrot.slane %v21632_v62, %v21638_v0  ;;  %v16226_v14 = vcombine.low %v1028_v56, %v1044_v57 }
 0x2c5   : > { %3065 = vmatpush1.bf16.msra.mxu0 %v16286_v19  ;;  %3106 = vmatpush1.bf16.msra.mxu1 %v16288_v20  ;;  %v16261_v19 = vcombine.high %v1061_v8, %v1077_v10  ;;  %v1092_v20 = vld [vmem:[#allocation7 + $0x770] sm:$0xff] }
 0x2c6   : > { %3132 = vmatprep.subr.bf16.mxu0 %v16067_v21  ;;  %3173 = vmatprep.subr.bf16.mxu1 %v16069_v22  ;;  %v1108_v21 = vld [vmem:[#allocation7 + $0x7f0] sm:$0xff] }
 0x2c8   : > { %3083 = vmatmul.mubr.bf16.vlgmr.msra.gmra.mrb[24].mxu0 %v21597_v12  ;;  %3124 = vmatmul.mubr.bf16.vlgmr.msra.gmra.mrb[24].mxu1 %v21597_v12 }
 0x2c9   : > { %3133 = vmatpush1.bf16.msra.mxu0 %v16066_v27  ;;  %3174 = vmatpush1.bf16.msra.mxu1 %v16068_v28 }
 0x2ca   : > { %3134 = vmatprep.subr.bf16.mxu0 %v16099_v29  ;;  %3175 = vmatprep.subr.bf16.mxu1 %v16101_v30 }
 0x2cb   : > { %3164 = vmatprep.mubr.bf16.mxu0 %v21020_v9  ;;  %3205 = vmatprep.mubr.bf16.mxu1 %v21020_v9  ;;  %v16195_v9 = vcombine.high %v996_v48, %v1012_v49  ;;  %v21657_v48 = vsub.s32 6, %v21627_v52  ;;  %v21660_v49 = vsub.s32 5, %v21627_v52 }
 0x2cd   : > { %3135 = vmatpush1.bf16.msra.mxu0 %v16098_v35  ;;  %3176 = vmatpush1.bf16.msra.mxu1 %v16100_v36  ;;  %v16260_v36 = vcombine.low %v1061_v8, %v1077_v10 }
 0x2ce   : > { %3136 = vmatprep.subr.bf16.mxu0 %v16131_v37  ;;  %3177 = vmatprep.subr.bf16.mxu1 %v16133_v38  ;;  %v16291_v37 = vcombine.high %v1092_v20, %v1108_v21 }
 0x2d1   : > { %3137 = vmatpush1.bf16.msra.mxu0 %v16130_v44  ;;  %3178 = vmatpush1.bf16.msra.mxu1 %v16132_v45  ;;  %v16290_v44 = vcombine.low %v1092_v20, %v1108_v21 }
 0x2d2   : > { %3138 = vmatprep.subr.bf16.mxu0 %v16163_v46  ;;  %3179 = vmatprep.subr.bf16.mxu1 %v16165_v47  ;;  %v16292_v46 = vcombine.low %v1093_v25, %v1109_v26  ;;  %v21654_v47 = vsub.s32 4, %v21627_v52 }
 0x2d4   : > { %v1137_v51 = vrot.slane %v21632_v62, %v21654_v47 }
 0x2d5   : > { %3139 = vmatpush1.bf16.msra.mxu0 %v16162_v53  ;;  %3180 = vmatpush1.bf16.msra.mxu1 %v16164_v54  ;;  %v1145_v53 = vrot.slane %v21632_v62, %v21657_v48  ;;  %v1149_v54 = vrot.slane %v21632_v62, %v21663_v50 }
 0x2d6   : > { %3140 = vmatprep.subr.bf16.mxu0 %v16195_v9  ;;  %3181 = vmatprep.subr.bf16.mxu1 %v16197_v55 }
 0x2d9   : > { %3141 = vmatpush1.bf16.msra.mxu0 %v16194_v61  ;;  %3182 = vmatpush1.bf16.msra.mxu1 %v16196_v1 }
 0x2da   : > { %3142 = vmatprep.subr.bf16.mxu0 %v16227_v3  ;;  %3183 = vmatprep.subr.bf16.mxu1 %v16229_v4 }
 0x2db   : > { %v2592_v18 = vpop.f32.mrb[0].mxu0  ;;  %v2633_v23 = vpop.f32.mrb[0].mxu1 }
 0x2dc   : > { %v2593_v22 = vadd.f32 %v2592_v18, %v1121_v7  ;;  %v2594_v24 = vpop.f32.mrb[1].mxu0  ;;  %v2634_v27 = vadd.f32 %v2633_v23, %v1129_v11  ;;  %v2635_v29 = vpop.f32.mrb[1].mxu1 }
 0x2dd   : > { %v2595_v28 = vadd.f32 %v2594_v24, %v1125_v13  ;;  %v2596_v30 = vpop.f32.mrb[2].mxu0  ;;  %3143 = vmatpush1.bf16.msra.mxu0 %v16226_v14  ;;  %v2636_v33 = vadd.f32 %v2635_v29, %v1133_v15  ;;  %v2637_v34 = vpop.f32.mrb[2].mxu1  ;;  %3184 = vmatpush1.bf16.msra.mxu1 %v16228_v16 }
 0x2de   : > { %v3214_v32 = vmax.f32 %v2593_v22, 0.0  ;;  %v2597_v35 = vpop.f32.mrb[3].mxu0  ;;  %3144 = vmatprep.subr.bf16.mxu0 %v16259_v17  ;;  %v3216_v38 = vmax.f32 %v2634_v27, 0.0  ;;  %v2638_v40 = vpop.f32.mrb[3].mxu1  ;;  %3185 = vmatprep.subr.bf16.mxu1 %v16261_v19 }
 0x2df   : > { %v3215_v39 = vmax.f32 %v2595_v28, 0.0  ;;  %v3217_v42 = vmax.f32 %v2636_v33, 0.0 }
 0x2e1   : > { %v17985_v43 = vpack.c.bf16 %v3215_v39, %v3214_v32  ;;  %3145 = vmatpush1.bf16.msra.mxu0 %v16258_v31  ;;  %v17986_v45 = vpack.c.bf16 %v3217_v42, %v3216_v38  ;;  %3186 = vmatpush1.bf16.msra.mxu1 %v16260_v36 }
 0x2e2   : > { %3146 = vmatprep.subr.bf16.mxu0 %v16291_v37  ;;  %3187 = vmatprep.subr.bf16.mxu1 %v16293_v41 }
 0x2e3   : > { %3374 = vst [vmem:[#allocation2] sm:$0xff] %v17985_v43  ;;  %3375 = vst [vmem:[#allocation2 + $0x8] sm:$0xff] %v17986_v45 }
 0x2e5   : > { %3147 = vmatpush1.bf16.msra.mxu0 %v16290_v44  ;;  %3188 = vmatpush1.bf16.msra.mxu1 %v16292_v46 }
 0x2e8   : > { %3165 = vmatmul.mubr.bf16.vlgmr.msra.gmra.mrb[28].mxu0 %v21597_v12  ;;  %3206 = vmatmul.mubr.bf16.vlgmr.msra.gmra.mrb[28].mxu1 %v21597_v12  ;;  %v1141_v12 = vrot.slane %v21632_v62, %v21660_v49  ;;  %v1111_v62 = vld [vmem:[#allocation9 + $0x8] sm:$0xff] }
 0x2e9   : > { %v1153_v14 = vrot.slane %v1111_v62, %v21630_v58  ;;  %v1161_v15 = vrot.slane %v1111_v62, %v21635_v63  ;;  %v1157_v16 = vrot.slane %v1111_v62, %v21638_v0  ;;  %v1165_v17 = vrot.slane %v1111_v62, %v21641_v2 }
 0x2ea   : > { %v1169_v36 = vrot.slane %v1111_v62, %v21654_v47  ;;  %v1177_v37 = vrot.slane %v1111_v62, %v21657_v48  ;;  %v1173_v38 = vrot.slane %v1111_v62, %v21660_v49  ;;  %v1181_v39 = vrot.slane %v1111_v62, %v21663_v50 }
 0x2fb   : > { %v2674_v9 = vpop.f32.mrb[4].mxu0  ;;  %v2715_v56 = vpop.f32.mrb[4].mxu1 }
 0x2fc   : > { %v2675_v55 = vadd.f32 %v2674_v9, %v1137_v51  ;;  %v2676_v57 = vpop.f32.mrb[5].mxu0  ;;  %v2716_v59 = vadd.f32 %v2715_v56, %v1145_v53  ;;  %v2717_v52 = vpop.f32.mrb[5].mxu1 }
 0x2fd   : > { %v2677_v60 = vadd.f32 %v2676_v57, %v1141_v12  ;;  %v2678_v61 = vpop.f32.mrb[6].mxu0  ;;  %v2718_v3 = vadd.f32 %v2717_v52, %v1149_v54  ;;  %v2719_v4 = vpop.f32.mrb[6].mxu1 }
 0x2fe   : > { %v3218_v1 = vmax.f32 %v2675_v55, 0.0  ;;  %v2679_v5 = vpop.f32.mrb[7].mxu0  ;;  %v3220_v6 = vmax.f32 %v2716_v59, 0.0  ;;  %v2720_v8 = vpop.f32.mrb[7].mxu1  ;;  %v21021_v61 = vmov 0.0  }
 0x2ff   : > { %v3219_v7 = vmax.f32 %v2677_v60, 0.0  ;;  %v3221_v10 = vmax.f32 %v2718_v3, 0.0  ;;  %3390 = vst [vmem:[#allocation3] sm:$0xff] %v21021_v61  ;;  %3391 = vst [vmem:[#allocation3 + $0x8] sm:$0xff] %v21021_v61 }
 0x300   : > { %3392 = vst [vmem:[#allocation3 + $0x10] sm:$0xff] %v21021_v61  ;;  %3393 = vst [vmem:[#allocation3 + $0x18] sm:$0xff] %v21021_v61 }
 0x301   : > { %v17987_v11 = vpack.c.bf16 %v3219_v7, %v3218_v1  ;;  %v17988_v13 = vpack.c.bf16 %v3221_v10, %v3220_v6  ;;  %3394 = vst [vmem:[#allocation3 + $0x20] sm:$0xff] %v21021_v61  ;;  %3395 = vst [vmem:[#allocation3 + $0x28] sm:$0xff] %v21021_v61  ;;  %v1112_v1 = vld [vmem:[#allocation9 + $0x10] sm:$0xff] }
 0x302   : > { %3396 = vst [vmem:[#allocation3 + $0x30] sm:$0xff] %v21021_v61  ;;  %3397 = vst [vmem:[#allocation3 + $0x38] sm:$0xff] %v21021_v61  ;;  %v1185_v3 = vrot.slane %v1112_v1, %v21630_v58  ;;  %v1193_v4 = vrot.slane %v1112_v1, %v21635_v63  ;;  %v1189_v5 = vrot.slane %v1112_v1, %v21638_v0 }
 0x303   : > { %3376 = vst [vmem:[#allocation2 + $0x10] sm:$0xff] %v17987_v11  ;;  %3377 = vst [vmem:[#allocation2 + $0x18] sm:$0xff] %v17988_v13  ;;  %v1197_v6 = vrot.slane %v1112_v1, %v21641_v2 }
 0x31b   : > { %v2756_v18 = vpop.f32.mrb[8].mxu0  ;;  %v2797_v20 = vpop.f32.mrb[8].mxu1 }
 0x31c   : > { %v2757_v19 = vadd.f32 %v2756_v18, %v1153_v14  ;;  %v2758_v21 = vpop.f32.mrb[9].mxu0  ;;  %v2798_v22 = vadd.f32 %v2797_v20, %v1161_v15  ;;  %v2799_v24 = vpop.f32.mrb[9].mxu1 }
 0x31d   : > { %v2759_v23 = vadd.f32 %v2758_v21, %v1157_v16  ;;  %v2760_v25 = vpop.f32.mrb[10].mxu0  ;;  %v2800_v27 = vadd.f32 %v2799_v24, %v1165_v17  ;;  %v2801_v28 = vpop.f32.mrb[10].mxu1 }
 0x31e   : > { %v3222_v26 = vmax.f32 %v2757_v19, 0.0  ;;  %v2761_v29 = vpop.f32.mrb[11].mxu0  ;;  %v3224_v30 = vmax.f32 %v2798_v22, 0.0  ;;  %v2802_v32 = vpop.f32.mrb[11].mxu1  ;;  %v1205_v28 = vrot.slane %v1112_v1, %v21660_v49 }
 0x31f   : > { %v3223_v31 = vmax.f32 %v2759_v23, 0.0  ;;  %v3225_v33 = vmax.f32 %v2800_v27, 0.0  ;;  %v1209_v27 = vrot.slane %v1112_v1, %v21657_v48  ;;  %v1213_v29 = vrot.slane %v1112_v1, %v21663_v50 }
 0x321   : > { %v17989_v34 = vpack.c.bf16 %v3223_v31, %v3222_v26  ;;  %v17990_v35 = vpack.c.bf16 %v3225_v33, %v3224_v30  ;;  %v1201_v26 = vrot.slane %v1112_v1, %v21654_v47 }
 0x323   : > { %3378 = vst [vmem:[#allocation2 + $0x20] sm:$0xff] %v17989_v34  ;;  %3379 = vst [vmem:[#allocation2 + $0x28] sm:$0xff] %v17990_v35 }
 0x33b   : > { %v2838_v40 = vpop.f32.mrb[12].mxu0  ;;  %v2879_v42 = vpop.f32.mrb[12].mxu1 }
 0x33c   : > { %v2839_v41 = vadd.f32 %v2838_v40, %v1169_v36  ;;  %v2840_v43 = vpop.f32.mrb[13].mxu0  ;;  %v2880_v44 = vadd.f32 %v2879_v42, %v1177_v37  ;;  %v2881_v46 = vpop.f32.mrb[13].mxu1 }
 0x33d   : > { %v2841_v45 = vadd.f32 %v2840_v43, %v1173_v38  ;;  %v2842_v51 = vpop.f32.mrb[14].mxu0  ;;  %v2882_v12 = vadd.f32 %v2881_v46, %v1181_v39  ;;  %v2883_v54 = vpop.f32.mrb[14].mxu1 }
 0x33e   : > { %v3226_v53 = vmax.f32 %v2839_v41, 0.0  ;;  %v2843_v9 = vpop.f32.mrb[15].mxu0  ;;  %v3228_v55 = vmax.f32 %v2880_v44, 0.0  ;;  %v2884_v57 = vpop.f32.mrb[15].mxu1 }
 0x33f   : > { %v3227_v56 = vmax.f32 %v2841_v45, 0.0  ;;  %v3229_v59 = vmax.f32 %v2882_v12, 0.0 }
 0x341   : > { %v17991_v60 = vpack.c.bf16 %v3227_v56, %v3226_v53  ;;  %v17992_v52 = vpack.c.bf16 %v3229_v59, %v3228_v55  ;;  %v1113_v53 = vld [vmem:[#allocation9 + $0x18] sm:$0xff] }
 0x342   : > { %v1217_v12 = vrot.slane %v1113_v53, %v21630_v58  ;;  %v1225_v54 = vrot.slane %v1113_v53, %v21635_v63  ;;  %v1221_v9 = vrot.slane %v1113_v53, %v21638_v0  ;;  %v1229_v55 = vrot.slane %v1113_v53, %v21641_v2 }
 0x343   : > { %3380 = vst [vmem:[#allocation2 + $0x30] sm:$0xff] %v17991_v60  ;;  %3381 = vst [vmem:[#allocation2 + $0x38] sm:$0xff] %v17992_v52  ;;  %v1233_v2 = vrot.slane %v1113_v53, %v21654_v47 }
 0x35b   : > { %v2920_v7 = vpop.f32.mrb[16].mxu0  ;;  %v2961_v10 = vpop.f32.mrb[16].mxu1 }
 0x35c   : > { %v2921_v8 = vadd.f32 %v2920_v7, %v1185_v3  ;;  %v2922_v11 = vpop.f32.mrb[17].mxu0  ;;  %v2962_v13 = vadd.f32 %v2961_v10, %v1193_v4  ;;  %v2963_v14 = vpop.f32.mrb[17].mxu1 }
 0x35d   : > { %v2923_v62 = vadd.f32 %v2922_v11, %v1189_v5  ;;  %v2924_v15 = vpop.f32.mrb[18].mxu0  ;;  %v2964_v17 = vadd.f32 %v2963_v14, %v1197_v6  ;;  %v2965_v18 = vpop.f32.mrb[18].mxu1  ;;  %v1245_v14 = vrot.slane %v1113_v53, %v21663_v50 }
 0x35e   : > { %v3230_v16 = vmax.f32 %v2921_v8, 0.0  ;;  %v2925_v19 = vpop.f32.mrb[19].mxu0  ;;  %v3232_v20 = vmax.f32 %v2962_v13, 0.0  ;;  %v2966_v22 = vpop.f32.mrb[19].mxu1  ;;  %v1241_v13 = vrot.slane %v1113_v53, %v21657_v48 }
 0x35f   : > { %v3231_v21 = vmax.f32 %v2923_v62, 0.0  ;;  %v3233_v23 = vmax.f32 %v2964_v17, 0.0  ;;  %v1237_v62 = vrot.slane %v1113_v53, %v21660_v49 }
 0x361   : > { %v17993_v24 = vpack.c.bf16 %v3231_v21, %v3230_v16  ;;  %v17994_v25 = vpack.c.bf16 %v3233_v23, %v3232_v20 }
 0x363   : > { %3382 = vst [vmem:[#allocation2 + $0x40] sm:$0xff] %v17993_v24  ;;  %3383 = vst [vmem:[#allocation2 + $0x48] sm:$0xff] %v17994_v25 }
 0x37b   : > { %v3002_v30 = vpop.f32.mrb[20].mxu0  ;;  %v3043_v32 = vpop.f32.mrb[20].mxu1 }
 0x37c   : > { %v3003_v31 = vadd.f32 %v3002_v30, %v1201_v26  ;;  %v3004_v33 = vpop.f32.mrb[21].mxu0  ;;  %v3044_v34 = vadd.f32 %v3043_v32, %v1209_v27  ;;  %v3045_v36 = vpop.f32.mrb[21].mxu1 }
 0x37d   : > { %v3005_v35 = vadd.f32 %v3004_v33, %v1205_v28  ;;  %v3006_v37 = vpop.f32.mrb[22].mxu0  ;;  %v3046_v39 = vadd.f32 %v3045_v36, %v1213_v29  ;;  %v3047_v40 = vpop.f32.mrb[22].mxu1 }
 0x37e   : > { %v3234_v38 = vmax.f32 %v3003_v31, 0.0  ;;  %v3007_v41 = vpop.f32.mrb[23].mxu0  ;;  %v3236_v42 = vmax.f32 %v3044_v34, 0.0  ;;  %v3048_v44 = vpop.f32.mrb[23].mxu1 }
 0x37f   : > { %v3235_v43 = vmax.f32 %v3005_v35, 0.0  ;;  %v3237_v45 = vmax.f32 %v3046_v39, 0.0 }
 0x381   : > { %v17995_v46 = vpack.c.bf16 %v3235_v43, %v3234_v38  ;;  %v17996_v51 = vpack.c.bf16 %v3237_v45, %v3236_v42 }
 0x383   : > { %3384 = vst [vmem:[#allocation2 + $0x50] sm:$0xff] %v17995_v46  ;;  %3385 = vst [vmem:[#allocation2 + $0x58] sm:$0xff] %v17996_v51 }
 0x39b   : > { %v3084_v56 = vpop.f32.mrb[24].mxu0  ;;  %v3125_v59 = vpop.f32.mrb[24].mxu1 }
 0x39c   : > { %v3085_v57 = vadd.f32 %v3084_v56, %v1217_v12  ;;  %v3086_v60 = vpop.f32.mrb[25].mxu0  ;;  %v3126_v52 = vadd.f32 %v3125_v59, %v1225_v54  ;;  %v3127_v1 = vpop.f32.mrb[25].mxu1 }
 0x39d   : > { %v3087_v61 = vadd.f32 %v3086_v60, %v1221_v9  ;;  %v3088_v3 = vpop.f32.mrb[26].mxu0  ;;  %v3128_v5 = vadd.f32 %v3127_v1, %v1229_v55  ;;  %v3129_v6 = vpop.f32.mrb[26].mxu1 }
 0x39e   : > { %v3238_v4 = vmax.f32 %v3085_v57, 0.0  ;;  %v3089_v7 = vpop.f32.mrb[27].mxu0  ;;  %v3240_v8 = vmax.f32 %v3126_v52, 0.0  ;;  %v3130_v10 = vpop.f32.mrb[27].mxu1 }
 0x39f   : > { %v3239_v58 = vmax.f32 %v3087_v61, 0.0  ;;  %v3241_v63 = vmax.f32 %v3128_v5, 0.0 }
 0x3a1   : > { %v17997_v11 = vpack.c.bf16 %v3239_v58, %v3238_v4  ;;  %v17998_v0 = vpack.c.bf16 %v3241_v63, %v3240_v8 }
 0x3a3   : > { %3386 = vst [vmem:[#allocation2 + $0x60] sm:$0xff] %v17997_v11  ;;  %3387 = vst [vmem:[#allocation2 + $0x68] sm:$0xff] %v17998_v0 }
 0x3bb   : > { %v3166_v15 = vpop.f32.mrb[28].mxu0  ;;  %v3207_v17 = vpop.f32.mrb[28].mxu1 }
 0x3bc   : > { %v3167_v16 = vadd.f32 %v3166_v15, %v1233_v2  ;;  %v3168_v18 = vpop.f32.mrb[29].mxu0  ;;  %v3208_v19 = vadd.f32 %v3207_v17, %v1241_v13  ;;  %v3209_v21 = vpop.f32.mrb[29].mxu1 }
 0x3bd   : > { %v3169_v20 = vadd.f32 %v3168_v18, %v1237_v62  ;;  %v3170_v22 = vpop.f32.mrb[30].mxu0  ;;  %v3210_v24 = vadd.f32 %v3209_v21, %v1245_v14  ;;  %v3211_v25 = vpop.f32.mrb[30].mxu1 }
 0x3be   : > { %v3242_v23 = vmax.f32 %v3167_v16, 0.0  ;;  %v3171_v26 = vpop.f32.mrb[31].mxu0  ;;  %v3244_v27 = vmax.f32 %v3208_v19, 0.0  ;;  %v3212_v28 = vpop.f32.mrb[31].mxu1 }
 0x3bf   : > { %v3243_v47 = vmax.f32 %v3169_v20, 0.0  ;;  %v3245_v48 = vmax.f32 %v3210_v24, 0.0 }
 0x3c1   : > { %v17999_v29 = vpack.c.bf16 %v3243_v47, %v3242_v23  ;;  %v18000_v49 = vpack.c.bf16 %v3245_v48, %v3244_v27 }
 0x3c3   : > { %3388 = vst [vmem:[#allocation2 + $0x70] sm:$0xff] %v17999_v29  ;;  %3389 = vst [vmem:[#allocation2 + $0x78] sm:$0xff] %v18000_v49 }
 0x3c4 PF: > { %v18422_v50 = vld [vmem:[%s21559_s1 + $0x4] ss:$16 sps:$4 sm:$0xff]   ;;  %v18424_v30 = vld [vmem:[%s21559_s1 + $0xc] ss:$16 sps:$4 sm:$0xff]   ;;  %v18426_v31 = vld [vmem:[%s21559_s1] ss:$16 sps:$4 sm:$0xff]  }
 0x3c5   : > { %9692 = vmatprep.subr.bf16.mxu0 %v18422_v50  ;;  %v18427_v32 = vld [vmem:[%s21559_s1 + $0x8] ss:$16 sps:$4 sm:$0xff]   ;;  %10348 = vmatprep.subr.bf16.mxu1 %v18424_v30  ;;  %v18428_v33 = vld [vmem:[%s21559_s1 + $0x24] ss:$16 sps:$4 sm:$0xff]   ;;  %v18430_v34 = vld [vmem:[%s21559_s1 + $0x2c] ss:$16 sps:$4 sm:$0xff]  }
 0x3c6   : > { %9693 = vmatpush1.bf16.msra.mxu0 %v18426_v31  ;;  %10349 = vmatpush1.bf16.msra.mxu1 %v18427_v32  ;;  %v18432_v35 = vld [vmem:[%s21559_s1 + $0x20] ss:$16 sps:$4 sm:$0xff]   ;;  %v18433_v36 = vld [vmem:[%s21559_s1 + $0x28] ss:$16 sps:$4 sm:$0xff]   ;;  %v18434_v37 = vld [vmem:[%s21559_s1 + $0x44] ss:$16 sps:$4 sm:$0xff]  }
 0x3c7   : > { %9694 = vmatprep.subr.bf16.mxu0 %v18428_v33  ;;  %10350 = vmatprep.subr.bf16.mxu1 %v18430_v34  ;;  %v18436_v38 = vld [vmem:[%s21559_s1 + $0x4c] ss:$16 sps:$4 sm:$0xff]   ;;  %v18438_v39 = vld [vmem:[%s21559_s1 + $0x40] ss:$16 sps:$4 sm:$0xff]   ;;  %v18439_v40 = vld [vmem:[%s21559_s1 + $0x48] ss:$16 sps:$4 sm:$0xff]  }
 0x3c8   : > { %v18440_v41 = vld [vmem:[%s21559_s1 + $0x64] ss:$16 sps:$4 sm:$0xff]   ;;  %v18442_v42 = vld [vmem:[%s21559_s1 + $0x6c] ss:$16 sps:$4 sm:$0xff]   ;;  %v18444_v43 = vld [vmem:[%s21559_s1 + $0x60] ss:$16 sps:$4 sm:$0xff]  }
 0x3c9   : > { %v18445_v44 = vld [vmem:[%s21559_s1 + $0x68] ss:$16 sps:$4 sm:$0xff]   ;;  %v18446_v45 = vld [vmem:[%s21559_s1 + $0x84] ss:$16 sps:$4 sm:$0xff]   ;;  %v18448_v46 = vld [vmem:[%s21559_s1 + $0x8c] ss:$16 sps:$4 sm:$0xff]  }
 0x3ca   : > { %9695 = vmatpush1.bf16.msra.mxu0 %v18432_v35  ;;  %10351 = vmatpush1.bf16.msra.mxu1 %v18433_v36  ;;  %v18450_v51 = vld [vmem:[%s21559_s1 + $0x80] ss:$16 sps:$4 sm:$0xff]   ;;  %v18451_v53 = vld [vmem:[%s21559_s1 + $0x88] ss:$16 sps:$4 sm:$0xff]   ;;  %v18452_v12 = vld [vmem:[%s21559_s1 + $0xa4] ss:$16 sps:$4 sm:$0xff]  }
 0x3cb   : > { %9696 = vmatprep.subr.bf16.mxu0 %v18434_v37  ;;  %10352 = vmatprep.subr.bf16.mxu1 %v18436_v38  ;;  %v18454_v54 = vld [vmem:[%s21559_s1 + $0xac] ss:$16 sps:$4 sm:$0xff]   ;;  %v18456_v9 = vld [vmem:[%s21559_s1 + $0xa0] ss:$16 sps:$4 sm:$0xff]   ;;  %v18457_v55 = vld [vmem:[%s21559_s1 + $0xa8] ss:$16 sps:$4 sm:$0xff]  }
 0x3cc   : > { %v18458_v56 = vld [vmem:[%s21559_s1 + $0xc4] ss:$16 sps:$4 sm:$0xff]   ;;  %v18460_v57 = vld [vmem:[%s21559_s1 + $0xcc] ss:$16 sps:$4 sm:$0xff]   ;;  %v18462_v59 = vld [vmem:[%s21559_s1 + $0xc0] ss:$16 sps:$4 sm:$0xff]  }
 0x3cd   : > { %v18463_v60 = vld [vmem:[%s21559_s1 + $0xc8] ss:$16 sps:$4 sm:$0xff]   ;;  %v18464_v52 = vld [vmem:[%s21559_s1 + $0xe4] ss:$16 sps:$4 sm:$0xff]   ;;  %v18466_v61 = vld [vmem:[%s21559_s1 + $0xec] ss:$16 sps:$4 sm:$0xff]  }
 0x3ce   : > { %9697 = vmatpush1.bf16.msra.mxu0 %v18438_v39  ;;  %10353 = vmatpush1.bf16.msra.mxu1 %v18439_v40  ;;  %v18468_v1 = vld [vmem:[%s21559_s1 + $0xe0] ss:$16 sps:$4 sm:$0xff]   ;;  %v18469_v3 = vld [vmem:[%s21559_s1 + $0xe8] ss:$16 sps:$4 sm:$0xff]   ;;  %v18470_v4 = vld [vmem:[%s21559_s1 + $0x104] ss:$16 sps:$4 sm:$0xff]  }
 0x3cf   : > { %9698 = vmatprep.subr.bf16.mxu0 %v18440_v41  ;;  %10354 = vmatprep.subr.bf16.mxu1 %v18442_v42  ;;  %v18472_v5 = vld [vmem:[%s21559_s1 + $0x10c] ss:$16 sps:$4 sm:$0xff]   ;;  %v18474_v6 = vld [vmem:[%s21559_s1 + $0x100] ss:$16 sps:$4 sm:$0xff]   ;;  %v18475_v7 = vld [vmem:[%s21559_s1 + $0x108] ss:$16 sps:$4 sm:$0xff]  }
 0x3d0   : > { %v18476_v8 = vld [vmem:[%s21559_s1 + $0x124] ss:$16 sps:$4 sm:$0xff]   ;;  %v18478_v58 = vld [vmem:[%s21559_s1 + $0x12c] ss:$16 sps:$4 sm:$0xff]   ;;  %v18480_v10 = vld [vmem:[%s21559_s1 + $0x120] ss:$16 sps:$4 sm:$0xff]  }
 0x3d1   : > { %v18481_v63 = vld [vmem:[%s21559_s1 + $0x128] ss:$16 sps:$4 sm:$0xff]   ;;  %v18482_v11 = vld [vmem:[%s21559_s1 + $0x144] ss:$16 sps:$4 sm:$0xff]   ;;  %v18484_v0 = vld [vmem:[%s21559_s1 + $0x14c] ss:$16 sps:$4 sm:$0xff]  }
 0x3d2   : > { %9699 = vmatpush1.bf16.msra.mxu0 %v18444_v43  ;;  %10355 = vmatpush1.bf16.msra.mxu1 %v18445_v44  ;;  %v18486_v2 = vld [vmem:[%s21559_s1 + $0x140] ss:$16 sps:$4 sm:$0xff]   ;;  %v18487_v13 = vld [vmem:[%s21559_s1 + $0x148] ss:$16 sps:$4 sm:$0xff]   ;;  %v18488_v62 = vld [vmem:[%s21559_s1 + $0x164] ss:$16 sps:$4 sm:$0xff]  }
 0x3d3   : > { %9700 = vmatprep.subr.bf16.mxu0 %v18446_v45  ;;  %10356 = vmatprep.subr.bf16.mxu1 %v18448_v46  ;;  %v18490_v14 = vld [vmem:[%s21559_s1 + $0x16c] ss:$16 sps:$4 sm:$0xff]   ;;  %v18492_v16 = vld [vmem:[%s21559_s1 + $0x160] ss:$16 sps:$4 sm:$0xff]   ;;  %v18493_v18 = vld [vmem:[%s21559_s1 + $0x168] ss:$16 sps:$4 sm:$0xff]  }
 0x3d4   : > { %v3398_v15 = vld [vmem:[#allocation2] sm:$0xff]  ;;  %v18498_v21 = vld [vmem:[%s21559_s1 + $0x180] ss:$16 sps:$4 sm:$0xff]   ;;  %p17622_p12 = scmp.ne.s32.totalorder %s21148_s23, 3 }
 0x3d5   : > { %v16311_v17 = vcombine.high %v3398_v15, %v3398_v15  ;;  %v18494_v19 = vld [vmem:[%s21559_s1 + $0x184] ss:$16 sps:$4 sm:$0xff]   ;;  %v18496_v20 = vld [vmem:[%s21559_s1 + $0x18c] ss:$16 sps:$4 sm:$0xff]   ;;  %v18499_v22 = vld [vmem:[%s21559_s1 + $0x188] ss:$16 sps:$4 sm:$0xff]   ;;  %v16310_v33 = vcombine.low %v3398_v15, %v3398_v15 }
 0x3d6   : > { %9701 = vmatpush1.bf16.msra.mxu0 %v18450_v51  ;;  %10357 = vmatpush1.bf16.msra.mxu1 %v18451_v53  ;;  %v18500_v23 = vld [vmem:[%s21559_s1 + $0x1a4] ss:$16 sps:$4 sm:$0xff]   ;;  %v18502_v24 = vld [vmem:[%s21559_s1 + $0x1ac] ss:$16 sps:$4 sm:$0xff]   ;;  %v18504_v25 = vld [vmem:[%s21559_s1 + $0x1a0] ss:$16 sps:$4 sm:$0xff]  }
 0x3d7   : > { %9702 = vmatprep.subr.bf16.mxu0 %v18452_v12  ;;  %10358 = vmatprep.subr.bf16.mxu1 %v18454_v54  ;;  %v18505_v26 = vld [vmem:[%s21559_s1 + $0x1a8] ss:$16 sps:$4 sm:$0xff]   ;;  %v18506_v27 = vld [vmem:[%s21559_s1 + $0x1c4] ss:$16 sps:$4 sm:$0xff]   ;;  %v18508_v47 = vld [vmem:[%s21559_s1 + $0x1cc] ss:$16 sps:$4 sm:$0xff]  }
 0x3d8   : > { %9724 = vmatprep.mubr.bf16.mxu0 %v16311_v17  ;;  %10380 = vmatprep.mubr.bf16.mxu1 %v16311_v17  ;;  %v18510_v28 = vld [vmem:[%s21559_s1 + $0x1c0] ss:$16 sps:$4 sm:$0xff]   ;;  %v18511_v48 = vld [vmem:[%s21559_s1 + $0x1c8] ss:$16 sps:$4 sm:$0xff]   ;;  %v18512_v29 = vld [vmem:[%s21559_s1 + $0x1e4] ss:$16 sps:$4 sm:$0xff]  }
 0x3d9   : > { %v18514_v49 = vld [vmem:[%s21559_s1 + $0x1ec] ss:$16 sps:$4 sm:$0xff]   ;;  %v18516_v50 = vld [vmem:[%s21559_s1 + $0x1e0] ss:$16 sps:$4 sm:$0xff]   ;;  %v18517_v30 = vld [vmem:[%s21559_s1 + $0x1e8] ss:$16 sps:$4 sm:$0xff]  }
 0x3da   : > { %9703 = vmatpush1.bf16.msra.mxu0 %v18456_v9  ;;  %10359 = vmatpush1.bf16.msra.mxu1 %v18457_v55  ;;  %v18522_v31 = vld [vmem:[%s21559_s1 + $0x204] ss:$16 sps:$4 sm:$0xff]   ;;  %v18525_v32 = vld [vmem:[%s21559_s1 + $0x20c] ss:$16 sps:$4 sm:$0xff]   ;;  %v18520_v34 = vld [vmem:[%s21559_s1 + $0x200] ss:$16 sps:$4 sm:$0xff]  }
 0x3db   : > { %9704 = vmatprep.subr.bf16.mxu0 %v18458_v56  ;;  %10360 = vmatprep.subr.bf16.mxu1 %v18460_v57  ;;  %v18523_v35 = vld [vmem:[%s21559_s1 + $0x208] ss:$16 sps:$4 sm:$0xff]   ;;  %v18528_v36 = vld [vmem:[%s21559_s1 + $0x224] ss:$16 sps:$4 sm:$0xff]   ;;  %v18531_v37 = vld [vmem:[%s21559_s1 + $0x22c] ss:$16 sps:$4 sm:$0xff]  }
 0x3dc   : > { %v18526_v38 = vld [vmem:[%s21559_s1 + $0x220] ss:$16 sps:$4 sm:$0xff]   ;;  %v18529_v39 = vld [vmem:[%s21559_s1 + $0x228] ss:$16 sps:$4 sm:$0xff]   ;;  %v18534_v40 = vld [vmem:[%s21559_s1 + $0x244] ss:$16 sps:$4 sm:$0xff]  }
 0x3dd   : > { %v18537_v41 = vld [vmem:[%s21559_s1 + $0x24c] ss:$16 sps:$4 sm:$0xff]   ;;  %v18532_v42 = vld [vmem:[%s21559_s1 + $0x240] ss:$16 sps:$4 sm:$0xff]   ;;  %v18535_v43 = vld [vmem:[%s21559_s1 + $0x248] ss:$16 sps:$4 sm:$0xff]  }
 0x3de   : > { %9705 = vmatpush1.bf16.msra.mxu0 %v18462_v59  ;;  %10361 = vmatpush1.bf16.msra.mxu1 %v18463_v60  ;;  %v18540_v44 = vld [vmem:[%s21559_s1 + $0x264] ss:$16 sps:$4 sm:$0xff]   ;;  %v18543_v45 = vld [vmem:[%s21559_s1 + $0x26c] ss:$16 sps:$4 sm:$0xff]   ;;  %v18538_v46 = vld [vmem:[%s21559_s1 + $0x260] ss:$16 sps:$4 sm:$0xff]  }
 0x3df   : > { %9706 = vmatprep.subr.bf16.mxu0 %v18464_v52  ;;  %10362 = vmatprep.subr.bf16.mxu1 %v18466_v61  ;;  %v18541_v51 = vld [vmem:[%s21559_s1 + $0x268] ss:$16 sps:$4 sm:$0xff]   ;;  %v18546_v53 = vld [vmem:[%s21559_s1 + $0x284] ss:$16 sps:$4 sm:$0xff]   ;;  %v18549_v12 = vld [vmem:[%s21559_s1 + $0x28c] ss:$16 sps:$4 sm:$0xff]  }
 0x3e0   : > { %v18544_v54 = vld [vmem:[%s21559_s1 + $0x280] ss:$16 sps:$4 sm:$0xff]   ;;  %v18547_v9 = vld [vmem:[%s21559_s1 + $0x288] ss:$16 sps:$4 sm:$0xff]   ;;  %v18552_v55 = vld [vmem:[%s21559_s1 + $0x2a4] ss:$16 sps:$4 sm:$0xff]  }
 0x3e1   : > { %v18555_v56 = vld [vmem:[%s21559_s1 + $0x2ac] ss:$16 sps:$4 sm:$0xff]   ;;  %v18550_v57 = vld [vmem:[%s21559_s1 + $0x2a0] ss:$16 sps:$4 sm:$0xff]   ;;  %v18553_v59 = vld [vmem:[%s21559_s1 + $0x2a8] ss:$16 sps:$4 sm:$0xff]  }
 0x3e2   : > { %9707 = vmatpush1.bf16.msra.mxu0 %v18468_v1  ;;  %10363 = vmatpush1.bf16.msra.mxu1 %v18469_v3  ;;  %v18558_v60 = vld [vmem:[%s21559_s1 + $0x2c4] ss:$16 sps:$4 sm:$0xff]   ;;  %v18561_v52 = vld [vmem:[%s21559_s1 + $0x2cc] ss:$16 sps:$4 sm:$0xff]   ;;  %v18556_v3 = vld [vmem:[%s21559_s1 + $0x2c0] ss:$16 sps:$4 sm:$0xff]  }
 0x3e3   : > { %9708 = vmatprep.subr.bf16.mxu0 %v18470_v4  ;;  %10364 = vmatprep.subr.bf16.mxu1 %v18472_v5  ;;  %v21787_v61 = vld [vmem:[#allocation2 + $0x8] sm:$0xff]  ;;  %v18559_v4 = vld [vmem:[%s21559_s1 + $0x2c8] ss:$16 sps:$4 sm:$0xff]   ;;  %s23337_s24 = sld [smem:[#allocation51_spill]] (!%p17622_p12)  ;;  %vm21023_vm0 = vmmov (!%p17622_p12), 0   ;;  %vm15683_vm1 = vcmask (!%p17622_p12), 523264  }
 0x3e4   : > { %v16313_v1 = vcombine.high %v21787_v61, %v21787_v61  ;;  %v18564_v5 = vld [vmem:[%s21559_s1 + $0x2e4] ss:$16 sps:$4 sm:$0xff]   ;;  %v18585_v15 = vld [vmem:[%s21559_s1 + $0x34c] ss:$16 sps:$4 sm:$0xff]   ;;  %v18583_v17 = vld [vmem:[%s21559_s1 + $0x348] ss:$16 sps:$4 sm:$0xff]  }
 0x3e5   : > { %s23340_s4 = sld [smem:[#allocation54_spill]] (!%p17622_p12)  ;;  %vm15752_vm2 = vcmask (!%p17622_p12), 261120   ;;  %vm15796_vm3 = vcmask (!%p17622_p12), 7168   ;;  %s23341_s13 = sld [smem:[#allocation55_spill]] (!%p17622_p12) }
 0x3e6   : > { %9709 = vmatpush1.bf16.msra.mxu0 %v18474_v6  ;;  %10365 = vmatpush1.bf16.msra.mxu1 %v18475_v7  ;;  %v18567_v6 = vld [vmem:[%s21559_s1 + $0x2ec] ss:$16 sps:$4 sm:$0xff]   ;;  %v18562_v7 = vld [vmem:[%s21559_s1 + $0x2e0] ss:$16 sps:$4 sm:$0xff]  }
 0x3e7   : > { %9710 = vmatprep.subr.bf16.mxu0 %v18476_v8  ;;  %10366 = vmatprep.subr.bf16.mxu1 %v18478_v58  ;;  %v18565_v8 = vld [vmem:[%s21559_s1 + $0x2e8] ss:$16 sps:$4 sm:$0xff]   ;;  %v18570_v58 = vld [vmem:[%s21559_s1 + $0x304] ss:$16 sps:$4 sm:$0xff]  }
 0x3ea   : > { %9711 = vmatpush1.bf16.msra.mxu0 %v18480_v10  ;;  %10367 = vmatpush1.bf16.msra.mxu1 %v18481_v63  ;;  %v18573_v10 = vld [vmem:[%s21559_s1 + $0x30c] ss:$16 sps:$4 sm:$0xff]   ;;  %v18568_v63 = vld [vmem:[%s21559_s1 + $0x300] ss:$16 sps:$4 sm:$0xff]  }
 0x3eb   : > { %9712 = vmatprep.subr.bf16.mxu0 %v18482_v11  ;;  %10368 = vmatprep.subr.bf16.mxu1 %v18484_v0  ;;  %v18571_v11 = vld [vmem:[%s21559_s1 + $0x308] ss:$16 sps:$4 sm:$0xff]   ;;  %v18576_v0 = vld [vmem:[%s21559_s1 + $0x324] ss:$16 sps:$4 sm:$0xff]  }
 0x3ee   : > { %9713 = vmatpush1.bf16.msra.mxu0 %v18486_v2  ;;  %10369 = vmatpush1.bf16.msra.mxu1 %v18487_v13  ;;  %v18579_v2 = vld [vmem:[%s21559_s1 + $0x32c] ss:$16 sps:$4 sm:$0xff]   ;;  %v18574_v13 = vld [vmem:[%s21559_s1 + $0x320] ss:$16 sps:$4 sm:$0xff]  }
 0x3ef   : > { %9714 = vmatprep.subr.bf16.mxu0 %v18488_v62  ;;  %10370 = vmatprep.subr.bf16.mxu1 %v18490_v14  ;;  %v18577_v62 = vld [vmem:[%s21559_s1 + $0x328] ss:$16 sps:$4 sm:$0xff]   ;;  %v18582_v14 = vld [vmem:[%s21559_s1 + $0x344] ss:$16 sps:$4 sm:$0xff]  }
 0x3f2   : > { %9715 = vmatpush1.bf16.msra.mxu0 %v18492_v16  ;;  %10371 = vmatpush1.bf16.msra.mxu1 %v18493_v18  ;;  %v18580_v16 = vld [vmem:[%s21559_s1 + $0x340] ss:$16 sps:$4 sm:$0xff]   ;;  %v18588_v18 = vld [vmem:[%s21559_s1 + $0x364] ss:$16 sps:$4 sm:$0xff]  }
 0x3f3   : > { %9716 = vmatprep.subr.bf16.mxu0 %v18494_v19  ;;  %10372 = vmatprep.subr.bf16.mxu1 %v18496_v20  ;;  %v18591_v19 = vld [vmem:[%s21559_s1 + $0x36c] ss:$16 sps:$4 sm:$0xff]   ;;  %v18586_v20 = vld [vmem:[%s21559_s1 + $0x360] ss:$16 sps:$4 sm:$0xff]  }
 0x3f6   : > { %9717 = vmatpush1.bf16.msra.mxu0 %v18498_v21  ;;  %10373 = vmatpush1.bf16.msra.mxu1 %v18499_v22  ;;  %v18589_v21 = vld [vmem:[%s21559_s1 + $0x368] ss:$16 sps:$4 sm:$0xff]   ;;  %v18594_v22 = vld [vmem:[%s21559_s1 + $0x384] ss:$16 sps:$4 sm:$0xff]  }
 0x3f7   : > { %9718 = vmatprep.subr.bf16.mxu0 %v18500_v23  ;;  %10374 = vmatprep.subr.bf16.mxu1 %v18502_v24  ;;  %v18597_v23 = vld [vmem:[%s21559_s1 + $0x38c] ss:$16 sps:$4 sm:$0xff]   ;;  %v18592_v24 = vld [vmem:[%s21559_s1 + $0x380] ss:$16 sps:$4 sm:$0xff]  }
 0x3fa   : > { %9719 = vmatpush1.bf16.msra.mxu0 %v18504_v25  ;;  %10375 = vmatpush1.bf16.msra.mxu1 %v18505_v26  ;;  %v18595_v25 = vld [vmem:[%s21559_s1 + $0x388] ss:$16 sps:$4 sm:$0xff]   ;;  %v18600_v26 = vld [vmem:[%s21559_s1 + $0x3a4] ss:$16 sps:$4 sm:$0xff]  }
 0x3fb   : > { %9720 = vmatprep.subr.bf16.mxu0 %v18506_v27  ;;  %10376 = vmatprep.subr.bf16.mxu1 %v18508_v47  ;;  %v18603_v27 = vld [vmem:[%s21559_s1 + $0x3ac] ss:$16 sps:$4 sm:$0xff]   ;;  %v18598_v47 = vld [vmem:[%s21559_s1 + $0x3a0] ss:$16 sps:$4 sm:$0xff]  }
 0x3fe   : > { %9721 = vmatpush1.bf16.msra.mxu0 %v18510_v28  ;;  %10377 = vmatpush1.bf16.msra.mxu1 %v18511_v48  ;;  %v18601_v28 = vld [vmem:[%s21559_s1 + $0x3a8] ss:$16 sps:$4 sm:$0xff]   ;;  %v18606_v48 = vld [vmem:[%s21559_s1 + $0x3c4] ss:$16 sps:$4 sm:$0xff]  }
 0x3ff   : > { %9722 = vmatprep.subr.bf16.mxu0 %v18512_v29  ;;  %10378 = vmatprep.subr.bf16.mxu1 %v18514_v49  ;;  %v18609_v29 = vld [vmem:[%s21559_s1 + $0x3cc] ss:$16 sps:$4 sm:$0xff]   ;;  %v18604_v49 = vld [vmem:[%s21559_s1 + $0x3c0] ss:$16 sps:$4 sm:$0xff]  }
 0x402   : > { %9723 = vmatpush1.bf16.msra.mxu0 %v18516_v50  ;;  %10379 = vmatpush1.bf16.msra.mxu1 %v18517_v30  ;;  %v18607_v50 = vld [vmem:[%s21559_s1 + $0x3c8] ss:$16 sps:$4 sm:$0xff]   ;;  %v18612_v30 = vld [vmem:[%s21559_s1 + $0x3e4] ss:$16 sps:$4 sm:$0xff]  }
 0x403   : > { %9733 = vmatprep.subr.bf16.mxu0 %v18522_v31  ;;  %10389 = vmatprep.subr.bf16.mxu1 %v18525_v32  ;;  %v18615_v31 = vld [vmem:[%s21559_s1 + $0x3ec] ss:$16 sps:$4 sm:$0xff]   ;;  %v18610_v32 = vld [vmem:[%s21559_s1 + $0x3e0] ss:$16 sps:$4 sm:$0xff]  }
 0x405   : > { %9725 = vmatmul.mubr.bf16.vlgmr.msra.gmra.mrb[0].mxu0 %v16310_v33  ;;  %10381 = vmatmul.mubr.bf16.vlgmr.msra.gmra.mrb[0].mxu1 %v16310_v33  ;;  %v18613_v33 = vld [vmem:[%s21559_s1 + $0x3e8] ss:$16 sps:$4 sm:$0xff]  }
 0x406   : > { %9734 = vmatpush1.bf16.msra.mxu0 %v18520_v34  ;;  %10390 = vmatpush1.bf16.msra.mxu1 %v18523_v35  ;;  %v18620_v34 = vld [vmem:[%s21559_s1 + $0x404] ss:$16 sps:$4 sm:$0xff]   ;;  %v18623_v35 = vld [vmem:[%s21559_s1 + $0x40c] ss:$16 sps:$4 sm:$0xff]  }
 0x407   : > { %9735 = vmatprep.subr.bf16.mxu0 %v18528_v36  ;;  %10391 = vmatprep.subr.bf16.mxu1 %v18531_v37  ;;  %v16312_v36 = vcombine.low %v21787_v61, %v21787_v61  ;;  %v18618_v37 = vld [vmem:[%s21559_s1 + $0x400] ss:$16 sps:$4 sm:$0xff]   ;;  %v18653_v61 = vld [vmem:[%s21559_s1 + $0x4ac] ss:$16 sps:$4 sm:$0xff]  }
 0x408   : > { %9765 = vmatprep.mubr.bf16.mxu0 %v16313_v1  ;;  %10421 = vmatprep.mubr.bf16.mxu1 %v16313_v1  ;;  %v18648_v1 = vld [vmem:[%s21559_s1 + $0x4a0] ss:$16 sps:$4 sm:$0xff]  }
 0x40a   : > { %9736 = vmatpush1.bf16.msra.mxu0 %v18526_v38  ;;  %10392 = vmatpush1.bf16.msra.mxu1 %v18529_v39  ;;  %v18621_v38 = vld [vmem:[%s21559_s1 + $0x408] ss:$16 sps:$4 sm:$0xff]   ;;  %v18626_v39 = vld [vmem:[%s21559_s1 + $0x424] ss:$16 sps:$4 sm:$0xff]  }
 0x40b   : > { %9737 = vmatprep.subr.bf16.mxu0 %v18534_v40  ;;  %10393 = vmatprep.subr.bf16.mxu1 %v18537_v41  ;;  %v21836_v40 = vld [vmem:[#allocation2 + $0x10] sm:$0xff] }
 0x40c   : > { %v18629_v41 = vld [vmem:[%s21559_s1 + $0x42c] ss:$16 sps:$4 sm:$0xff]  }
 0x40e   : > { %9738 = vmatpush1.bf16.msra.mxu0 %v18532_v42  ;;  %10394 = vmatpush1.bf16.msra.mxu1 %v18535_v43  ;;  %v16315_v42 = vcombine.high %v21836_v40, %v21836_v40  ;;  %v18624_v43 = vld [vmem:[%s21559_s1 + $0x420] ss:$16 sps:$4 sm:$0xff]  }
 0x40f   : > { %9739 = vmatprep.subr.bf16.mxu0 %v18540_v44  ;;  %10395 = vmatprep.subr.bf16.mxu1 %v18543_v45  ;;  %v18627_v44 = vld [vmem:[%s21559_s1 + $0x428] ss:$16 sps:$4 sm:$0xff]   ;;  %v18632_v45 = vld [vmem:[%s21559_s1 + $0x444] ss:$16 sps:$4 sm:$0xff]  }
 0x412   : > { %9740 = vmatpush1.bf16.msra.mxu0 %v18538_v46  ;;  %10396 = vmatpush1.bf16.msra.mxu1 %v18541_v51  ;;  %v18635_v46 = vld [vmem:[%s21559_s1 + $0x44c] ss:$16 sps:$4 sm:$0xff]   ;;  %v18630_v51 = vld [vmem:[%s21559_s1 + $0x440] ss:$16 sps:$4 sm:$0xff]  }
 0x413   : > { %9741 = vmatprep.subr.bf16.mxu0 %v18546_v53  ;;  %10397 = vmatprep.subr.bf16.mxu1 %v18549_v12  ;;  %v18633_v53 = vld [vmem:[%s21559_s1 + $0x448] ss:$16 sps:$4 sm:$0xff]   ;;  %v18638_v12 = vld [vmem:[%s21559_s1 + $0x464] ss:$16 sps:$4 sm:$0xff]  }
 0x416   : > { %9742 = vmatpush1.bf16.msra.mxu0 %v18544_v54  ;;  %10398 = vmatpush1.bf16.msra.mxu1 %v18547_v9  ;;  %v18641_v54 = vld [vmem:[%s21559_s1 + $0x46c] ss:$16 sps:$4 sm:$0xff]   ;;  %v18636_v9 = vld [vmem:[%s21559_s1 + $0x460] ss:$16 sps:$4 sm:$0xff]  }
 0x417   : > { %9743 = vmatprep.subr.bf16.mxu0 %v18552_v55  ;;  %10399 = vmatprep.subr.bf16.mxu1 %v18555_v56  ;;  %v18639_v55 = vld [vmem:[%s21559_s1 + $0x468] ss:$16 sps:$4 sm:$0xff]   ;;  %v18644_v56 = vld [vmem:[%s21559_s1 + $0x484] ss:$16 sps:$4 sm:$0xff]  }
 0x41a   : > { %9744 = vmatpush1.bf16.msra.mxu0 %v18550_v57  ;;  %10400 = vmatpush1.bf16.msra.mxu1 %v18553_v59  ;;  %v18647_v57 = vld [vmem:[%s21559_s1 + $0x48c] ss:$16 sps:$4 sm:$0xff]   ;;  %v18642_v59 = vld [vmem:[%s21559_s1 + $0x480] ss:$16 sps:$4 sm:$0xff]  }
 0x41b   : > { %9745 = vmatprep.subr.bf16.mxu0 %v18558_v60  ;;  %10401 = vmatprep.subr.bf16.mxu1 %v18561_v52  ;;  %v18645_v60 = vld [vmem:[%s21559_s1 + $0x488] ss:$16 sps:$4 sm:$0xff]   ;;  %v18650_v52 = vld [vmem:[%s21559_s1 + $0x4a4] ss:$16 sps:$4 sm:$0xff]  }
 0x41e   : > { %9746 = vmatpush1.bf16.msra.mxu0 %v18556_v3  ;;  %10402 = vmatpush1.bf16.msra.mxu1 %v18559_v4  ;;  %v18651_v3 = vld [vmem:[%s21559_s1 + $0x4a8] ss:$16 sps:$4 sm:$0xff]   ;;  %v18656_v4 = vld [vmem:[%s21559_s1 + $0x4c4] ss:$16 sps:$4 sm:$0xff]  }
 0x41f   : > { %9747 = vmatprep.subr.bf16.mxu0 %v18564_v5  ;;  %10403 = vmatprep.subr.bf16.mxu1 %v18567_v6  ;;  %v18659_v5 = vld [vmem:[%s21559_s1 + $0x4cc] ss:$16 sps:$4 sm:$0xff]   ;;  %v18654_v6 = vld [vmem:[%s21559_s1 + $0x4c0] ss:$16 sps:$4 sm:$0xff]  }
 0x422   : > { %9748 = vmatpush1.bf16.msra.mxu0 %v18562_v7  ;;  %10404 = vmatpush1.bf16.msra.mxu1 %v18565_v8  ;;  %v18657_v7 = vld [vmem:[%s21559_s1 + $0x4c8] ss:$16 sps:$4 sm:$0xff]   ;;  %v18662_v8 = vld [vmem:[%s21559_s1 + $0x4e4] ss:$16 sps:$4 sm:$0xff]  }
 0x423   : > { %9749 = vmatprep.subr.bf16.mxu0 %v18570_v58  ;;  %10405 = vmatprep.subr.bf16.mxu1 %v18573_v10  ;;  %v18665_v58 = vld [vmem:[%s21559_s1 + $0x4ec] ss:$16 sps:$4 sm:$0xff]   ;;  %v18660_v10 = vld [vmem:[%s21559_s1 + $0x4e0] ss:$16 sps:$4 sm:$0xff]  }
 0x426   : > { %9750 = vmatpush1.bf16.msra.mxu0 %v18568_v63  ;;  %10406 = vmatpush1.bf16.msra.mxu1 %v18571_v11  ;;  %v18663_v63 = vld [vmem:[%s21559_s1 + $0x4e8] ss:$16 sps:$4 sm:$0xff]   ;;  %v18668_v11 = vld [vmem:[%s21559_s1 + $0x504] ss:$16 sps:$4 sm:$0xff]  }
 0x427   : > { %9751 = vmatprep.subr.bf16.mxu0 %v18576_v0  ;;  %10407 = vmatprep.subr.bf16.mxu1 %v18579_v2  ;;  %v18671_v0 = vld [vmem:[%s21559_s1 + $0x50c] ss:$16 sps:$4 sm:$0xff]   ;;  %v18666_v2 = vld [vmem:[%s21559_s1 + $0x500] ss:$16 sps:$4 sm:$0xff]  }
 0x42a   : > { %9752 = vmatpush1.bf16.msra.mxu0 %v18574_v13  ;;  %10408 = vmatpush1.bf16.msra.mxu1 %v18577_v62  ;;  %v18669_v13 = vld [vmem:[%s21559_s1 + $0x508] ss:$16 sps:$4 sm:$0xff]   ;;  %v18674_v62 = vld [vmem:[%s21559_s1 + $0x524] ss:$16 sps:$4 sm:$0xff]  }
 0x42b   : > { %9753 = vmatprep.subr.bf16.mxu0 %v18582_v14  ;;  %10409 = vmatprep.subr.bf16.mxu1 %v18585_v15  ;;  %v18677_v14 = vld [vmem:[%s21559_s1 + $0x52c] ss:$16 sps:$4 sm:$0xff]   ;;  %v18672_v15 = vld [vmem:[%s21559_s1 + $0x520] ss:$16 sps:$4 sm:$0xff]  }
 0x42e   : > { %9754 = vmatpush1.bf16.msra.mxu0 %v18580_v16  ;;  %10410 = vmatpush1.bf16.msra.mxu1 %v18583_v17  ;;  %v18675_v16 = vld [vmem:[%s21559_s1 + $0x528] ss:$16 sps:$4 sm:$0xff]   ;;  %v18680_v17 = vld [vmem:[%s21559_s1 + $0x544] ss:$16 sps:$4 sm:$0xff]  }
 0x42f   : > { %9755 = vmatprep.subr.bf16.mxu0 %v18588_v18  ;;  %10411 = vmatprep.subr.bf16.mxu1 %v18591_v19  ;;  %v18683_v18 = vld [vmem:[%s21559_s1 + $0x54c] ss:$16 sps:$4 sm:$0xff]   ;;  %v18678_v19 = vld [vmem:[%s21559_s1 + $0x540] ss:$16 sps:$4 sm:$0xff]  }
 0x432   : > { %9756 = vmatpush1.bf16.msra.mxu0 %v18586_v20  ;;  %10412 = vmatpush1.bf16.msra.mxu1 %v18589_v21  ;;  %v18681_v20 = vld [vmem:[%s21559_s1 + $0x548] ss:$16 sps:$4 sm:$0xff]   ;;  %v18686_v21 = vld [vmem:[%s21559_s1 + $0x564] ss:$16 sps:$4 sm:$0xff]  }
 0x433   : > { %9757 = vmatprep.subr.bf16.mxu0 %v18594_v22  ;;  %10413 = vmatprep.subr.bf16.mxu1 %v18597_v23  ;;  %v18689_v22 = vld [vmem:[%s21559_s1 + $0x56c] ss:$16 sps:$4 sm:$0xff]   ;;  %v18684_v23 = vld [vmem:[%s21559_s1 + $0x560] ss:$16 sps:$4 sm:$0xff]  }
 0x436   : > { %9758 = vmatpush1.bf16.msra.mxu0 %v18592_v24  ;;  %10414 = vmatpush1.bf16.msra.mxu1 %v18595_v25  ;;  %v18687_v24 = vld [vmem:[%s21559_s1 + $0x568] ss:$16 sps:$4 sm:$0xff]   ;;  %v18692_v25 = vld [vmem:[%s21559_s1 + $0x584] ss:$16 sps:$4 sm:$0xff]  }
 0x437   : > { %9759 = vmatprep.subr.bf16.mxu0 %v18600_v26  ;;  %10415 = vmatprep.subr.bf16.mxu1 %v18603_v27  ;;  %v18695_v26 = vld [vmem:[%s21559_s1 + $0x58c] ss:$16 sps:$4 sm:$0xff]   ;;  %v18690_v27 = vld [vmem:[%s21559_s1 + $0x580] ss:$16 sps:$4 sm:$0xff]  }
 0x43a   : > { %9760 = vmatpush1.bf16.msra.mxu0 %v18598_v47  ;;  %10416 = vmatpush1.bf16.msra.mxu1 %v18601_v28  ;;  %v18693_v47 = vld [vmem:[%s21559_s1 + $0x588] ss:$16 sps:$4 sm:$0xff]   ;;  %v18698_v28 = vld [vmem:[%s21559_s1 + $0x5a4] ss:$16 sps:$4 sm:$0xff]  }
 0x43b   : > { %9761 = vmatprep.subr.bf16.mxu0 %v18606_v48  ;;  %10417 = vmatprep.subr.bf16.mxu1 %v18609_v29  ;;  %v18701_v48 = vld [vmem:[%s21559_s1 + $0x5ac] ss:$16 sps:$4 sm:$0xff]   ;;  %v18696_v29 = vld [vmem:[%s21559_s1 + $0x5a0] ss:$16 sps:$4 sm:$0xff]  }
 0x43e   : > { %9762 = vmatpush1.bf16.msra.mxu0 %v18604_v49  ;;  %10418 = vmatpush1.bf16.msra.mxu1 %v18607_v50  ;;  %v18699_v49 = vld [vmem:[%s21559_s1 + $0x5a8] ss:$16 sps:$4 sm:$0xff]   ;;  %v18704_v50 = vld [vmem:[%s21559_s1 + $0x5c4] ss:$16 sps:$4 sm:$0xff]  }
 0x43f   : > { %9763 = vmatprep.subr.bf16.mxu0 %v18612_v30  ;;  %10419 = vmatprep.subr.bf16.mxu1 %v18615_v31  ;;  %v18707_v30 = vld [vmem:[%s21559_s1 + $0x5cc] ss:$16 sps:$4 sm:$0xff]   ;;  %v18702_v31 = vld [vmem:[%s21559_s1 + $0x5c0] ss:$16 sps:$4 sm:$0xff]  }
 0x442   : > { %9764 = vmatpush1.bf16.msra.mxu0 %v18610_v32  ;;  %10420 = vmatpush1.bf16.msra.mxu1 %v18613_v33  ;;  %v18705_v32 = vld [vmem:[%s21559_s1 + $0x5c8] ss:$16 sps:$4 sm:$0xff]   ;;  %v18710_v33 = vld [vmem:[%s21559_s1 + $0x5e4] ss:$16 sps:$4 sm:$0xff]  }
 0x443   : > { %9774 = vmatprep.subr.bf16.mxu0 %v18620_v34  ;;  %10430 = vmatprep.subr.bf16.mxu1 %v18623_v35  ;;  %v18713_v34 = vld [vmem:[%s21559_s1 + $0x5ec] ss:$16 sps:$4 sm:$0xff]   ;;  %v18708_v35 = vld [vmem:[%s21559_s1 + $0x5e0] ss:$16 sps:$4 sm:$0xff]  }
 0x445   : > { %9766 = vmatmul.mubr.bf16.vlgmr.msra.gmra.mrb[0].mxu0 %v16312_v36  ;;  %10422 = vmatmul.mubr.bf16.vlgmr.msra.gmra.mrb[0].mxu1 %v16312_v36  ;;  %v18711_v36 = vld [vmem:[%s21559_s1 + $0x5e8] ss:$16 sps:$4 sm:$0xff]  }
 0x446   : > { %9775 = vmatpush1.bf16.msra.mxu0 %v18618_v37  ;;  %10431 = vmatpush1.bf16.msra.mxu1 %v18621_v38  ;;  %v18718_v37 = vld [vmem:[%s21559_s1 + $0x604] ss:$16 sps:$4 sm:$0xff]   ;;  %v18721_v38 = vld [vmem:[%s21559_s1 + $0x60c] ss:$16 sps:$4 sm:$0xff]  }
 0x447   : > { %9776 = vmatprep.subr.bf16.mxu0 %v18626_v39  ;;  %10432 = vmatprep.subr.bf16.mxu1 %v18629_v41  ;;  %v18716_v39 = vld [vmem:[%s21559_s1 + $0x600] ss:$16 sps:$4 sm:$0xff]   ;;  %v16314_v41 = vcombine.low %v21836_v40, %v21836_v40 }
 0x448   : > { %9806 = vmatprep.mubr.bf16.mxu0 %v16315_v42  ;;  %10462 = vmatprep.mubr.bf16.mxu1 %v16315_v42  ;;  %v18719_v42 = vld [vmem:[%s21559_s1 + $0x608] ss:$16 sps:$4 sm:$0xff]   ;;  %v18722_v40 = vld [vmem:[%s21559_s1 + $0x620] ss:$16 sps:$4 sm:$0xff]  }
 0x44a   : > { %9777 = vmatpush1.bf16.msra.mxu0 %v18624_v43  ;;  %10433 = vmatpush1.bf16.msra.mxu1 %v18627_v44  ;;  %v21905_v43 = vld [vmem:[#allocation2 + $0x18] sm:$0xff] }
 0x44b   : > { %9778 = vmatprep.subr.bf16.mxu0 %v18632_v45  ;;  %10434 = vmatprep.subr.bf16.mxu1 %v18635_v46  ;;  %v18724_v44 = vld [vmem:[%s21559_s1 + $0x624] ss:$16 sps:$4 sm:$0xff]   ;;  %v18727_v45 = vld [vmem:[%s21559_s1 + $0x62c] ss:$16 sps:$4 sm:$0xff]   ;;  %v16317_v46 = vcombine.high %v21905_v43, %v21905_v43 }
 0x44e   : > { %9779 = vmatpush1.bf16.msra.mxu0 %v18630_v51  ;;  %10435 = vmatpush1.bf16.msra.mxu1 %v18633_v53  ;;  %v18725_v51 = vld [vmem:[%s21559_s1 + $0x628] ss:$16 sps:$4 sm:$0xff]   ;;  %v18730_v53 = vld [vmem:[%s21559_s1 + $0x644] ss:$16 sps:$4 sm:$0xff]  }
 0x44f   : > { %9780 = vmatprep.subr.bf16.mxu0 %v18638_v12  ;;  %10436 = vmatprep.subr.bf16.mxu1 %v18641_v54  ;;  %v18733_v12 = vld [vmem:[%s21559_s1 + $0x64c] ss:$16 sps:$4 sm:$0xff]   ;;  %v18728_v54 = vld [vmem:[%s21559_s1 + $0x640] ss:$16 sps:$4 sm:$0xff]  }
 0x452   : > { %9781 = vmatpush1.bf16.msra.mxu0 %v18636_v9  ;;  %10437 = vmatpush1.bf16.msra.mxu1 %v18639_v55  ;;  %v18731_v9 = vld [vmem:[%s21559_s1 + $0x648] ss:$16 sps:$4 sm:$0xff]   ;;  %v18736_v55 = vld [vmem:[%s21559_s1 + $0x664] ss:$16 sps:$4 sm:$0xff]  }
 0x453   : > { %9782 = vmatprep.subr.bf16.mxu0 %v18644_v56  ;;  %10438 = vmatprep.subr.bf16.mxu1 %v18647_v57  ;;  %v18739_v56 = vld [vmem:[%s21559_s1 + $0x66c] ss:$16 sps:$4 sm:$0xff]   ;;  %v18734_v57 = vld [vmem:[%s21559_s1 + $0x660] ss:$16 sps:$4 sm:$0xff]  }
 0x456   : > { %9783 = vmatpush1.bf16.msra.mxu0 %v18642_v59  ;;  %10439 = vmatpush1.bf16.msra.mxu1 %v18645_v60  ;;  %v18737_v59 = vld [vmem:[%s21559_s1 + $0x668] ss:$16 sps:$4 sm:$0xff]   ;;  %v18742_v60 = vld [vmem:[%s21559_s1 + $0x684] ss:$16 sps:$4 sm:$0xff]  }
 0x457   : > { %9784 = vmatprep.subr.bf16.mxu0 %v18650_v52  ;;  %10440 = vmatprep.subr.bf16.mxu1 %v18653_v61  ;;  %v18745_v52 = vld [vmem:[%s21559_s1 + $0x68c] ss:$16 sps:$4 sm:$0xff]   ;;  %v18740_v61 = vld [vmem:[%s21559_s1 + $0x680] ss:$16 sps:$4 sm:$0xff]  }
 0x45a   : > { %9785 = vmatpush1.bf16.msra.mxu0 %v18648_v1  ;;  %10441 = vmatpush1.bf16.msra.mxu1 %v18651_v3  ;;  %v18743_v1 = vld [vmem:[%s21559_s1 + $0x688] ss:$16 sps:$4 sm:$0xff]   ;;  %v18748_v3 = vld [vmem:[%s21559_s1 + $0x6a4] ss:$16 sps:$4 sm:$0xff]  }
 0x45b   : > { %9786 = vmatprep.subr.bf16.mxu0 %v18656_v4  ;;  %10442 = vmatprep.subr.bf16.mxu1 %v18659_v5  ;;  %v18751_v4 = vld [vmem:[%s21559_s1 + $0x6ac] ss:$16 sps:$4 sm:$0xff]   ;;  %v18746_v5 = vld [vmem:[%s21559_s1 + $0x6a0] ss:$16 sps:$4 sm:$0xff]  }
 0x45e   : > { %9787 = vmatpush1.bf16.msra.mxu0 %v18654_v6  ;;  %10443 = vmatpush1.bf16.msra.mxu1 %v18657_v7  ;;  %v18749_v6 = vld [vmem:[%s21559_s1 + $0x6a8] ss:$16 sps:$4 sm:$0xff]   ;;  %v18754_v7 = vld [vmem:[%s21559_s1 + $0x6c4] ss:$16 sps:$4 sm:$0xff]  }
 0x45f   : > { %9788 = vmatprep.subr.bf16.mxu0 %v18662_v8  ;;  %10444 = vmatprep.subr.bf16.mxu1 %v18665_v58  ;;  %v18757_v8 = vld [vmem:[%s21559_s1 + $0x6cc] ss:$16 sps:$4 sm:$0xff]   ;;  %v18752_v58 = vld [vmem:[%s21559_s1 + $0x6c0] ss:$16 sps:$4 sm:$0xff]  }
 0x462   : > { %9789 = vmatpush1.bf16.msra.mxu0 %v18660_v10  ;;  %10445 = vmatpush1.bf16.msra.mxu1 %v18663_v63  ;;  %v18755_v10 = vld [vmem:[%s21559_s1 + $0x6c8] ss:$16 sps:$4 sm:$0xff]   ;;  %v18760_v63 = vld [vmem:[%s21559_s1 + $0x6e4] ss:$16 sps:$4 sm:$0xff]  }
 0x463   : > { %9790 = vmatprep.subr.bf16.mxu0 %v18668_v11  ;;  %10446 = vmatprep.subr.bf16.mxu1 %v18671_v0  ;;  %v18763_v11 = vld [vmem:[%s21559_s1 + $0x6ec] ss:$16 sps:$4 sm:$0xff]   ;;  %v18758_v0 = vld [vmem:[%s21559_s1 + $0x6e0] ss:$16 sps:$4 sm:$0xff]  }
 0x466   : > { %9791 = vmatpush1.bf16.msra.mxu0 %v18666_v2  ;;  %10447 = vmatpush1.bf16.msra.mxu1 %v18669_v13  ;;  %v18761_v2 = vld [vmem:[%s21559_s1 + $0x6e8] ss:$16 sps:$4 sm:$0xff]   ;;  %v18766_v13 = vld [vmem:[%s21559_s1 + $0x704] ss:$16 sps:$4 sm:$0xff]  }
 0x467   : > { %9792 = vmatprep.subr.bf16.mxu0 %v18674_v62  ;;  %10448 = vmatprep.subr.bf16.mxu1 %v18677_v14  ;;  %v18769_v62 = vld [vmem:[%s21559_s1 + $0x70c] ss:$16 sps:$4 sm:$0xff]   ;;  %v18764_v14 = vld [vmem:[%s21559_s1 + $0x700] ss:$16 sps:$4 sm:$0xff]  }
 0x46a   : > { %9793 = vmatpush1.bf16.msra.mxu0 %v18672_v15  ;;  %10449 = vmatpush1.bf16.msra.mxu1 %v18675_v16  ;;  %v18767_v15 = vld [vmem:[%s21559_s1 + $0x708] ss:$16 sps:$4 sm:$0xff]   ;;  %v18772_v16 = vld [vmem:[%s21559_s1 + $0x724] ss:$16 sps:$4 sm:$0xff]  }
 0x46b   : > { %9794 = vmatprep.subr.bf16.mxu0 %v18680_v17  ;;  %10450 = vmatprep.subr.bf16.mxu1 %v18683_v18  ;;  %v18775_v17 = vld [vmem:[%s21559_s1 + $0x72c] ss:$16 sps:$4 sm:$0xff]   ;;  %v18770_v18 = vld [vmem:[%s21559_s1 + $0x720] ss:$16 sps:$4 sm:$0xff]  }
 0x46e   : > { %9795 = vmatpush1.bf16.msra.mxu0 %v18678_v19  ;;  %10451 = vmatpush1.bf16.msra.mxu1 %v18681_v20  ;;  %v18773_v19 = vld [vmem:[%s21559_s1 + $0x728] ss:$16 sps:$4 sm:$0xff]   ;;  %v18778_v20 = vld [vmem:[%s21559_s1 + $0x744] ss:$16 sps:$4 sm:$0xff]  }
 0x46f   : > { %9796 = vmatprep.subr.bf16.mxu0 %v18686_v21  ;;  %10452 = vmatprep.subr.bf16.mxu1 %v18689_v22  ;;  %v18781_v21 = vld [vmem:[%s21559_s1 + $0x74c] ss:$16 sps:$4 sm:$0xff]   ;;  %v18776_v22 = vld [vmem:[%s21559_s1 + $0x740] ss:$16 sps:$4 sm:$0xff]  }
 0x472   : > { %9797 = vmatpush1.bf16.msra.mxu0 %v18684_v23  ;;  %10453 = vmatpush1.bf16.msra.mxu1 %v18687_v24  ;;  %v18779_v23 = vld [vmem:[%s21559_s1 + $0x748] ss:$16 sps:$4 sm:$0xff]   ;;  %v18784_v24 = vld [vmem:[%s21559_s1 + $0x764] ss:$16 sps:$4 sm:$0xff]  }
 0x473   : > { %9798 = vmatprep.subr.bf16.mxu0 %v18692_v25  ;;  %10454 = vmatprep.subr.bf16.mxu1 %v18695_v26  ;;  %v18787_v25 = vld [vmem:[%s21559_s1 + $0x76c] ss:$16 sps:$4 sm:$0xff]   ;;  %v18782_v26 = vld [vmem:[%s21559_s1 + $0x760] ss:$16 sps:$4 sm:$0xff]  }
 0x476   : > { %9799 = vmatpush1.bf16.msra.mxu0 %v18690_v27  ;;  %10455 = vmatpush1.bf16.msra.mxu1 %v18693_v47  ;;  %v18785_v27 = vld [vmem:[%s21559_s1 + $0x768] ss:$16 sps:$4 sm:$0xff]   ;;  %v18790_v47 = vld [vmem:[%s21559_s1 + $0x784] ss:$16 sps:$4 sm:$0xff]  }
 0x477   : > { %9800 = vmatprep.subr.bf16.mxu0 %v18698_v28  ;;  %10456 = vmatprep.subr.bf16.mxu1 %v18701_v48  ;;  %v18793_v28 = vld [vmem:[%s21559_s1 + $0x78c] ss:$16 sps:$4 sm:$0xff]   ;;  %v18788_v48 = vld [vmem:[%s21559_s1 + $0x780] ss:$16 sps:$4 sm:$0xff]  }
 0x47a   : > { %9801 = vmatpush1.bf16.msra.mxu0 %v18696_v29  ;;  %10457 = vmatpush1.bf16.msra.mxu1 %v18699_v49  ;;  %v18791_v29 = vld [vmem:[%s21559_s1 + $0x788] ss:$16 sps:$4 sm:$0xff]   ;;  %v18796_v49 = vld [vmem:[%s21559_s1 + $0x7a4] ss:$16 sps:$4 sm:$0xff]  }
 0x47b   : > { %9802 = vmatprep.subr.bf16.mxu0 %v18704_v50  ;;  %10458 = vmatprep.subr.bf16.mxu1 %v18707_v30  ;;  %v18799_v50 = vld [vmem:[%s21559_s1 + $0x7ac] ss:$16 sps:$4 sm:$0xff]   ;;  %v18794_v30 = vld [vmem:[%s21559_s1 + $0x7a0] ss:$16 sps:$4 sm:$0xff]  }
 0x47e   : > { %9803 = vmatpush1.bf16.msra.mxu0 %v18702_v31  ;;  %10459 = vmatpush1.bf16.msra.mxu1 %v18705_v32  ;;  %v18797_v31 = vld [vmem:[%s21559_s1 + $0x7a8] ss:$16 sps:$4 sm:$0xff]   ;;  %v18802_v32 = vld [vmem:[%s21559_s1 + $0x7c4] ss:$16 sps:$4 sm:$0xff]  }
 0x47f   : > { %9804 = vmatprep.subr.bf16.mxu0 %v18710_v33  ;;  %10460 = vmatprep.subr.bf16.mxu1 %v18713_v34  ;;  %v18805_v33 = vld [vmem:[%s21559_s1 + $0x7cc] ss:$16 sps:$4 sm:$0xff]   ;;  %v18800_v34 = vld [vmem:[%s21559_s1 + $0x7c0] ss:$16 sps:$4 sm:$0xff]  }
 0x482   : > { %9805 = vmatpush1.bf16.msra.mxu0 %v18708_v35  ;;  %10461 = vmatpush1.bf16.msra.mxu1 %v18711_v36  ;;  %v18803_v35 = vld [vmem:[%s21559_s1 + $0x7c8] ss:$16 sps:$4 sm:$0xff]   ;;  %v18808_v36 = vld [vmem:[%s21559_s1 + $0x7e4] ss:$16 sps:$4 sm:$0xff]  }
 0x483   : > { %9815 = vmatprep.subr.bf16.mxu0 %v18718_v37  ;;  %10471 = vmatprep.subr.bf16.mxu1 %v18721_v38  ;;  %v18811_v37 = vld [vmem:[%s21559_s1 + $0x7ec] ss:$16 sps:$4 sm:$0xff]   ;;  %v18806_v38 = vld [vmem:[%s21559_s1 + $0x7e0] ss:$16 sps:$4 sm:$0xff]  }
 0x485   : > { %9807 = vmatmul.mubr.bf16.vlgmr.msra.gmra.mrb[0].mxu0 %v16314_v41  ;;  %10463 = vmatmul.mubr.bf16.vlgmr.msra.gmra.mrb[0].mxu1 %v16314_v41  ;;  %v18816_v41 = vld [vmem:[%s21559_s1 + $0x804] ss:$16 sps:$4 sm:$0xff]  }
 0x486   : > { %9816 = vmatpush1.bf16.msra.mxu0 %v18716_v39  ;;  %10472 = vmatpush1.bf16.msra.mxu1 %v18719_v42  ;;  %v18809_v39 = vld [vmem:[%s21559_s1 + $0x7e8] ss:$16 sps:$4 sm:$0xff]   ;;  %v18819_v42 = vld [vmem:[%s21559_s1 + $0x80c] ss:$16 sps:$4 sm:$0xff]  }
 0x487   : > { %9817 = vmatprep.subr.bf16.mxu0 %v18724_v44  ;;  %10473 = vmatprep.subr.bf16.mxu1 %v18727_v45  ;;  %v18814_v44 = vld [vmem:[%s21559_s1 + $0x800] ss:$16 sps:$4 sm:$0xff]   ;;  %v16316_v45 = vcombine.low %v21905_v43, %v21905_v43 }
 0x488   : > { %9847 = vmatprep.mubr.bf16.mxu0 %v16317_v46  ;;  %10503 = vmatprep.mubr.bf16.mxu1 %v16317_v46  ;;  %v21974_v46 = vld [vmem:[#allocation2 + $0x20] sm:$0xff]  ;;  %v18820_v43 = vld [vmem:[%s21559_s1 + $0x820] ss:$16 sps:$4 sm:$0xff]  }
 0x48a   : > { %9818 = vmatpush1.bf16.msra.mxu0 %v18722_v40  ;;  %10474 = vmatpush1.bf16.msra.mxu1 %v18725_v51  ;;  %v18817_v40 = vld [vmem:[%s21559_s1 + $0x808] ss:$16 sps:$4 sm:$0xff]   ;;  %v18822_v51 = vld [vmem:[%s21559_s1 + $0x824] ss:$16 sps:$4 sm:$0xff]  }
 0x48b   : > { %9819 = vmatprep.subr.bf16.mxu0 %v18730_v53  ;;  %10475 = vmatprep.subr.bf16.mxu1 %v18733_v12  ;;  %v18825_v53 = vld [vmem:[%s21559_s1 + $0x82c] ss:$16 sps:$4 sm:$0xff]   ;;  %v16319_v12 = vcombine.high %v21974_v46, %v21974_v46 }
 0x48e   : > { %9820 = vmatpush1.bf16.msra.mxu0 %v18728_v54  ;;  %10476 = vmatpush1.bf16.msra.mxu1 %v18731_v9  ;;  %v18823_v54 = vld [vmem:[%s21559_s1 + $0x828] ss:$16 sps:$4 sm:$0xff]   ;;  %v18828_v9 = vld [vmem:[%s21559_s1 + $0x844] ss:$16 sps:$4 sm:$0xff]  }
 0x48f   : > { %9821 = vmatprep.subr.bf16.mxu0 %v18736_v55  ;;  %10477 = vmatprep.subr.bf16.mxu1 %v18739_v56  ;;  %v18831_v55 = vld [vmem:[%s21559_s1 + $0x84c] ss:$16 sps:$4 sm:$0xff]   ;;  %v18826_v56 = vld [vmem:[%s21559_s1 + $0x840] ss:$16 sps:$4 sm:$0xff]  }
 0x492   : > { %9822 = vmatpush1.bf16.msra.mxu0 %v18734_v57  ;;  %10478 = vmatpush1.bf16.msra.mxu1 %v18737_v59  ;;  %v18829_v57 = vld [vmem:[%s21559_s1 + $0x848] ss:$16 sps:$4 sm:$0xff]   ;;  %v18834_v59 = vld [vmem:[%s21559_s1 + $0x864] ss:$16 sps:$4 sm:$0xff]  }
 0x493   : > { %9823 = vmatprep.subr.bf16.mxu0 %v18742_v60  ;;  %10479 = vmatprep.subr.bf16.mxu1 %v18745_v52  ;;  %v18837_v60 = vld [vmem:[%s21559_s1 + $0x86c] ss:$16 sps:$4 sm:$0xff]   ;;  %v18832_v52 = vld [vmem:[%s21559_s1 + $0x860] ss:$16 sps:$4 sm:$0xff]  }
 0x496   : > { %9824 = vmatpush1.bf16.msra.mxu0 %v18740_v61  ;;  %10480 = vmatpush1.bf16.msra.mxu1 %v18743_v1  ;;  %v18835_v61 = vld [vmem:[%s21559_s1 + $0x868] ss:$16 sps:$4 sm:$0xff]   ;;  %v18840_v1 = vld [vmem:[%s21559_s1 + $0x884] ss:$16 sps:$4 sm:$0xff]  }
 0x497   : > { %9825 = vmatprep.subr.bf16.mxu0 %v18748_v3  ;;  %10481 = vmatprep.subr.bf16.mxu1 %v18751_v4  ;;  %v18843_v3 = vld [vmem:[%s21559_s1 + $0x88c] ss:$16 sps:$4 sm:$0xff]   ;;  %v18838_v4 = vld [vmem:[%s21559_s1 + $0x880] ss:$16 sps:$4 sm:$0xff]  }
 0x49a   : > { %9826 = vmatpush1.bf16.msra.mxu0 %v18746_v5  ;;  %10482 = vmatpush1.bf16.msra.mxu1 %v18749_v6  ;;  %v18841_v5 = vld [vmem:[%s21559_s1 + $0x888] ss:$16 sps:$4 sm:$0xff]   ;;  %v18846_v6 = vld [vmem:[%s21559_s1 + $0x8a4] ss:$16 sps:$4 sm:$0xff]  }
 0x49b   : > { %9827 = vmatprep.subr.bf16.mxu0 %v18754_v7  ;;  %10483 = vmatprep.subr.bf16.mxu1 %v18757_v8  ;;  %v18849_v7 = vld [vmem:[%s21559_s1 + $0x8ac] ss:$16 sps:$4 sm:$0xff]   ;;  %v18844_v8 = vld [vmem:[%s21559_s1 + $0x8a0] ss:$16 sps:$4 sm:$0xff]  }
 0x49e   : > { %9828 = vmatpush1.bf16.msra.mxu0 %v18752_v58  ;;  %10484 = vmatpush1.bf16.msra.mxu1 %v18755_v10  ;;  %v18847_v58 = vld [vmem:[%s21559_s1 + $0x8a8] ss:$16 sps:$4 sm:$0xff]   ;;  %v18852_v10 = vld [vmem:[%s21559_s1 + $0x8c4] ss:$16 sps:$4 sm:$0xff]  }
 0x49f   : > { %9829 = vmatprep.subr.bf16.mxu0 %v18760_v63  ;;  %10485 = vmatprep.subr.bf16.mxu1 %v18763_v11  ;;  %v18855_v63 = vld [vmem:[%s21559_s1 + $0x8cc] ss:$16 sps:$4 sm:$0xff]   ;;  %v18850_v11 = vld [vmem:[%s21559_s1 + $0x8c0] ss:$16 sps:$4 sm:$0xff]  }
 0x4a2   : > { %9830 = vmatpush1.bf16.msra.mxu0 %v18758_v0  ;;  %10486 = vmatpush1.bf16.msra.mxu1 %v18761_v2  ;;  %v18853_v0 = vld [vmem:[%s21559_s1 + $0x8c8] ss:$16 sps:$4 sm:$0xff]   ;;  %v18858_v2 = vld [vmem:[%s21559_s1 + $0x8e4] ss:$16 sps:$4 sm:$0xff]  }
 0x4a3   : > { %9831 = vmatprep.subr.bf16.mxu0 %v18766_v13  ;;  %10487 = vmatprep.subr.bf16.mxu1 %v18769_v62  ;;  %v18861_v13 = vld [vmem:[%s21559_s1 + $0x8ec] ss:$16 sps:$4 sm:$0xff]   ;;  %v18856_v62 = vld [vmem:[%s21559_s1 + $0x8e0] ss:$16 sps:$4 sm:$0xff]  }
 0x4a6   : > { %9832 = vmatpush1.bf16.msra.mxu0 %v18764_v14  ;;  %10488 = vmatpush1.bf16.msra.mxu1 %v18767_v15  ;;  %v18859_v14 = vld [vmem:[%s21559_s1 + $0x8e8] ss:$16 sps:$4 sm:$0xff]   ;;  %v18864_v15 = vld [vmem:[%s21559_s1 + $0x904] ss:$16 sps:$4 sm:$0xff]  }
 0x4a7   : > { %9833 = vmatprep.subr.bf16.mxu0 %v18772_v16  ;;  %10489 = vmatprep.subr.bf16.mxu1 %v18775_v17  ;;  %v18867_v16 = vld [vmem:[%s21559_s1 + $0x90c] ss:$16 sps:$4 sm:$0xff]   ;;  %v18862_v17 = vld [vmem:[%s21559_s1 + $0x900] ss:$16 sps:$4 sm:$0xff]  }
 0x4aa   : > { %9834 = vmatpush1.bf16.msra.mxu0 %v18770_v18  ;;  %10490 = vmatpush1.bf16.msra.mxu1 %v18773_v19  ;;  %v18865_v18 = vld [vmem:[%s21559_s1 + $0x908] ss:$16 sps:$4 sm:$0xff]   ;;  %v18870_v19 = vld [vmem:[%s21559_s1 + $0x924] ss:$16 sps:$4 sm:$0xff]  }
 0x4ab   : > { %9835 = vmatprep.subr.bf16.mxu0 %v18778_v20  ;;  %10491 = vmatprep.subr.bf16.mxu1 %v18781_v21  ;;  %v18873_v20 = vld [vmem:[%s21559_s1 + $0x92c] ss:$16 sps:$4 sm:$0xff]   ;;  %v18868_v21 = vld [vmem:[%s21559_s1 + $0x920] ss:$16 sps:$4 sm:$0xff]  }
 0x4ae   : > { %9836 = vmatpush1.bf16.msra.mxu0 %v18776_v22  ;;  %10492 = vmatpush1.bf16.msra.mxu1 %v18779_v23  ;;  %v18871_v22 = vld [vmem:[%s21559_s1 + $0x928] ss:$16 sps:$4 sm:$0xff]   ;;  %v18876_v23 = vld [vmem:[%s21559_s1 + $0x944] ss:$16 sps:$4 sm:$0xff]  }
 0x4af   : > { %9837 = vmatprep.subr.bf16.mxu0 %v18784_v24  ;;  %10493 = vmatprep.subr.bf16.mxu1 %v18787_v25  ;;  %v18879_v24 = vld [vmem:[%s21559_s1 + $0x94c] ss:$16 sps:$4 sm:$0xff]   ;;  %v18874_v25 = vld [vmem:[%s21559_s1 + $0x940] ss:$16 sps:$4 sm:$0xff]  }
 0x4b2   : > { %9838 = vmatpush1.bf16.msra.mxu0 %v18782_v26  ;;  %10494 = vmatpush1.bf16.msra.mxu1 %v18785_v27  ;;  %v18877_v26 = vld [vmem:[%s21559_s1 + $0x948] ss:$16 sps:$4 sm:$0xff]   ;;  %v18882_v27 = vld [vmem:[%s21559_s1 + $0x964] ss:$16 sps:$4 sm:$0xff]  }
 0x4b3   : > { %9839 = vmatprep.subr.bf16.mxu0 %v18790_v47  ;;  %10495 = vmatprep.subr.bf16.mxu1 %v18793_v28  ;;  %v18885_v47 = vld [vmem:[%s21559_s1 + $0x96c] ss:$16 sps:$4 sm:$0xff]   ;;  %v18880_v28 = vld [vmem:[%s21559_s1 + $0x960] ss:$16 sps:$4 sm:$0xff]  }
 0x4b6   : > { %9840 = vmatpush1.bf16.msra.mxu0 %v18788_v48  ;;  %10496 = vmatpush1.bf16.msra.mxu1 %v18791_v29  ;;  %v18883_v48 = vld [vmem:[%s21559_s1 + $0x968] ss:$16 sps:$4 sm:$0xff]   ;;  %v18888_v29 = vld [vmem:[%s21559_s1 + $0x984] ss:$16 sps:$4 sm:$0xff]  }
 0x4b7   : > { %9841 = vmatprep.subr.bf16.mxu0 %v18796_v49  ;;  %10497 = vmatprep.subr.bf16.mxu1 %v18799_v50  ;;  %v18891_v49 = vld [vmem:[%s21559_s1 + $0x98c] ss:$16 sps:$4 sm:$0xff]   ;;  %v18886_v50 = vld [vmem:[%s21559_s1 + $0x980] ss:$16 sps:$4 sm:$0xff]  }
 0x4ba   : > { %9842 = vmatpush1.bf16.msra.mxu0 %v18794_v30  ;;  %10498 = vmatpush1.bf16.msra.mxu1 %v18797_v31  ;;  %v18889_v30 = vld [vmem:[%s21559_s1 + $0x988] ss:$16 sps:$4 sm:$0xff]   ;;  %v18894_v31 = vld [vmem:[%s21559_s1 + $0x9a4] ss:$16 sps:$4 sm:$0xff]  }
 0x4bb   : > { %9843 = vmatprep.subr.bf16.mxu0 %v18802_v32  ;;  %10499 = vmatprep.subr.bf16.mxu1 %v18805_v33  ;;  %v18897_v32 = vld [vmem:[%s21559_s1 + $0x9ac] ss:$16 sps:$4 sm:$0xff]   ;;  %v18892_v33 = vld [vmem:[%s21559_s1 + $0x9a0] ss:$16 sps:$4 sm:$0xff]  }
 0x4be   : > { %9844 = vmatpush1.bf16.msra.mxu0 %v18800_v34  ;;  %10500 = vmatpush1.bf16.msra.mxu1 %v18803_v35  ;;  %v18895_v34 = vld [vmem:[%s21559_s1 + $0x9a8] ss:$16 sps:$4 sm:$0xff]   ;;  %v18900_v35 = vld [vmem:[%s21559_s1 + $0x9c4] ss:$16 sps:$4 sm:$0xff]  }
 0x4bf   : > { %9845 = vmatprep.subr.bf16.mxu0 %v18808_v36  ;;  %10501 = vmatprep.subr.bf16.mxu1 %v18811_v37  ;;  %v18903_v36 = vld [vmem:[%s21559_s1 + $0x9cc] ss:$16 sps:$4 sm:$0xff]   ;;  %v18898_v37 = vld [vmem:[%s21559_s1 + $0x9c0] ss:$16 sps:$4 sm:$0xff]  }
 0x4c2   : > { %9846 = vmatpush1.bf16.msra.mxu0 %v18806_v38  ;;  %10502 = vmatpush1.bf16.msra.mxu1 %v18809_v39  ;;  %v18901_v38 = vld [vmem:[%s21559_s1 + $0x9c8] ss:$16 sps:$4 sm:$0xff]   ;;  %v18906_v39 = vld [vmem:[%s21559_s1 + $0x9e4] ss:$16 sps:$4 sm:$0xff]  }
 0x4c3   : > { %9856 = vmatprep.subr.bf16.mxu0 %v18816_v41  ;;  %10512 = vmatprep.subr.bf16.mxu1 %v18819_v42  ;;  %v18909_v41 = vld [vmem:[%s21559_s1 + $0x9ec] ss:$16 sps:$4 sm:$0xff]   ;;  %v18904_v42 = vld [vmem:[%s21559_s1 + $0x9e0] ss:$16 sps:$4 sm:$0xff]  }
 0x4c5   : > { %9848 = vmatmul.mubr.bf16.vlgmr.msra.gmra.mrb[0].mxu0 %v16316_v45  ;;  %10504 = vmatmul.mubr.bf16.vlgmr.msra.gmra.mrb[0].mxu1 %v16316_v45  ;;  %v18914_v45 = vld [vmem:[%s21559_s1 + $0xa04] ss:$16 sps:$4 sm:$0xff]  }
 0x4c6   : > { %9857 = vmatpush1.bf16.msra.mxu0 %v18814_v44  ;;  %10513 = vmatpush1.bf16.msra.mxu1 %v18817_v40  ;;  %v18907_v44 = vld [vmem:[%s21559_s1 + $0x9e8] ss:$16 sps:$4 sm:$0xff]   ;;  %v18917_v40 = vld [vmem:[%s21559_s1 + $0xa0c] ss:$16 sps:$4 sm:$0xff]  }
 0x4c7   : > { %9858 = vmatprep.subr.bf16.mxu0 %v18822_v51  ;;  %10514 = vmatprep.subr.bf16.mxu1 %v18825_v53  ;;  %v22041_v51 = vld [vmem:[#allocation2 + $0x28] sm:$0xff]  ;;  %v16318_v53 = vcombine.low %v21974_v46, %v21974_v46 }
 0x4c8   : > { %9888 = vmatprep.mubr.bf16.mxu0 %v16319_v12  ;;  %10544 = vmatprep.mubr.bf16.mxu1 %v16319_v12  ;;  %v18912_v12 = vld [vmem:[%s21559_s1 + $0xa00] ss:$16 sps:$4 sm:$0xff]  }
 0x4c9   : > { %v18918_v46 = vld [vmem:[%s21559_s1 + $0xa20] ss:$16 sps:$4 sm:$0xff]  }
 0x4ca   : > { %9859 = vmatpush1.bf16.msra.mxu0 %v18820_v43  ;;  %10515 = vmatpush1.bf16.msra.mxu1 %v18823_v54  ;;  %v18915_v43 = vld [vmem:[%s21559_s1 + $0xa08] ss:$16 sps:$4 sm:$0xff]   ;;  %v18920_v54 = vld [vmem:[%s21559_s1 + $0xa24] ss:$16 sps:$4 sm:$0xff]  }
 0x4cb   : > { %9860 = vmatprep.subr.bf16.mxu0 %v18828_v9  ;;  %10516 = vmatprep.subr.bf16.mxu1 %v18831_v55  ;;  %v18923_v9 = vld [vmem:[%s21559_s1 + $0xa2c] ss:$16 sps:$4 sm:$0xff]   ;;  %v16321_v55 = vcombine.high %v22041_v51, %v22041_v51 }
 0x4ce   : > { %9861 = vmatpush1.bf16.msra.mxu0 %v18826_v56  ;;  %10517 = vmatpush1.bf16.msra.mxu1 %v18829_v57  ;;  %v18921_v56 = vld [vmem:[%s21559_s1 + $0xa28] ss:$16 sps:$4 sm:$0xff]   ;;  %v18926_v57 = vld [vmem:[%s21559_s1 + $0xa44] ss:$16 sps:$4 sm:$0xff]  }
 0x4cf   : > { %9862 = vmatprep.subr.bf16.mxu0 %v18834_v59  ;;  %10518 = vmatprep.subr.bf16.mxu1 %v18837_v60  ;;  %v18929_v59 = vld [vmem:[%s21559_s1 + $0xa4c] ss:$16 sps:$4 sm:$0xff]   ;;  %v18924_v60 = vld [vmem:[%s21559_s1 + $0xa40] ss:$16 sps:$4 sm:$0xff]  }
 0x4d2   : > { %9863 = vmatpush1.bf16.msra.mxu0 %v18832_v52  ;;  %10519 = vmatpush1.bf16.msra.mxu1 %v18835_v61  ;;  %v18927_v52 = vld [vmem:[%s21559_s1 + $0xa48] ss:$16 sps:$4 sm:$0xff]   ;;  %v18932_v61 = vld [vmem:[%s21559_s1 + $0xa64] ss:$16 sps:$4 sm:$0xff]  }
 0x4d3   : > { %9864 = vmatprep.subr.bf16.mxu0 %v18840_v1  ;;  %10520 = vmatprep.subr.bf16.mxu1 %v18843_v3  ;;  %v18935_v1 = vld [vmem:[%s21559_s1 + $0xa6c] ss:$16 sps:$4 sm:$0xff]   ;;  %v18930_v3 = vld [vmem:[%s21559_s1 + $0xa60] ss:$16 sps:$4 sm:$0xff]  }
 0x4d6   : > { %9865 = vmatpush1.bf16.msra.mxu0 %v18838_v4  ;;  %10521 = vmatpush1.bf16.msra.mxu1 %v18841_v5  ;;  %v18933_v4 = vld [vmem:[%s21559_s1 + $0xa68] ss:$16 sps:$4 sm:$0xff]   ;;  %v18938_v5 = vld [vmem:[%s21559_s1 + $0xa84] ss:$16 sps:$4 sm:$0xff]  }
 0x4d7   : > { %9866 = vmatprep.subr.bf16.mxu0 %v18846_v6  ;;  %10522 = vmatprep.subr.bf16.mxu1 %v18849_v7  ;;  %v18941_v6 = vld [vmem:[%s21559_s1 + $0xa8c] ss:$16 sps:$4 sm:$0xff]   ;;  %v18936_v7 = vld [vmem:[%s21559_s1 + $0xa80] ss:$16 sps:$4 sm:$0xff]  }
 0x4da   : > { %9867 = vmatpush1.bf16.msra.mxu0 %v18844_v8  ;;  %10523 = vmatpush1.bf16.msra.mxu1 %v18847_v58  ;;  %v18939_v8 = vld [vmem:[%s21559_s1 + $0xa88] ss:$16 sps:$4 sm:$0xff]   ;;  %v18944_v58 = vld [vmem:[%s21559_s1 + $0xaa4] ss:$16 sps:$4 sm:$0xff]  }
 0x4db   : > { %9868 = vmatprep.subr.bf16.mxu0 %v18852_v10  ;;  %10524 = vmatprep.subr.bf16.mxu1 %v18855_v63  ;;  %v18947_v10 = vld [vmem:[%s21559_s1 + $0xaac] ss:$16 sps:$4 sm:$0xff]   ;;  %v18942_v63 = vld [vmem:[%s21559_s1 + $0xaa0] ss:$16 sps:$4 sm:$0xff]  }
 0x4de   : > { %9869 = vmatpush1.bf16.msra.mxu0 %v18850_v11  ;;  %10525 = vmatpush1.bf16.msra.mxu1 %v18853_v0  ;;  %v18945_v11 = vld [vmem:[%s21559_s1 + $0xaa8] ss:$16 sps:$4 sm:$0xff]   ;;  %v18950_v0 = vld [vmem:[%s21559_s1 + $0xac4] ss:$16 sps:$4 sm:$0xff]  }
 0x4df   : > { %9870 = vmatprep.subr.bf16.mxu0 %v18858_v2  ;;  %10526 = vmatprep.subr.bf16.mxu1 %v18861_v13  ;;  %v18953_v2 = vld [vmem:[%s21559_s1 + $0xacc] ss:$16 sps:$4 sm:$0xff]   ;;  %v18948_v13 = vld [vmem:[%s21559_s1 + $0xac0] ss:$16 sps:$4 sm:$0xff]  }
 0x4e2   : > { %9871 = vmatpush1.bf16.msra.mxu0 %v18856_v62  ;;  %10527 = vmatpush1.bf16.msra.mxu1 %v18859_v14  ;;  %v18951_v62 = vld [vmem:[%s21559_s1 + $0xac8] ss:$16 sps:$4 sm:$0xff]   ;;  %v18956_v14 = vld [vmem:[%s21559_s1 + $0xae4] ss:$16 sps:$4 sm:$0xff]  }
 0x4e3   : > { %9872 = vmatprep.subr.bf16.mxu0 %v18864_v15  ;;  %10528 = vmatprep.subr.bf16.mxu1 %v18867_v16  ;;  %v18959_v15 = vld [vmem:[%s21559_s1 + $0xaec] ss:$16 sps:$4 sm:$0xff]   ;;  %v18954_v16 = vld [vmem:[%s21559_s1 + $0xae0] ss:$16 sps:$4 sm:$0xff]  }
 0x4e6   : > { %9873 = vmatpush1.bf16.msra.mxu0 %v18862_v17  ;;  %10529 = vmatpush1.bf16.msra.mxu1 %v18865_v18  ;;  %v18957_v17 = vld [vmem:[%s21559_s1 + $0xae8] ss:$16 sps:$4 sm:$0xff]   ;;  %v18962_v18 = vld [vmem:[%s21559_s1 + $0xb04] ss:$16 sps:$4 sm:$0xff]  }
 0x4e7   : > { %9874 = vmatprep.subr.bf16.mxu0 %v18870_v19  ;;  %10530 = vmatprep.subr.bf16.mxu1 %v18873_v20  ;;  %v18965_v19 = vld [vmem:[%s21559_s1 + $0xb0c] ss:$16 sps:$4 sm:$0xff]   ;;  %v18960_v20 = vld [vmem:[%s21559_s1 + $0xb00] ss:$16 sps:$4 sm:$0xff]  }
 0x4ea   : > { %9875 = vmatpush1.bf16.msra.mxu0 %v18868_v21  ;;  %10531 = vmatpush1.bf16.msra.mxu1 %v18871_v22  ;;  %v18963_v21 = vld [vmem:[%s21559_s1 + $0xb08] ss:$16 sps:$4 sm:$0xff]   ;;  %v18968_v22 = vld [vmem:[%s21559_s1 + $0xb24] ss:$16 sps:$4 sm:$0xff]  }
 0x4eb   : > { %9876 = vmatprep.subr.bf16.mxu0 %v18876_v23  ;;  %10532 = vmatprep.subr.bf16.mxu1 %v18879_v24  ;;  %v18971_v23 = vld [vmem:[%s21559_s1 + $0xb2c] ss:$16 sps:$4 sm:$0xff]   ;;  %v18966_v24 = vld [vmem:[%s21559_s1 + $0xb20] ss:$16 sps:$4 sm:$0xff]  }
 0x4ee   : > { %9877 = vmatpush1.bf16.msra.mxu0 %v18874_v25  ;;  %10533 = vmatpush1.bf16.msra.mxu1 %v18877_v26  ;;  %v18969_v25 = vld [vmem:[%s21559_s1 + $0xb28] ss:$16 sps:$4 sm:$0xff]   ;;  %v18974_v26 = vld [vmem:[%s21559_s1 + $0xb44] ss:$16 sps:$4 sm:$0xff]  }
 0x4ef   : > { %9878 = vmatprep.subr.bf16.mxu0 %v18882_v27  ;;  %10534 = vmatprep.subr.bf16.mxu1 %v18885_v47  ;;  %v18977_v27 = vld [vmem:[%s21559_s1 + $0xb4c] ss:$16 sps:$4 sm:$0xff]   ;;  %v18972_v47 = vld [vmem:[%s21559_s1 + $0xb40] ss:$16 sps:$4 sm:$0xff]  }
 0x4f2   : > { %9879 = vmatpush1.bf16.msra.mxu0 %v18880_v28  ;;  %10535 = vmatpush1.bf16.msra.mxu1 %v18883_v48  ;;  %v18975_v28 = vld [vmem:[%s21559_s1 + $0xb48] ss:$16 sps:$4 sm:$0xff]   ;;  %v18980_v48 = vld [vmem:[%s21559_s1 + $0xb64] ss:$16 sps:$4 sm:$0xff]  }
 0x4f3   : > { %9880 = vmatprep.subr.bf16.mxu0 %v18888_v29  ;;  %10536 = vmatprep.subr.bf16.mxu1 %v18891_v49  ;;  %v18983_v29 = vld [vmem:[%s21559_s1 + $0xb6c] ss:$16 sps:$4 sm:$0xff]   ;;  %v18978_v49 = vld [vmem:[%s21559_s1 + $0xb60] ss:$16 sps:$4 sm:$0xff]  }
 0x4f6   : > { %9881 = vmatpush1.bf16.msra.mxu0 %v18886_v50  ;;  %10537 = vmatpush1.bf16.msra.mxu1 %v18889_v30  ;;  %v18981_v50 = vld [vmem:[%s21559_s1 + $0xb68] ss:$16 sps:$4 sm:$0xff]   ;;  %v18986_v30 = vld [vmem:[%s21559_s1 + $0xb84] ss:$16 sps:$4 sm:$0xff]  }
 0x4f7   : > { %9882 = vmatprep.subr.bf16.mxu0 %v18894_v31  ;;  %10538 = vmatprep.subr.bf16.mxu1 %v18897_v32  ;;  %v18989_v31 = vld [vmem:[%s21559_s1 + $0xb8c] ss:$16 sps:$4 sm:$0xff]   ;;  %v18984_v32 = vld [vmem:[%s21559_s1 + $0xb80] ss:$16 sps:$4 sm:$0xff]  }
 0x4fa   : > { %9883 = vmatpush1.bf16.msra.mxu0 %v18892_v33  ;;  %10539 = vmatpush1.bf16.msra.mxu1 %v18895_v34  ;;  %v18987_v33 = vld [vmem:[%s21559_s1 + $0xb88] ss:$16 sps:$4 sm:$0xff]   ;;  %v18992_v34 = vld [vmem:[%s21559_s1 + $0xba4] ss:$16 sps:$4 sm:$0xff]  }
 0x4fb   : > { %9884 = vmatprep.subr.bf16.mxu0 %v18900_v35  ;;  %10540 = vmatprep.subr.bf16.mxu1 %v18903_v36  ;;  %v18995_v35 = vld [vmem:[%s21559_s1 + $0xbac] ss:$16 sps:$4 sm:$0xff]   ;;  %v18990_v36 = vld [vmem:[%s21559_s1 + $0xba0] ss:$16 sps:$4 sm:$0xff]  }
 0x4fe   : > { %9885 = vmatpush1.bf16.msra.mxu0 %v18898_v37  ;;  %10541 = vmatpush1.bf16.msra.mxu1 %v18901_v38  ;;  %v18993_v37 = vld [vmem:[%s21559_s1 + $0xba8] ss:$16 sps:$4 sm:$0xff]   ;;  %v18998_v38 = vld [vmem:[%s21559_s1 + $0xbc4] ss:$16 sps:$4 sm:$0xff]  }
 0x4ff   : > { %9886 = vmatprep.subr.bf16.mxu0 %v18906_v39  ;;  %10542 = vmatprep.subr.bf16.mxu1 %v18909_v41  ;;  %v19001_v39 = vld [vmem:[%s21559_s1 + $0xbcc] ss:$16 sps:$4 sm:$0xff]   ;;  %v18996_v41 = vld [vmem:[%s21559_s1 + $0xbc0] ss:$16 sps:$4 sm:$0xff]  }
 0x502   : > { %9887 = vmatpush1.bf16.msra.mxu0 %v18904_v42  ;;  %10543 = vmatpush1.bf16.msra.mxu1 %v18907_v44  ;;  %v18999_v42 = vld [vmem:[%s21559_s1 + $0xbc8] ss:$16 sps:$4 sm:$0xff]   ;;  %v19004_v44 = vld [vmem:[%s21559_s1 + $0xbe4] ss:$16 sps:$4 sm:$0xff]  }
 0x503   : > { %9897 = vmatprep.subr.bf16.mxu0 %v18914_v45  ;;  %10553 = vmatprep.subr.bf16.mxu1 %v18917_v40  ;;  %v19007_v45 = vld [vmem:[%s21559_s1 + $0xbec] ss:$16 sps:$4 sm:$0xff]   ;;  %v19002_v40 = vld [vmem:[%s21559_s1 + $0xbe0] ss:$16 sps:$4 sm:$0xff]  }
 0x505   : > { %9889 = vmatmul.mubr.bf16.vlgmr.msra.gmra.mrb[0].mxu0 %v16318_v53  ;;  %10545 = vmatmul.mubr.bf16.vlgmr.msra.gmra.mrb[0].mxu1 %v16318_v53  ;;  %v19005_v53 = vld [vmem:[%s21559_s1 + $0xbe8] ss:$16 sps:$4 sm:$0xff]  }
 0x506   : > { %9898 = vmatpush1.bf16.msra.mxu0 %v18912_v12  ;;  %10554 = vmatpush1.bf16.msra.mxu1 %v18915_v43  ;;  %v19012_v12 = vld [vmem:[%s21559_s1 + $0xc04] ss:$16 sps:$4 sm:$0xff]   ;;  %v19015_v43 = vld [vmem:[%s21559_s1 + $0xc0c] ss:$16 sps:$4 sm:$0xff]  }
 0x507   : > { %9899 = vmatprep.subr.bf16.mxu0 %v18920_v54  ;;  %10555 = vmatprep.subr.bf16.mxu1 %v18923_v9  ;;  %v22111_v54 = vld [vmem:[#allocation2 + $0x30] sm:$0xff]  ;;  %v16320_v9 = vcombine.low %v22041_v51, %v22041_v51  ;;  %v19016_v51 = vld [vmem:[%s21559_s1 + $0xc20] ss:$16 sps:$4 sm:$0xff]  }
 0x508   : > { %9929 = vmatprep.mubr.bf16.mxu0 %v16321_v55  ;;  %10585 = vmatprep.mubr.bf16.mxu1 %v16321_v55  ;;  %v19010_v55 = vld [vmem:[%s21559_s1 + $0xc00] ss:$16 sps:$4 sm:$0xff]  }
 0x50a   : > { %9900 = vmatpush1.bf16.msra.mxu0 %v18918_v46  ;;  %10556 = vmatpush1.bf16.msra.mxu1 %v18921_v56  ;;  %v19013_v46 = vld [vmem:[%s21559_s1 + $0xc08] ss:$16 sps:$4 sm:$0xff]   ;;  %v19018_v56 = vld [vmem:[%s21559_s1 + $0xc24] ss:$16 sps:$4 sm:$0xff]  }
 0x50b   : > { %9901 = vmatprep.subr.bf16.mxu0 %v18926_v57  ;;  %10557 = vmatprep.subr.bf16.mxu1 %v18929_v59  ;;  %v19021_v57 = vld [vmem:[%s21559_s1 + $0xc2c] ss:$16 sps:$4 sm:$0xff]   ;;  %v16323_v59 = vcombine.high %v22111_v54, %v22111_v54 }
 0x50e   : > { %9902 = vmatpush1.bf16.msra.mxu0 %v18924_v60  ;;  %10558 = vmatpush1.bf16.msra.mxu1 %v18927_v52  ;;  %v19019_v60 = vld [vmem:[%s21559_s1 + $0xc28] ss:$16 sps:$4 sm:$0xff]   ;;  %v19024_v52 = vld [vmem:[%s21559_s1 + $0xc44] ss:$16 sps:$4 sm:$0xff]  }
 0x50f   : > { %9903 = vmatprep.subr.bf16.mxu0 %v18932_v61  ;;  %10559 = vmatprep.subr.bf16.mxu1 %v18935_v1  ;;  %v19027_v61 = vld [vmem:[%s21559_s1 + $0xc4c] ss:$16 sps:$4 sm:$0xff]   ;;  %v19022_v1 = vld [vmem:[%s21559_s1 + $0xc40] ss:$16 sps:$4 sm:$0xff]  }
 0x512   : > { %9904 = vmatpush1.bf16.msra.mxu0 %v18930_v3  ;;  %10560 = vmatpush1.bf16.msra.mxu1 %v18933_v4  ;;  %v19025_v3 = vld [vmem:[%s21559_s1 + $0xc48] ss:$16 sps:$4 sm:$0xff]   ;;  %v19030_v4 = vld [vmem:[%s21559_s1 + $0xc64] ss:$16 sps:$4 sm:$0xff]  }
 0x513   : > { %9905 = vmatprep.subr.bf16.mxu0 %v18938_v5  ;;  %10561 = vmatprep.subr.bf16.mxu1 %v18941_v6  ;;  %v19033_v5 = vld [vmem:[%s21559_s1 + $0xc6c] ss:$16 sps:$4 sm:$0xff]   ;;  %v19028_v6 = vld [vmem:[%s21559_s1 + $0xc60] ss:$16 sps:$4 sm:$0xff]  }
 0x516   : > { %9906 = vmatpush1.bf16.msra.mxu0 %v18936_v7  ;;  %10562 = vmatpush1.bf16.msra.mxu1 %v18939_v8  ;;  %v19031_v7 = vld [vmem:[%s21559_s1 + $0xc68] ss:$16 sps:$4 sm:$0xff]   ;;  %v19036_v8 = vld [vmem:[%s21559_s1 + $0xc84] ss:$16 sps:$4 sm:$0xff]  }
 0x517   : > { %9907 = vmatprep.subr.bf16.mxu0 %v18944_v58  ;;  %10563 = vmatprep.subr.bf16.mxu1 %v18947_v10  ;;  %v19039_v58 = vld [vmem:[%s21559_s1 + $0xc8c] ss:$16 sps:$4 sm:$0xff]   ;;  %v19034_v10 = vld [vmem:[%s21559_s1 + $0xc80] ss:$16 sps:$4 sm:$0xff]  }
 0x51a   : > { %9908 = vmatpush1.bf16.msra.mxu0 %v18942_v63  ;;  %10564 = vmatpush1.bf16.msra.mxu1 %v18945_v11  ;;  %v19037_v63 = vld [vmem:[%s21559_s1 + $0xc88] ss:$16 sps:$4 sm:$0xff]   ;;  %v19042_v11 = vld [vmem:[%s21559_s1 + $0xca4] ss:$16 sps:$4 sm:$0xff]  }
 0x51b   : > { %9909 = vmatprep.subr.bf16.mxu0 %v18950_v0  ;;  %10565 = vmatprep.subr.bf16.mxu1 %v18953_v2  ;;  %v19045_v0 = vld [vmem:[%s21559_s1 + $0xcac] ss:$16 sps:$4 sm:$0xff]   ;;  %v19040_v2 = vld [vmem:[%s21559_s1 + $0xca0] ss:$16 sps:$4 sm:$0xff]  }
 0x51e   : > { %9910 = vmatpush1.bf16.msra.mxu0 %v18948_v13  ;;  %10566 = vmatpush1.bf16.msra.mxu1 %v18951_v62  ;;  %v19043_v13 = vld [vmem:[%s21559_s1 + $0xca8] ss:$16 sps:$4 sm:$0xff]   ;;  %v19048_v62 = vld [vmem:[%s21559_s1 + $0xcc4] ss:$16 sps:$4 sm:$0xff]  }
 0x51f   : > { %9911 = vmatprep.subr.bf16.mxu0 %v18956_v14  ;;  %10567 = vmatprep.subr.bf16.mxu1 %v18959_v15  ;;  %v19051_v14 = vld [vmem:[%s21559_s1 + $0xccc] ss:$16 sps:$4 sm:$0xff]   ;;  %v19046_v15 = vld [vmem:[%s21559_s1 + $0xcc0] ss:$16 sps:$4 sm:$0xff]  }
 0x522   : > { %9912 = vmatpush1.bf16.msra.mxu0 %v18954_v16  ;;  %10568 = vmatpush1.bf16.msra.mxu1 %v18957_v17  ;;  %v19049_v16 = vld [vmem:[%s21559_s1 + $0xcc8] ss:$16 sps:$4 sm:$0xff]   ;;  %v19054_v17 = vld [vmem:[%s21559_s1 + $0xce4] ss:$16 sps:$4 sm:$0xff]  }
 0x523   : > { %9913 = vmatprep.subr.bf16.mxu0 %v18962_v18  ;;  %10569 = vmatprep.subr.bf16.mxu1 %v18965_v19  ;;  %v19057_v18 = vld [vmem:[%s21559_s1 + $0xcec] ss:$16 sps:$4 sm:$0xff]   ;;  %v19052_v19 = vld [vmem:[%s21559_s1 + $0xce0] ss:$16 sps:$4 sm:$0xff]  }
 0x526   : > { %9914 = vmatpush1.bf16.msra.mxu0 %v18960_v20  ;;  %10570 = vmatpush1.bf16.msra.mxu1 %v18963_v21  ;;  %v19055_v20 = vld [vmem:[%s21559_s1 + $0xce8] ss:$16 sps:$4 sm:$0xff]   ;;  %v19060_v21 = vld [vmem:[%s21559_s1 + $0xd04] ss:$16 sps:$4 sm:$0xff]  }
 0x527   : > { %9915 = vmatprep.subr.bf16.mxu0 %v18968_v22  ;;  %10571 = vmatprep.subr.bf16.mxu1 %v18971_v23  ;;  %v19063_v22 = vld [vmem:[%s21559_s1 + $0xd0c] ss:$16 sps:$4 sm:$0xff]   ;;  %v19058_v23 = vld [vmem:[%s21559_s1 + $0xd00] ss:$16 sps:$4 sm:$0xff]  }
 0x52a   : > { %9916 = vmatpush1.bf16.msra.mxu0 %v18966_v24  ;;  %10572 = vmatpush1.bf16.msra.mxu1 %v18969_v25  ;;  %v19061_v24 = vld [vmem:[%s21559_s1 + $0xd08] ss:$16 sps:$4 sm:$0xff]   ;;  %v19066_v25 = vld [vmem:[%s21559_s1 + $0xd24] ss:$16 sps:$4 sm:$0xff]  }
 0x52b   : > { %9917 = vmatprep.subr.bf16.mxu0 %v18974_v26  ;;  %10573 = vmatprep.subr.bf16.mxu1 %v18977_v27  ;;  %v19069_v26 = vld [vmem:[%s21559_s1 + $0xd2c] ss:$16 sps:$4 sm:$0xff]   ;;  %v19064_v27 = vld [vmem:[%s21559_s1 + $0xd20] ss:$16 sps:$4 sm:$0xff]  }
 0x52e   : > { %9918 = vmatpush1.bf16.msra.mxu0 %v18972_v47  ;;  %10574 = vmatpush1.bf16.msra.mxu1 %v18975_v28  ;;  %v19067_v47 = vld [vmem:[%s21559_s1 + $0xd28] ss:$16 sps:$4 sm:$0xff]   ;;  %v19072_v28 = vld [vmem:[%s21559_s1 + $0xd44] ss:$16 sps:$4 sm:$0xff]  }
 0x52f   : > { %9919 = vmatprep.subr.bf16.mxu0 %v18980_v48  ;;  %10575 = vmatprep.subr.bf16.mxu1 %v18983_v29  ;;  %v19075_v48 = vld [vmem:[%s21559_s1 + $0xd4c] ss:$16 sps:$4 sm:$0xff]   ;;  %v19070_v29 = vld [vmem:[%s21559_s1 + $0xd40] ss:$16 sps:$4 sm:$0xff]  }
 0x532   : > { %9920 = vmatpush1.bf16.msra.mxu0 %v18978_v49  ;;  %10576 = vmatpush1.bf16.msra.mxu1 %v18981_v50  ;;  %v19073_v49 = vld [vmem:[%s21559_s1 + $0xd48] ss:$16 sps:$4 sm:$0xff]   ;;  %v19078_v50 = vld [vmem:[%s21559_s1 + $0xd64] ss:$16 sps:$4 sm:$0xff]  }
 0x533   : > { %9921 = vmatprep.subr.bf16.mxu0 %v18986_v30  ;;  %10577 = vmatprep.subr.bf16.mxu1 %v18989_v31  ;;  %v19081_v30 = vld [vmem:[%s21559_s1 + $0xd6c] ss:$16 sps:$4 sm:$0xff]   ;;  %v19076_v31 = vld [vmem:[%s21559_s1 + $0xd60] ss:$16 sps:$4 sm:$0xff]  }
 0x536   : > { %9922 = vmatpush1.bf16.msra.mxu0 %v18984_v32  ;;  %10578 = vmatpush1.bf16.msra.mxu1 %v18987_v33  ;;  %v19079_v32 = vld [vmem:[%s21559_s1 + $0xd68] ss:$16 sps:$4 sm:$0xff]   ;;  %v19084_v33 = vld [vmem:[%s21559_s1 + $0xd84] ss:$16 sps:$4 sm:$0xff]  }
 0x537   : > { %9923 = vmatprep.subr.bf16.mxu0 %v18992_v34  ;;  %10579 = vmatprep.subr.bf16.mxu1 %v18995_v35  ;;  %v19087_v34 = vld [vmem:[%s21559_s1 + $0xd8c] ss:$16 sps:$4 sm:$0xff]   ;;  %v19082_v35 = vld [vmem:[%s21559_s1 + $0xd80] ss:$16 sps:$4 sm:$0xff]  }
 0x53a   : > { %9924 = vmatpush1.bf16.msra.mxu0 %v18990_v36  ;;  %10580 = vmatpush1.bf16.msra.mxu1 %v18993_v37  ;;  %v19085_v36 = vld [vmem:[%s21559_s1 + $0xd88] ss:$16 sps:$4 sm:$0xff]   ;;  %v19090_v37 = vld [vmem:[%s21559_s1 + $0xda4] ss:$16 sps:$4 sm:$0xff]  }
 0x53b   : > { %9925 = vmatprep.subr.bf16.mxu0 %v18998_v38  ;;  %10581 = vmatprep.subr.bf16.mxu1 %v19001_v39  ;;  %v19093_v38 = vld [vmem:[%s21559_s1 + $0xdac] ss:$16 sps:$4 sm:$0xff]   ;;  %v19088_v39 = vld [vmem:[%s21559_s1 + $0xda0] ss:$16 sps:$4 sm:$0xff]  }
 0x53e   : > { %9926 = vmatpush1.bf16.msra.mxu0 %v18996_v41  ;;  %10582 = vmatpush1.bf16.msra.mxu1 %v18999_v42  ;;  %v19091_v41 = vld [vmem:[%s21559_s1 + $0xda8] ss:$16 sps:$4 sm:$0xff]   ;;  %v19096_v42 = vld [vmem:[%s21559_s1 + $0xdc4] ss:$16 sps:$4 sm:$0xff]  }
 0x53f   : > { %9927 = vmatprep.subr.bf16.mxu0 %v19004_v44  ;;  %10583 = vmatprep.subr.bf16.mxu1 %v19007_v45  ;;  %v19099_v44 = vld [vmem:[%s21559_s1 + $0xdcc] ss:$16 sps:$4 sm:$0xff]   ;;  %v19094_v45 = vld [vmem:[%s21559_s1 + $0xdc0] ss:$16 sps:$4 sm:$0xff]  }
 0x542   : > { %9928 = vmatpush1.bf16.msra.mxu0 %v19002_v40  ;;  %10584 = vmatpush1.bf16.msra.mxu1 %v19005_v53  ;;  %v19097_v40 = vld [vmem:[%s21559_s1 + $0xdc8] ss:$16 sps:$4 sm:$0xff]   ;;  %v19102_v53 = vld [vmem:[%s21559_s1 + $0xde4] ss:$16 sps:$4 sm:$0xff]  }
 0x543   : > { %9938 = vmatprep.subr.bf16.mxu0 %v19012_v12  ;;  %10594 = vmatprep.subr.bf16.mxu1 %v19015_v43  ;;  %v19105_v12 = vld [vmem:[%s21559_s1 + $0xdec] ss:$16 sps:$4 sm:$0xff]   ;;  %v19100_v43 = vld [vmem:[%s21559_s1 + $0xde0] ss:$16 sps:$4 sm:$0xff]  }
 0x545   : > { %9930 = vmatmul.mubr.bf16.vlgmr.msra.gmra.mrb[0].mxu0 %v16320_v9  ;;  %10586 = vmatmul.mubr.bf16.vlgmr.msra.gmra.mrb[0].mxu1 %v16320_v9  ;;  %v19103_v9 = vld [vmem:[%s21559_s1 + $0xde8] ss:$16 sps:$4 sm:$0xff]  }
 0x546   : > { %9939 = vmatpush1.bf16.msra.mxu0 %v19010_v55  ;;  %10595 = vmatpush1.bf16.msra.mxu1 %v19013_v46  ;;  %v19110_v55 = vld [vmem:[%s21559_s1 + $0xe04] ss:$16 sps:$4 sm:$0xff]   ;;  %v19113_v46 = vld [vmem:[%s21559_s1 + $0xe0c] ss:$16 sps:$4 sm:$0xff]  }
 0x547   : > { %9940 = vmatprep.subr.bf16.mxu0 %v19018_v56  ;;  %10596 = vmatprep.subr.bf16.mxu1 %v19021_v57  ;;  %v22181_v56 = vld [vmem:[#allocation2 + $0x38] sm:$0xff]  ;;  %v16322_v57 = vcombine.low %v22111_v54, %v22111_v54 }
 0x548   : > { %9970 = vmatprep.mubr.bf16.mxu0 %v16323_v59  ;;  %10626 = vmatprep.mubr.bf16.mxu1 %v16323_v59  ;;  %v19108_v59 = vld [vmem:[%s21559_s1 + $0xe00] ss:$16 sps:$4 sm:$0xff]  }
 0x549   : > { %v19114_v54 = vld [vmem:[%s21559_s1 + $0xe20] ss:$16 sps:$4 sm:$0xff]  }
 0x54a   : > { %9941 = vmatpush1.bf16.msra.mxu0 %v19016_v51  ;;  %10597 = vmatpush1.bf16.msra.mxu1 %v19019_v60  ;;  %v19111_v51 = vld [vmem:[%s21559_s1 + $0xe08] ss:$16 sps:$4 sm:$0xff]   ;;  %v19116_v60 = vld [vmem:[%s21559_s1 + $0xe24] ss:$16 sps:$4 sm:$0xff]  }
 0x54b   : > { %9942 = vmatprep.subr.bf16.mxu0 %v19024_v52  ;;  %10598 = vmatprep.subr.bf16.mxu1 %v19027_v61  ;;  %v19119_v52 = vld [vmem:[%s21559_s1 + $0xe2c] ss:$16 sps:$4 sm:$0xff]   ;;  %v16325_v61 = vcombine.high %v22181_v56, %v22181_v56 }
 0x54e   : > { %9943 = vmatpush1.bf16.msra.mxu0 %v19022_v1  ;;  %10599 = vmatpush1.bf16.msra.mxu1 %v19025_v3  ;;  %v19117_v1 = vld [vmem:[%s21559_s1 + $0xe28] ss:$16 sps:$4 sm:$0xff]   ;;  %v19122_v3 = vld [vmem:[%s21559_s1 + $0xe44] ss:$16 sps:$4 sm:$0xff]  }
 0x54f   : > { %9944 = vmatprep.subr.bf16.mxu0 %v19030_v4  ;;  %10600 = vmatprep.subr.bf16.mxu1 %v19033_v5  ;;  %v19125_v4 = vld [vmem:[%s21559_s1 + $0xe4c] ss:$16 sps:$4 sm:$0xff]   ;;  %v19120_v5 = vld [vmem:[%s21559_s1 + $0xe40] ss:$16 sps:$4 sm:$0xff]  }
 0x552   : > { %9945 = vmatpush1.bf16.msra.mxu0 %v19028_v6  ;;  %10601 = vmatpush1.bf16.msra.mxu1 %v19031_v7  ;;  %v19123_v6 = vld [vmem:[%s21559_s1 + $0xe48] ss:$16 sps:$4 sm:$0xff]   ;;  %v19128_v7 = vld [vmem:[%s21559_s1 + $0xe64] ss:$16 sps:$4 sm:$0xff]  }
 0x553   : > { %9946 = vmatprep.subr.bf16.mxu0 %v19036_v8  ;;  %10602 = vmatprep.subr.bf16.mxu1 %v19039_v58  ;;  %v19131_v8 = vld [vmem:[%s21559_s1 + $0xe6c] ss:$16 sps:$4 sm:$0xff]   ;;  %v19126_v58 = vld [vmem:[%s21559_s1 + $0xe60] ss:$16 sps:$4 sm:$0xff]  }
 0x556   : > { %9947 = vmatpush1.bf16.msra.mxu0 %v19034_v10  ;;  %10603 = vmatpush1.bf16.msra.mxu1 %v19037_v63  ;;  %v19129_v10 = vld [vmem:[%s21559_s1 + $0xe68] ss:$16 sps:$4 sm:$0xff]   ;;  %v19134_v63 = vld [vmem:[%s21559_s1 + $0xe84] ss:$16 sps:$4 sm:$0xff]  }
 0x557   : > { %9948 = vmatprep.subr.bf16.mxu0 %v19042_v11  ;;  %10604 = vmatprep.subr.bf16.mxu1 %v19045_v0  ;;  %v19137_v11 = vld [vmem:[%s21559_s1 + $0xe8c] ss:$16 sps:$4 sm:$0xff]   ;;  %v19132_v0 = vld [vmem:[%s21559_s1 + $0xe80] ss:$16 sps:$4 sm:$0xff]  }
 0x55a   : > { %9949 = vmatpush1.bf16.msra.mxu0 %v19040_v2  ;;  %10605 = vmatpush1.bf16.msra.mxu1 %v19043_v13  ;;  %v19135_v2 = vld [vmem:[%s21559_s1 + $0xe88] ss:$16 sps:$4 sm:$0xff]   ;;  %v19140_v13 = vld [vmem:[%s21559_s1 + $0xea4] ss:$16 sps:$4 sm:$0xff]  }
 0x55b   : > { %9950 = vmatprep.subr.bf16.mxu0 %v19048_v62  ;;  %10606 = vmatprep.subr.bf16.mxu1 %v19051_v14  ;;  %v19143_v62 = vld [vmem:[%s21559_s1 + $0xeac] ss:$16 sps:$4 sm:$0xff]   ;;  %v19138_v14 = vld [vmem:[%s21559_s1 + $0xea0] ss:$16 sps:$4 sm:$0xff]  }
 0x55e   : > { %9951 = vmatpush1.bf16.msra.mxu0 %v19046_v15  ;;  %10607 = vmatpush1.bf16.msra.mxu1 %v19049_v16  ;;  %v19141_v15 = vld [vmem:[%s21559_s1 + $0xea8] ss:$16 sps:$4 sm:$0xff]   ;;  %v19146_v16 = vld [vmem:[%s21559_s1 + $0xec4] ss:$16 sps:$4 sm:$0xff]  }
 0x55f   : > { %9952 = vmatprep.subr.bf16.mxu0 %v19054_v17  ;;  %10608 = vmatprep.subr.bf16.mxu1 %v19057_v18  ;;  %v19149_v17 = vld [vmem:[%s21559_s1 + $0xecc] ss:$16 sps:$4 sm:$0xff]   ;;  %v19144_v18 = vld [vmem:[%s21559_s1 + $0xec0] ss:$16 sps:$4 sm:$0xff]  }
 0x562   : > { %9953 = vmatpush1.bf16.msra.mxu0 %v19052_v19  ;;  %10609 = vmatpush1.bf16.msra.mxu1 %v19055_v20  ;;  %v19147_v19 = vld [vmem:[%s21559_s1 + $0xec8] ss:$16 sps:$4 sm:$0xff]   ;;  %v19152_v20 = vld [vmem:[%s21559_s1 + $0xee4] ss:$16 sps:$4 sm:$0xff]  }
 0x563   : > { %9954 = vmatprep.subr.bf16.mxu0 %v19060_v21  ;;  %10610 = vmatprep.subr.bf16.mxu1 %v19063_v22  ;;  %v19155_v21 = vld [vmem:[%s21559_s1 + $0xeec] ss:$16 sps:$4 sm:$0xff]   ;;  %v19150_v22 = vld [vmem:[%s21559_s1 + $0xee0] ss:$16 sps:$4 sm:$0xff]  }
 0x566   : > { %9955 = vmatpush1.bf16.msra.mxu0 %v19058_v23  ;;  %10611 = vmatpush1.bf16.msra.mxu1 %v19061_v24  ;;  %v19153_v23 = vld [vmem:[%s21559_s1 + $0xee8] ss:$16 sps:$4 sm:$0xff]   ;;  %v19158_v24 = vld [vmem:[%s21559_s1 + $0xf04] ss:$16 sps:$4 sm:$0xff]  }
 0x567   : > { %9956 = vmatprep.subr.bf16.mxu0 %v19066_v25  ;;  %10612 = vmatprep.subr.bf16.mxu1 %v19069_v26  ;;  %v19161_v25 = vld [vmem:[%s21559_s1 + $0xf0c] ss:$16 sps:$4 sm:$0xff]   ;;  %v19156_v26 = vld [vmem:[%s21559_s1 + $0xf00] ss:$16 sps:$4 sm:$0xff]  }
 0x56a   : > { %9957 = vmatpush1.bf16.msra.mxu0 %v19064_v27  ;;  %10613 = vmatpush1.bf16.msra.mxu1 %v19067_v47  ;;  %v19159_v27 = vld [vmem:[%s21559_s1 + $0xf08] ss:$16 sps:$4 sm:$0xff]   ;;  %v19164_v47 = vld [vmem:[%s21559_s1 + $0xf24] ss:$16 sps:$4 sm:$0xff]  }
 0x56b   : > { %9958 = vmatprep.subr.bf16.mxu0 %v19072_v28  ;;  %10614 = vmatprep.subr.bf16.mxu1 %v19075_v48  ;;  %v19167_v28 = vld [vmem:[%s21559_s1 + $0xf2c] ss:$16 sps:$4 sm:$0xff]   ;;  %v19162_v48 = vld [vmem:[%s21559_s1 + $0xf20] ss:$16 sps:$4 sm:$0xff]  }
 0x56e   : > { %9959 = vmatpush1.bf16.msra.mxu0 %v19070_v29  ;;  %10615 = vmatpush1.bf16.msra.mxu1 %v19073_v49  ;;  %v19165_v29 = vld [vmem:[%s21559_s1 + $0xf28] ss:$16 sps:$4 sm:$0xff]   ;;  %v19170_v49 = vld [vmem:[%s21559_s1 + $0xf44] ss:$16 sps:$4 sm:$0xff]  }
 0x56f   : > { %9960 = vmatprep.subr.bf16.mxu0 %v19078_v50  ;;  %10616 = vmatprep.subr.bf16.mxu1 %v19081_v30  ;;  %v19173_v50 = vld [vmem:[%s21559_s1 + $0xf4c] ss:$16 sps:$4 sm:$0xff]   ;;  %v19168_v30 = vld [vmem:[%s21559_s1 + $0xf40] ss:$16 sps:$4 sm:$0xff]  }
 0x572   : > { %9961 = vmatpush1.bf16.msra.mxu0 %v19076_v31  ;;  %10617 = vmatpush1.bf16.msra.mxu1 %v19079_v32  ;;  %v19171_v31 = vld [vmem:[%s21559_s1 + $0xf48] ss:$16 sps:$4 sm:$0xff]   ;;  %v19176_v32 = vld [vmem:[%s21559_s1 + $0xf64] ss:$16 sps:$4 sm:$0xff]  }
 0x573   : > { %9962 = vmatprep.subr.bf16.mxu0 %v19084_v33  ;;  %10618 = vmatprep.subr.bf16.mxu1 %v19087_v34  ;;  %v19179_v33 = vld [vmem:[%s21559_s1 + $0xf6c] ss:$16 sps:$4 sm:$0xff]   ;;  %v19174_v34 = vld [vmem:[%s21559_s1 + $0xf60] ss:$16 sps:$4 sm:$0xff]  }
 0x576   : > { %9963 = vmatpush1.bf16.msra.mxu0 %v19082_v35  ;;  %10619 = vmatpush1.bf16.msra.mxu1 %v19085_v36  ;;  %v19177_v35 = vld [vmem:[%s21559_s1 + $0xf68] ss:$16 sps:$4 sm:$0xff]   ;;  %v19182_v36 = vld [vmem:[%s21559_s1 + $0xf84] ss:$16 sps:$4 sm:$0xff]  }
 0x577   : > { %9964 = vmatprep.subr.bf16.mxu0 %v19090_v37  ;;  %10620 = vmatprep.subr.bf16.mxu1 %v19093_v38  ;;  %v19185_v37 = vld [vmem:[%s21559_s1 + $0xf8c] ss:$16 sps:$4 sm:$0xff]   ;;  %v19180_v38 = vld [vmem:[%s21559_s1 + $0xf80] ss:$16 sps:$4 sm:$0xff]  }
 0x57a   : > { %9965 = vmatpush1.bf16.msra.mxu0 %v19088_v39  ;;  %10621 = vmatpush1.bf16.msra.mxu1 %v19091_v41  ;;  %v19183_v39 = vld [vmem:[%s21559_s1 + $0xf88] ss:$16 sps:$4 sm:$0xff]   ;;  %v19188_v41 = vld [vmem:[%s21559_s1 + $0xfa4] ss:$16 sps:$4 sm:$0xff]  }
 0x57b   : > { %9966 = vmatprep.subr.bf16.mxu0 %v19096_v42  ;;  %10622 = vmatprep.subr.bf16.mxu1 %v19099_v44  ;;  %v19191_v42 = vld [vmem:[%s21559_s1 + $0xfac] ss:$16 sps:$4 sm:$0xff]   ;;  %v19186_v44 = vld [vmem:[%s21559_s1 + $0xfa0] ss:$16 sps:$4 sm:$0xff]  }
 0x57e   : > { %9967 = vmatpush1.bf16.msra.mxu0 %v19094_v45  ;;  %10623 = vmatpush1.bf16.msra.mxu1 %v19097_v40  ;;  %v19189_v45 = vld [vmem:[%s21559_s1 + $0xfa8] ss:$16 sps:$4 sm:$0xff]   ;;  %v19194_v40 = vld [vmem:[%s21559_s1 + $0xfc4] ss:$16 sps:$4 sm:$0xff]  }
 0x57f   : > { %9968 = vmatprep.subr.bf16.mxu0 %v19102_v53  ;;  %10624 = vmatprep.subr.bf16.mxu1 %v19105_v12  ;;  %v19197_v53 = vld [vmem:[%s21559_s1 + $0xfcc] ss:$16 sps:$4 sm:$0xff]   ;;  %v19192_v12 = vld [vmem:[%s21559_s1 + $0xfc0] ss:$16 sps:$4 sm:$0xff]  }
 0x582   : > { %9969 = vmatpush1.bf16.msra.mxu0 %v19100_v43  ;;  %10625 = vmatpush1.bf16.msra.mxu1 %v19103_v9  ;;  %v19195_v43 = vld [vmem:[%s21559_s1 + $0xfc8] ss:$16 sps:$4 sm:$0xff]   ;;  %v19200_v9 = vld [vmem:[%s21559_s1 + $0xfe4] ss:$16 sps:$4 sm:$0xff]  }
 0x583   : > { %9979 = vmatprep.subr.bf16.mxu0 %v19110_v55  ;;  %10635 = vmatprep.subr.bf16.mxu1 %v19113_v46  ;;  %v19203_v55 = vld [vmem:[%s21559_s1 + $0xfec] ss:$16 sps:$4 sm:$0xff]   ;;  %v19198_v46 = vld [vmem:[%s21559_s1 + $0xfe0] ss:$16 sps:$4 sm:$0xff]  }
 0x585   : > { %9971 = vmatmul.mubr.bf16.vlgmr.msra.gmra.mrb[0].mxu0 %v16322_v57  ;;  %10627 = vmatmul.mubr.bf16.vlgmr.msra.gmra.mrb[0].mxu1 %v16322_v57  ;;  %v19201_v57 = vld [vmem:[%s21559_s1 + $0xfe8] ss:$16 sps:$4 sm:$0xff]  }
 0x586   : > { %9980 = vmatpush1.bf16.msra.mxu0 %v19108_v59  ;;  %10636 = vmatpush1.bf16.msra.mxu1 %v19111_v51  ;;  %v19208_v59 = vld [vmem:[%s21559_s1 + $0x1004] ss:$16 sps:$4 sm:$0xff]   ;;  %v19211_v51 = vld [vmem:[%s21559_s1 + $0x100c] ss:$16 sps:$4 sm:$0xff]  }
 0x587   : > { %9981 = vmatprep.subr.bf16.mxu0 %v19116_v60  ;;  %10637 = vmatprep.subr.bf16.mxu1 %v19119_v52  ;;  %v22251_v60 = vld [vmem:[#allocation2 + $0x40] sm:$0xff]  ;;  %v16324_v52 = vcombine.low %v22181_v56, %v22181_v56  ;;  %v19212_v56 = vld [vmem:[%s21559_s1 + $0x1020] ss:$16 sps:$4 sm:$0xff]  }
 0x588   : > { %10011 = vmatprep.mubr.bf16.mxu0 %v16325_v61  ;;  %10667 = vmatprep.mubr.bf16.mxu1 %v16325_v61  ;;  %v19206_v61 = vld [vmem:[%s21559_s1 + $0x1000] ss:$16 sps:$4 sm:$0xff]  }
 0x58a   : > { %9982 = vmatpush1.bf16.msra.mxu0 %v19114_v54  ;;  %10638 = vmatpush1.bf16.msra.mxu1 %v19117_v1  ;;  %v19209_v54 = vld [vmem:[%s21559_s1 + $0x1008] ss:$16 sps:$4 sm:$0xff]   ;;  %v19214_v1 = vld [vmem:[%s21559_s1 + $0x1024] ss:$16 sps:$4 sm:$0xff]  }
 0x58b   : > { %9983 = vmatprep.subr.bf16.mxu0 %v19122_v3  ;;  %10639 = vmatprep.subr.bf16.mxu1 %v19125_v4  ;;  %v19217_v3 = vld [vmem:[%s21559_s1 + $0x102c] ss:$16 sps:$4 sm:$0xff]   ;;  %v16327_v4 = vcombine.high %v22251_v60, %v22251_v60 }
 0x58e   : > { %9984 = vmatpush1.bf16.msra.mxu0 %v19120_v5  ;;  %10640 = vmatpush1.bf16.msra.mxu1 %v19123_v6  ;;  %v19215_v5 = vld [vmem:[%s21559_s1 + $0x1028] ss:$16 sps:$4 sm:$0xff]   ;;  %v19220_v6 = vld [vmem:[%s21559_s1 + $0x1044] ss:$16 sps:$4 sm:$0xff]  }
 0x58f   : > { %9985 = vmatprep.subr.bf16.mxu0 %v19128_v7  ;;  %10641 = vmatprep.subr.bf16.mxu1 %v19131_v8  ;;  %v19223_v7 = vld [vmem:[%s21559_s1 + $0x104c] ss:$16 sps:$4 sm:$0xff]   ;;  %v19218_v8 = vld [vmem:[%s21559_s1 + $0x1040] ss:$16 sps:$4 sm:$0xff]  }
 0x592   : > { %9986 = vmatpush1.bf16.msra.mxu0 %v19126_v58  ;;  %10642 = vmatpush1.bf16.msra.mxu1 %v19129_v10  ;;  %v19221_v58 = vld [vmem:[%s21559_s1 + $0x1048] ss:$16 sps:$4 sm:$0xff]   ;;  %v19226_v10 = vld [vmem:[%s21559_s1 + $0x1064] ss:$16 sps:$4 sm:$0xff]  }
 0x593   : > { %9987 = vmatprep.subr.bf16.mxu0 %v19134_v63  ;;  %10643 = vmatprep.subr.bf16.mxu1 %v19137_v11  ;;  %v19229_v63 = vld [vmem:[%s21559_s1 + $0x106c] ss:$16 sps:$4 sm:$0xff]   ;;  %v19224_v11 = vld [vmem:[%s21559_s1 + $0x1060] ss:$16 sps:$4 sm:$0xff]  }
 0x596   : > { %9988 = vmatpush1.bf16.msra.mxu0 %v19132_v0  ;;  %10644 = vmatpush1.bf16.msra.mxu1 %v19135_v2  ;;  %v19227_v0 = vld [vmem:[%s21559_s1 + $0x1068] ss:$16 sps:$4 sm:$0xff]   ;;  %v19232_v2 = vld [vmem:[%s21559_s1 + $0x1084] ss:$16 sps:$4 sm:$0xff]  }
 0x597   : > { %9989 = vmatprep.subr.bf16.mxu0 %v19140_v13  ;;  %10645 = vmatprep.subr.bf16.mxu1 %v19143_v62  ;;  %v19235_v13 = vld [vmem:[%s21559_s1 + $0x108c] ss:$16 sps:$4 sm:$0xff]   ;;  %v19230_v62 = vld [vmem:[%s21559_s1 + $0x1080] ss:$16 sps:$4 sm:$0xff]  }
 0x59a   : > { %9990 = vmatpush1.bf16.msra.mxu0 %v19138_v14  ;;  %10646 = vmatpush1.bf16.msra.mxu1 %v19141_v15  ;;  %v19233_v14 = vld [vmem:[%s21559_s1 + $0x1088] ss:$16 sps:$4 sm:$0xff]   ;;  %v19238_v15 = vld [vmem:[%s21559_s1 + $0x10a4] ss:$16 sps:$4 sm:$0xff]  }
 0x59b   : > { %9991 = vmatprep.subr.bf16.mxu0 %v19146_v16  ;;  %10647 = vmatprep.subr.bf16.mxu1 %v19149_v17  ;;  %v19241_v16 = vld [vmem:[%s21559_s1 + $0x10ac] ss:$16 sps:$4 sm:$0xff]   ;;  %v19236_v17 = vld [vmem:[%s21559_s1 + $0x10a0] ss:$16 sps:$4 sm:$0xff]  }
 0x59e   : > { %9992 = vmatpush1.bf16.msra.mxu0 %v19144_v18  ;;  %10648 = vmatpush1.bf16.msra.mxu1 %v19147_v19  ;;  %v19239_v18 = vld [vmem:[%s21559_s1 + $0x10a8] ss:$16 sps:$4 sm:$0xff]   ;;  %v19244_v19 = vld [vmem:[%s21559_s1 + $0x10c4] ss:$16 sps:$4 sm:$0xff]  }
 0x59f   : > { %9993 = vmatprep.subr.bf16.mxu0 %v19152_v20  ;;  %10649 = vmatprep.subr.bf16.mxu1 %v19155_v21  ;;  %v19247_v20 = vld [vmem:[%s21559_s1 + $0x10cc] ss:$16 sps:$4 sm:$0xff]   ;;  %v19242_v21 = vld [vmem:[%s21559_s1 + $0x10c0] ss:$16 sps:$4 sm:$0xff]  }
 0x5a2   : > { %9994 = vmatpush1.bf16.msra.mxu0 %v19150_v22  ;;  %10650 = vmatpush1.bf16.msra.mxu1 %v19153_v23  ;;  %v19245_v22 = vld [vmem:[%s21559_s1 + $0x10c8] ss:$16 sps:$4 sm:$0xff]   ;;  %v19250_v23 = vld [vmem:[%s21559_s1 + $0x10e4] ss:$16 sps:$4 sm:$0xff]  }
 0x5a3   : > { %9995 = vmatprep.subr.bf16.mxu0 %v19158_v24  ;;  %10651 = vmatprep.subr.bf16.mxu1 %v19161_v25  ;;  %v19253_v24 = vld [vmem:[%s21559_s1 + $0x10ec] ss:$16 sps:$4 sm:$0xff]   ;;  %v19248_v25 = vld [vmem:[%s21559_s1 + $0x10e0] ss:$16 sps:$4 sm:$0xff]  }
 0x5a6   : > { %9996 = vmatpush1.bf16.msra.mxu0 %v19156_v26  ;;  %10652 = vmatpush1.bf16.msra.mxu1 %v19159_v27  ;;  %v19251_v26 = vld [vmem:[%s21559_s1 + $0x10e8] ss:$16 sps:$4 sm:$0xff]   ;;  %v19256_v27 = vld [vmem:[%s21559_s1 + $0x1104] ss:$16 sps:$4 sm:$0xff]  }
 0x5a7   : > { %9997 = vmatprep.subr.bf16.mxu0 %v19164_v47  ;;  %10653 = vmatprep.subr.bf16.mxu1 %v19167_v28  ;;  %v19259_v47 = vld [vmem:[%s21559_s1 + $0x110c] ss:$16 sps:$4 sm:$0xff]   ;;  %v19254_v28 = vld [vmem:[%s21559_s1 + $0x1100] ss:$16 sps:$4 sm:$0xff]  }
 0x5aa   : > { %9998 = vmatpush1.bf16.msra.mxu0 %v19162_v48  ;;  %10654 = vmatpush1.bf16.msra.mxu1 %v19165_v29  ;;  %v19257_v48 = vld [vmem:[%s21559_s1 + $0x1108] ss:$16 sps:$4 sm:$0xff]   ;;  %v19262_v29 = vld [vmem:[%s21559_s1 + $0x1124] ss:$16 sps:$4 sm:$0xff]  }
 0x5ab   : > { %9999 = vmatprep.subr.bf16.mxu0 %v19170_v49  ;;  %10655 = vmatprep.subr.bf16.mxu1 %v19173_v50  ;;  %v19265_v49 = vld [vmem:[%s21559_s1 + $0x112c] ss:$16 sps:$4 sm:$0xff]   ;;  %v19260_v50 = vld [vmem:[%s21559_s1 + $0x1120] ss:$16 sps:$4 sm:$0xff]  }
 0x5ae   : > { %10000 = vmatpush1.bf16.msra.mxu0 %v19168_v30  ;;  %10656 = vmatpush1.bf16.msra.mxu1 %v19171_v31  ;;  %v19263_v30 = vld [vmem:[%s21559_s1 + $0x1128] ss:$16 sps:$4 sm:$0xff]   ;;  %v19268_v31 = vld [vmem:[%s21559_s1 + $0x1144] ss:$16 sps:$4 sm:$0xff]  }
 0x5af   : > { %10001 = vmatprep.subr.bf16.mxu0 %v19176_v32  ;;  %10657 = vmatprep.subr.bf16.mxu1 %v19179_v33  ;;  %v19271_v32 = vld [vmem:[%s21559_s1 + $0x114c] ss:$16 sps:$4 sm:$0xff]   ;;  %v19266_v33 = vld [vmem:[%s21559_s1 + $0x1140] ss:$16 sps:$4 sm:$0xff]  }
 0x5b2   : > { %10002 = vmatpush1.bf16.msra.mxu0 %v19174_v34  ;;  %10658 = vmatpush1.bf16.msra.mxu1 %v19177_v35  ;;  %v19269_v34 = vld [vmem:[%s21559_s1 + $0x1148] ss:$16 sps:$4 sm:$0xff]   ;;  %v19274_v35 = vld [vmem:[%s21559_s1 + $0x1164] ss:$16 sps:$4 sm:$0xff]  }
 0x5b3   : > { %10003 = vmatprep.subr.bf16.mxu0 %v19182_v36  ;;  %10659 = vmatprep.subr.bf16.mxu1 %v19185_v37  ;;  %v19277_v36 = vld [vmem:[%s21559_s1 + $0x116c] ss:$16 sps:$4 sm:$0xff]   ;;  %v19272_v37 = vld [vmem:[%s21559_s1 + $0x1160] ss:$16 sps:$4 sm:$0xff]  }
 0x5b6   : > { %10004 = vmatpush1.bf16.msra.mxu0 %v19180_v38  ;;  %10660 = vmatpush1.bf16.msra.mxu1 %v19183_v39  ;;  %v19275_v38 = vld [vmem:[%s21559_s1 + $0x1168] ss:$16 sps:$4 sm:$0xff]   ;;  %v19280_v39 = vld [vmem:[%s21559_s1 + $0x1184] ss:$16 sps:$4 sm:$0xff]  }
 0x5b7   : > { %10005 = vmatprep.subr.bf16.mxu0 %v19188_v41  ;;  %10661 = vmatprep.subr.bf16.mxu1 %v19191_v42  ;;  %v19283_v41 = vld [vmem:[%s21559_s1 + $0x118c] ss:$16 sps:$4 sm:$0xff]   ;;  %v19278_v42 = vld [vmem:[%s21559_s1 + $0x1180] ss:$16 sps:$4 sm:$0xff]  }
 0x5ba   : > { %10006 = vmatpush1.bf16.msra.mxu0 %v19186_v44  ;;  %10662 = vmatpush1.bf16.msra.mxu1 %v19189_v45  ;;  %v19281_v44 = vld [vmem:[%s21559_s1 + $0x1188] ss:$16 sps:$4 sm:$0xff]   ;;  %v19286_v45 = vld [vmem:[%s21559_s1 + $0x11a4] ss:$16 sps:$4 sm:$0xff]  }
 0x5bb   : > { %10007 = vmatprep.subr.bf16.mxu0 %v19194_v40  ;;  %10663 = vmatprep.subr.bf16.mxu1 %v19197_v53  ;;  %v19289_v40 = vld [vmem:[%s21559_s1 + $0x11ac] ss:$16 sps:$4 sm:$0xff]   ;;  %v19284_v53 = vld [vmem:[%s21559_s1 + $0x11a0] ss:$16 sps:$4 sm:$0xff]  }
 0x5be   : > { %10008 = vmatpush1.bf16.msra.mxu0 %v19192_v12  ;;  %10664 = vmatpush1.bf16.msra.mxu1 %v19195_v43  ;;  %v19287_v12 = vld [vmem:[%s21559_s1 + $0x11a8] ss:$16 sps:$4 sm:$0xff]   ;;  %v19292_v43 = vld [vmem:[%s21559_s1 + $0x11c4] ss:$16 sps:$4 sm:$0xff]  }
 0x5bf   : > { %10009 = vmatprep.subr.bf16.mxu0 %v19200_v9  ;;  %10665 = vmatprep.subr.bf16.mxu1 %v19203_v55  ;;  %v19295_v9 = vld [vmem:[%s21559_s1 + $0x11cc] ss:$16 sps:$4 sm:$0xff]   ;;  %v19290_v55 = vld [vmem:[%s21559_s1 + $0x11c0] ss:$16 sps:$4 sm:$0xff]  }
 0x5c2   : > { %10010 = vmatpush1.bf16.msra.mxu0 %v19198_v46  ;;  %10666 = vmatpush1.bf16.msra.mxu1 %v19201_v57  ;;  %v19293_v46 = vld [vmem:[%s21559_s1 + $0x11c8] ss:$16 sps:$4 sm:$0xff]   ;;  %v19298_v57 = vld [vmem:[%s21559_s1 + $0x11e4] ss:$16 sps:$4 sm:$0xff]  }
 0x5c3   : > { %10020 = vmatprep.subr.bf16.mxu0 %v19208_v59  ;;  %10676 = vmatprep.subr.bf16.mxu1 %v19211_v51  ;;  %v19301_v59 = vld [vmem:[%s21559_s1 + $0x11ec] ss:$16 sps:$4 sm:$0xff]   ;;  %v19296_v51 = vld [vmem:[%s21559_s1 + $0x11e0] ss:$16 sps:$4 sm:$0xff]  }
 0x5c5   : > { %10012 = vmatmul.mubr.bf16.vlgmr.msra.gmra.mrb[0].mxu0 %v16324_v52  ;;  %10668 = vmatmul.mubr.bf16.vlgmr.msra.gmra.mrb[0].mxu1 %v16324_v52  ;;  %v19299_v52 = vld [vmem:[%s21559_s1 + $0x11e8] ss:$16 sps:$4 sm:$0xff]  }
 0x5c6   : > { %10021 = vmatpush1.bf16.msra.mxu0 %v19206_v61  ;;  %10677 = vmatpush1.bf16.msra.mxu1 %v19209_v54  ;;  %v19306_v61 = vld [vmem:[%s21559_s1 + $0x1204] ss:$16 sps:$4 sm:$0xff]   ;;  %v19309_v54 = vld [vmem:[%s21559_s1 + $0x120c] ss:$16 sps:$4 sm:$0xff]  }
 0x5c7   : > { %10022 = vmatprep.subr.bf16.mxu0 %v19214_v1  ;;  %10678 = vmatprep.subr.bf16.mxu1 %v19217_v3  ;;  %v22321_v1 = vld [vmem:[#allocation2 + $0x48] sm:$0xff]  ;;  %v16326_v3 = vcombine.low %v22251_v60, %v22251_v60 }
 0x5c8   : > { %10052 = vmatprep.mubr.bf16.mxu0 %v16327_v4  ;;  %10708 = vmatprep.mubr.bf16.mxu1 %v16327_v4  ;;  %v19304_v4 = vld [vmem:[%s21559_s1 + $0x1200] ss:$16 sps:$4 sm:$0xff]  }
 0x5c9   : > { %v19310_v60 = vld [vmem:[%s21559_s1 + $0x1220] ss:$16 sps:$4 sm:$0xff]  }
 0x5ca   : > { %10023 = vmatpush1.bf16.msra.mxu0 %v19212_v56  ;;  %10679 = vmatpush1.bf16.msra.mxu1 %v19215_v5  ;;  %v19307_v56 = vld [vmem:[%s21559_s1 + $0x1208] ss:$16 sps:$4 sm:$0xff]   ;;  %v19312_v5 = vld [vmem:[%s21559_s1 + $0x1224] ss:$16 sps:$4 sm:$0xff]  }
 0x5cb   : > { %10024 = vmatprep.subr.bf16.mxu0 %v19220_v6  ;;  %10680 = vmatprep.subr.bf16.mxu1 %v19223_v7  ;;  %v19315_v6 = vld [vmem:[%s21559_s1 + $0x122c] ss:$16 sps:$4 sm:$0xff]   ;;  %v16329_v7 = vcombine.high %v22321_v1, %v22321_v1 }
 0x5ce   : > { %10025 = vmatpush1.bf16.msra.mxu0 %v19218_v8  ;;  %10681 = vmatpush1.bf16.msra.mxu1 %v19221_v58  ;;  %v19313_v8 = vld [vmem:[%s21559_s1 + $0x1228] ss:$16 sps:$4 sm:$0xff]   ;;  %v19318_v58 = vld [vmem:[%s21559_s1 + $0x1244] ss:$16 sps:$4 sm:$0xff]  }
 0x5cf   : > { %10026 = vmatprep.subr.bf16.mxu0 %v19226_v10  ;;  %10682 = vmatprep.subr.bf16.mxu1 %v19229_v63  ;;  %v19321_v10 = vld [vmem:[%s21559_s1 + $0x124c] ss:$16 sps:$4 sm:$0xff]   ;;  %v19316_v63 = vld [vmem:[%s21559_s1 + $0x1240] ss:$16 sps:$4 sm:$0xff]  }
 0x5d2   : > { %10027 = vmatpush1.bf16.msra.mxu0 %v19224_v11  ;;  %10683 = vmatpush1.bf16.msra.mxu1 %v19227_v0  ;;  %v19319_v11 = vld [vmem:[%s21559_s1 + $0x1248] ss:$16 sps:$4 sm:$0xff]   ;;  %v19324_v0 = vld [vmem:[%s21559_s1 + $0x1264] ss:$16 sps:$4 sm:$0xff]  }
 0x5d3   : > { %10028 = vmatprep.subr.bf16.mxu0 %v19232_v2  ;;  %10684 = vmatprep.subr.bf16.mxu1 %v19235_v13  ;;  %v19327_v2 = vld [vmem:[%s21559_s1 + $0x126c] ss:$16 sps:$4 sm:$0xff]   ;;  %v19322_v13 = vld [vmem:[%s21559_s1 + $0x1260] ss:$16 sps:$4 sm:$0xff]  }
 0x5d6   : > { %10029 = vmatpush1.bf16.msra.mxu0 %v19230_v62  ;;  %10685 = vmatpush1.bf16.msra.mxu1 %v19233_v14  ;;  %v19325_v62 = vld [vmem:[%s21559_s1 + $0x1268] ss:$16 sps:$4 sm:$0xff]   ;;  %v19330_v14 = vld [vmem:[%s21559_s1 + $0x1284] ss:$16 sps:$4 sm:$0xff]  }
 0x5d7   : > { %10030 = vmatprep.subr.bf16.mxu0 %v19238_v15  ;;  %10686 = vmatprep.subr.bf16.mxu1 %v19241_v16  ;;  %v19333_v15 = vld [vmem:[%s21559_s1 + $0x128c] ss:$16 sps:$4 sm:$0xff]   ;;  %v19328_v16 = vld [vmem:[%s21559_s1 + $0x1280] ss:$16 sps:$4 sm:$0xff]  }
 0x5da   : > { %10031 = vmatpush1.bf16.msra.mxu0 %v19236_v17  ;;  %10687 = vmatpush1.bf16.msra.mxu1 %v19239_v18  ;;  %v19331_v17 = vld [vmem:[%s21559_s1 + $0x1288] ss:$16 sps:$4 sm:$0xff]   ;;  %v19336_v18 = vld [vmem:[%s21559_s1 + $0x12a4] ss:$16 sps:$4 sm:$0xff]  }
 0x5db   : > { %10032 = vmatprep.subr.bf16.mxu0 %v19244_v19  ;;  %10688 = vmatprep.subr.bf16.mxu1 %v19247_v20  ;;  %v19339_v19 = vld [vmem:[%s21559_s1 + $0x12ac] ss:$16 sps:$4 sm:$0xff]   ;;  %v19334_v20 = vld [vmem:[%s21559_s1 + $0x12a0] ss:$16 sps:$4 sm:$0xff]  }
 0x5de   : > { %10033 = vmatpush1.bf16.msra.mxu0 %v19242_v21  ;;  %10689 = vmatpush1.bf16.msra.mxu1 %v19245_v22  ;;  %v19337_v21 = vld [vmem:[%s21559_s1 + $0x12a8] ss:$16 sps:$4 sm:$0xff]   ;;  %v19342_v22 = vld [vmem:[%s21559_s1 + $0x12c4] ss:$16 sps:$4 sm:$0xff]  }
 0x5df   : > { %10034 = vmatprep.subr.bf16.mxu0 %v19250_v23  ;;  %10690 = vmatprep.subr.bf16.mxu1 %v19253_v24  ;;  %v19345_v23 = vld [vmem:[%s21559_s1 + $0x12cc] ss:$16 sps:$4 sm:$0xff]   ;;  %v19340_v24 = vld [vmem:[%s21559_s1 + $0x12c0] ss:$16 sps:$4 sm:$0xff]  }
 0x5e2   : > { %10035 = vmatpush1.bf16.msra.mxu0 %v19248_v25  ;;  %10691 = vmatpush1.bf16.msra.mxu1 %v19251_v26  ;;  %v19343_v25 = vld [vmem:[%s21559_s1 + $0x12c8] ss:$16 sps:$4 sm:$0xff]   ;;  %v19348_v26 = vld [vmem:[%s21559_s1 + $0x12e4] ss:$16 sps:$4 sm:$0xff]  }
 0x5e3   : > { %10036 = vmatprep.subr.bf16.mxu0 %v19256_v27  ;;  %10692 = vmatprep.subr.bf16.mxu1 %v19259_v47  ;;  %v19351_v27 = vld [vmem:[%s21559_s1 + $0x12ec] ss:$16 sps:$4 sm:$0xff]   ;;  %v19346_v47 = vld [vmem:[%s21559_s1 + $0x12e0] ss:$16 sps:$4 sm:$0xff]  }
 0x5e6   : > { %10037 = vmatpush1.bf16.msra.mxu0 %v19254_v28  ;;  %10693 = vmatpush1.bf16.msra.mxu1 %v19257_v48  ;;  %v19349_v28 = vld [vmem:[%s21559_s1 + $0x12e8] ss:$16 sps:$4 sm:$0xff]   ;;  %v19354_v48 = vld [vmem:[%s21559_s1 + $0x1304] ss:$16 sps:$4 sm:$0xff]  }
 0x5e7   : > { %10038 = vmatprep.subr.bf16.mxu0 %v19262_v29  ;;  %10694 = vmatprep.subr.bf16.mxu1 %v19265_v49  ;;  %v19357_v29 = vld [vmem:[%s21559_s1 + $0x130c] ss:$16 sps:$4 sm:$0xff]   ;;  %v19352_v49 = vld [vmem:[%s21559_s1 + $0x1300] ss:$16 sps:$4 sm:$0xff]  }
 0x5ea   : > { %10039 = vmatpush1.bf16.msra.mxu0 %v19260_v50  ;;  %10695 = vmatpush1.bf16.msra.mxu1 %v19263_v30  ;;  %v19355_v50 = vld [vmem:[%s21559_s1 + $0x1308] ss:$16 sps:$4 sm:$0xff]   ;;  %v19360_v30 = vld [vmem:[%s21559_s1 + $0x1324] ss:$16 sps:$4 sm:$0xff]  }
 0x5eb   : > { %10040 = vmatprep.subr.bf16.mxu0 %v19268_v31  ;;  %10696 = vmatprep.subr.bf16.mxu1 %v19271_v32  ;;  %v19363_v31 = vld [vmem:[%s21559_s1 + $0x132c] ss:$16 sps:$4 sm:$0xff]   ;;  %v19358_v32 = vld [vmem:[%s21559_s1 + $0x1320] ss:$16 sps:$4 sm:$0xff]  }
 0x5ee   : > { %10041 = vmatpush1.bf16.msra.mxu0 %v19266_v33  ;;  %10697 = vmatpush1.bf16.msra.mxu1 %v19269_v34  ;;  %v19361_v33 = vld [vmem:[%s21559_s1 + $0x1328] ss:$16 sps:$4 sm:$0xff]   ;;  %v19366_v34 = vld [vmem:[%s21559_s1 + $0x1344] ss:$16 sps:$4 sm:$0xff]  }
 0x5ef   : > { %10042 = vmatprep.subr.bf16.mxu0 %v19274_v35  ;;  %10698 = vmatprep.subr.bf16.mxu1 %v19277_v36  ;;  %v19369_v35 = vld [vmem:[%s21559_s1 + $0x134c] ss:$16 sps:$4 sm:$0xff]   ;;  %v19364_v36 = vld [vmem:[%s21559_s1 + $0x1340] ss:$16 sps:$4 sm:$0xff]  }
 0x5f2   : > { %10043 = vmatpush1.bf16.msra.mxu0 %v19272_v37  ;;  %10699 = vmatpush1.bf16.msra.mxu1 %v19275_v38  ;;  %v19367_v37 = vld [vmem:[%s21559_s1 + $0x1348] ss:$16 sps:$4 sm:$0xff]   ;;  %v19372_v38 = vld [vmem:[%s21559_s1 + $0x1364] ss:$16 sps:$4 sm:$0xff]  }
 0x5f3   : > { %10044 = vmatprep.subr.bf16.mxu0 %v19280_v39  ;;  %10700 = vmatprep.subr.bf16.mxu1 %v19283_v41  ;;  %v19375_v39 = vld [vmem:[%s21559_s1 + $0x136c] ss:$16 sps:$4 sm:$0xff]   ;;  %v19370_v41 = vld [vmem:[%s21559_s1 + $0x1360] ss:$16 sps:$4 sm:$0xff]  }
 0x5f6   : > { %10045 = vmatpush1.bf16.msra.mxu0 %v19278_v42  ;;  %10701 = vmatpush1.bf16.msra.mxu1 %v19281_v44  ;;  %v19373_v42 = vld [vmem:[%s21559_s1 + $0x1368] ss:$16 sps:$4 sm:$0xff]   ;;  %v19378_v44 = vld [vmem:[%s21559_s1 + $0x1384] ss:$16 sps:$4 sm:$0xff]  }
 0x5f7   : > { %10046 = vmatprep.subr.bf16.mxu0 %v19286_v45  ;;  %10702 = vmatprep.subr.bf16.mxu1 %v19289_v40  ;;  %v19381_v45 = vld [vmem:[%s21559_s1 + $0x138c] ss:$16 sps:$4 sm:$0xff]   ;;  %v19376_v40 = vld [vmem:[%s21559_s1 + $0x1380] ss:$16 sps:$4 sm:$0xff]  }
 0x5fa   : > { %10047 = vmatpush1.bf16.msra.mxu0 %v19284_v53  ;;  %10703 = vmatpush1.bf16.msra.mxu1 %v19287_v12  ;;  %v19379_v53 = vld [vmem:[%s21559_s1 + $0x1388] ss:$16 sps:$4 sm:$0xff]   ;;  %v19384_v12 = vld [vmem:[%s21559_s1 + $0x13a4] ss:$16 sps:$4 sm:$0xff]  }
 0x5fb   : > { %10048 = vmatprep.subr.bf16.mxu0 %v19292_v43  ;;  %10704 = vmatprep.subr.bf16.mxu1 %v19295_v9  ;;  %v19387_v43 = vld [vmem:[%s21559_s1 + $0x13ac] ss:$16 sps:$4 sm:$0xff]   ;;  %v19382_v9 = vld [vmem:[%s21559_s1 + $0x13a0] ss:$16 sps:$4 sm:$0xff]  }
 0x5fe   : > { %10049 = vmatpush1.bf16.msra.mxu0 %v19290_v55  ;;  %10705 = vmatpush1.bf16.msra.mxu1 %v19293_v46  ;;  %v19385_v55 = vld [vmem:[%s21559_s1 + $0x13a8] ss:$16 sps:$4 sm:$0xff]   ;;  %v19390_v46 = vld [vmem:[%s21559_s1 + $0x13c4] ss:$16 sps:$4 sm:$0xff]  }
 0x5ff   : > { %10050 = vmatprep.subr.bf16.mxu0 %v19298_v57  ;;  %10706 = vmatprep.subr.bf16.mxu1 %v19301_v59  ;;  %v19393_v57 = vld [vmem:[%s21559_s1 + $0x13cc] ss:$16 sps:$4 sm:$0xff]   ;;  %v19388_v59 = vld [vmem:[%s21559_s1 + $0x13c0] ss:$16 sps:$4 sm:$0xff]  }
 0x602   : > { %10051 = vmatpush1.bf16.msra.mxu0 %v19296_v51  ;;  %10707 = vmatpush1.bf16.msra.mxu1 %v19299_v52  ;;  %v19391_v51 = vld [vmem:[%s21559_s1 + $0x13c8] ss:$16 sps:$4 sm:$0xff]   ;;  %v19396_v52 = vld [vmem:[%s21559_s1 + $0x13e4] ss:$16 sps:$4 sm:$0xff]  }
 0x603   : > { %10061 = vmatprep.subr.bf16.mxu0 %v19306_v61  ;;  %10717 = vmatprep.subr.bf16.mxu1 %v19309_v54  ;;  %v19399_v61 = vld [vmem:[%s21559_s1 + $0x13ec] ss:$16 sps:$4 sm:$0xff]   ;;  %v19394_v54 = vld [vmem:[%s21559_s1 + $0x13e0] ss:$16 sps:$4 sm:$0xff]  }
 0x605   : > { %10053 = vmatmul.mubr.bf16.vlgmr.msra.gmra.mrb[0].mxu0 %v16326_v3  ;;  %10709 = vmatmul.mubr.bf16.vlgmr.msra.gmra.mrb[0].mxu1 %v16326_v3  ;;  %v19397_v3 = vld [vmem:[%s21559_s1 + $0x13e8] ss:$16 sps:$4 sm:$0xff]  }
 0x606   : > { %10062 = vmatpush1.bf16.msra.mxu0 %v19304_v4  ;;  %10718 = vmatpush1.bf16.msra.mxu1 %v19307_v56  ;;  %v19404_v4 = vld [vmem:[%s21559_s1 + $0x1404] ss:$16 sps:$4 sm:$0xff]   ;;  %v19407_v56 = vld [vmem:[%s21559_s1 + $0x140c] ss:$16 sps:$4 sm:$0xff]  }
 0x607   : > { %10063 = vmatprep.subr.bf16.mxu0 %v19312_v5  ;;  %10719 = vmatprep.subr.bf16.mxu1 %v19315_v6  ;;  %v16328_v5 = vcombine.low %v22321_v1, %v22321_v1  ;;  %v22393_v6 = vld [vmem:[#allocation2 + $0x50] sm:$0xff]  ;;  %v19408_v1 = vld [vmem:[%s21559_s1 + $0x1420] ss:$16 sps:$4 sm:$0xff]  }
 0x608   : > { %10093 = vmatprep.mubr.bf16.mxu0 %v16329_v7  ;;  %10749 = vmatprep.mubr.bf16.mxu1 %v16329_v7  ;;  %v19402_v7 = vld [vmem:[%s21559_s1 + $0x1400] ss:$16 sps:$4 sm:$0xff]  }
 0x60a   : > { %10064 = vmatpush1.bf16.msra.mxu0 %v19310_v60  ;;  %10720 = vmatpush1.bf16.msra.mxu1 %v19313_v8  ;;  %v19405_v60 = vld [vmem:[%s21559_s1 + $0x1408] ss:$16 sps:$4 sm:$0xff]   ;;  %v19410_v8 = vld [vmem:[%s21559_s1 + $0x1424] ss:$16 sps:$4 sm:$0xff]  }
 0x60b   : > { %10065 = vmatprep.subr.bf16.mxu0 %v19318_v58  ;;  %10721 = vmatprep.subr.bf16.mxu1 %v19321_v10  ;;  %v19413_v58 = vld [vmem:[%s21559_s1 + $0x142c] ss:$16 sps:$4 sm:$0xff]   ;;  %v16331_v10 = vcombine.high %v22393_v6, %v22393_v6 }
 0x60e   : > { %10066 = vmatpush1.bf16.msra.mxu0 %v19316_v63  ;;  %10722 = vmatpush1.bf16.msra.mxu1 %v19319_v11  ;;  %v19411_v63 = vld [vmem:[%s21559_s1 + $0x1428] ss:$16 sps:$4 sm:$0xff]   ;;  %v19416_v11 = vld [vmem:[%s21559_s1 + $0x1444] ss:$16 sps:$4 sm:$0xff]  }
 0x60f   : > { %10067 = vmatprep.subr.bf16.mxu0 %v19324_v0  ;;  %10723 = vmatprep.subr.bf16.mxu1 %v19327_v2  ;;  %v19419_v0 = vld [vmem:[%s21559_s1 + $0x144c] ss:$16 sps:$4 sm:$0xff]   ;;  %v19414_v2 = vld [vmem:[%s21559_s1 + $0x1440] ss:$16 sps:$4 sm:$0xff]  }
 0x612   : > { %10068 = vmatpush1.bf16.msra.mxu0 %v19322_v13  ;;  %10724 = vmatpush1.bf16.msra.mxu1 %v19325_v62  ;;  %v19417_v13 = vld [vmem:[%s21559_s1 + $0x1448] ss:$16 sps:$4 sm:$0xff]   ;;  %v19422_v62 = vld [vmem:[%s21559_s1 + $0x1464] ss:$16 sps:$4 sm:$0xff]  }
 0x613   : > { %10069 = vmatprep.subr.bf16.mxu0 %v19330_v14  ;;  %10725 = vmatprep.subr.bf16.mxu1 %v19333_v15  ;;  %v19425_v14 = vld [vmem:[%s21559_s1 + $0x146c] ss:$16 sps:$4 sm:$0xff]   ;;  %v19420_v15 = vld [vmem:[%s21559_s1 + $0x1460] ss:$16 sps:$4 sm:$0xff]  }
 0x616   : > { %10070 = vmatpush1.bf16.msra.mxu0 %v19328_v16  ;;  %10726 = vmatpush1.bf16.msra.mxu1 %v19331_v17  ;;  %v19423_v16 = vld [vmem:[%s21559_s1 + $0x1468] ss:$16 sps:$4 sm:$0xff]   ;;  %v19428_v17 = vld [vmem:[%s21559_s1 + $0x1484] ss:$16 sps:$4 sm:$0xff]  }
 0x617   : > { %10071 = vmatprep.subr.bf16.mxu0 %v19336_v18  ;;  %10727 = vmatprep.subr.bf16.mxu1 %v19339_v19  ;;  %v19431_v18 = vld [vmem:[%s21559_s1 + $0x148c] ss:$16 sps:$4 sm:$0xff]   ;;  %v19426_v19 = vld [vmem:[%s21559_s1 + $0x1480] ss:$16 sps:$4 sm:$0xff]  }
 0x61a   : > { %10072 = vmatpush1.bf16.msra.mxu0 %v19334_v20  ;;  %10728 = vmatpush1.bf16.msra.mxu1 %v19337_v21  ;;  %v19429_v20 = vld [vmem:[%s21559_s1 + $0x1488] ss:$16 sps:$4 sm:$0xff]   ;;  %v19434_v21 = vld [vmem:[%s21559_s1 + $0x14a4] ss:$16 sps:$4 sm:$0xff]  }
 0x61b   : > { %10073 = vmatprep.subr.bf16.mxu0 %v19342_v22  ;;  %10729 = vmatprep.subr.bf16.mxu1 %v19345_v23  ;;  %v19437_v22 = vld [vmem:[%s21559_s1 + $0x14ac] ss:$16 sps:$4 sm:$0xff]   ;;  %v19432_v23 = vld [vmem:[%s21559_s1 + $0x14a0] ss:$16 sps:$4 sm:$0xff]  }
 0x61e   : > { %10074 = vmatpush1.bf16.msra.mxu0 %v19340_v24  ;;  %10730 = vmatpush1.bf16.msra.mxu1 %v19343_v25  ;;  %v19435_v24 = vld [vmem:[%s21559_s1 + $0x14a8] ss:$16 sps:$4 sm:$0xff]   ;;  %v19440_v25 = vld [vmem:[%s21559_s1 + $0x14c4] ss:$16 sps:$4 sm:$0xff]  }
 0x61f   : > { %10075 = vmatprep.subr.bf16.mxu0 %v19348_v26  ;;  %10731 = vmatprep.subr.bf16.mxu1 %v19351_v27  ;;  %v19443_v26 = vld [vmem:[%s21559_s1 + $0x14cc] ss:$16 sps:$4 sm:$0xff]   ;;  %v19438_v27 = vld [vmem:[%s21559_s1 + $0x14c0] ss:$16 sps:$4 sm:$0xff]  }
 0x622   : > { %10076 = vmatpush1.bf16.msra.mxu0 %v19346_v47  ;;  %10732 = vmatpush1.bf16.msra.mxu1 %v19349_v28  ;;  %v19441_v47 = vld [vmem:[%s21559_s1 + $0x14c8] ss:$16 sps:$4 sm:$0xff]   ;;  %v19446_v28 = vld [vmem:[%s21559_s1 + $0x14e4] ss:$16 sps:$4 sm:$0xff]  }
 0x623   : > { %10077 = vmatprep.subr.bf16.mxu0 %v19354_v48  ;;  %10733 = vmatprep.subr.bf16.mxu1 %v19357_v29  ;;  %v19449_v48 = vld [vmem:[%s21559_s1 + $0x14ec] ss:$16 sps:$4 sm:$0xff]   ;;  %v19444_v29 = vld [vmem:[%s21559_s1 + $0x14e0] ss:$16 sps:$4 sm:$0xff]  }
 0x626   : > { %10078 = vmatpush1.bf16.msra.mxu0 %v19352_v49  ;;  %10734 = vmatpush1.bf16.msra.mxu1 %v19355_v50  ;;  %v19447_v49 = vld [vmem:[%s21559_s1 + $0x14e8] ss:$16 sps:$4 sm:$0xff]   ;;  %v19452_v50 = vld [vmem:[%s21559_s1 + $0x1504] ss:$16 sps:$4 sm:$0xff]  }
 0x627   : > { %10079 = vmatprep.subr.bf16.mxu0 %v19360_v30  ;;  %10735 = vmatprep.subr.bf16.mxu1 %v19363_v31  ;;  %v19455_v30 = vld [vmem:[%s21559_s1 + $0x150c] ss:$16 sps:$4 sm:$0xff]   ;;  %v19450_v31 = vld [vmem:[%s21559_s1 + $0x1500] ss:$16 sps:$4 sm:$0xff]  }
 0x62a   : > { %10080 = vmatpush1.bf16.msra.mxu0 %v19358_v32  ;;  %10736 = vmatpush1.bf16.msra.mxu1 %v19361_v33  ;;  %v19453_v32 = vld [vmem:[%s21559_s1 + $0x1508] ss:$16 sps:$4 sm:$0xff]   ;;  %v19458_v33 = vld [vmem:[%s21559_s1 + $0x1524] ss:$16 sps:$4 sm:$0xff]  }
 0x62b   : > { %10081 = vmatprep.subr.bf16.mxu0 %v19366_v34  ;;  %10737 = vmatprep.subr.bf16.mxu1 %v19369_v35  ;;  %v19461_v34 = vld [vmem:[%s21559_s1 + $0x152c] ss:$16 sps:$4 sm:$0xff]   ;;  %v19456_v35 = vld [vmem:[%s21559_s1 + $0x1520] ss:$16 sps:$4 sm:$0xff]  }
 0x62e   : > { %10082 = vmatpush1.bf16.msra.mxu0 %v19364_v36  ;;  %10738 = vmatpush1.bf16.msra.mxu1 %v19367_v37  ;;  %v19459_v36 = vld [vmem:[%s21559_s1 + $0x1528] ss:$16 sps:$4 sm:$0xff]   ;;  %v19464_v37 = vld [vmem:[%s21559_s1 + $0x1544] ss:$16 sps:$4 sm:$0xff]  }
 0x62f   : > { %10083 = vmatprep.subr.bf16.mxu0 %v19372_v38  ;;  %10739 = vmatprep.subr.bf16.mxu1 %v19375_v39  ;;  %v19467_v38 = vld [vmem:[%s21559_s1 + $0x154c] ss:$16 sps:$4 sm:$0xff]   ;;  %v19462_v39 = vld [vmem:[%s21559_s1 + $0x1540] ss:$16 sps:$4 sm:$0xff]  }
 0x632   : > { %10084 = vmatpush1.bf16.msra.mxu0 %v19370_v41  ;;  %10740 = vmatpush1.bf16.msra.mxu1 %v19373_v42  ;;  %v19465_v41 = vld [vmem:[%s21559_s1 + $0x1548] ss:$16 sps:$4 sm:$0xff]   ;;  %v19470_v42 = vld [vmem:[%s21559_s1 + $0x1564] ss:$16 sps:$4 sm:$0xff]  }
 0x633   : > { %10085 = vmatprep.subr.bf16.mxu0 %v19378_v44  ;;  %10741 = vmatprep.subr.bf16.mxu1 %v19381_v45  ;;  %v19473_v44 = vld [vmem:[%s21559_s1 + $0x156c] ss:$16 sps:$4 sm:$0xff]   ;;  %v19468_v45 = vld [vmem:[%s21559_s1 + $0x1560] ss:$16 sps:$4 sm:$0xff]  }
 0x636   : > { %10086 = vmatpush1.bf16.msra.mxu0 %v19376_v40  ;;  %10742 = vmatpush1.bf16.msra.mxu1 %v19379_v53  ;;  %v19471_v40 = vld [vmem:[%s21559_s1 + $0x1568] ss:$16 sps:$4 sm:$0xff]   ;;  %v19476_v53 = vld [vmem:[%s21559_s1 + $0x1584] ss:$16 sps:$4 sm:$0xff]  }
 0x637   : > { %10087 = vmatprep.subr.bf16.mxu0 %v19384_v12  ;;  %10743 = vmatprep.subr.bf16.mxu1 %v19387_v43  ;;  %v19479_v12 = vld [vmem:[%s21559_s1 + $0x158c] ss:$16 sps:$4 sm:$0xff]   ;;  %v19474_v43 = vld [vmem:[%s21559_s1 + $0x1580] ss:$16 sps:$4 sm:$0xff]  }
 0x63a   : > { %10088 = vmatpush1.bf16.msra.mxu0 %v19382_v9  ;;  %10744 = vmatpush1.bf16.msra.mxu1 %v19385_v55  ;;  %v19477_v9 = vld [vmem:[%s21559_s1 + $0x1588] ss:$16 sps:$4 sm:$0xff]   ;;  %v19482_v55 = vld [vmem:[%s21559_s1 + $0x15a4] ss:$16 sps:$4 sm:$0xff]  }
 0x63b   : > { %10089 = vmatprep.subr.bf16.mxu0 %v19390_v46  ;;  %10745 = vmatprep.subr.bf16.mxu1 %v19393_v57  ;;  %v19485_v46 = vld [vmem:[%s21559_s1 + $0x15ac] ss:$16 sps:$4 sm:$0xff]   ;;  %v19480_v57 = vld [vmem:[%s21559_s1 + $0x15a0] ss:$16 sps:$4 sm:$0xff]  }
 0x63e   : > { %10090 = vmatpush1.bf16.msra.mxu0 %v19388_v59  ;;  %10746 = vmatpush1.bf16.msra.mxu1 %v19391_v51  ;;  %v19483_v59 = vld [vmem:[%s21559_s1 + $0x15a8] ss:$16 sps:$4 sm:$0xff]   ;;  %v19488_v51 = vld [vmem:[%s21559_s1 + $0x15c4] ss:$16 sps:$4 sm:$0xff]  }
 0x63f   : > { %10091 = vmatprep.subr.bf16.mxu0 %v19396_v52  ;;  %10747 = vmatprep.subr.bf16.mxu1 %v19399_v61  ;;  %v19491_v52 = vld [vmem:[%s21559_s1 + $0x15cc] ss:$16 sps:$4 sm:$0xff]   ;;  %v19486_v61 = vld [vmem:[%s21559_s1 + $0x15c0] ss:$16 sps:$4 sm:$0xff]  }
 0x642   : > { %10092 = vmatpush1.bf16.msra.mxu0 %v19394_v54  ;;  %10748 = vmatpush1.bf16.msra.mxu1 %v19397_v3  ;;  %v19489_v54 = vld [vmem:[%s21559_s1 + $0x15c8] ss:$16 sps:$4 sm:$0xff]   ;;  %v19494_v3 = vld [vmem:[%s21559_s1 + $0x15e4] ss:$16 sps:$4 sm:$0xff]  }
 0x643   : > { %10102 = vmatprep.subr.bf16.mxu0 %v19404_v4  ;;  %10758 = vmatprep.subr.bf16.mxu1 %v19407_v56  ;;  %v19497_v4 = vld [vmem:[%s21559_s1 + $0x15ec] ss:$16 sps:$4 sm:$0xff]   ;;  %v19492_v56 = vld [vmem:[%s21559_s1 + $0x15e0] ss:$16 sps:$4 sm:$0xff]  }
 0x645   : > { %10094 = vmatmul.mubr.bf16.vlgmr.msra.gmra.mrb[0].mxu0 %v16328_v5  ;;  %10750 = vmatmul.mubr.bf16.vlgmr.msra.gmra.mrb[0].mxu1 %v16328_v5  ;;  %v19495_v5 = vld [vmem:[%s21559_s1 + $0x15e8] ss:$16 sps:$4 sm:$0xff]  }
 0x646   : > { %10103 = vmatpush1.bf16.msra.mxu0 %v19402_v7  ;;  %10759 = vmatpush1.bf16.msra.mxu1 %v19405_v60  ;;  %v19502_v7 = vld [vmem:[%s21559_s1 + $0x1604] ss:$16 sps:$4 sm:$0xff]   ;;  %v19505_v60 = vld [vmem:[%s21559_s1 + $0x160c] ss:$16 sps:$4 sm:$0xff]  }
 0x647   : > { %10104 = vmatprep.subr.bf16.mxu0 %v19410_v8  ;;  %10760 = vmatprep.subr.bf16.mxu1 %v19413_v58  ;;  %v16330_v8 = vcombine.low %v22393_v6, %v22393_v6  ;;  %v22463_v58 = vld [vmem:[#allocation2 + $0x58] sm:$0xff] }
 0x648   : > { %10134 = vmatprep.mubr.bf16.mxu0 %v16331_v10  ;;  %10790 = vmatprep.mubr.bf16.mxu1 %v16331_v10  ;;  %v19500_v10 = vld [vmem:[%s21559_s1 + $0x1600] ss:$16 sps:$4 sm:$0xff]  }
 0x649   : > { %v19506_v6 = vld [vmem:[%s21559_s1 + $0x1620] ss:$16 sps:$4 sm:$0xff]  }
 0x64a   : > { %10105 = vmatpush1.bf16.msra.mxu0 %v19408_v1  ;;  %10761 = vmatpush1.bf16.msra.mxu1 %v19411_v63  ;;  %v19503_v1 = vld [vmem:[%s21559_s1 + $0x1608] ss:$16 sps:$4 sm:$0xff]   ;;  %v19508_v63 = vld [vmem:[%s21559_s1 + $0x1624] ss:$16 sps:$4 sm:$0xff]  }
 0x64b   : > { %10106 = vmatprep.subr.bf16.mxu0 %v19416_v11  ;;  %10762 = vmatprep.subr.bf16.mxu1 %v19419_v0  ;;  %v19511_v11 = vld [vmem:[%s21559_s1 + $0x162c] ss:$16 sps:$4 sm:$0xff]   ;;  %v16333_v0 = vcombine.high %v22463_v58, %v22463_v58 }
 0x64e   : > { %10107 = vmatpush1.bf16.msra.mxu0 %v19414_v2  ;;  %10763 = vmatpush1.bf16.msra.mxu1 %v19417_v13  ;;  %v19509_v2 = vld [vmem:[%s21559_s1 + $0x1628] ss:$16 sps:$4 sm:$0xff]   ;;  %v19514_v13 = vld [vmem:[%s21559_s1 + $0x1644] ss:$16 sps:$4 sm:$0xff]  }
 0x64f   : > { %10108 = vmatprep.subr.bf16.mxu0 %v19422_v62  ;;  %10764 = vmatprep.subr.bf16.mxu1 %v19425_v14  ;;  %v19517_v62 = vld [vmem:[%s21559_s1 + $0x164c] ss:$16 sps:$4 sm:$0xff]   ;;  %v19512_v14 = vld [vmem:[%s21559_s1 + $0x1640] ss:$16 sps:$4 sm:$0xff]  }
 0x652   : > { %10109 = vmatpush1.bf16.msra.mxu0 %v19420_v15  ;;  %10765 = vmatpush1.bf16.msra.mxu1 %v19423_v16  ;;  %v19515_v15 = vld [vmem:[%s21559_s1 + $0x1648] ss:$16 sps:$4 sm:$0xff]   ;;  %v19520_v16 = vld [vmem:[%s21559_s1 + $0x1664] ss:$16 sps:$4 sm:$0xff]  }
 0x653   : > { %10110 = vmatprep.subr.bf16.mxu0 %v19428_v17  ;;  %10766 = vmatprep.subr.bf16.mxu1 %v19431_v18  ;;  %v19523_v17 = vld [vmem:[%s21559_s1 + $0x166c] ss:$16 sps:$4 sm:$0xff]   ;;  %v19518_v18 = vld [vmem:[%s21559_s1 + $0x1660] ss:$16 sps:$4 sm:$0xff]  }
 0x656   : > { %10111 = vmatpush1.bf16.msra.mxu0 %v19426_v19  ;;  %10767 = vmatpush1.bf16.msra.mxu1 %v19429_v20  ;;  %v19521_v19 = vld [vmem:[%s21559_s1 + $0x1668] ss:$16 sps:$4 sm:$0xff]   ;;  %v19526_v20 = vld [vmem:[%s21559_s1 + $0x1684] ss:$16 sps:$4 sm:$0xff]  }
 0x657   : > { %10112 = vmatprep.subr.bf16.mxu0 %v19434_v21  ;;  %10768 = vmatprep.subr.bf16.mxu1 %v19437_v22  ;;  %v19529_v21 = vld [vmem:[%s21559_s1 + $0x168c] ss:$16 sps:$4 sm:$0xff]   ;;  %v19524_v22 = vld [vmem:[%s21559_s1 + $0x1680] ss:$16 sps:$4 sm:$0xff]  }
 0x65a   : > { %10113 = vmatpush1.bf16.msra.mxu0 %v19432_v23  ;;  %10769 = vmatpush1.bf16.msra.mxu1 %v19435_v24  ;;  %v19527_v23 = vld [vmem:[%s21559_s1 + $0x1688] ss:$16 sps:$4 sm:$0xff]   ;;  %v19532_v24 = vld [vmem:[%s21559_s1 + $0x16a4] ss:$16 sps:$4 sm:$0xff]  }
 0x65b   : > { %10114 = vmatprep.subr.bf16.mxu0 %v19440_v25  ;;  %10770 = vmatprep.subr.bf16.mxu1 %v19443_v26  ;;  %v19535_v25 = vld [vmem:[%s21559_s1 + $0x16ac] ss:$16 sps:$4 sm:$0xff]   ;;  %v19530_v26 = vld [vmem:[%s21559_s1 + $0x16a0] ss:$16 sps:$4 sm:$0xff]  }
 0x65e   : > { %10115 = vmatpush1.bf16.msra.mxu0 %v19438_v27  ;;  %10771 = vmatpush1.bf16.msra.mxu1 %v19441_v47  ;;  %v19533_v27 = vld [vmem:[%s21559_s1 + $0x16a8] ss:$16 sps:$4 sm:$0xff]   ;;  %v19538_v47 = vld [vmem:[%s21559_s1 + $0x16c4] ss:$16 sps:$4 sm:$0xff]  }
 0x65f   : > { %10116 = vmatprep.subr.bf16.mxu0 %v19446_v28  ;;  %10772 = vmatprep.subr.bf16.mxu1 %v19449_v48  ;;  %v19541_v28 = vld [vmem:[%s21559_s1 + $0x16cc] ss:$16 sps:$4 sm:$0xff]   ;;  %v19536_v48 = vld [vmem:[%s21559_s1 + $0x16c0] ss:$16 sps:$4 sm:$0xff]  }
 0x662   : > { %10117 = vmatpush1.bf16.msra.mxu0 %v19444_v29  ;;  %10773 = vmatpush1.bf16.msra.mxu1 %v19447_v49  ;;  %v19539_v29 = vld [vmem:[%s21559_s1 + $0x16c8] ss:$16 sps:$4 sm:$0xff]   ;;  %v19544_v49 = vld [vmem:[%s21559_s1 + $0x16e4] ss:$16 sps:$4 sm:$0xff]  }
 0x663   : > { %10118 = vmatprep.subr.bf16.mxu0 %v19452_v50  ;;  %10774 = vmatprep.subr.bf16.mxu1 %v19455_v30  ;;  %v19547_v50 = vld [vmem:[%s21559_s1 + $0x16ec] ss:$16 sps:$4 sm:$0xff]   ;;  %v19542_v30 = vld [vmem:[%s21559_s1 + $0x16e0] ss:$16 sps:$4 sm:$0xff]  }
 0x666   : > { %10119 = vmatpush1.bf16.msra.mxu0 %v19450_v31  ;;  %10775 = vmatpush1.bf16.msra.mxu1 %v19453_v32  ;;  %v19545_v31 = vld [vmem:[%s21559_s1 + $0x16e8] ss:$16 sps:$4 sm:$0xff]   ;;  %v19550_v32 = vld [vmem:[%s21559_s1 + $0x1704] ss:$16 sps:$4 sm:$0xff]  }
 0x667   : > { %10120 = vmatprep.subr.bf16.mxu0 %v19458_v33  ;;  %10776 = vmatprep.subr.bf16.mxu1 %v19461_v34  ;;  %v19553_v33 = vld [vmem:[%s21559_s1 + $0x170c] ss:$16 sps:$4 sm:$0xff]   ;;  %v19548_v34 = vld [vmem:[%s21559_s1 + $0x1700] ss:$16 sps:$4 sm:$0xff]  }
 0x66a   : > { %10121 = vmatpush1.bf16.msra.mxu0 %v19456_v35  ;;  %10777 = vmatpush1.bf16.msra.mxu1 %v19459_v36  ;;  %v19551_v35 = vld [vmem:[%s21559_s1 + $0x1708] ss:$16 sps:$4 sm:$0xff]   ;;  %v19556_v36 = vld [vmem:[%s21559_s1 + $0x1724] ss:$16 sps:$4 sm:$0xff]  }
 0x66b   : > { %10122 = vmatprep.subr.bf16.mxu0 %v19464_v37  ;;  %10778 = vmatprep.subr.bf16.mxu1 %v19467_v38  ;;  %v19559_v37 = vld [vmem:[%s21559_s1 + $0x172c] ss:$16 sps:$4 sm:$0xff]   ;;  %v19554_v38 = vld [vmem:[%s21559_s1 + $0x1720] ss:$16 sps:$4 sm:$0xff]  }
 0x66e   : > { %10123 = vmatpush1.bf16.msra.mxu0 %v19462_v39  ;;  %10779 = vmatpush1.bf16.msra.mxu1 %v19465_v41  ;;  %v19557_v39 = vld [vmem:[%s21559_s1 + $0x1728] ss:$16 sps:$4 sm:$0xff]   ;;  %v19562_v41 = vld [vmem:[%s21559_s1 + $0x1744] ss:$16 sps:$4 sm:$0xff]  }
 0x66f   : > { %10124 = vmatprep.subr.bf16.mxu0 %v19470_v42  ;;  %10780 = vmatprep.subr.bf16.mxu1 %v19473_v44  ;;  %v19565_v42 = vld [vmem:[%s21559_s1 + $0x174c] ss:$16 sps:$4 sm:$0xff]   ;;  %v19560_v44 = vld [vmem:[%s21559_s1 + $0x1740] ss:$16 sps:$4 sm:$0xff]  }
 0x672   : > { %10125 = vmatpush1.bf16.msra.mxu0 %v19468_v45  ;;  %10781 = vmatpush1.bf16.msra.mxu1 %v19471_v40  ;;  %v19563_v45 = vld [vmem:[%s21559_s1 + $0x1748] ss:$16 sps:$4 sm:$0xff]   ;;  %v19568_v40 = vld [vmem:[%s21559_s1 + $0x1764] ss:$16 sps:$4 sm:$0xff]  }
 0x673   : > { %10126 = vmatprep.subr.bf16.mxu0 %v19476_v53  ;;  %10782 = vmatprep.subr.bf16.mxu1 %v19479_v12  ;;  %v19571_v53 = vld [vmem:[%s21559_s1 + $0x176c] ss:$16 sps:$4 sm:$0xff]   ;;  %v19566_v12 = vld [vmem:[%s21559_s1 + $0x1760] ss:$16 sps:$4 sm:$0xff]  }
 0x676   : > { %10127 = vmatpush1.bf16.msra.mxu0 %v19474_v43  ;;  %10783 = vmatpush1.bf16.msra.mxu1 %v19477_v9  ;;  %v19569_v43 = vld [vmem:[%s21559_s1 + $0x1768] ss:$16 sps:$4 sm:$0xff]   ;;  %v19574_v9 = vld [vmem:[%s21559_s1 + $0x1784] ss:$16 sps:$4 sm:$0xff]  }
 0x677   : > { %10128 = vmatprep.subr.bf16.mxu0 %v19482_v55  ;;  %10784 = vmatprep.subr.bf16.mxu1 %v19485_v46  ;;  %v19577_v55 = vld [vmem:[%s21559_s1 + $0x178c] ss:$16 sps:$4 sm:$0xff]   ;;  %v19572_v46 = vld [vmem:[%s21559_s1 + $0x1780] ss:$16 sps:$4 sm:$0xff]  }
 0x67a   : > { %10129 = vmatpush1.bf16.msra.mxu0 %v19480_v57  ;;  %10785 = vmatpush1.bf16.msra.mxu1 %v19483_v59  ;;  %v19575_v57 = vld [vmem:[%s21559_s1 + $0x1788] ss:$16 sps:$4 sm:$0xff]   ;;  %v19580_v59 = vld [vmem:[%s21559_s1 + $0x17a4] ss:$16 sps:$4 sm:$0xff]  }
 0x67b   : > { %10130 = vmatprep.subr.bf16.mxu0 %v19488_v51  ;;  %10786 = vmatprep.subr.bf16.mxu1 %v19491_v52  ;;  %v19583_v51 = vld [vmem:[%s21559_s1 + $0x17ac] ss:$16 sps:$4 sm:$0xff]   ;;  %v19578_v52 = vld [vmem:[%s21559_s1 + $0x17a0] ss:$16 sps:$4 sm:$0xff]  }
 0x67e   : > { %10131 = vmatpush1.bf16.msra.mxu0 %v19486_v61  ;;  %10787 = vmatpush1.bf16.msra.mxu1 %v19489_v54  ;;  %v19581_v61 = vld [vmem:[%s21559_s1 + $0x17a8] ss:$16 sps:$4 sm:$0xff]   ;;  %v19586_v54 = vld [vmem:[%s21559_s1 + $0x17c4] ss:$16 sps:$4 sm:$0xff]  }
 0x67f   : > { %10132 = vmatprep.subr.bf16.mxu0 %v19494_v3  ;;  %10788 = vmatprep.subr.bf16.mxu1 %v19497_v4  ;;  %v19589_v3 = vld [vmem:[%s21559_s1 + $0x17cc] ss:$16 sps:$4 sm:$0xff]   ;;  %v19584_v4 = vld [vmem:[%s21559_s1 + $0x17c0] ss:$16 sps:$4 sm:$0xff]  }
 0x682   : > { %10133 = vmatpush1.bf16.msra.mxu0 %v19492_v56  ;;  %10789 = vmatpush1.bf16.msra.mxu1 %v19495_v5  ;;  %v19587_v56 = vld [vmem:[%s21559_s1 + $0x17c8] ss:$16 sps:$4 sm:$0xff]   ;;  %v19592_v5 = vld [vmem:[%s21559_s1 + $0x17e4] ss:$16 sps:$4 sm:$0xff]  }
 0x683   : > { %10143 = vmatprep.subr.bf16.mxu0 %v19502_v7  ;;  %10799 = vmatprep.subr.bf16.mxu1 %v19505_v60  ;;  %v19595_v7 = vld [vmem:[%s21559_s1 + $0x17ec] ss:$16 sps:$4 sm:$0xff]   ;;  %v19590_v60 = vld [vmem:[%s21559_s1 + $0x17e0] ss:$16 sps:$4 sm:$0xff]  }
 0x685   : > { %10135 = vmatmul.mubr.bf16.vlgmr.msra.gmra.mrb[0].mxu0 %v16330_v8  ;;  %10791 = vmatmul.mubr.bf16.vlgmr.msra.gmra.mrb[0].mxu1 %v16330_v8  ;;  %v19593_v8 = vld [vmem:[%s21559_s1 + $0x17e8] ss:$16 sps:$4 sm:$0xff]  }
 0x686   : > { %10144 = vmatpush1.bf16.msra.mxu0 %v19500_v10  ;;  %10800 = vmatpush1.bf16.msra.mxu1 %v19503_v1  ;;  %v19600_v10 = vld [vmem:[%s21559_s1 + $0x1804] ss:$16 sps:$4 sm:$0xff]   ;;  %v19603_v1 = vld [vmem:[%s21559_s1 + $0x180c] ss:$16 sps:$4 sm:$0xff]  }
 0x687   : > { %10145 = vmatprep.subr.bf16.mxu0 %v19508_v63  ;;  %10801 = vmatprep.subr.bf16.mxu1 %v19511_v11  ;;  %v16332_v63 = vcombine.low %v22463_v58, %v22463_v58  ;;  %v22533_v11 = vld [vmem:[#allocation2 + $0x60] sm:$0xff]  ;;  %v19604_v58 = vld [vmem:[%s21559_s1 + $0x1820] ss:$16 sps:$4 sm:$0xff]  }
 0x688   : > { %10175 = vmatprep.mubr.bf16.mxu0 %v16333_v0  ;;  %10831 = vmatprep.mubr.bf16.mxu1 %v16333_v0  ;;  %v19598_v0 = vld [vmem:[%s21559_s1 + $0x1800] ss:$16 sps:$4 sm:$0xff]  }
 0x68a   : > { %10146 = vmatpush1.bf16.msra.mxu0 %v19506_v6  ;;  %10802 = vmatpush1.bf16.msra.mxu1 %v19509_v2  ;;  %v19601_v6 = vld [vmem:[%s21559_s1 + $0x1808] ss:$16 sps:$4 sm:$0xff]   ;;  %v19606_v2 = vld [vmem:[%s21559_s1 + $0x1824] ss:$16 sps:$4 sm:$0xff]  }
 0x68b   : > { %10147 = vmatprep.subr.bf16.mxu0 %v19514_v13  ;;  %10803 = vmatprep.subr.bf16.mxu1 %v19517_v62  ;;  %v19609_v13 = vld [vmem:[%s21559_s1 + $0x182c] ss:$16 sps:$4 sm:$0xff]   ;;  %v16335_v62 = vcombine.high %v22533_v11, %v22533_v11 }
 0x68e   : > { %10148 = vmatpush1.bf16.msra.mxu0 %v19512_v14  ;;  %10804 = vmatpush1.bf16.msra.mxu1 %v19515_v15  ;;  %v19607_v14 = vld [vmem:[%s21559_s1 + $0x1828] ss:$16 sps:$4 sm:$0xff]   ;;  %v19612_v15 = vld [vmem:[%s21559_s1 + $0x1844] ss:$16 sps:$4 sm:$0xff]  }
 0x68f   : > { %10149 = vmatprep.subr.bf16.mxu0 %v19520_v16  ;;  %10805 = vmatprep.subr.bf16.mxu1 %v19523_v17  ;;  %v19615_v16 = vld [vmem:[%s21559_s1 + $0x184c] ss:$16 sps:$4 sm:$0xff]   ;;  %v19610_v17 = vld [vmem:[%s21559_s1 + $0x1840] ss:$16 sps:$4 sm:$0xff]  }
 0x692   : > { %10150 = vmatpush1.bf16.msra.mxu0 %v19518_v18  ;;  %10806 = vmatpush1.bf16.msra.mxu1 %v19521_v19  ;;  %v19613_v18 = vld [vmem:[%s21559_s1 + $0x1848] ss:$16 sps:$4 sm:$0xff]   ;;  %v19618_v19 = vld [vmem:[%s21559_s1 + $0x1864] ss:$16 sps:$4 sm:$0xff]  }
 0x693   : > { %10151 = vmatprep.subr.bf16.mxu0 %v19526_v20  ;;  %10807 = vmatprep.subr.bf16.mxu1 %v19529_v21  ;;  %v19621_v20 = vld [vmem:[%s21559_s1 + $0x186c] ss:$16 sps:$4 sm:$0xff]   ;;  %v19616_v21 = vld [vmem:[%s21559_s1 + $0x1860] ss:$16 sps:$4 sm:$0xff]  }
 0x696   : > { %10152 = vmatpush1.bf16.msra.mxu0 %v19524_v22  ;;  %10808 = vmatpush1.bf16.msra.mxu1 %v19527_v23  ;;  %v19619_v22 = vld [vmem:[%s21559_s1 + $0x1868] ss:$16 sps:$4 sm:$0xff]   ;;  %v19624_v23 = vld [vmem:[%s21559_s1 + $0x1884] ss:$16 sps:$4 sm:$0xff]  }
 0x697   : > { %10153 = vmatprep.subr.bf16.mxu0 %v19532_v24  ;;  %10809 = vmatprep.subr.bf16.mxu1 %v19535_v25  ;;  %v19627_v24 = vld [vmem:[%s21559_s1 + $0x188c] ss:$16 sps:$4 sm:$0xff]   ;;  %v19622_v25 = vld [vmem:[%s21559_s1 + $0x1880] ss:$16 sps:$4 sm:$0xff]  }
 0x69a   : > { %10154 = vmatpush1.bf16.msra.mxu0 %v19530_v26  ;;  %10810 = vmatpush1.bf16.msra.mxu1 %v19533_v27  ;;  %v19625_v26 = vld [vmem:[%s21559_s1 + $0x1888] ss:$16 sps:$4 sm:$0xff]   ;;  %v19630_v27 = vld [vmem:[%s21559_s1 + $0x18a4] ss:$16 sps:$4 sm:$0xff]  }
 0x69b   : > { %10155 = vmatprep.subr.bf16.mxu0 %v19538_v47  ;;  %10811 = vmatprep.subr.bf16.mxu1 %v19541_v28  ;;  %v19633_v47 = vld [vmem:[%s21559_s1 + $0x18ac] ss:$16 sps:$4 sm:$0xff]   ;;  %v19628_v28 = vld [vmem:[%s21559_s1 + $0x18a0] ss:$16 sps:$4 sm:$0xff]  }
 0x69e   : > { %10156 = vmatpush1.bf16.msra.mxu0 %v19536_v48  ;;  %10812 = vmatpush1.bf16.msra.mxu1 %v19539_v29  ;;  %v19631_v48 = vld [vmem:[%s21559_s1 + $0x18a8] ss:$16 sps:$4 sm:$0xff]   ;;  %v19636_v29 = vld [vmem:[%s21559_s1 + $0x18c4] ss:$16 sps:$4 sm:$0xff]  }
 0x69f   : > { %10157 = vmatprep.subr.bf16.mxu0 %v19544_v49  ;;  %10813 = vmatprep.subr.bf16.mxu1 %v19547_v50  ;;  %v19639_v49 = vld [vmem:[%s21559_s1 + $0x18cc] ss:$16 sps:$4 sm:$0xff]   ;;  %v19634_v50 = vld [vmem:[%s21559_s1 + $0x18c0] ss:$16 sps:$4 sm:$0xff]  }
 0x6a2   : > { %10158 = vmatpush1.bf16.msra.mxu0 %v19542_v30  ;;  %10814 = vmatpush1.bf16.msra.mxu1 %v19545_v31  ;;  %v19637_v30 = vld [vmem:[%s21559_s1 + $0x18c8] ss:$16 sps:$4 sm:$0xff]   ;;  %v19642_v31 = vld [vmem:[%s21559_s1 + $0x18e4] ss:$16 sps:$4 sm:$0xff]  }
 0x6a3   : > { %10159 = vmatprep.subr.bf16.mxu0 %v19550_v32  ;;  %10815 = vmatprep.subr.bf16.mxu1 %v19553_v33  ;;  %v19645_v32 = vld [vmem:[%s21559_s1 + $0x18ec] ss:$16 sps:$4 sm:$0xff]   ;;  %v19640_v33 = vld [vmem:[%s21559_s1 + $0x18e0] ss:$16 sps:$4 sm:$0xff]  }
 0x6a6   : > { %10160 = vmatpush1.bf16.msra.mxu0 %v19548_v34  ;;  %10816 = vmatpush1.bf16.msra.mxu1 %v19551_v35  ;;  %v19643_v34 = vld [vmem:[%s21559_s1 + $0x18e8] ss:$16 sps:$4 sm:$0xff]   ;;  %v19648_v35 = vld [vmem:[%s21559_s1 + $0x1904] ss:$16 sps:$4 sm:$0xff]  }
 0x6a7   : > { %10161 = vmatprep.subr.bf16.mxu0 %v19556_v36  ;;  %10817 = vmatprep.subr.bf16.mxu1 %v19559_v37  ;;  %v19651_v36 = vld [vmem:[%s21559_s1 + $0x190c] ss:$16 sps:$4 sm:$0xff]   ;;  %v19646_v37 = vld [vmem:[%s21559_s1 + $0x1900] ss:$16 sps:$4 sm:$0xff]  }
 0x6aa   : > { %10162 = vmatpush1.bf16.msra.mxu0 %v19554_v38  ;;  %10818 = vmatpush1.bf16.msra.mxu1 %v19557_v39  ;;  %v19649_v38 = vld [vmem:[%s21559_s1 + $0x1908] ss:$16 sps:$4 sm:$0xff]   ;;  %v19654_v39 = vld [vmem:[%s21559_s1 + $0x1924] ss:$16 sps:$4 sm:$0xff]  }
 0x6ab   : > { %10163 = vmatprep.subr.bf16.mxu0 %v19562_v41  ;;  %10819 = vmatprep.subr.bf16.mxu1 %v19565_v42  ;;  %v19657_v41 = vld [vmem:[%s21559_s1 + $0x192c] ss:$16 sps:$4 sm:$0xff]   ;;  %v19652_v42 = vld [vmem:[%s21559_s1 + $0x1920] ss:$16 sps:$4 sm:$0xff]  }
 0x6ae   : > { %10164 = vmatpush1.bf16.msra.mxu0 %v19560_v44  ;;  %10820 = vmatpush1.bf16.msra.mxu1 %v19563_v45  ;;  %v19655_v44 = vld [vmem:[%s21559_s1 + $0x1928] ss:$16 sps:$4 sm:$0xff]   ;;  %v19660_v45 = vld [vmem:[%s21559_s1 + $0x1944] ss:$16 sps:$4 sm:$0xff]  }
 0x6af   : > { %10165 = vmatprep.subr.bf16.mxu0 %v19568_v40  ;;  %10821 = vmatprep.subr.bf16.mxu1 %v19571_v53  ;;  %v19663_v40 = vld [vmem:[%s21559_s1 + $0x194c] ss:$16 sps:$4 sm:$0xff]   ;;  %v19658_v53 = vld [vmem:[%s21559_s1 + $0x1940] ss:$16 sps:$4 sm:$0xff]  }
 0x6b2   : > { %10166 = vmatpush1.bf16.msra.mxu0 %v19566_v12  ;;  %10822 = vmatpush1.bf16.msra.mxu1 %v19569_v43  ;;  %v19661_v12 = vld [vmem:[%s21559_s1 + $0x1948] ss:$16 sps:$4 sm:$0xff]   ;;  %v19666_v43 = vld [vmem:[%s21559_s1 + $0x1964] ss:$16 sps:$4 sm:$0xff]  }
 0x6b3   : > { %10167 = vmatprep.subr.bf16.mxu0 %v19574_v9  ;;  %10823 = vmatprep.subr.bf16.mxu1 %v19577_v55  ;;  %v19669_v9 = vld [vmem:[%s21559_s1 + $0x196c] ss:$16 sps:$4 sm:$0xff]   ;;  %v19664_v55 = vld [vmem:[%s21559_s1 + $0x1960] ss:$16 sps:$4 sm:$0xff]  }
 0x6b6   : > { %10168 = vmatpush1.bf16.msra.mxu0 %v19572_v46  ;;  %10824 = vmatpush1.bf16.msra.mxu1 %v19575_v57  ;;  %v19667_v46 = vld [vmem:[%s21559_s1 + $0x1968] ss:$16 sps:$4 sm:$0xff]   ;;  %v19672_v57 = vld [vmem:[%s21559_s1 + $0x1984] ss:$16 sps:$4 sm:$0xff]  }
 0x6b7   : > { %10169 = vmatprep.subr.bf16.mxu0 %v19580_v59  ;;  %10825 = vmatprep.subr.bf16.mxu1 %v19583_v51  ;;  %v19675_v59 = vld [vmem:[%s21559_s1 + $0x198c] ss:$16 sps:$4 sm:$0xff]   ;;  %v19670_v51 = vld [vmem:[%s21559_s1 + $0x1980] ss:$16 sps:$4 sm:$0xff]  }
 0x6ba   : > { %10170 = vmatpush1.bf16.msra.mxu0 %v19578_v52  ;;  %10826 = vmatpush1.bf16.msra.mxu1 %v19581_v61  ;;  %v19673_v52 = vld [vmem:[%s21559_s1 + $0x1988] ss:$16 sps:$4 sm:$0xff]   ;;  %v19678_v61 = vld [vmem:[%s21559_s1 + $0x19a4] ss:$16 sps:$4 sm:$0xff]  }
 0x6bb   : > { %10171 = vmatprep.subr.bf16.mxu0 %v19586_v54  ;;  %10827 = vmatprep.subr.bf16.mxu1 %v19589_v3  ;;  %v19681_v54 = vld [vmem:[%s21559_s1 + $0x19ac] ss:$16 sps:$4 sm:$0xff]   ;;  %v19676_v3 = vld [vmem:[%s21559_s1 + $0x19a0] ss:$16 sps:$4 sm:$0xff]  }
 0x6be   : > { %10172 = vmatpush1.bf16.msra.mxu0 %v19584_v4  ;;  %10828 = vmatpush1.bf16.msra.mxu1 %v19587_v56  ;;  %v19679_v4 = vld [vmem:[%s21559_s1 + $0x19a8] ss:$16 sps:$4 sm:$0xff]   ;;  %v19684_v56 = vld [vmem:[%s21559_s1 + $0x19c4] ss:$16 sps:$4 sm:$0xff]  }
 0x6bf   : > { %10173 = vmatprep.subr.bf16.mxu0 %v19592_v5  ;;  %10829 = vmatprep.subr.bf16.mxu1 %v19595_v7  ;;  %v19687_v5 = vld [vmem:[%s21559_s1 + $0x19cc] ss:$16 sps:$4 sm:$0xff]   ;;  %v19682_v7 = vld [vmem:[%s21559_s1 + $0x19c0] ss:$16 sps:$4 sm:$0xff]  }
 0x6c2   : > { %10174 = vmatpush1.bf16.msra.mxu0 %v19590_v60  ;;  %10830 = vmatpush1.bf16.msra.mxu1 %v19593_v8  ;;  %v19685_v60 = vld [vmem:[%s21559_s1 + $0x19c8] ss:$16 sps:$4 sm:$0xff]   ;;  %v19690_v8 = vld [vmem:[%s21559_s1 + $0x19e4] ss:$16 sps:$4 sm:$0xff]  }
 0x6c3   : > { %10184 = vmatprep.subr.bf16.mxu0 %v19600_v10  ;;  %10840 = vmatprep.subr.bf16.mxu1 %v19603_v1  ;;  %v19693_v10 = vld [vmem:[%s21559_s1 + $0x19ec] ss:$16 sps:$4 sm:$0xff]   ;;  %v19688_v1 = vld [vmem:[%s21559_s1 + $0x19e0] ss:$16 sps:$4 sm:$0xff]  }
 0x6c5   : > { %10176 = vmatmul.mubr.bf16.vlgmr.msra.gmra.mrb[0].mxu0 %v16332_v63  ;;  %10832 = vmatmul.mubr.bf16.vlgmr.msra.gmra.mrb[0].mxu1 %v16332_v63  ;;  %v19691_v63 = vld [vmem:[%s21559_s1 + $0x19e8] ss:$16 sps:$4 sm:$0xff]  }
 0x6c6   : > { %10185 = vmatpush1.bf16.msra.mxu0 %v19598_v0  ;;  %10841 = vmatpush1.bf16.msra.mxu1 %v19601_v6  ;;  %v19698_v0 = vld [vmem:[%s21559_s1 + $0x1a04] ss:$16 sps:$4 sm:$0xff]   ;;  %v19701_v6 = vld [vmem:[%s21559_s1 + $0x1a0c] ss:$16 sps:$4 sm:$0xff]  }
 0x6c7   : > { %10186 = vmatprep.subr.bf16.mxu0 %v19606_v2  ;;  %10842 = vmatprep.subr.bf16.mxu1 %v19609_v13  ;;  %v16334_v2 = vcombine.low %v22533_v11, %v22533_v11  ;;  %v22603_v13 = vld [vmem:[#allocation2 + $0x68] sm:$0xff] }
 0x6c8   : > { %10216 = vmatprep.mubr.bf16.mxu0 %v16335_v62  ;;  %10872 = vmatprep.mubr.bf16.mxu1 %v16335_v62  ;;  %v19696_v62 = vld [vmem:[%s21559_s1 + $0x1a00] ss:$16 sps:$4 sm:$0xff]  }
 0x6c9   : > { %v19702_v11 = vld [vmem:[%s21559_s1 + $0x1a20] ss:$16 sps:$4 sm:$0xff]  }
 0x6ca   : > { %10187 = vmatpush1.bf16.msra.mxu0 %v19604_v58  ;;  %10843 = vmatpush1.bf16.msra.mxu1 %v19607_v14  ;;  %v19699_v58 = vld [vmem:[%s21559_s1 + $0x1a08] ss:$16 sps:$4 sm:$0xff]   ;;  %v19704_v14 = vld [vmem:[%s21559_s1 + $0x1a24] ss:$16 sps:$4 sm:$0xff]  }
 0x6cb   : > { %10188 = vmatprep.subr.bf16.mxu0 %v19612_v15  ;;  %10844 = vmatprep.subr.bf16.mxu1 %v19615_v16  ;;  %v19707_v15 = vld [vmem:[%s21559_s1 + $0x1a2c] ss:$16 sps:$4 sm:$0xff]   ;;  %v16337_v16 = vcombine.high %v22603_v13, %v22603_v13 }
 0x6ce   : > { %10189 = vmatpush1.bf16.msra.mxu0 %v19610_v17  ;;  %10845 = vmatpush1.bf16.msra.mxu1 %v19613_v18  ;;  %v19705_v17 = vld [vmem:[%s21559_s1 + $0x1a28] ss:$16 sps:$4 sm:$0xff]   ;;  %v19710_v18 = vld [vmem:[%s21559_s1 + $0x1a44] ss:$16 sps:$4 sm:$0xff]  }
 0x6cf   : > { %10190 = vmatprep.subr.bf16.mxu0 %v19618_v19  ;;  %10846 = vmatprep.subr.bf16.mxu1 %v19621_v20  ;;  %v19713_v19 = vld [vmem:[%s21559_s1 + $0x1a4c] ss:$16 sps:$4 sm:$0xff]   ;;  %v19708_v20 = vld [vmem:[%s21559_s1 + $0x1a40] ss:$16 sps:$4 sm:$0xff]  }
 0x6d2   : > { %10191 = vmatpush1.bf16.msra.mxu0 %v19616_v21  ;;  %10847 = vmatpush1.bf16.msra.mxu1 %v19619_v22  ;;  %v19711_v21 = vld [vmem:[%s21559_s1 + $0x1a48] ss:$16 sps:$4 sm:$0xff]   ;;  %v19716_v22 = vld [vmem:[%s21559_s1 + $0x1a64] ss:$16 sps:$4 sm:$0xff]  }
 0x6d3   : > { %10192 = vmatprep.subr.bf16.mxu0 %v19624_v23  ;;  %10848 = vmatprep.subr.bf16.mxu1 %v19627_v24  ;;  %v19719_v23 = vld [vmem:[%s21559_s1 + $0x1a6c] ss:$16 sps:$4 sm:$0xff]   ;;  %v19714_v24 = vld [vmem:[%s21559_s1 + $0x1a60] ss:$16 sps:$4 sm:$0xff]  }
 0x6d6   : > { %10193 = vmatpush1.bf16.msra.mxu0 %v19622_v25  ;;  %10849 = vmatpush1.bf16.msra.mxu1 %v19625_v26  ;;  %v19717_v25 = vld [vmem:[%s21559_s1 + $0x1a68] ss:$16 sps:$4 sm:$0xff]   ;;  %v19722_v26 = vld [vmem:[%s21559_s1 + $0x1a84] ss:$16 sps:$4 sm:$0xff]  }
 0x6d7   : > { %10194 = vmatprep.subr.bf16.mxu0 %v19630_v27  ;;  %10850 = vmatprep.subr.bf16.mxu1 %v19633_v47  ;;  %v19725_v27 = vld [vmem:[%s21559_s1 + $0x1a8c] ss:$16 sps:$4 sm:$0xff]   ;;  %v19720_v47 = vld [vmem:[%s21559_s1 + $0x1a80] ss:$16 sps:$4 sm:$0xff]  }
 0x6da   : > { %10195 = vmatpush1.bf16.msra.mxu0 %v19628_v28  ;;  %10851 = vmatpush1.bf16.msra.mxu1 %v19631_v48  ;;  %v19723_v28 = vld [vmem:[%s21559_s1 + $0x1a88] ss:$16 sps:$4 sm:$0xff]   ;;  %v19728_v48 = vld [vmem:[%s21559_s1 + $0x1aa4] ss:$16 sps:$4 sm:$0xff]  }
 0x6db   : > { %10196 = vmatprep.subr.bf16.mxu0 %v19636_v29  ;;  %10852 = vmatprep.subr.bf16.mxu1 %v19639_v49  ;;  %v19731_v29 = vld [vmem:[%s21559_s1 + $0x1aac] ss:$16 sps:$4 sm:$0xff]   ;;  %v19726_v49 = vld [vmem:[%s21559_s1 + $0x1aa0] ss:$16 sps:$4 sm:$0xff]  }
 0x6de   : > { %10197 = vmatpush1.bf16.msra.mxu0 %v19634_v50  ;;  %10853 = vmatpush1.bf16.msra.mxu1 %v19637_v30  ;;  %v19729_v50 = vld [vmem:[%s21559_s1 + $0x1aa8] ss:$16 sps:$4 sm:$0xff]   ;;  %v19734_v30 = vld [vmem:[%s21559_s1 + $0x1ac4] ss:$16 sps:$4 sm:$0xff]  }
 0x6df   : > { %10198 = vmatprep.subr.bf16.mxu0 %v19642_v31  ;;  %10854 = vmatprep.subr.bf16.mxu1 %v19645_v32  ;;  %v19737_v31 = vld [vmem:[%s21559_s1 + $0x1acc] ss:$16 sps:$4 sm:$0xff]   ;;  %v19732_v32 = vld [vmem:[%s21559_s1 + $0x1ac0] ss:$16 sps:$4 sm:$0xff]  }
 0x6e2   : > { %10199 = vmatpush1.bf16.msra.mxu0 %v19640_v33  ;;  %10855 = vmatpush1.bf16.msra.mxu1 %v19643_v34  ;;  %v19735_v33 = vld [vmem:[%s21559_s1 + $0x1ac8] ss:$16 sps:$4 sm:$0xff]   ;;  %v19740_v34 = vld [vmem:[%s21559_s1 + $0x1ae4] ss:$16 sps:$4 sm:$0xff]  }
 0x6e3   : > { %10200 = vmatprep.subr.bf16.mxu0 %v19648_v35  ;;  %10856 = vmatprep.subr.bf16.mxu1 %v19651_v36  ;;  %v19743_v35 = vld [vmem:[%s21559_s1 + $0x1aec] ss:$16 sps:$4 sm:$0xff]   ;;  %v19738_v36 = vld [vmem:[%s21559_s1 + $0x1ae0] ss:$16 sps:$4 sm:$0xff]  }
 0x6e6   : > { %10201 = vmatpush1.bf16.msra.mxu0 %v19646_v37  ;;  %10857 = vmatpush1.bf16.msra.mxu1 %v19649_v38  ;;  %v19741_v37 = vld [vmem:[%s21559_s1 + $0x1ae8] ss:$16 sps:$4 sm:$0xff]   ;;  %v19746_v38 = vld [vmem:[%s21559_s1 + $0x1b04] ss:$16 sps:$4 sm:$0xff]  }
 0x6e7   : > { %10202 = vmatprep.subr.bf16.mxu0 %v19654_v39  ;;  %10858 = vmatprep.subr.bf16.mxu1 %v19657_v41  ;;  %v19749_v39 = vld [vmem:[%s21559_s1 + $0x1b0c] ss:$16 sps:$4 sm:$0xff]   ;;  %v19744_v41 = vld [vmem:[%s21559_s1 + $0x1b00] ss:$16 sps:$4 sm:$0xff]  }
 0x6ea   : > { %10203 = vmatpush1.bf16.msra.mxu0 %v19652_v42  ;;  %10859 = vmatpush1.bf16.msra.mxu1 %v19655_v44  ;;  %v19747_v42 = vld [vmem:[%s21559_s1 + $0x1b08] ss:$16 sps:$4 sm:$0xff]   ;;  %v19752_v44 = vld [vmem:[%s21559_s1 + $0x1b24] ss:$16 sps:$4 sm:$0xff]  }
 0x6eb   : > { %10204 = vmatprep.subr.bf16.mxu0 %v19660_v45  ;;  %10860 = vmatprep.subr.bf16.mxu1 %v19663_v40  ;;  %v19755_v45 = vld [vmem:[%s21559_s1 + $0x1b2c] ss:$16 sps:$4 sm:$0xff]   ;;  %v19750_v40 = vld [vmem:[%s21559_s1 + $0x1b20] ss:$16 sps:$4 sm:$0xff]  }
 0x6ee   : > { %10205 = vmatpush1.bf16.msra.mxu0 %v19658_v53  ;;  %10861 = vmatpush1.bf16.msra.mxu1 %v19661_v12  ;;  %v19753_v53 = vld [vmem:[%s21559_s1 + $0x1b28] ss:$16 sps:$4 sm:$0xff]   ;;  %v19758_v12 = vld [vmem:[%s21559_s1 + $0x1b44] ss:$16 sps:$4 sm:$0xff]  }
 0x6ef   : > { %10206 = vmatprep.subr.bf16.mxu0 %v19666_v43  ;;  %10862 = vmatprep.subr.bf16.mxu1 %v19669_v9  ;;  %v19761_v43 = vld [vmem:[%s21559_s1 + $0x1b4c] ss:$16 sps:$4 sm:$0xff]   ;;  %v19756_v9 = vld [vmem:[%s21559_s1 + $0x1b40] ss:$16 sps:$4 sm:$0xff]  }
 0x6f2   : > { %10207 = vmatpush1.bf16.msra.mxu0 %v19664_v55  ;;  %10863 = vmatpush1.bf16.msra.mxu1 %v19667_v46  ;;  %v19759_v55 = vld [vmem:[%s21559_s1 + $0x1b48] ss:$16 sps:$4 sm:$0xff]   ;;  %v19764_v46 = vld [vmem:[%s21559_s1 + $0x1b64] ss:$16 sps:$4 sm:$0xff]  }
 0x6f3   : > { %10208 = vmatprep.subr.bf16.mxu0 %v19672_v57  ;;  %10864 = vmatprep.subr.bf16.mxu1 %v19675_v59  ;;  %v19767_v57 = vld [vmem:[%s21559_s1 + $0x1b6c] ss:$16 sps:$4 sm:$0xff]   ;;  %v19762_v59 = vld [vmem:[%s21559_s1 + $0x1b60] ss:$16 sps:$4 sm:$0xff]  }
 0x6f6   : > { %10209 = vmatpush1.bf16.msra.mxu0 %v19670_v51  ;;  %10865 = vmatpush1.bf16.msra.mxu1 %v19673_v52  ;;  %v19765_v51 = vld [vmem:[%s21559_s1 + $0x1b68] ss:$16 sps:$4 sm:$0xff]   ;;  %v19770_v52 = vld [vmem:[%s21559_s1 + $0x1b84] ss:$16 sps:$4 sm:$0xff]  }
 0x6f7   : > { %10210 = vmatprep.subr.bf16.mxu0 %v19678_v61  ;;  %10866 = vmatprep.subr.bf16.mxu1 %v19681_v54  ;;  %v19773_v61 = vld [vmem:[%s21559_s1 + $0x1b8c] ss:$16 sps:$4 sm:$0xff]   ;;  %v19768_v54 = vld [vmem:[%s21559_s1 + $0x1b80] ss:$16 sps:$4 sm:$0xff]  }
 0x6fa   : > { %10211 = vmatpush1.bf16.msra.mxu0 %v19676_v3  ;;  %10867 = vmatpush1.bf16.msra.mxu1 %v19679_v4  ;;  %v19771_v3 = vld [vmem:[%s21559_s1 + $0x1b88] ss:$16 sps:$4 sm:$0xff]   ;;  %v19776_v4 = vld [vmem:[%s21559_s1 + $0x1ba4] ss:$16 sps:$4 sm:$0xff]  }
 0x6fb   : > { %10212 = vmatprep.subr.bf16.mxu0 %v19684_v56  ;;  %10868 = vmatprep.subr.bf16.mxu1 %v19687_v5  ;;  %v19779_v56 = vld [vmem:[%s21559_s1 + $0x1bac] ss:$16 sps:$4 sm:$0xff]   ;;  %v19774_v5 = vld [vmem:[%s21559_s1 + $0x1ba0] ss:$16 sps:$4 sm:$0xff]  }
 0x6fe   : > { %10213 = vmatpush1.bf16.msra.mxu0 %v19682_v7  ;;  %10869 = vmatpush1.bf16.msra.mxu1 %v19685_v60  ;;  %v19777_v7 = vld [vmem:[%s21559_s1 + $0x1ba8] ss:$16 sps:$4 sm:$0xff]   ;;  %v19782_v60 = vld [vmem:[%s21559_s1 + $0x1bc4] ss:$16 sps:$4 sm:$0xff]  }
 0x6ff   : > { %10214 = vmatprep.subr.bf16.mxu0 %v19690_v8  ;;  %10870 = vmatprep.subr.bf16.mxu1 %v19693_v10  ;;  %v19785_v8 = vld [vmem:[%s21559_s1 + $0x1bcc] ss:$16 sps:$4 sm:$0xff]   ;;  %v19780_v10 = vld [vmem:[%s21559_s1 + $0x1bc0] ss:$16 sps:$4 sm:$0xff]  }
 0x702   : > { %10215 = vmatpush1.bf16.msra.mxu0 %v19688_v1  ;;  %10871 = vmatpush1.bf16.msra.mxu1 %v19691_v63  ;;  %v19783_v1 = vld [vmem:[%s21559_s1 + $0x1bc8] ss:$16 sps:$4 sm:$0xff]   ;;  %v19788_v63 = vld [vmem:[%s21559_s1 + $0x1be4] ss:$16 sps:$4 sm:$0xff]  }
 0x703   : > { %10225 = vmatprep.subr.bf16.mxu0 %v19698_v0  ;;  %10881 = vmatprep.subr.bf16.mxu1 %v19701_v6  ;;  %v19791_v0 = vld [vmem:[%s21559_s1 + $0x1bec] ss:$16 sps:$4 sm:$0xff]   ;;  %v19786_v6 = vld [vmem:[%s21559_s1 + $0x1be0] ss:$16 sps:$4 sm:$0xff]  }
 0x705   : > { %10217 = vmatmul.mubr.bf16.vlgmr.msra.gmra.mrb[0].mxu0 %v16334_v2  ;;  %10873 = vmatmul.mubr.bf16.vlgmr.msra.gmra.mrb[0].mxu1 %v16334_v2  ;;  %v19789_v2 = vld [vmem:[%s21559_s1 + $0x1be8] ss:$16 sps:$4 sm:$0xff]  }
 0x706   : > { %10226 = vmatpush1.bf16.msra.mxu0 %v19696_v62  ;;  %10882 = vmatpush1.bf16.msra.mxu1 %v19699_v58  ;;  %v19796_v62 = vld [vmem:[%s21559_s1 + $0x1c04] ss:$16 sps:$4 sm:$0xff]   ;;  %v19799_v58 = vld [vmem:[%s21559_s1 + $0x1c0c] ss:$16 sps:$4 sm:$0xff]  }
 0x707   : > { %10227 = vmatprep.subr.bf16.mxu0 %v19704_v14  ;;  %10883 = vmatprep.subr.bf16.mxu1 %v19707_v15  ;;  %v16336_v14 = vcombine.low %v22603_v13, %v22603_v13  ;;  %v22673_v15 = vld [vmem:[#allocation2 + $0x70] sm:$0xff]  ;;  %v19800_v13 = vld [vmem:[%s21559_s1 + $0x1c20] ss:$16 sps:$4 sm:$0xff]  }
 0x708   : > { %10257 = vmatprep.mubr.bf16.mxu0 %v16337_v16  ;;  %10913 = vmatprep.mubr.bf16.mxu1 %v16337_v16  ;;  %v19794_v16 = vld [vmem:[%s21559_s1 + $0x1c00] ss:$16 sps:$4 sm:$0xff]  }
 0x70a   : > { %10228 = vmatpush1.bf16.msra.mxu0 %v19702_v11  ;;  %10884 = vmatpush1.bf16.msra.mxu1 %v19705_v17  ;;  %v19797_v11 = vld [vmem:[%s21559_s1 + $0x1c08] ss:$16 sps:$4 sm:$0xff]   ;;  %v19802_v17 = vld [vmem:[%s21559_s1 + $0x1c24] ss:$16 sps:$4 sm:$0xff]  }
 0x70b   : > { %10229 = vmatprep.subr.bf16.mxu0 %v19710_v18  ;;  %10885 = vmatprep.subr.bf16.mxu1 %v19713_v19  ;;  %v19805_v18 = vld [vmem:[%s21559_s1 + $0x1c2c] ss:$16 sps:$4 sm:$0xff]   ;;  %v16339_v19 = vcombine.high %v22673_v15, %v22673_v15 }
 0x70e   : > { %10230 = vmatpush1.bf16.msra.mxu0 %v19708_v20  ;;  %10886 = vmatpush1.bf16.msra.mxu1 %v19711_v21  ;;  %v19803_v20 = vld [vmem:[%s21559_s1 + $0x1c28] ss:$16 sps:$4 sm:$0xff]   ;;  %v19808_v21 = vld [vmem:[%s21559_s1 + $0x1c44] ss:$16 sps:$4 sm:$0xff]  }
 0x70f   : > { %10231 = vmatprep.subr.bf16.mxu0 %v19716_v22  ;;  %10887 = vmatprep.subr.bf16.mxu1 %v19719_v23  ;;  %v19811_v22 = vld [vmem:[%s21559_s1 + $0x1c4c] ss:$16 sps:$4 sm:$0xff]   ;;  %v19806_v23 = vld [vmem:[%s21559_s1 + $0x1c40] ss:$16 sps:$4 sm:$0xff]  }
 0x712   : > { %10232 = vmatpush1.bf16.msra.mxu0 %v19714_v24  ;;  %10888 = vmatpush1.bf16.msra.mxu1 %v19717_v25  ;;  %v19809_v24 = vld [vmem:[%s21559_s1 + $0x1c48] ss:$16 sps:$4 sm:$0xff]   ;;  %v19814_v25 = vld [vmem:[%s21559_s1 + $0x1c64] ss:$16 sps:$4 sm:$0xff]  }
 0x713   : > { %10233 = vmatprep.subr.bf16.mxu0 %v19722_v26  ;;  %10889 = vmatprep.subr.bf16.mxu1 %v19725_v27  ;;  %v19817_v26 = vld [vmem:[%s21559_s1 + $0x1c6c] ss:$16 sps:$4 sm:$0xff]   ;;  %v19812_v27 = vld [vmem:[%s21559_s1 + $0x1c60] ss:$16 sps:$4 sm:$0xff]  }
 0x716   : > { %10234 = vmatpush1.bf16.msra.mxu0 %v19720_v47  ;;  %10890 = vmatpush1.bf16.msra.mxu1 %v19723_v28  ;;  %v19815_v47 = vld [vmem:[%s21559_s1 + $0x1c68] ss:$16 sps:$4 sm:$0xff]   ;;  %v19820_v28 = vld [vmem:[%s21559_s1 + $0x1c84] ss:$16 sps:$4 sm:$0xff]  }
 0x717   : > { %10235 = vmatprep.subr.bf16.mxu0 %v19728_v48  ;;  %10891 = vmatprep.subr.bf16.mxu1 %v19731_v29  ;;  %v19823_v48 = vld [vmem:[%s21559_s1 + $0x1c8c] ss:$16 sps:$4 sm:$0xff]   ;;  %v19818_v29 = vld [vmem:[%s21559_s1 + $0x1c80] ss:$16 sps:$4 sm:$0xff]  }
 0x71a   : > { %10236 = vmatpush1.bf16.msra.mxu0 %v19726_v49  ;;  %10892 = vmatpush1.bf16.msra.mxu1 %v19729_v50  ;;  %v19821_v49 = vld [vmem:[%s21559_s1 + $0x1c88] ss:$16 sps:$4 sm:$0xff]   ;;  %v19826_v50 = vld [vmem:[%s21559_s1 + $0x1ca4] ss:$16 sps:$4 sm:$0xff]  }
 0x71b   : > { %10237 = vmatprep.subr.bf16.mxu0 %v19734_v30  ;;  %10893 = vmatprep.subr.bf16.mxu1 %v19737_v31  ;;  %v19829_v30 = vld [vmem:[%s21559_s1 + $0x1cac] ss:$16 sps:$4 sm:$0xff]   ;;  %v19824_v31 = vld [vmem:[%s21559_s1 + $0x1ca0] ss:$16 sps:$4 sm:$0xff]  }
 0x71e   : > { %10238 = vmatpush1.bf16.msra.mxu0 %v19732_v32  ;;  %10894 = vmatpush1.bf16.msra.mxu1 %v19735_v33  ;;  %v19827_v32 = vld [vmem:[%s21559_s1 + $0x1ca8] ss:$16 sps:$4 sm:$0xff]   ;;  %v19832_v33 = vld [vmem:[%s21559_s1 + $0x1cc4] ss:$16 sps:$4 sm:$0xff]  }
 0x71f   : > { %10239 = vmatprep.subr.bf16.mxu0 %v19740_v34  ;;  %10895 = vmatprep.subr.bf16.mxu1 %v19743_v35  ;;  %v19835_v34 = vld [vmem:[%s21559_s1 + $0x1ccc] ss:$16 sps:$4 sm:$0xff]   ;;  %v19830_v35 = vld [vmem:[%s21559_s1 + $0x1cc0] ss:$16 sps:$4 sm:$0xff]  }
 0x722   : > { %10240 = vmatpush1.bf16.msra.mxu0 %v19738_v36  ;;  %10896 = vmatpush1.bf16.msra.mxu1 %v19741_v37  ;;  %v19833_v36 = vld [vmem:[%s21559_s1 + $0x1cc8] ss:$16 sps:$4 sm:$0xff]   ;;  %v19838_v37 = vld [vmem:[%s21559_s1 + $0x1ce4] ss:$16 sps:$4 sm:$0xff]  }
 0x723   : > { %10241 = vmatprep.subr.bf16.mxu0 %v19746_v38  ;;  %10897 = vmatprep.subr.bf16.mxu1 %v19749_v39  ;;  %v19841_v38 = vld [vmem:[%s21559_s1 + $0x1cec] ss:$16 sps:$4 sm:$0xff]   ;;  %v19836_v39 = vld [vmem:[%s21559_s1 + $0x1ce0] ss:$16 sps:$4 sm:$0xff]  }
 0x726   : > { %10242 = vmatpush1.bf16.msra.mxu0 %v19744_v41  ;;  %10898 = vmatpush1.bf16.msra.mxu1 %v19747_v42  ;;  %v19839_v41 = vld [vmem:[%s21559_s1 + $0x1ce8] ss:$16 sps:$4 sm:$0xff]   ;;  %v19844_v42 = vld [vmem:[%s21559_s1 + $0x1d04] ss:$16 sps:$4 sm:$0xff]  }
 0x727   : > { %10243 = vmatprep.subr.bf16.mxu0 %v19752_v44  ;;  %10899 = vmatprep.subr.bf16.mxu1 %v19755_v45  ;;  %v19847_v44 = vld [vmem:[%s21559_s1 + $0x1d0c] ss:$16 sps:$4 sm:$0xff]   ;;  %v19842_v45 = vld [vmem:[%s21559_s1 + $0x1d00] ss:$16 sps:$4 sm:$0xff]  }
 0x72a   : > { %10244 = vmatpush1.bf16.msra.mxu0 %v19750_v40  ;;  %10900 = vmatpush1.bf16.msra.mxu1 %v19753_v53  ;;  %v19845_v40 = vld [vmem:[%s21559_s1 + $0x1d08] ss:$16 sps:$4 sm:$0xff]   ;;  %v19850_v53 = vld [vmem:[%s21559_s1 + $0x1d24] ss:$16 sps:$4 sm:$0xff]  }
 0x72b   : > { %10245 = vmatprep.subr.bf16.mxu0 %v19758_v12  ;;  %10901 = vmatprep.subr.bf16.mxu1 %v19761_v43  ;;  %v19853_v12 = vld [vmem:[%s21559_s1 + $0x1d2c] ss:$16 sps:$4 sm:$0xff]   ;;  %v19848_v43 = vld [vmem:[%s21559_s1 + $0x1d20] ss:$16 sps:$4 sm:$0xff]  }
 0x72e   : > { %10246 = vmatpush1.bf16.msra.mxu0 %v19756_v9  ;;  %10902 = vmatpush1.bf16.msra.mxu1 %v19759_v55  ;;  %v19851_v9 = vld [vmem:[%s21559_s1 + $0x1d28] ss:$16 sps:$4 sm:$0xff]   ;;  %v19856_v55 = vld [vmem:[%s21559_s1 + $0x1d44] ss:$16 sps:$4 sm:$0xff]  }
 0x72f   : > { %10247 = vmatprep.subr.bf16.mxu0 %v19764_v46  ;;  %10903 = vmatprep.subr.bf16.mxu1 %v19767_v57  ;;  %v19859_v46 = vld [vmem:[%s21559_s1 + $0x1d4c] ss:$16 sps:$4 sm:$0xff]   ;;  %v19854_v57 = vld [vmem:[%s21559_s1 + $0x1d40] ss:$16 sps:$4 sm:$0xff]  }
 0x732   : > { %10248 = vmatpush1.bf16.msra.mxu0 %v19762_v59  ;;  %10904 = vmatpush1.bf16.msra.mxu1 %v19765_v51  ;;  %v19857_v59 = vld [vmem:[%s21559_s1 + $0x1d48] ss:$16 sps:$4 sm:$0xff]   ;;  %v19862_v51 = vld [vmem:[%s21559_s1 + $0x1d64] ss:$16 sps:$4 sm:$0xff]  }
 0x733   : > { %10249 = vmatprep.subr.bf16.mxu0 %v19770_v52  ;;  %10905 = vmatprep.subr.bf16.mxu1 %v19773_v61  ;;  %v19865_v52 = vld [vmem:[%s21559_s1 + $0x1d6c] ss:$16 sps:$4 sm:$0xff]   ;;  %v19860_v61 = vld [vmem:[%s21559_s1 + $0x1d60] ss:$16 sps:$4 sm:$0xff]  }
 0x736   : > { %10250 = vmatpush1.bf16.msra.mxu0 %v19768_v54  ;;  %10906 = vmatpush1.bf16.msra.mxu1 %v19771_v3  ;;  %v19863_v54 = vld [vmem:[%s21559_s1 + $0x1d68] ss:$16 sps:$4 sm:$0xff]   ;;  %v19868_v3 = vld [vmem:[%s21559_s1 + $0x1d84] ss:$16 sps:$4 sm:$0xff]  }
 0x737   : > { %10251 = vmatprep.subr.bf16.mxu0 %v19776_v4  ;;  %10907 = vmatprep.subr.bf16.mxu1 %v19779_v56  ;;  %v19871_v4 = vld [vmem:[%s21559_s1 + $0x1d8c] ss:$16 sps:$4 sm:$0xff]   ;;  %v19866_v56 = vld [vmem:[%s21559_s1 + $0x1d80] ss:$16 sps:$4 sm:$0xff]  }
 0x73a   : > { %10252 = vmatpush1.bf16.msra.mxu0 %v19774_v5  ;;  %10908 = vmatpush1.bf16.msra.mxu1 %v19777_v7  ;;  %v19869_v5 = vld [vmem:[%s21559_s1 + $0x1d88] ss:$16 sps:$4 sm:$0xff]   ;;  %v19874_v7 = vld [vmem:[%s21559_s1 + $0x1da4] ss:$16 sps:$4 sm:$0xff]  }
 0x73b   : > { %10253 = vmatprep.subr.bf16.mxu0 %v19782_v60  ;;  %10909 = vmatprep.subr.bf16.mxu1 %v19785_v8  ;;  %v19877_v60 = vld [vmem:[%s21559_s1 + $0x1dac] ss:$16 sps:$4 sm:$0xff]   ;;  %v19872_v8 = vld [vmem:[%s21559_s1 + $0x1da0] ss:$16 sps:$4 sm:$0xff]  }
 0x73e   : > { %10254 = vmatpush1.bf16.msra.mxu0 %v19780_v10  ;;  %10910 = vmatpush1.bf16.msra.mxu1 %v19783_v1  ;;  %v19875_v10 = vld [vmem:[%s21559_s1 + $0x1da8] ss:$16 sps:$4 sm:$0xff]   ;;  %v19880_v1 = vld [vmem:[%s21559_s1 + $0x1dc4] ss:$16 sps:$4 sm:$0xff]  }
 0x73f   : > { %10255 = vmatprep.subr.bf16.mxu0 %v19788_v63  ;;  %10911 = vmatprep.subr.bf16.mxu1 %v19791_v0  ;;  %v19883_v63 = vld [vmem:[%s21559_s1 + $0x1dcc] ss:$16 sps:$4 sm:$0xff]   ;;  %v19878_v0 = vld [vmem:[%s21559_s1 + $0x1dc0] ss:$16 sps:$4 sm:$0xff]  }
 0x742   : > { %10256 = vmatpush1.bf16.msra.mxu0 %v19786_v6  ;;  %10912 = vmatpush1.bf16.msra.mxu1 %v19789_v2  ;;  %v19881_v6 = vld [vmem:[%s21559_s1 + $0x1dc8] ss:$16 sps:$4 sm:$0xff]   ;;  %v19886_v2 = vld [vmem:[%s21559_s1 + $0x1de4] ss:$16 sps:$4 sm:$0xff]  }
 0x743   : > { %10266 = vmatprep.subr.bf16.mxu0 %v19796_v62  ;;  %10922 = vmatprep.subr.bf16.mxu1 %v19799_v58  ;;  %v19889_v62 = vld [vmem:[%s21559_s1 + $0x1dec] ss:$16 sps:$4 sm:$0xff]   ;;  %v19884_v58 = vld [vmem:[%s21559_s1 + $0x1de0] ss:$16 sps:$4 sm:$0xff]  }
 0x745   : > { %10258 = vmatmul.mubr.bf16.vlgmr.msra.gmra.mrb[0].mxu0 %v16336_v14  ;;  %10914 = vmatmul.mubr.bf16.vlgmr.msra.gmra.mrb[0].mxu1 %v16336_v14  ;;  %v19887_v14 = vld [vmem:[%s21559_s1 + $0x1de8] ss:$16 sps:$4 sm:$0xff]  }
 0x746   : > { %10267 = vmatpush1.bf16.msra.mxu0 %v19794_v16  ;;  %10923 = vmatpush1.bf16.msra.mxu1 %v19797_v11  ;;  %v19894_v16 = vld [vmem:[%s21559_s1 + $0x1e04] ss:$16 sps:$4 sm:$0xff]   ;;  %v19897_v11 = vld [vmem:[%s21559_s1 + $0x1e0c] ss:$16 sps:$4 sm:$0xff]  }
 0x747   : > { %10268 = vmatprep.subr.bf16.mxu0 %v19802_v17  ;;  %10924 = vmatprep.subr.bf16.mxu1 %v19805_v18  ;;  %v16338_v17 = vcombine.low %v22673_v15, %v22673_v15  ;;  %v22743_v18 = vld [vmem:[#allocation2 + $0x78] sm:$0xff] }
 0x748   : > { %10298 = vmatprep.mubr.bf16.mxu0 %v16339_v19  ;;  %10954 = vmatprep.mubr.bf16.mxu1 %v16339_v19  ;;  %v19892_v19 = vld [vmem:[%s21559_s1 + $0x1e00] ss:$16 sps:$4 sm:$0xff]  }
 0x749   : > { %v19898_v15 = vld [vmem:[%s21559_s1 + $0x1e20] ss:$16 sps:$4 sm:$0xff]  }
 0x74a   : > { %10269 = vmatpush1.bf16.msra.mxu0 %v19800_v13  ;;  %10925 = vmatpush1.bf16.msra.mxu1 %v19803_v20  ;;  %v19895_v13 = vld [vmem:[%s21559_s1 + $0x1e08] ss:$16 sps:$4 sm:$0xff]   ;;  %v19900_v20 = vld [vmem:[%s21559_s1 + $0x1e24] ss:$16 sps:$4 sm:$0xff]  }
 0x74b   : > { %10270 = vmatprep.subr.bf16.mxu0 %v19808_v21  ;;  %10926 = vmatprep.subr.bf16.mxu1 %v19811_v22  ;;  %v19903_v21 = vld [vmem:[%s21559_s1 + $0x1e2c] ss:$16 sps:$4 sm:$0xff]   ;;  %v16341_v22 = vcombine.high %v22743_v18, %v22743_v18 }
 0x74e   : > { %10271 = vmatpush1.bf16.msra.mxu0 %v19806_v23  ;;  %10927 = vmatpush1.bf16.msra.mxu1 %v19809_v24  ;;  %v19901_v23 = vld [vmem:[%s21559_s1 + $0x1e28] ss:$16 sps:$4 sm:$0xff]   ;;  %v19906_v24 = vld [vmem:[%s21559_s1 + $0x1e44] ss:$16 sps:$4 sm:$0xff]  }
 0x74f   : > { %10272 = vmatprep.subr.bf16.mxu0 %v19814_v25  ;;  %10928 = vmatprep.subr.bf16.mxu1 %v19817_v26  ;;  %v19909_v25 = vld [vmem:[%s21559_s1 + $0x1e4c] ss:$16 sps:$4 sm:$0xff]   ;;  %v19904_v26 = vld [vmem:[%s21559_s1 + $0x1e40] ss:$16 sps:$4 sm:$0xff]  }
 0x752   : > { %10273 = vmatpush1.bf16.msra.mxu0 %v19812_v27  ;;  %10929 = vmatpush1.bf16.msra.mxu1 %v19815_v47  ;;  %v19907_v27 = vld [vmem:[%s21559_s1 + $0x1e48] ss:$16 sps:$4 sm:$0xff]   ;;  %v19912_v47 = vld [vmem:[%s21559_s1 + $0x1e64] ss:$16 sps:$4 sm:$0xff]  }
 0x753   : > { %10274 = vmatprep.subr.bf16.mxu0 %v19820_v28  ;;  %10930 = vmatprep.subr.bf16.mxu1 %v19823_v48  ;;  %v19915_v28 = vld [vmem:[%s21559_s1 + $0x1e6c] ss:$16 sps:$4 sm:$0xff]   ;;  %v19910_v48 = vld [vmem:[%s21559_s1 + $0x1e60] ss:$16 sps:$4 sm:$0xff]  }
 0x756   : > { %10275 = vmatpush1.bf16.msra.mxu0 %v19818_v29  ;;  %10931 = vmatpush1.bf16.msra.mxu1 %v19821_v49  ;;  %v19913_v29 = vld [vmem:[%s21559_s1 + $0x1e68] ss:$16 sps:$4 sm:$0xff]   ;;  %v19918_v49 = vld [vmem:[%s21559_s1 + $0x1e84] ss:$16 sps:$4 sm:$0xff]  }
 0x757   : > { %10276 = vmatprep.subr.bf16.mxu0 %v19826_v50  ;;  %10932 = vmatprep.subr.bf16.mxu1 %v19829_v30  ;;  %v19921_v50 = vld [vmem:[%s21559_s1 + $0x1e8c] ss:$16 sps:$4 sm:$0xff]   ;;  %v19916_v30 = vld [vmem:[%s21559_s1 + $0x1e80] ss:$16 sps:$4 sm:$0xff]  }
 0x75a   : > { %10277 = vmatpush1.bf16.msra.mxu0 %v19824_v31  ;;  %10933 = vmatpush1.bf16.msra.mxu1 %v19827_v32  ;;  %v19919_v31 = vld [vmem:[%s21559_s1 + $0x1e88] ss:$16 sps:$4 sm:$0xff]   ;;  %v19924_v32 = vld [vmem:[%s21559_s1 + $0x1ea4] ss:$16 sps:$4 sm:$0xff]  }
 0x75b   : > { %10278 = vmatprep.subr.bf16.mxu0 %v19832_v33  ;;  %10934 = vmatprep.subr.bf16.mxu1 %v19835_v34  ;;  %v19927_v33 = vld [vmem:[%s21559_s1 + $0x1eac] ss:$16 sps:$4 sm:$0xff]   ;;  %v19922_v34 = vld [vmem:[%s21559_s1 + $0x1ea0] ss:$16 sps:$4 sm:$0xff]  }
 0x75e   : > { %10279 = vmatpush1.bf16.msra.mxu0 %v19830_v35  ;;  %10935 = vmatpush1.bf16.msra.mxu1 %v19833_v36  ;;  %v19925_v35 = vld [vmem:[%s21559_s1 + $0x1ea8] ss:$16 sps:$4 sm:$0xff]   ;;  %v19930_v36 = vld [vmem:[%s21559_s1 + $0x1ec4] ss:$16 sps:$4 sm:$0xff]  }
 0x75f   : > { %10280 = vmatprep.subr.bf16.mxu0 %v19838_v37  ;;  %10936 = vmatprep.subr.bf16.mxu1 %v19841_v38  ;;  %v19933_v37 = vld [vmem:[%s21559_s1 + $0x1ecc] ss:$16 sps:$4 sm:$0xff]   ;;  %v19928_v38 = vld [vmem:[%s21559_s1 + $0x1ec0] ss:$16 sps:$4 sm:$0xff]  }
 0x762   : > { %10281 = vmatpush1.bf16.msra.mxu0 %v19836_v39  ;;  %10937 = vmatpush1.bf16.msra.mxu1 %v19839_v41  ;;  %v19931_v39 = vld [vmem:[%s21559_s1 + $0x1ec8] ss:$16 sps:$4 sm:$0xff]   ;;  %v19936_v41 = vld [vmem:[%s21559_s1 + $0x1ee4] ss:$16 sps:$4 sm:$0xff]  }
 0x763   : > { %10282 = vmatprep.subr.bf16.mxu0 %v19844_v42  ;;  %10938 = vmatprep.subr.bf16.mxu1 %v19847_v44  ;;  %v19939_v42 = vld [vmem:[%s21559_s1 + $0x1eec] ss:$16 sps:$4 sm:$0xff]   ;;  %v19934_v44 = vld [vmem:[%s21559_s1 + $0x1ee0] ss:$16 sps:$4 sm:$0xff]  }
 0x766   : > { %10283 = vmatpush1.bf16.msra.mxu0 %v19842_v45  ;;  %10939 = vmatpush1.bf16.msra.mxu1 %v19845_v40  ;;  %v19937_v45 = vld [vmem:[%s21559_s1 + $0x1ee8] ss:$16 sps:$4 sm:$0xff]   ;;  %v19942_v40 = vld [vmem:[%s21559_s1 + $0x1f04] ss:$16 sps:$4 sm:$0xff]  }
 0x767   : > { %10284 = vmatprep.subr.bf16.mxu0 %v19850_v53  ;;  %10940 = vmatprep.subr.bf16.mxu1 %v19853_v12  ;;  %v19945_v53 = vld [vmem:[%s21559_s1 + $0x1f0c] ss:$16 sps:$4 sm:$0xff]   ;;  %v19940_v12 = vld [vmem:[%s21559_s1 + $0x1f00] ss:$16 sps:$4 sm:$0xff]  }
 0x76a   : > { %10285 = vmatpush1.bf16.msra.mxu0 %v19848_v43  ;;  %10941 = vmatpush1.bf16.msra.mxu1 %v19851_v9  ;;  %v19943_v43 = vld [vmem:[%s21559_s1 + $0x1f08] ss:$16 sps:$4 sm:$0xff]   ;;  %v19948_v9 = vld [vmem:[%s21559_s1 + $0x1f24] ss:$16 sps:$4 sm:$0xff]  }
 0x76b   : > { %10286 = vmatprep.subr.bf16.mxu0 %v19856_v55  ;;  %10942 = vmatprep.subr.bf16.mxu1 %v19859_v46  ;;  %v19951_v55 = vld [vmem:[%s21559_s1 + $0x1f2c] ss:$16 sps:$4 sm:$0xff]   ;;  %v19946_v46 = vld [vmem:[%s21559_s1 + $0x1f20] ss:$16 sps:$4 sm:$0xff]  }
 0x76e   : > { %10287 = vmatpush1.bf16.msra.mxu0 %v19854_v57  ;;  %10943 = vmatpush1.bf16.msra.mxu1 %v19857_v59  ;;  %v19949_v57 = vld [vmem:[%s21559_s1 + $0x1f28] ss:$16 sps:$4 sm:$0xff]   ;;  %v19954_v59 = vld [vmem:[%s21559_s1 + $0x1f44] ss:$16 sps:$4 sm:$0xff]  }
 0x76f   : > { %10288 = vmatprep.subr.bf16.mxu0 %v19862_v51  ;;  %10944 = vmatprep.subr.bf16.mxu1 %v19865_v52  ;;  %v19957_v51 = vld [vmem:[%s21559_s1 + $0x1f4c] ss:$16 sps:$4 sm:$0xff]   ;;  %v19952_v52 = vld [vmem:[%s21559_s1 + $0x1f40] ss:$16 sps:$4 sm:$0xff]  }
 0x772   : > { %10289 = vmatpush1.bf16.msra.mxu0 %v19860_v61  ;;  %10945 = vmatpush1.bf16.msra.mxu1 %v19863_v54  ;;  %v19955_v61 = vld [vmem:[%s21559_s1 + $0x1f48] ss:$16 sps:$4 sm:$0xff]   ;;  %v19960_v54 = vld [vmem:[%s21559_s1 + $0x1f64] ss:$16 sps:$4 sm:$0xff]  }
 0x773   : > { %10290 = vmatprep.subr.bf16.mxu0 %v19868_v3  ;;  %10946 = vmatprep.subr.bf16.mxu1 %v19871_v4  ;;  %v19963_v3 = vld [vmem:[%s21559_s1 + $0x1f6c] ss:$16 sps:$4 sm:$0xff]   ;;  %v19958_v4 = vld [vmem:[%s21559_s1 + $0x1f60] ss:$16 sps:$4 sm:$0xff]  }
 0x776   : > { %10291 = vmatpush1.bf16.msra.mxu0 %v19866_v56  ;;  %10947 = vmatpush1.bf16.msra.mxu1 %v19869_v5  ;;  %v19961_v56 = vld [vmem:[%s21559_s1 + $0x1f68] ss:$16 sps:$4 sm:$0xff]   ;;  %v19966_v5 = vld [vmem:[%s21559_s1 + $0x1f84] ss:$16 sps:$4 sm:$0xff]  }
 0x777   : > { %10292 = vmatprep.subr.bf16.mxu0 %v19874_v7  ;;  %10948 = vmatprep.subr.bf16.mxu1 %v19877_v60  ;;  %v19969_v7 = vld [vmem:[%s21559_s1 + $0x1f8c] ss:$16 sps:$4 sm:$0xff]   ;;  %v19964_v60 = vld [vmem:[%s21559_s1 + $0x1f80] ss:$16 sps:$4 sm:$0xff]  }
 0x77a   : > { %10293 = vmatpush1.bf16.msra.mxu0 %v19872_v8  ;;  %10949 = vmatpush1.bf16.msra.mxu1 %v19875_v10  ;;  %v19967_v8 = vld [vmem:[%s21559_s1 + $0x1f88] ss:$16 sps:$4 sm:$0xff]   ;;  %v19972_v10 = vld [vmem:[%s21559_s1 + $0x1fa4] ss:$16 sps:$4 sm:$0xff]  }
 0x77b   : > { %10294 = vmatprep.subr.bf16.mxu0 %v19880_v1  ;;  %10950 = vmatprep.subr.bf16.mxu1 %v19883_v63  ;;  %v19975_v1 = vld [vmem:[%s21559_s1 + $0x1fac] ss:$16 sps:$4 sm:$0xff]   ;;  %v19970_v63 = vld [vmem:[%s21559_s1 + $0x1fa0] ss:$16 sps:$4 sm:$0xff]  }
 0x77e   : > { %10295 = vmatpush1.bf16.msra.mxu0 %v19878_v0  ;;  %10951 = vmatpush1.bf16.msra.mxu1 %v19881_v6  ;;  %v19973_v0 = vld [vmem:[%s21559_s1 + $0x1fa8] ss:$16 sps:$4 sm:$0xff]   ;;  %v19978_v6 = vld [vmem:[%s21559_s1 + $0x1fc4] ss:$16 sps:$4 sm:$0xff]  }
 0x77f   : > { %10296 = vmatprep.subr.bf16.mxu0 %v19886_v2  ;;  %10952 = vmatprep.subr.bf16.mxu1 %v19889_v62  ;;  %v19981_v2 = vld [vmem:[%s21559_s1 + $0x1fcc] ss:$16 sps:$4 sm:$0xff]   ;;  %v19976_v62 = vld [vmem:[%s21559_s1 + $0x1fc0] ss:$16 sps:$4 sm:$0xff]  }
 0x782   : > { %10297 = vmatpush1.bf16.msra.mxu0 %v19884_v58  ;;  %10953 = vmatpush1.bf16.msra.mxu1 %v19887_v14  ;;  %v19979_v58 = vld [vmem:[%s21559_s1 + $0x1fc8] ss:$16 sps:$4 sm:$0xff]   ;;  %v19984_v14 = vld [vmem:[%s21559_s1 + $0x1fe4] ss:$16 sps:$4 sm:$0xff]  }
 0x783   : > { %10307 = vmatprep.subr.bf16.mxu0 %v19894_v16  ;;  %10963 = vmatprep.subr.bf16.mxu1 %v19897_v11  ;;  %v19987_v16 = vld [vmem:[%s21559_s1 + $0x1fec] ss:$16 sps:$4 sm:$0xff]  }
 0x784   : > { %v11020_v11 = vld [vmem:[%s21567_s19] sm:$0xff] }
 0x785   : > { %10299 = vmatmul.mubr.bf16.vlgmr.msra.gmra.mrb[0].mxu0 %v16338_v17  ;;  %10955 = vmatmul.mubr.bf16.vlgmr.msra.gmra.mrb[0].mxu1 %v16338_v17  ;;  %v11024_v17 = vld [vmem:[%s21567_s19 + $0x20] sm:$0xff] }
 0x786   : > { %10308 = vmatpush1.bf16.msra.mxu0 %v19892_v19  ;;  %10964 = vmatpush1.bf16.msra.mxu1 %v19895_v13  ;;  %v11148_v19 = vld [vmem:[%s21567_s19 + $0x400] sm:$0xff] }
 0x787   : > { %10309 = vmatprep.subr.bf16.mxu0 %v19900_v20  ;;  %10965 = vmatprep.subr.bf16.mxu1 %v19903_v21  ;;  %v11152_v13 = vld [vmem:[%s21567_s19 + $0x420] sm:$0xff]  ;;  %v19982_v20 = vld [vmem:[%s21559_s1 + $0x1fe0] ss:$16 sps:$4 sm:$0xff]  }
 0x788   : > { %10339 = vmatprep.mubr.bf16.mxu0 %v16341_v22  ;;  %10995 = vmatprep.mubr.bf16.mxu1 %v16341_v22  ;;  %v19985_v21 = vld [vmem:[%s21559_s1 + $0x1fe8] ss:$16 sps:$4 sm:$0xff]   ;;  %v17367_v22 = vcombine.high %v11020_v11, %v11024_v17 }
 0x78a   : > { %10310 = vmatpush1.bf16.msra.mxu0 %v19898_v15  ;;  %10966 = vmatpush1.bf16.msra.mxu1 %v19901_v23  ;;  %v17495_v15 = vcombine.high %v11148_v19, %v11152_v13  ;;  %v11028_v23 = vld [vmem:[%s21567_s19 + $0x40] sm:$0xff] }
 0x78b   : > { %10311 = vmatprep.subr.bf16.mxu0 %v19906_v24  ;;  %10967 = vmatprep.subr.bf16.mxu1 %v19909_v25  ;;  %v11032_v24 = vld [vmem:[%s21567_s19 + $0x60] sm:$0xff] }
 0x78c   : > { %v11156_v25 = vld [vmem:[%s21567_s19 + $0x440] sm:$0xff] }
 0x78e   : > { %10312 = vmatpush1.bf16.msra.mxu0 %v19904_v26  ;;  %10968 = vmatpush1.bf16.msra.mxu1 %v19907_v27  ;;  %v11160_v26 = vld [vmem:[%s21567_s19 + $0x460] sm:$0xff]  ;;  %v16340_v27 = vcombine.low %v22743_v18, %v22743_v18  ;;  %v17374_v18 = vcombine.low %v11028_v23, %v11032_v24 }
 0x78f   : > { %10313 = vmatprep.subr.bf16.mxu0 %v19912_v47  ;;  %10969 = vmatprep.subr.bf16.mxu1 %v19915_v28  ;;  %v17366_v47 = vcombine.low %v11020_v11, %v11024_v17  ;;  %v17494_v28 = vcombine.low %v11148_v19, %v11152_v13  ;;  %v11084_v17 = vld [vmem:[%s21567_s19 + $0x200] sm:$0xff] }
 0x790   : > { %v11088_v19 = vld [vmem:[%s21567_s19 + $0x220] sm:$0xff] }
 0x791   : > { %v11212_v13 = vld [vmem:[%s21567_s19 + $0x600] sm:$0xff] }
 0x792   : > { %10314 = vmatpush1.bf16.msra.mxu0 %v19910_v48  ;;  %10970 = vmatpush1.bf16.msra.mxu1 %v19913_v29  ;;  %v17375_v48 = vcombine.high %v11028_v23, %v11032_v24  ;;  %v17503_v29 = vcombine.high %v11156_v25, %v11160_v26  ;;  %v11092_v24 = vld [vmem:[%s21567_s19 + $0x240] sm:$0xff] }
 0x793   : > { %10315 = vmatprep.subr.bf16.mxu0 %v19918_v49  ;;  %10971 = vmatprep.subr.bf16.mxu1 %v19921_v50  ;;  %v11036_v49 = vld [vmem:[%s21567_s19 + $0x80] sm:$0xff] }
 0x794   : > { %v11040_v50 = vld [vmem:[%s21567_s19 + $0xa0] sm:$0xff] }
 0x796   : > { %10316 = vmatpush1.bf16.msra.mxu0 %v19916_v30  ;;  %10972 = vmatpush1.bf16.msra.mxu1 %v19919_v31  ;;  %v11164_v30 = vld [vmem:[%s21567_s19 + $0x480] sm:$0xff] }
 0x797   : > { %10317 = vmatprep.subr.bf16.mxu0 %v19924_v32  ;;  %10973 = vmatprep.subr.bf16.mxu1 %v19927_v33  ;;  %v11168_v31 = vld [vmem:[%s21567_s19 + $0x4a0] sm:$0xff]  ;;  %v17502_v32 = vcombine.low %v11156_v25, %v11160_v26  ;;  %v17383_v33 = vcombine.high %v11036_v49, %v11040_v50 }
 0x798   : > { %v11096_v25 = vld [vmem:[%s21567_s19 + $0x260] sm:$0xff] }
 0x799   : > { %v11220_v26 = vld [vmem:[%s21567_s19 + $0x640] sm:$0xff] }
 0x79a   : > { %10318 = vmatpush1.bf16.msra.mxu0 %v19922_v34  ;;  %10974 = vmatpush1.bf16.msra.mxu1 %v19925_v35  ;;  %v17511_v34 = vcombine.high %v11164_v30, %v11168_v31  ;;  %v11044_v35 = vld [vmem:[%s21567_s19 + $0xc0] sm:$0xff] }
 0x79b   : > { %10319 = vmatprep.subr.bf16.mxu0 %v19930_v36  ;;  %10975 = vmatprep.subr.bf16.mxu1 %v19933_v37  ;;  %v11048_v36 = vld [vmem:[%s21567_s19 + $0xe0] sm:$0xff] }
 0x79c   : > { %v11172_v37 = vld [vmem:[%s21567_s19 + $0x4c0] sm:$0xff] }
 0x79e   : > { %10320 = vmatpush1.bf16.msra.mxu0 %v19928_v38  ;;  %10976 = vmatpush1.bf16.msra.mxu1 %v19931_v39  ;;  %v11176_v38 = vld [vmem:[%s21567_s19 + $0x4e0] sm:$0xff]  ;;  %v17382_v39 = vcombine.low %v11036_v49, %v11040_v50 }
 0x79f   : > { %10321 = vmatprep.subr.bf16.mxu0 %v19936_v41  ;;  %10977 = vmatprep.subr.bf16.mxu1 %v19939_v42  ;;  %v17510_v41 = vcombine.low %v11164_v30, %v11168_v31  ;;  %v17391_v42 = vcombine.high %v11044_v35, %v11048_v36  ;;  %v11100_v49 = vld [vmem:[%s21567_s19 + $0x280] sm:$0xff] }
 0x7a0   : > { %v11104_v50 = vld [vmem:[%s21567_s19 + $0x2a0] sm:$0xff] }
 0x7a1   : > { %v11228_v30 = vld [vmem:[%s21567_s19 + $0x680] sm:$0xff] }
 0x7a2   : > { %10322 = vmatpush1.bf16.msra.mxu0 %v19934_v44  ;;  %10978 = vmatpush1.bf16.msra.mxu1 %v19937_v45  ;;  %v17519_v44 = vcombine.high %v11172_v37, %v11176_v38  ;;  %v11052_v45 = vld [vmem:[%s21567_s19 + $0x100] sm:$0xff] }
 0x7a3   : > { %10323 = vmatprep.subr.bf16.mxu0 %v19942_v40  ;;  %10979 = vmatprep.subr.bf16.mxu1 %v19945_v53  ;;  %v11056_v40 = vld [vmem:[%s21567_s19 + $0x120] sm:$0xff] }
 0x7a4   : > { %v11180_v53 = vld [vmem:[%s21567_s19 + $0x500] sm:$0xff] }
 0x7a5   : > { %v11232_v31 = vld [vmem:[%s21567_s19 + $0x6a0] sm:$0xff] }
 0x7a6   : > { %10324 = vmatpush1.bf16.msra.mxu0 %v19940_v12  ;;  %10980 = vmatpush1.bf16.msra.mxu1 %v19943_v43  ;;  %v11184_v12 = vld [vmem:[%s21567_s19 + $0x520] sm:$0xff]  ;;  %v17390_v43 = vcombine.low %v11044_v35, %v11048_v36 }
 0x7a7   : > { %10325 = vmatprep.subr.bf16.mxu0 %v19948_v9  ;;  %10981 = vmatprep.subr.bf16.mxu1 %v19951_v55  ;;  %v17518_v9 = vcombine.low %v11172_v37, %v11176_v38  ;;  %v17399_v55 = vcombine.high %v11052_v45, %v11056_v40  ;;  %v11108_v35 = vld [vmem:[%s21567_s19 + $0x2c0] sm:$0xff] }
 0x7a8   : > { %v11112_v36 = vld [vmem:[%s21567_s19 + $0x2e0] sm:$0xff] }
 0x7a9   : > { %v11236_v37 = vld [vmem:[%s21567_s19 + $0x6c0] sm:$0xff] }
 0x7aa   : > { %10326 = vmatpush1.bf16.msra.mxu0 %v19946_v46  ;;  %10982 = vmatpush1.bf16.msra.mxu1 %v19949_v57  ;;  %v17527_v46 = vcombine.high %v11180_v53, %v11184_v12  ;;  %v11060_v57 = vld [vmem:[%s21567_s19 + $0x140] sm:$0xff] }
 0x7ab   : > { %10327 = vmatprep.subr.bf16.mxu0 %v19954_v59  ;;  %10983 = vmatprep.subr.bf16.mxu1 %v19957_v51  ;;  %v11064_v59 = vld [vmem:[%s21567_s19 + $0x160] sm:$0xff] }
 0x7ac   : > { %v11188_v51 = vld [vmem:[%s21567_s19 + $0x540] sm:$0xff] }
 0x7ad   : > { %v11240_v38 = vld [vmem:[%s21567_s19 + $0x6e0] sm:$0xff] }
 0x7ae   : > { %10328 = vmatpush1.bf16.msra.mxu0 %v19952_v52  ;;  %10984 = vmatpush1.bf16.msra.mxu1 %v19955_v61  ;;  %v11192_v52 = vld [vmem:[%s21567_s19 + $0x560] sm:$0xff]  ;;  %v17398_v61 = vcombine.low %v11052_v45, %v11056_v40 }
 0x7af   : > { %10329 = vmatprep.subr.bf16.mxu0 %v19960_v54  ;;  %10985 = vmatprep.subr.bf16.mxu1 %v19963_v3  ;;  %v17526_v54 = vcombine.low %v11180_v53, %v11184_v12  ;;  %v17407_v3 = vcombine.high %v11060_v57, %v11064_v59  ;;  %v11116_v45 = vld [vmem:[%s21567_s19 + $0x300] sm:$0xff] }
 0x7b0   : > { %v11120_v40 = vld [vmem:[%s21567_s19 + $0x320] sm:$0xff] }
 0x7b1   : > { %v11244_v53 = vld [vmem:[%s21567_s19 + $0x700] sm:$0xff] }
 0x7b2   : > { %10330 = vmatpush1.bf16.msra.mxu0 %v19958_v4  ;;  %10986 = vmatpush1.bf16.msra.mxu1 %v19961_v56  ;;  %v17535_v4 = vcombine.high %v11188_v51, %v11192_v52  ;;  %v11068_v56 = vld [vmem:[%s21567_s19 + $0x180] sm:$0xff] }
 0x7b3   : > { %10331 = vmatprep.subr.bf16.mxu0 %v19966_v5  ;;  %10987 = vmatprep.subr.bf16.mxu1 %v19969_v7  ;;  %v11072_v5 = vld [vmem:[%s21567_s19 + $0x1a0] sm:$0xff] }
 0x7b4   : > { %v11196_v7 = vld [vmem:[%s21567_s19 + $0x580] sm:$0xff] }
 0x7b5   : > { %v11248_v12 = vld [vmem:[%s21567_s19 + $0x720] sm:$0xff] }
 0x7b6   : > { %10332 = vmatpush1.bf16.msra.mxu0 %v19964_v60  ;;  %10988 = vmatpush1.bf16.msra.mxu1 %v19967_v8  ;;  %v11200_v60 = vld [vmem:[%s21567_s19 + $0x5a0] sm:$0xff]  ;;  %v17406_v8 = vcombine.low %v11060_v57, %v11064_v59 }
 0x7b7   : > { %10333 = vmatprep.subr.bf16.mxu0 %v19972_v10  ;;  %10989 = vmatprep.subr.bf16.mxu1 %v19975_v1  ;;  %v17534_v10 = vcombine.low %v11188_v51, %v11192_v52  ;;  %v17415_v1 = vcombine.high %v11068_v56, %v11072_v5  ;;  %v11124_v57 = vld [vmem:[%s21567_s19 + $0x340] sm:$0xff] }
 0x7b8   : > { %v11128_v59 = vld [vmem:[%s21567_s19 + $0x360] sm:$0xff] }
 0x7b9   : > { %v11252_v51 = vld [vmem:[%s21567_s19 + $0x740] sm:$0xff] }
 0x7ba   : > { %10334 = vmatpush1.bf16.msra.mxu0 %v19970_v63  ;;  %10990 = vmatpush1.bf16.msra.mxu1 %v19973_v0  ;;  %v17543_v63 = vcombine.high %v11196_v7, %v11200_v60  ;;  %v11076_v0 = vld [vmem:[%s21567_s19 + $0x1c0] sm:$0xff] }
 0x7bb   : > { %10335 = vmatprep.subr.bf16.mxu0 %v19978_v6  ;;  %10991 = vmatprep.subr.bf16.mxu1 %v19981_v2  ;;  %v11080_v6 = vld [vmem:[%s21567_s19 + $0x1e0] sm:$0xff] }
 0x7bc   : > { %v11204_v2 = vld [vmem:[%s21567_s19 + $0x5c0] sm:$0xff] }
 0x7bd   : > { %v11256_v52 = vld [vmem:[%s21567_s19 + $0x760] sm:$0xff] }
 0x7be   : > { %10336 = vmatpush1.bf16.msra.mxu0 %v19976_v62  ;;  %10992 = vmatpush1.bf16.msra.mxu1 %v19979_v58  ;;  %v11208_v62 = vld [vmem:[%s21567_s19 + $0x5e0] sm:$0xff]  ;;  %v17414_v58 = vcombine.low %v11068_v56, %v11072_v5  ;;  %v17470_v56 = vcombine.low %v11124_v57, %v11128_v59  ;;  %v17598_v5 = vcombine.low %v11252_v51, %v11256_v52 }
 0x7bf   : > { %10337 = vmatprep.subr.bf16.mxu0 %v19984_v14  ;;  %10993 = vmatprep.subr.bf16.mxu1 %v19987_v16  ;;  %v17542_v14 = vcombine.low %v11196_v7, %v11200_v60  ;;  %v17423_v16 = vcombine.high %v11076_v0, %v11080_v6  ;;  %v17551_v11 = vcombine.high %v11204_v2, %v11208_v62  ;;  %v11132_v7 = vld [vmem:[%s21567_s19 + $0x380] sm:$0xff] }
 0x7c0   : > { %v11136_v60 = vld [vmem:[%s21567_s19 + $0x3a0] sm:$0xff] }
 0x7c2   : > { %10338 = vmatpush1.bf16.msra.mxu0 %v19982_v20  ;;  %10994 = vmatpush1.bf16.msra.mxu1 %v19985_v21  ;;  %v11216_v20 = vld [vmem:[%s21567_s19 + $0x620] sm:$0xff]  ;;  %v17422_v21 = vcombine.low %v11076_v0, %v11080_v6 }
 0x7c3   : > { %12556 = vmatprep.subr.bf16.mxu0 %v17367_v22  ;;  %12597 = vmatprep.subr.bf16.mxu1 %v17495_v15  ;;  %v17550_v22 = vcombine.low %v11204_v2, %v11208_v62  ;;  %v17431_v15 = vcombine.high %v11084_v17, %v11088_v19  ;;  %v17559_v23 = vcombine.high %v11212_v13, %v11216_v20  ;;  %v11140_v2 = vld [vmem:[%s21567_s19 + $0x3c0] sm:$0xff] }
 0x7c4   : > { %v11144_v62 = vld [vmem:[%s21567_s19 + $0x3e0] sm:$0xff] }
 0x7c5   : > { %10340 = vmatmul.mubr.bf16.vlgmr.msra.gmra.mrb[0].mxu0 %v16340_v27  ;;  %10996 = vmatmul.mubr.bf16.vlgmr.msra.gmra.mrb[0].mxu1 %v16340_v27  ;;  %v11224_v27 = vld [vmem:[%s21567_s19 + $0x660] sm:$0xff] }
 0x7c6   : > { %12557 = vmatpush1.bf16.msra.mxu0 %v17366_v47  ;;  %12598 = vmatpush1.bf16.msra.mxu1 %v17494_v28  ;;  %v17430_v47 = vcombine.low %v11084_v17, %v11088_v19  ;;  %v17558_v28 = vcombine.low %v11212_v13, %v11216_v20  ;;  %v11021_v13 = vld [vmem:[%s21567_s19 + $0x8] sm:$0xff] }
 0x7c7   : > { %12558 = vmatprep.subr.bf16.mxu0 %v17375_v48  ;;  %12599 = vmatprep.subr.bf16.mxu1 %v17503_v29  ;;  %v17439_v48 = vcombine.high %v11092_v24, %v11096_v25  ;;  %v17567_v29 = vcombine.high %v11220_v26, %v11224_v27  ;;  %v11025_v20 = vld [vmem:[%s21567_s19 + $0x28] sm:$0xff] }
 0x7ca   : > { %12559 = vmatpush1.bf16.msra.mxu0 %v17374_v18  ;;  %12600 = vmatpush1.bf16.msra.mxu1 %v17502_v32  ;;  %v17438_v18 = vcombine.low %v11092_v24, %v11096_v25  ;;  %v17566_v32 = vcombine.low %v11220_v26, %v11224_v27  ;;  %v4440_v26 = vlaneseq }
 0x7cb   : > { %12560 = vmatprep.subr.bf16.mxu0 %v17383_v33  ;;  %12601 = vmatprep.subr.bf16.mxu1 %v17511_v34  ;;  %v17447_v33 = vcombine.high %v11100_v49, %v11104_v50  ;;  %v17575_v34 = vcombine.high %v11228_v30, %v11232_v31 }
 0x7cc   : > { %v22879_v27 = vshrl.u32 %v4440_v26, 7  ;;  %v11193_v26 = vld [vmem:[%s21567_s19 + $0x568] sm:$0xff] }
 0x7ce   : > { %12561 = vmatpush1.bf16.msra.mxu0 %v17382_v39  ;;  %12602 = vmatpush1.bf16.msra.mxu1 %v17510_v41  ;;  %v17446_v39 = vcombine.low %v11100_v49, %v11104_v50  ;;  %v17574_v41 = vcombine.low %v11228_v30, %v11232_v31  ;;  %v22892_v49 = vsub.s32 3, %v22879_v27 }
 0x7cf   : > { %12562 = vmatprep.subr.bf16.mxu0 %v17391_v42  ;;  %12603 = vmatprep.subr.bf16.mxu1 %v17519_v44  ;;  %v17455_v42 = vcombine.high %v11108_v35, %v11112_v36  ;;  %v17583_v44 = vcombine.high %v11236_v37, %v11240_v38 }
 0x7d2   : > { %12563 = vmatpush1.bf16.msra.mxu0 %v17390_v43  ;;  %12604 = vmatpush1.bf16.msra.mxu1 %v17518_v9  ;;  %v17454_v43 = vcombine.low %v11108_v35, %v11112_v36  ;;  %v17582_v9 = vcombine.low %v11236_v37, %v11240_v38 }
 0x7d3   : > { %12564 = vmatprep.subr.bf16.mxu0 %v17399_v55  ;;  %12605 = vmatprep.subr.bf16.mxu1 %v17527_v46  ;;  %v17463_v55 = vcombine.high %v11116_v45, %v11120_v40  ;;  %v17591_v46 = vcombine.high %v11244_v53, %v11248_v12 }
 0x7d6   : > { %12565 = vmatpush1.bf16.msra.mxu0 %v17398_v61  ;;  %12606 = vmatpush1.bf16.msra.mxu1 %v17526_v54  ;;  %v17462_v61 = vcombine.low %v11116_v45, %v11120_v40  ;;  %v17590_v54 = vcombine.low %v11244_v53, %v11248_v12 }
 0x7d7   : > { %12566 = vmatprep.subr.bf16.mxu0 %v17407_v3  ;;  %12607 = vmatprep.subr.bf16.mxu1 %v17535_v4  ;;  %v17471_v3 = vcombine.high %v11124_v57, %v11128_v59  ;;  %v17599_v4 = vcombine.high %v11252_v51, %v11256_v52  ;;  %v11161_v57 = vld [vmem:[%s21567_s19 + $0x468] sm:$0xff] }
 0x7da   : > { %12567 = vmatpush1.bf16.msra.mxu0 %v17406_v8  ;;  %12608 = vmatpush1.bf16.msra.mxu1 %v17534_v10  ;;  %v11260_v8 = vld [vmem:[%s21567_s19 + $0x780] sm:$0xff]  ;;  %v17479_v10 = vcombine.high %v11132_v7, %v11136_v60 }
 0x7db   : > { %12568 = vmatprep.subr.bf16.mxu0 %v17415_v1  ;;  %12609 = vmatprep.subr.bf16.mxu1 %v17543_v63  ;;  %v11264_v1 = vld [vmem:[%s21567_s19 + $0x7a0] sm:$0xff]  ;;  %v17478_v63 = vcombine.low %v11132_v7, %v11136_v60  ;;  %v11169_v7 = vld [vmem:[%s21567_s19 + $0x4a8] sm:$0xff] }
 0x7dc   : > { %v17606_v0 = vcombine.low %v11260_v8, %v11264_v1  ;;  %v17607_v6 = vcombine.high %v11260_v8, %v11264_v1 }
 0x7de   : > { %12569 = vmatpush1.bf16.msra.mxu0 %v17414_v58  ;;  %12610 = vmatpush1.bf16.msra.mxu1 %v17542_v14  ;;  %v11268_v58 = vld [vmem:[%s21567_s19 + $0x7c0] sm:$0xff]  ;;  %v17487_v14 = vcombine.high %v11140_v2, %v11144_v62 }
 0x7df   : > { %12570 = vmatprep.subr.bf16.mxu0 %v17423_v16  ;;  %12611 = vmatprep.subr.bf16.mxu1 %v17551_v11  ;;  %v11272_v16 = vld [vmem:[%s21567_s19 + $0x7e0] sm:$0xff]  ;;  %v17486_v11 = vcombine.low %v11140_v2, %v11144_v62  ;;  %v11177_v2 = vld [vmem:[%s21567_s19 + $0x4e8] sm:$0xff] }
 0x7e0   : > { %v17614_v17 = vcombine.low %v11268_v58, %v11272_v16  ;;  %v17615_v19 = vcombine.high %v11268_v58, %v11272_v16 }
 0x7e2   : > { %12571 = vmatpush1.bf16.msra.mxu0 %v17422_v21  ;;  %12612 = vmatpush1.bf16.msra.mxu1 %v17550_v22  ;;  %v11149_v21 = vld [vmem:[%s21567_s19 + $0x408] sm:$0xff]  ;;  %v17369_v22 = vcombine.high %v11021_v13, %v11025_v20 }
 0x7e3   : > { %12572 = vmatprep.subr.bf16.mxu0 %v17431_v15  ;;  %12613 = vmatprep.subr.bf16.mxu1 %v17559_v23  ;;  %v11153_v15 = vld [vmem:[%s21567_s19 + $0x428] sm:$0xff]  ;;  %v17368_v23 = vcombine.low %v11021_v13, %v11025_v20 }
 0x7e4   : > { %v17496_v24 = vcombine.low %v11149_v21, %v11153_v15  ;;  %v17497_v25 = vcombine.high %v11149_v21, %v11153_v15  ;;  %v11185_v13 = vld [vmem:[%s21567_s19 + $0x528] sm:$0xff] }
 0x7e6   : > { %12573 = vmatpush1.bf16.msra.mxu0 %v17430_v47  ;;  %12614 = vmatpush1.bf16.msra.mxu1 %v17558_v28  ;;  %v22882_v47 = vsub.s32 0, %v22879_v27  ;;  %v22885_v28 = vsub.s32 2, %v22879_v27 }
 0x7e7   : > { %12574 = vmatprep.subr.bf16.mxu0 %v17439_v48  ;;  %12615 = vmatprep.subr.bf16.mxu1 %v17567_v29  ;;  %v4438_v48 = vld [vmem:[%s21565_s20] sm:$0xf]  ;;  %v22889_v29 = vsub.s32 1, %v22879_v27  ;;  %s23338_s20 = sld [smem:[#allocation53_spill]] (!%p17622_p12) }
 0x7e8   : > { %v4443_v50 = vrot.slane %v4438_v48, %v22882_v47  ;;  %v4451_v30 = vrot.slane %v4438_v48, %v22885_v28 }
 0x7e9   : > { %v4447_v31 = vrot.slane %v4438_v48, %v22889_v29 }
 0x7ea   : > { %12575 = vmatpush1.bf16.msra.mxu0 %v17438_v18  ;;  %12616 = vmatpush1.bf16.msra.mxu1 %v17566_v32  ;;  %v4455_v18 = vrot.slane %v4438_v48, %v22892_v49 }
 0x7eb   : > { %12576 = vmatprep.subr.bf16.mxu0 %v17447_v33  ;;  %12617 = vmatprep.subr.bf16.mxu1 %v17575_v34 }
 0x7ed   : > { %s23339_s27 = smov (!%p17622_p12), %s23338_s20 }
 0x7ee   : > { %12577 = vmatpush1.bf16.msra.mxu0 %v17446_v39  ;;  %12618 = vmatpush1.bf16.msra.mxu1 %v17574_v41 }
 0x7ef   : > { %12578 = vmatprep.subr.bf16.mxu0 %v17455_v42  ;;  %12619 = vmatprep.subr.bf16.mxu1 %v17583_v44 }
 0x7f2   : > { %12579 = vmatpush1.bf16.msra.mxu0 %v17454_v43  ;;  %12620 = vmatpush1.bf16.msra.mxu1 %v17582_v9  ;;  %v11029_v9 = vld [vmem:[%s21567_s19 + $0x48] sm:$0xff] }
 0x7f3   : > { %12580 = vmatprep.subr.bf16.mxu0 %v17463_v55  ;;  %12621 = vmatprep.subr.bf16.mxu1 %v17591_v46  ;;  %v11033_v55 = vld [vmem:[%s21567_s19 + $0x68] sm:$0xff] }
 0x7f4   : > { %v11157_v46 = vld [vmem:[%s21567_s19 + $0x448] sm:$0xff]  ;;  %v17376_v60 = vcombine.low %v11029_v9, %v11033_v55 }
 0x7f5   : > { %v17504_v8 = vcombine.low %v11157_v46, %v11161_v57 }
 0x7f6   : > { %12581 = vmatpush1.bf16.msra.mxu0 %v17462_v61  ;;  %12622 = vmatpush1.bf16.msra.mxu1 %v17590_v54  ;;  %v11037_v54 = vld [vmem:[%s21567_s19 + $0x88] sm:$0xff] }
 0x7f7   : > { %12582 = vmatprep.subr.bf16.mxu0 %v17471_v3  ;;  %12623 = vmatprep.subr.bf16.mxu1 %v17599_v4  ;;  %v17377_v3 = vcombine.high %v11029_v9, %v11033_v55  ;;  %v17505_v4 = vcombine.high %v11157_v46, %v11161_v57  ;;  %v11089_v9 = vld [vmem:[%s21567_s19 + $0x228] sm:$0xff] }
 0x7f8   : > { %v11213_v55 = vld [vmem:[%s21567_s19 + $0x608] sm:$0xff] }
 0x7f9   : > { %v11217_v46 = vld [vmem:[%s21567_s19 + $0x628] sm:$0xff] }
 0x7fa   : > { %12583 = vmatpush1.bf16.msra.mxu0 %v17470_v56  ;;  %12624 = vmatpush1.bf16.msra.mxu1 %v17598_v5  ;;  %v11041_v56 = vld [vmem:[%s21567_s19 + $0xa8] sm:$0xff] }
 0x7fb   : > { %12584 = vmatprep.subr.bf16.mxu0 %v17479_v10  ;;  %12625 = vmatprep.subr.bf16.mxu1 %v17607_v6  ;;  %v11165_v5 = vld [vmem:[%s21567_s19 + $0x488] sm:$0xff]  ;;  %v17385_v10 = vcombine.high %v11037_v54, %v11041_v56  ;;  %v17384_v62 = vcombine.low %v11037_v54, %v11041_v56 }
 0x7fc   : > { %v17513_v1 = vcombine.high %v11165_v5, %v11169_v7  ;;  %v11173_v6 = vld [vmem:[%s21567_s19 + $0x4c8] sm:$0xff]  ;;  %v17512_v58 = vcombine.low %v11165_v5, %v11169_v7 }
 0x7fd   : > { %v17521_v16 = vcombine.high %v11173_v6, %v11177_v2  ;;  %v17520_v21 = vcombine.low %v11173_v6, %v11177_v2  ;;  %v11093_v56 = vld [vmem:[%s21567_s19 + $0x248] sm:$0xff] }
 0x7fe   : > { %12585 = vmatpush1.bf16.msra.mxu0 %v17478_v63  ;;  %12626 = vmatpush1.bf16.msra.mxu1 %v17606_v0  ;;  %v11045_v63 = vld [vmem:[%s21567_s19 + $0xc8] sm:$0xff] }
 0x7ff   : > { %12586 = vmatprep.subr.bf16.mxu0 %v17487_v14  ;;  %12627 = vmatprep.subr.bf16.mxu1 %v17615_v19  ;;  %v11049_v0 = vld [vmem:[%s21567_s19 + $0xe8] sm:$0xff] }
 0x800   : > { %v17393_v14 = vcombine.high %v11045_v63, %v11049_v0  ;;  %v11181_v19 = vld [vmem:[%s21567_s19 + $0x508] sm:$0xff]  ;;  %v17392_v20 = vcombine.low %v11045_v63, %v11049_v0 }
 0x801   : > { %v17529_v15 = vcombine.high %v11181_v19, %v11185_v13  ;;  %v11097_v5 = vld [vmem:[%s21567_s19 + $0x268] sm:$0xff] }
 0x802   : > { %12587 = vmatpush1.bf16.msra.mxu0 %v17486_v11  ;;  %12628 = vmatpush1.bf16.msra.mxu1 %v17614_v17  ;;  %v11053_v11 = vld [vmem:[%s21567_s19 + $0x108] sm:$0xff] }
 0x803   : > { %12638 = vmatprep.subr.bf16.mxu0 %v17369_v22  ;;  %12679 = vmatprep.subr.bf16.mxu1 %v17497_v25  ;;  %v11057_v17 = vld [vmem:[%s21567_s19 + $0x128] sm:$0xff] }
 0x804   : > { %v17401_v22 = vcombine.high %v11053_v11, %v11057_v17  ;;  %v11189_v25 = vld [vmem:[%s21567_s19 + $0x548] sm:$0xff]  ;;  %v17400_v48 = vcombine.low %v11053_v11, %v11057_v17 }
 0x805   : > { %v11221_v7 = vld [vmem:[%s21567_s19 + $0x648] sm:$0xff] }
 0x806   : > { %v11101_v0 = vld [vmem:[%s21567_s19 + $0x288] sm:$0xff] }
 0x807   : > { %v11105_v6 = vld [vmem:[%s21567_s19 + $0x2a8] sm:$0xff] }
 0x808   : > { %v11229_v2 = vld [vmem:[%s21567_s19 + $0x688] sm:$0xff] }
 0x809   : > { %v11109_v17 = vld [vmem:[%s21567_s19 + $0x2c8] sm:$0xff] }
 0x898   : > { %v10341_v32 = vpop.f32.mrb[0].mxu0  ;;  %v10997_v33 = vpop.f32.mrb[0].mxu1 }
 0x899   : > { %v18080_v34 = vadd.f32 %v10341_v32, %v4443_v50  ;;  %v18082_v35 = vadd.f32 %v10997_v33, %v4451_v30  ;;  %v10343_v36 = vpop.f32.mrb[1].mxu0  ;;  %v10999_v37 = vpop.f32.mrb[1].mxu1  ;;  %v17528_v50 = vcombine.low %v11181_v19, %v11185_v13  ;;  %v11073_v32 = vld [vmem:[%s21567_s19 + $0x1a8] sm:$0xff] }
 0x89a   : > { %v18081_v38 = vadd.f32 %v10343_v36, %v4447_v31  ;;  %v18083_v39 = vadd.f32 %v10999_v37, %v4455_v18  ;;  %v10345_v41 = vpop.f32.mrb[2].mxu0  ;;  %v11001_v42 = vpop.f32.mrb[2].mxu1  ;;  %v17537_v31 = vcombine.high %v11189_v25, %v11193_v26  ;;  %v11069_v18 = vld [vmem:[%s21567_s19 + $0x188] sm:$0xff]  ;;  %v17536_v36 = vcombine.low %v11189_v25, %v11193_v26 }
 0x89b   : > { %v11004_v44 = vmax.f32 %v18080_v34, 0.0  ;;  %v11006_v45 = vmax.f32 %v18082_v35, 0.0  ;;  %v10346_v40 = vpop.f32.mrb[3].mxu0  ;;  %v11002_v53 = vpop.f32.mrb[3].mxu1  ;;  %v11197_v33 = vld [vmem:[%s21567_s19 + $0x588] sm:$0xff]  ;;  %v17417_v37 = vcombine.high %v11069_v18, %v11073_v32 }
 0x89c   : > { %v11005_v12 = vmax.f32 %v18081_v38, 0.0  ;;  %v11007_v43 = vmax.f32 %v18083_v39, 0.0  ;;  %v11201_v34 = vld [vmem:[%s21567_s19 + $0x5a8] sm:$0xff] }
 0x89d   : > { %v22906_v52 = vpack.c.bf16 %v11004_v44, %v11004_v44  ;;  %v22908_v61 = vpack.c.bf16 %v11006_v45, %v11006_v45  ;;  %v17545_v38 = vcombine.high %v11197_v33, %v11201_v34  ;;  %v11077_v39 = vld [vmem:[%s21567_s19 + $0x1c8] sm:$0xff]  ;;  %v17416_v45 = vcombine.low %v11069_v18, %v11073_v32 }
 0x89e   : > { %v22902_v59 = vpack.c.bf16 %v11005_v12, %v11005_v12  ;;  %v22904_v51 = vpack.c.bf16 %v11007_v43, %v11007_v43  ;;  %v11081_v41 = vld [vmem:[%s21567_s19 + $0x1e8] sm:$0xff]  ;;  %v17544_v40 = vcombine.low %v11197_v33, %v11201_v34 }
 0x89f   : > { %v11205_v42 = vld [vmem:[%s21567_s19 + $0x5c8] sm:$0xff]  ;;  %v17425_v53 = vcombine.high %v11077_v39, %v11081_v41  ;;  %v17424_v57 = vcombine.low %v11077_v39, %v11081_v41 }
 0x8a0   : > { %12588 = vmatprep.mubr.bf16.mxu0 %v22902_v59  ;;  %12629 = vmatprep.mubr.bf16.mxu1 %v22904_v51  ;;  %v11209_v44 = vld [vmem:[%s21567_s19 + $0x5e8] sm:$0xff] }
 0x8a1   : > { %12589 = vmatmul.mubr.bf16.vlgmr.msra.gmra.mrb[4].mxu0 %v22906_v52  ;;  %12630 = vmatmul.mubr.bf16.vlgmr.msra.gmra.mrb[4].mxu1 %v22908_v61  ;;  %v17553_v12 = vcombine.high %v11205_v42, %v11209_v44  ;;  %v11085_v43 = vld [vmem:[%s21567_s19 + $0x208] sm:$0xff]  ;;  %v17552_v54 = vcombine.low %v11205_v42, %v11209_v44 }
 0x8a2   : > { %12639 = vmatpush1.bf16.msra.mxu0 %v17368_v23  ;;  %12680 = vmatpush1.bf16.msra.mxu1 %v17496_v24  ;;  %v11061_v23 = vld [vmem:[%s21567_s19 + $0x148] sm:$0xff] }
 0x8a3   : > { %12670 = vmatprep.mubr.bf16.mxu0 %v22902_v59  ;;  %12711 = vmatprep.mubr.bf16.mxu1 %v22904_v51  ;;  %v11065_v24 = vld [vmem:[%s21567_s19 + $0x168] sm:$0xff] }
 0x8a4   : > { %12640 = vmatprep.subr.bf16.mxu0 %v17377_v3  ;;  %12681 = vmatprep.subr.bf16.mxu1 %v17505_v4  ;;  %v17409_v30 = vcombine.high %v11061_v23, %v11065_v24  ;;  %v17408_v35 = vcombine.low %v11061_v23, %v11065_v24  ;;  %v17433_v3 = vcombine.high %v11085_v43, %v11089_v9  ;;  %v11113_v19 = vld [vmem:[%s21567_s19 + $0x2e8] sm:$0xff] }
 0x8a5   : > { %v17561_v4 = vcombine.high %v11213_v55, %v11217_v46  ;;  %v11237_v13 = vld [vmem:[%s21567_s19 + $0x6c8] sm:$0xff] }
 0x8a6   : > { %12641 = vmatpush1.bf16.msra.mxu0 %v17376_v60  ;;  %12682 = vmatpush1.bf16.msra.mxu1 %v17504_v8  ;;  %v11225_v60 = vld [vmem:[%s21567_s19 + $0x668] sm:$0xff]  ;;  %v17432_v8 = vcombine.low %v11085_v43, %v11089_v9 }
 0x8a7   : > { %12642 = vmatprep.subr.bf16.mxu0 %v17385_v10  ;;  %12683 = vmatprep.subr.bf16.mxu1 %v17513_v1  ;;  %v17560_v10 = vcombine.low %v11213_v55, %v11217_v46  ;;  %v17441_v1 = vcombine.high %v11093_v56, %v11097_v5  ;;  %v17569_v63 = vcombine.high %v11221_v7, %v11225_v60  ;;  %v11117_v24 = vld [vmem:[%s21567_s19 + $0x308] sm:$0xff] }
 0x8a8   : > { %v11121_v25 = vld [vmem:[%s21567_s19 + $0x328] sm:$0xff] }
 0x8a9   : > { %v11245_v26 = vld [vmem:[%s21567_s19 + $0x708] sm:$0xff] }
 0x8aa   : > { %12643 = vmatpush1.bf16.msra.mxu0 %v17384_v62  ;;  %12684 = vmatpush1.bf16.msra.mxu1 %v17512_v58  ;;  %v11233_v62 = vld [vmem:[%s21567_s19 + $0x6a8] sm:$0xff]  ;;  %v17440_v58 = vcombine.low %v11093_v56, %v11097_v5  ;;  %v11022_v5 = vld [vmem:[%s21567_s19 + $0x10] sm:$0xff] }
 0x8ab   : > { %12644 = vmatprep.subr.bf16.mxu0 %v17393_v14  ;;  %12685 = vmatprep.subr.bf16.mxu1 %v17521_v16  ;;  %v17568_v14 = vcombine.low %v11221_v7, %v11225_v60  ;;  %v17449_v16 = vcombine.high %v11101_v0, %v11105_v6  ;;  %v17577_v11 = vcombine.high %v11229_v2, %v11233_v62  ;;  %v11125_v32 = vld [vmem:[%s21567_s19 + $0x348] sm:$0xff]  ;;  %v11026_v7 = vld [vmem:[%s21567_s19 + $0x30] sm:$0xff] }
 0x8ac   : > { %v11129_v33 = vld [vmem:[%s21567_s19 + $0x368] sm:$0xff]  ;;  %v11150_v60 = vld [vmem:[%s21567_s19 + $0x410] sm:$0xff] }
 0x8ad   : > { %v11253_v34 = vld [vmem:[%s21567_s19 + $0x748] sm:$0xff] }
 0x8ae   : > { %12645 = vmatpush1.bf16.msra.mxu0 %v17392_v20  ;;  %12686 = vmatpush1.bf16.msra.mxu1 %v17520_v21  ;;  %v11241_v20 = vld [vmem:[%s21567_s19 + $0x6e8] sm:$0xff]  ;;  %v17448_v21 = vcombine.low %v11101_v0, %v11105_v6  ;;  %v11030_v6 = vld [vmem:[%s21567_s19 + $0x50] sm:$0xff] }
 0x8af   : > { %12646 = vmatprep.subr.bf16.mxu0 %v17401_v22  ;;  %12687 = vmatprep.subr.bf16.mxu1 %v17529_v15  ;;  %v17576_v22 = vcombine.low %v11229_v2, %v11233_v62  ;;  %v17457_v15 = vcombine.high %v11109_v17, %v11113_v19  ;;  %v17585_v23 = vcombine.high %v11237_v13, %v11241_v20  ;;  %v11133_v41 = vld [vmem:[%s21567_s19 + $0x388] sm:$0xff]  ;;  %v11034_v2 = vld [vmem:[%s21567_s19 + $0x70] sm:$0xff] }
 0x8b0   : > { %v11137_v42 = vld [vmem:[%s21567_s19 + $0x3a8] sm:$0xff]  ;;  %v11158_v62 = vld [vmem:[%s21567_s19 + $0x450] sm:$0xff] }
 0x8b1   : > { %v11261_v44 = vld [vmem:[%s21567_s19 + $0x788] sm:$0xff] }
 0x8b2   : > { %12647 = vmatpush1.bf16.msra.mxu0 %v17400_v48  ;;  %12688 = vmatpush1.bf16.msra.mxu1 %v17528_v50  ;;  %v11249_v48 = vld [vmem:[%s21567_s19 + $0x728] sm:$0xff]  ;;  %v17456_v50 = vcombine.low %v11109_v17, %v11113_v19  ;;  %v11038_v19 = vld [vmem:[%s21567_s19 + $0x90] sm:$0xff] }
 0x8b3   : > { %12648 = vmatprep.subr.bf16.mxu0 %v17409_v30  ;;  %12689 = vmatprep.subr.bf16.mxu1 %v17537_v31  ;;  %v17584_v30 = vcombine.low %v11237_v13, %v11241_v20  ;;  %v17465_v31 = vcombine.high %v11117_v24, %v11121_v25  ;;  %v17593_v18 = vcombine.high %v11245_v26, %v11249_v48  ;;  %v11141_v9 = vld [vmem:[%s21567_s19 + $0x3c8] sm:$0xff]  ;;  %v11042_v13 = vld [vmem:[%s21567_s19 + $0xb0] sm:$0xff] }
 0x8b4   : > { %v11145_v55 = vld [vmem:[%s21567_s19 + $0x3e8] sm:$0xff]  ;;  %v11166_v20 = vld [vmem:[%s21567_s19 + $0x490] sm:$0xff] }
 0x8b5   : > { %v11269_v46 = vld [vmem:[%s21567_s19 + $0x7c8] sm:$0xff] }
 0x8b6   : > { %12649 = vmatpush1.bf16.msra.mxu0 %v17408_v35  ;;  %12690 = vmatpush1.bf16.msra.mxu1 %v17536_v36  ;;  %v11257_v35 = vld [vmem:[%s21567_s19 + $0x768] sm:$0xff]  ;;  %v17464_v36 = vcombine.low %v11117_v24, %v11121_v25  ;;  %v11046_v25 = vld [vmem:[%s21567_s19 + $0xd0] sm:$0xff] }
 0x8b7   : > { %12650 = vmatprep.subr.bf16.mxu0 %v17417_v37  ;;  %12691 = vmatprep.subr.bf16.mxu1 %v17545_v38  ;;  %v17592_v37 = vcombine.low %v11245_v26, %v11249_v48  ;;  %v17473_v38 = vcombine.high %v11125_v32, %v11129_v33  ;;  %v17601_v39 = vcombine.high %v11253_v34, %v11257_v35  ;;  %v11050_v26 = vld [vmem:[%s21567_s19 + $0xf0] sm:$0xff] }
 0x8b8   : > { %v11174_v48 = vld [vmem:[%s21567_s19 + $0x4d0] sm:$0xff] }
 0x8ba   : > { %12651 = vmatpush1.bf16.msra.mxu0 %v17416_v45  ;;  %12692 = vmatpush1.bf16.msra.mxu1 %v17544_v40  ;;  %v11265_v45 = vld [vmem:[%s21567_s19 + $0x7a8] sm:$0xff]  ;;  %v17472_v40 = vcombine.low %v11125_v32, %v11129_v33  ;;  %v11054_v33 = vld [vmem:[%s21567_s19 + $0x110] sm:$0xff] }
 0x8bb   : > { %12652 = vmatprep.subr.bf16.mxu0 %v17425_v53  ;;  %12693 = vmatprep.subr.bf16.mxu1 %v17553_v12  ;;  %v17600_v53 = vcombine.low %v11253_v34, %v11257_v35  ;;  %v17481_v12 = vcombine.high %v11133_v41, %v11137_v42  ;;  %v17609_v43 = vcombine.high %v11261_v44, %v11265_v45  ;;  %v11058_v34 = vld [vmem:[%s21567_s19 + $0x130] sm:$0xff] }
 0x8bc   : > { %v11182_v35 = vld [vmem:[%s21567_s19 + $0x510] sm:$0xff] }
 0x8be   : > { %12653 = vmatpush1.bf16.msra.mxu0 %v17424_v57  ;;  %12694 = vmatpush1.bf16.msra.mxu1 %v17552_v54  ;;  %v11273_v57 = vld [vmem:[%s21567_s19 + $0x7e8] sm:$0xff]  ;;  %v17480_v54 = vcombine.low %v11133_v41, %v11137_v42  ;;  %v11062_v42 = vld [vmem:[%s21567_s19 + $0x150] sm:$0xff] }
 0x8bf   : > { %12654 = vmatprep.subr.bf16.mxu0 %v17433_v3  ;;  %12695 = vmatprep.subr.bf16.mxu1 %v17561_v4  ;;  %v17608_v3 = vcombine.low %v11261_v44, %v11265_v45  ;;  %v17489_v4 = vcombine.high %v11141_v9, %v11145_v55  ;;  %v17617_v56 = vcombine.high %v11269_v46, %v11273_v57  ;;  %v11066_v44 = vld [vmem:[%s21567_s19 + $0x170] sm:$0xff] }
 0x8c0   : > { %v11190_v45 = vld [vmem:[%s21567_s19 + $0x550] sm:$0xff] }
 0x8c2   : > { %12655 = vmatpush1.bf16.msra.mxu0 %v17432_v8  ;;  %12696 = vmatpush1.bf16.msra.mxu1 %v17560_v10  ;;  %v11154_v8 = vld [vmem:[%s21567_s19 + $0x430] sm:$0xff]  ;;  %v17488_v10 = vcombine.low %v11141_v9, %v11145_v55 }
 0x8c3   : > { %12656 = vmatprep.subr.bf16.mxu0 %v17441_v1  ;;  %12697 = vmatprep.subr.bf16.mxu1 %v17569_v63  ;;  %v17616_v1 = vcombine.low %v11269_v46, %v11273_v57  ;;  %v17371_v63 = vcombine.high %v11022_v5, %v11026_v7  ;;  %v17499_v0 = vcombine.high %v11150_v60, %v11154_v8  ;;  %v11070_v55 = vld [vmem:[%s21567_s19 + $0x190] sm:$0xff] }
 0x8c4   : > { %v11074_v46 = vld [vmem:[%s21567_s19 + $0x1b0] sm:$0xff] }
 0x8c5   : > { %v11198_v57 = vld [vmem:[%s21567_s19 + $0x590] sm:$0xff] }
 0x8c6   : > { %12657 = vmatpush1.bf16.msra.mxu0 %v17440_v58  ;;  %12698 = vmatpush1.bf16.msra.mxu1 %v17568_v14  ;;  %v11162_v58 = vld [vmem:[%s21567_s19 + $0x470] sm:$0xff]  ;;  %v17370_v14 = vcombine.low %v11022_v5, %v11026_v7 }
 0x8c7   : > { %12658 = vmatprep.subr.bf16.mxu0 %v17449_v16  ;;  %12699 = vmatprep.subr.bf16.mxu1 %v17577_v11  ;;  %v17498_v16 = vcombine.low %v11150_v60, %v11154_v8  ;;  %v17379_v11 = vcombine.high %v11030_v6, %v11034_v2  ;;  %v17507_v17 = vcombine.high %v11158_v62, %v11162_v58  ;;  %v11078_v7 = vld [vmem:[%s21567_s19 + $0x1d0] sm:$0xff] }
 0x8c8   : > { %v11082_v60 = vld [vmem:[%s21567_s19 + $0x1f0] sm:$0xff] }
 0x8c9   : > { %v11206_v8 = vld [vmem:[%s21567_s19 + $0x5d0] sm:$0xff] }
 0x8ca   : > { %12659 = vmatpush1.bf16.msra.mxu0 %v17448_v21  ;;  %12700 = vmatpush1.bf16.msra.mxu1 %v17576_v22  ;;  %v11170_v21 = vld [vmem:[%s21567_s19 + $0x4b0] sm:$0xff]  ;;  %v17378_v22 = vcombine.low %v11030_v6, %v11034_v2 }
 0x8cb   : > { %12660 = vmatprep.subr.bf16.mxu0 %v17457_v15  ;;  %12701 = vmatprep.subr.bf16.mxu1 %v17585_v23  ;;  %v17506_v15 = vcombine.low %v11158_v62, %v11162_v58  ;;  %v17387_v23 = vcombine.high %v11038_v19, %v11042_v13  ;;  %v17515_v24 = vcombine.high %v11166_v20, %v11170_v21  ;;  %v11086_v2 = vld [vmem:[%s21567_s19 + $0x210] sm:$0xff] }
 0x8cc   : > { %v11090_v62 = vld [vmem:[%s21567_s19 + $0x230] sm:$0xff] }
 0x8cd   : > { %v11214_v58 = vld [vmem:[%s21567_s19 + $0x610] sm:$0xff] }
 0x8ce   : > { %12661 = vmatpush1.bf16.msra.mxu0 %v17456_v50  ;;  %12702 = vmatpush1.bf16.msra.mxu1 %v17584_v30  ;;  %v11178_v50 = vld [vmem:[%s21567_s19 + $0x4f0] sm:$0xff]  ;;  %v17386_v30 = vcombine.low %v11038_v19, %v11042_v13 }
 0x8cf   : > { %12662 = vmatprep.subr.bf16.mxu0 %v17465_v31  ;;  %12703 = vmatprep.subr.bf16.mxu1 %v17593_v18  ;;  %v17514_v31 = vcombine.low %v11166_v20, %v11170_v21  ;;  %v17395_v18 = vcombine.high %v11046_v25, %v11050_v26  ;;  %v17523_v32 = vcombine.high %v11174_v48, %v11178_v50  ;;  %v11094_v13 = vld [vmem:[%s21567_s19 + $0x250] sm:$0xff] }
 0x8d0   : > { %v11098_v20 = vld [vmem:[%s21567_s19 + $0x270] sm:$0xff] }
 0x8d1   : > { %v11222_v21 = vld [vmem:[%s21567_s19 + $0x650] sm:$0xff] }
 0x8d2   : > { %12663 = vmatpush1.bf16.msra.mxu0 %v17464_v36  ;;  %12704 = vmatpush1.bf16.msra.mxu1 %v17592_v37  ;;  %v11186_v36 = vld [vmem:[%s21567_s19 + $0x530] sm:$0xff]  ;;  %v17394_v37 = vcombine.low %v11046_v25, %v11050_v26 }
 0x8d3   : > { %12664 = vmatprep.subr.bf16.mxu0 %v17473_v38  ;;  %12705 = vmatprep.subr.bf16.mxu1 %v17601_v39  ;;  %v17522_v38 = vcombine.low %v11174_v48, %v11178_v50  ;;  %v17403_v39 = vcombine.high %v11054_v33, %v11058_v34  ;;  %v17531_v41 = vcombine.high %v11182_v35, %v11186_v36  ;;  %v11102_v26 = vld [vmem:[%s21567_s19 + $0x290] sm:$0xff] }
 0x8d4   : > { %v11106_v48 = vld [vmem:[%s21567_s19 + $0x2b0] sm:$0xff] }
 0x8d5   : > { %v11230_v50 = vld [vmem:[%s21567_s19 + $0x690] sm:$0xff] }
 0x8d6   : > { %12665 = vmatpush1.bf16.msra.mxu0 %v17472_v40  ;;  %12706 = vmatpush1.bf16.msra.mxu1 %v17600_v53  ;;  %v11194_v40 = vld [vmem:[%s21567_s19 + $0x570] sm:$0xff]  ;;  %v17402_v53 = vcombine.low %v11054_v33, %v11058_v34 }
 0x8d7   : > { %12666 = vmatprep.subr.bf16.mxu0 %v17481_v12  ;;  %12707 = vmatprep.subr.bf16.mxu1 %v17609_v43  ;;  %v17530_v12 = vcombine.low %v11182_v35, %v11186_v36  ;;  %v17411_v43 = vcombine.high %v11062_v42, %v11066_v44  ;;  %v17539_v9 = vcombine.high %v11190_v45, %v11194_v40  ;;  %v11110_v34 = vld [vmem:[%s21567_s19 + $0x2d0] sm:$0xff] }
 0x8d8   : > { %v11114_v35 = vld [vmem:[%s21567_s19 + $0x2f0] sm:$0xff] }
 0x8d9   : > { %v11238_v36 = vld [vmem:[%s21567_s19 + $0x6d0] sm:$0xff] }
 0x8da   : > { %12667 = vmatpush1.bf16.msra.mxu0 %v17480_v54  ;;  %12708 = vmatpush1.bf16.msra.mxu1 %v17608_v3  ;;  %v11202_v54 = vld [vmem:[%s21567_s19 + $0x5b0] sm:$0xff]  ;;  %v17410_v3 = vcombine.low %v11062_v42, %v11066_v44 }
 0x8db   : > { %12668 = vmatprep.subr.bf16.mxu0 %v17489_v4  ;;  %12709 = vmatprep.subr.bf16.mxu1 %v17617_v56  ;;  %v17538_v4 = vcombine.low %v11190_v45, %v11194_v40  ;;  %v17419_v56 = vcombine.high %v11070_v55, %v11074_v46  ;;  %v17547_v5 = vcombine.high %v11198_v57, %v11202_v54  ;;  %v11118_v44 = vld [vmem:[%s21567_s19 + $0x310] sm:$0xff] }
 0x8dc   : > { %v11122_v45 = vld [vmem:[%s21567_s19 + $0x330] sm:$0xff] }
 0x8dd   : > { %v11246_v40 = vld [vmem:[%s21567_s19 + $0x710] sm:$0xff] }
 0x8de   : > { %12669 = vmatpush1.bf16.msra.mxu0 %v17488_v10  ;;  %12710 = vmatpush1.bf16.msra.mxu1 %v17616_v1  ;;  %v11210_v10 = vld [vmem:[%s21567_s19 + $0x5f0] sm:$0xff]  ;;  %v17418_v1 = vcombine.low %v11070_v55, %v11074_v46 }
 0x8df   : > { %12720 = vmatprep.subr.bf16.mxu0 %v17371_v63  ;;  %12761 = vmatprep.subr.bf16.mxu1 %v17499_v0  ;;  %v17546_v63 = vcombine.low %v11198_v57, %v11202_v54  ;;  %v17427_v0 = vcombine.high %v11078_v7, %v11082_v60  ;;  %v17555_v6 = vcombine.high %v11206_v8, %v11210_v10  ;;  %v11126_v46 = vld [vmem:[%s21567_s19 + $0x350] sm:$0xff] }
 0x8e0   : > { %v11130_v57 = vld [vmem:[%s21567_s19 + $0x370] sm:$0xff] }
 0x8e1   : > { %12671 = vmatmul.mubr.bf16.vlgmr.msra.gmra.mrb[8].mxu0 %v22906_v52  ;;  %12712 = vmatmul.mubr.bf16.vlgmr.msra.gmra.mrb[8].mxu1 %v22908_v61  ;;  %v11254_v54 = vld [vmem:[%s21567_s19 + $0x750] sm:$0xff] }
 0x8e2   : > { %12721 = vmatpush1.bf16.msra.mxu0 %v17370_v14  ;;  %12752 = vmatprep.mubr.bf16.mxu0 %v22902_v59  ;;  %v11218_v14 = vld [vmem:[%s21567_s19 + $0x630] sm:$0xff] }
 0x8e3   : > { %12762 = vmatpush1.bf16.msra.mxu1 %v17498_v16  ;;  %12793 = vmatprep.mubr.bf16.mxu1 %v22904_v51  ;;  %v17426_v16 = vcombine.low %v11078_v7, %v11082_v60  ;;  %v17563_v19 = vcombine.high %v11214_v58, %v11218_v14  ;;  %v11134_v60 = vld [vmem:[%s21567_s19 + $0x390] sm:$0xff] }
 0x8e4   : > { %12722 = vmatprep.subr.bf16.mxu0 %v17379_v11  ;;  %12763 = vmatprep.subr.bf16.mxu1 %v17507_v17  ;;  %v17554_v11 = vcombine.low %v11206_v8, %v11210_v10  ;;  %v17435_v17 = vcombine.high %v11086_v2, %v11090_v62  ;;  %v11138_v8 = vld [vmem:[%s21567_s19 + $0x3b0] sm:$0xff] }
 0x8e5   : > { %v11262_v10 = vld [vmem:[%s21567_s19 + $0x790] sm:$0xff] }
 0x8e6   : > { %12723 = vmatpush1.bf16.msra.mxu0 %v17378_v22  ;;  %v11226_v22 = vld [vmem:[%s21567_s19 + $0x670] sm:$0xff] }
 0x8e7   : > { %12764 = vmatpush1.bf16.msra.mxu1 %v17506_v15  ;;  %12724 = vmatprep.subr.bf16.mxu0 %v17387_v23  ;;  %v17434_v15 = vcombine.low %v11086_v2, %v11090_v62  ;;  %v17562_v23 = vcombine.low %v11214_v58, %v11218_v14  ;;  %v17571_v25 = vcombine.high %v11222_v21, %v11226_v22  ;;  %v11142_v62 = vld [vmem:[%s21567_s19 + $0x3d0] sm:$0xff] }
 0x8e8   : > { %12765 = vmatprep.subr.bf16.mxu1 %v17515_v24  ;;  %v17443_v24 = vcombine.high %v11094_v13, %v11098_v20  ;;  %v11146_v58 = vld [vmem:[%s21567_s19 + $0x3f0] sm:$0xff] }
 0x8e9   : > { %v11270_v14 = vld [vmem:[%s21567_s19 + $0x7d0] sm:$0xff] }
 0x8ea   : > { %12725 = vmatpush1.bf16.msra.mxu0 %v17386_v30  ;;  %v11234_v30 = vld [vmem:[%s21567_s19 + $0x6b0] sm:$0xff] }
 0x8eb   : > { %12766 = vmatpush1.bf16.msra.mxu1 %v17514_v31  ;;  %12726 = vmatprep.subr.bf16.mxu0 %v17395_v18  ;;  %v17442_v31 = vcombine.low %v11094_v13, %v11098_v20  ;;  %v17570_v18 = vcombine.low %v11222_v21, %v11226_v22  ;;  %v17579_v33 = vcombine.high %v11230_v50, %v11234_v30  ;;  %v11023_v20 = vld [vmem:[%s21567_s19 + $0x18] sm:$0xff] }
 0x8ec   : > { %12767 = vmatprep.subr.bf16.mxu1 %v17523_v32  ;;  %v17451_v32 = vcombine.high %v11102_v26, %v11106_v48  ;;  %v11027_v21 = vld [vmem:[%s21567_s19 + $0x38] sm:$0xff] }
 0x8ed   : > { %v11151_v22 = vld [vmem:[%s21567_s19 + $0x418] sm:$0xff] }
 0x8ee   : > { %12727 = vmatpush1.bf16.msra.mxu0 %v17394_v37  ;;  %v11242_v37 = vld [vmem:[%s21567_s19 + $0x6f0] sm:$0xff] }
 0x8ef   : > { %12768 = vmatpush1.bf16.msra.mxu1 %v17522_v38  ;;  %12728 = vmatprep.subr.bf16.mxu0 %v17403_v39  ;;  %v17450_v38 = vcombine.low %v11102_v26, %v11106_v48  ;;  %v17578_v39 = vcombine.low %v11230_v50, %v11234_v30  ;;  %v17587_v42 = vcombine.high %v11238_v36, %v11242_v37  ;;  %v11031_v48 = vld [vmem:[%s21567_s19 + $0x58] sm:$0xff] }
 0x8f0   : > { %12769 = vmatprep.subr.bf16.mxu1 %v17531_v41  ;;  %v17459_v41 = vcombine.high %v11110_v34, %v11114_v35  ;;  %v11035_v50 = vld [vmem:[%s21567_s19 + $0x78] sm:$0xff]  ;;  %v17372_v30 = vcombine.low %v11023_v20, %v11027_v21 }
 0x8f2   : > { %12729 = vmatpush1.bf16.msra.mxu0 %v17402_v53  ;;  %v11250_v53 = vld [vmem:[%s21567_s19 + $0x730] sm:$0xff] }
 0x8f3   : > { %12770 = vmatpush1.bf16.msra.mxu1 %v17530_v12  ;;  %12730 = vmatprep.subr.bf16.mxu0 %v17411_v43  ;;  %v17458_v12 = vcombine.low %v11110_v34, %v11114_v35  ;;  %v17586_v43 = vcombine.low %v11238_v36, %v11242_v37  ;;  %v17595_v55 = vcombine.high %v11246_v40, %v11250_v53  ;;  %v11039_v34 = vld [vmem:[%s21567_s19 + $0x98] sm:$0xff] }
 0x8f4   : > { %12771 = vmatprep.subr.bf16.mxu1 %v17539_v9  ;;  %v17467_v9 = vcombine.high %v11118_v44, %v11122_v45  ;;  %v11043_v35 = vld [vmem:[%s21567_s19 + $0xb8] sm:$0xff] }
 0x8f5   : > { %v11167_v37 = vld [vmem:[%s21567_s19 + $0x498] sm:$0xff] }
 0x8f6   : > { %12731 = vmatpush1.bf16.msra.mxu0 %v17410_v3  ;;  %v11258_v3 = vld [vmem:[%s21567_s19 + $0x770] sm:$0xff] }
 0x8f7   : > { %12772 = vmatpush1.bf16.msra.mxu1 %v17538_v4  ;;  %12732 = vmatprep.subr.bf16.mxu0 %v17419_v56  ;;  %v17466_v4 = vcombine.low %v11118_v44, %v11122_v45  ;;  %v17594_v56 = vcombine.low %v11246_v40, %v11250_v53  ;;  %v17603_v7 = vcombine.high %v11254_v54, %v11258_v3  ;;  %v11047_v45 = vld [vmem:[%s21567_s19 + $0xd8] sm:$0xff] }
 0x8f8   : > { %12773 = vmatprep.subr.bf16.mxu1 %v17547_v5  ;;  %v17475_v5 = vcombine.high %v11126_v46, %v11130_v57  ;;  %v11051_v40 = vld [vmem:[%s21567_s19 + $0xf8] sm:$0xff] }
 0x8f9   : > { %v11175_v53 = vld [vmem:[%s21567_s19 + $0x4d8] sm:$0xff] }
 0x8fa   : > { %12733 = vmatpush1.bf16.msra.mxu0 %v17418_v1  ;;  %v11266_v1 = vld [vmem:[%s21567_s19 + $0x7b0] sm:$0xff] }
 0x8fb   : > { %12774 = vmatpush1.bf16.msra.mxu1 %v17546_v63  ;;  %12734 = vmatprep.subr.bf16.mxu0 %v17427_v0  ;;  %v17474_v63 = vcombine.low %v11126_v46, %v11130_v57  ;;  %v17602_v0 = vcombine.low %v11254_v54, %v11258_v3  ;;  %v17611_v2 = vcombine.high %v11262_v10, %v11266_v1  ;;  %v11059_v46 = vld [vmem:[%s21567_s19 + $0x138] sm:$0xff] }
 0x8fc   : > { %12775 = vmatprep.subr.bf16.mxu1 %v17555_v6  ;;  %v17483_v6 = vcombine.high %v11134_v60, %v11138_v8  ;;  %v11183_v57 = vld [vmem:[%s21567_s19 + $0x518] sm:$0xff]  ;;  %v17396_v3 = vcombine.low %v11047_v45, %v11051_v40 }
 0x8fd   : > { %v11187_v54 = vld [vmem:[%s21567_s19 + $0x538] sm:$0xff] }
 0x8fe   : > { %12735 = vmatpush1.bf16.msra.mxu0 %v17426_v16  ;;  %v11274_v16 = vld [vmem:[%s21567_s19 + $0x7f0] sm:$0xff] }
 0x8ff   : > { %12776 = vmatpush1.bf16.msra.mxu1 %v17554_v11  ;;  %12736 = vmatprep.subr.bf16.mxu0 %v17435_v17  ;;  %v17482_v11 = vcombine.low %v11134_v60, %v11138_v8  ;;  %v17610_v17 = vcombine.low %v11262_v10, %v11266_v1  ;;  %v17619_v13 = vcombine.high %v11270_v14, %v11274_v16  ;;  %v11067_v60 = vld [vmem:[%s21567_s19 + $0x178] sm:$0xff] }
 0x900   : > { %12777 = vmatprep.subr.bf16.mxu1 %v17563_v19  ;;  %v17491_v19 = vcombine.high %v11142_v62, %v11146_v58  ;;  %v11191_v8 = vld [vmem:[%s21567_s19 + $0x558] sm:$0xff] }
 0x901   : > { %v11195_v10 = vld [vmem:[%s21567_s19 + $0x578] sm:$0xff] }
 0x902   : > { %12737 = vmatpush1.bf16.msra.mxu0 %v17434_v15  ;;  %v11155_v15 = vld [vmem:[%s21567_s19 + $0x438] sm:$0xff] }
 0x903   : > { %12778 = vmatpush1.bf16.msra.mxu1 %v17562_v23  ;;  %12738 = vmatprep.subr.bf16.mxu0 %v17443_v24  ;;  %v17490_v23 = vcombine.low %v11142_v62, %v11146_v58  ;;  %v17618_v24 = vcombine.low %v11270_v14, %v11274_v16  ;;  %v17501_v26 = vcombine.high %v11151_v22, %v11155_v15  ;;  %v11075_v62 = vld [vmem:[%s21567_s19 + $0x1b8] sm:$0xff] }
 0x904   : > { %12779 = vmatprep.subr.bf16.mxu1 %v17571_v25  ;;  %v17373_v25 = vcombine.high %v11023_v20, %v11027_v21  ;;  %v11199_v58 = vld [vmem:[%s21567_s19 + $0x598] sm:$0xff] }
 0x905   : > { %v11203_v14 = vld [vmem:[%s21567_s19 + $0x5b8] sm:$0xff] }
 0x906   : > { %12739 = vmatpush1.bf16.msra.mxu0 %v17442_v31  ;;  %v11159_v31 = vld [vmem:[%s21567_s19 + $0x458] sm:$0xff] }
 0x907   : > { %12780 = vmatpush1.bf16.msra.mxu1 %v17570_v18  ;;  %12740 = vmatprep.subr.bf16.mxu0 %v17451_v32  ;;  %v11163_v18 = vld [vmem:[%s21567_s19 + $0x478] sm:$0xff]  ;;  %v17500_v32 = vcombine.low %v11151_v22, %v11155_v15 }
 0x908   : > { %12781 = vmatprep.subr.bf16.mxu1 %v17579_v33  ;;  %v17381_v33 = vcombine.high %v11031_v48, %v11035_v50  ;;  %v17509_v36 = vcombine.high %v11159_v31, %v11163_v18  ;;  %v11083_v20 = vld [vmem:[%s21567_s19 + $0x1f8] sm:$0xff] }
 0x909   : > { %v11207_v21 = vld [vmem:[%s21567_s19 + $0x5d8] sm:$0xff] }
 0x90a   : > { %12741 = vmatpush1.bf16.msra.mxu0 %v17450_v38  ;;  %v11171_v38 = vld [vmem:[%s21567_s19 + $0x4b8] sm:$0xff] }
 0x90b   : > { %12782 = vmatpush1.bf16.msra.mxu1 %v17578_v39  ;;  %12742 = vmatprep.subr.bf16.mxu0 %v17459_v41  ;;  %v17380_v39 = vcombine.low %v11031_v48, %v11035_v50  ;;  %v17508_v41 = vcombine.low %v11159_v31, %v11163_v18  ;;  %v17517_v44 = vcombine.high %v11167_v37, %v11171_v38  ;;  %v11211_v22 = vld [vmem:[%s21567_s19 + $0x5f8] sm:$0xff] }
 0x90c   : > { %12783 = vmatprep.subr.bf16.mxu1 %v17587_v42  ;;  %v17389_v42 = vcombine.high %v11039_v34, %v11043_v35  ;;  %v11091_v48 = vld [vmem:[%s21567_s19 + $0x238] sm:$0xff]  ;;  %v17556_v18 = vcombine.low %v11207_v21, %v11211_v22 }
 0x90d   : > { %v11215_v50 = vld [vmem:[%s21567_s19 + $0x618] sm:$0xff] }
 0x90e   : > { %12743 = vmatpush1.bf16.msra.mxu0 %v17458_v12  ;;  %v11179_v12 = vld [vmem:[%s21567_s19 + $0x4f8] sm:$0xff] }
 0x90f   : > { %12784 = vmatpush1.bf16.msra.mxu1 %v17586_v43  ;;  %12744 = vmatprep.subr.bf16.mxu0 %v17467_v9  ;;  %v17388_v43 = vcombine.low %v11039_v34, %v11043_v35  ;;  %v17397_v9 = vcombine.high %v11047_v45, %v11051_v40  ;;  %v11095_v34 = vld [vmem:[%s21567_s19 + $0x258] sm:$0xff] }
 0x910   : > { %12785 = vmatprep.subr.bf16.mxu1 %v17595_v55  ;;  %v11055_v55 = vld [vmem:[%s21567_s19 + $0x118] sm:$0xff] }
 0x911   : > { %v17404_v1 = vcombine.low %v11055_v55, %v11059_v46  ;;  %v11099_v35 = vld [vmem:[%s21567_s19 + $0x278] sm:$0xff] }
 0x912   : > { %12745 = vmatpush1.bf16.msra.mxu0 %v17466_v4  ;;  %v17524_v4 = vcombine.low %v11175_v53, %v11179_v12  ;;  %v11107_v45 = vld [vmem:[%s21567_s19 + $0x2b8] sm:$0xff] }
 0x913   : > { %12786 = vmatpush1.bf16.msra.mxu1 %v17594_v56  ;;  %12746 = vmatprep.subr.bf16.mxu0 %v17475_v5  ;;  %v17405_v56 = vcombine.high %v11055_v55, %v11059_v46  ;;  %v17533_v5 = vcombine.high %v11183_v57, %v11187_v54  ;;  %v11231_v40 = vld [vmem:[%s21567_s19 + $0x698] sm:$0xff] }
 0x914   : > { %12787 = vmatprep.subr.bf16.mxu1 %v17603_v7  ;;  %v11063_v7 = vld [vmem:[%s21567_s19 + $0x158] sm:$0xff] }
 0x915   : > { %v17412_v16 = vcombine.low %v11063_v7, %v11067_v60  ;;  %v11115_v55 = vld [vmem:[%s21567_s19 + $0x2f8] sm:$0xff] }
 0x916   : > { %12747 = vmatpush1.bf16.msra.mxu0 %v17474_v63  ;;  %v17532_v63 = vcombine.low %v11183_v57, %v11187_v54  ;;  %v11239_v46 = vld [vmem:[%s21567_s19 + $0x6d8] sm:$0xff] }
 0x917   : > { %12788 = vmatpush1.bf16.msra.mxu1 %v17602_v0  ;;  %12748 = vmatprep.subr.bf16.mxu0 %v17483_v6  ;;  %v17413_v0 = vcombine.high %v11063_v7, %v11067_v60  ;;  %v17541_v6 = vcombine.high %v11191_v8, %v11195_v10  ;;  %v11243_v57 = vld [vmem:[%s21567_s19 + $0x6f8] sm:$0xff] }
 0x918   : > { %12789 = vmatprep.subr.bf16.mxu1 %v17611_v2  ;;  %v11071_v2 = vld [vmem:[%s21567_s19 + $0x198] sm:$0xff] }
 0x919   : > { %v17420_v15 = vcombine.low %v11071_v2, %v11075_v62  ;;  %v11123_v7 = vld [vmem:[%s21567_s19 + $0x338] sm:$0xff] }
 0x91a   : > { %12749 = vmatpush1.bf16.msra.mxu0 %v17482_v11  ;;  %v17540_v11 = vcombine.low %v11191_v8, %v11195_v10  ;;  %v11247_v60 = vld [vmem:[%s21567_s19 + $0x718] sm:$0xff] }
 0x91b   : > { %12790 = vmatpush1.bf16.msra.mxu1 %v17610_v17  ;;  %12750 = vmatprep.subr.bf16.mxu0 %v17491_v19  ;;  %v17421_v17 = vcombine.high %v11071_v2, %v11075_v62  ;;  %v17549_v19 = vcombine.high %v11199_v58, %v11203_v14  ;;  %v11251_v8 = vld [vmem:[%s21567_s19 + $0x738] sm:$0xff] }
 0x91c   : > { %12791 = vmatprep.subr.bf16.mxu1 %v17619_v13  ;;  %v11079_v13 = vld [vmem:[%s21567_s19 + $0x1d8] sm:$0xff] }
 0x91d   : > { %v17428_v31 = vcombine.low %v11079_v13, %v11083_v20  ;;  %v11131_v2 = vld [vmem:[%s21567_s19 + $0x378] sm:$0xff] }
 0x91e   : > { %12751 = vmatpush1.bf16.msra.mxu0 %v17490_v23  ;;  %v17548_v23 = vcombine.low %v11199_v58, %v11203_v14  ;;  %v11255_v62 = vld [vmem:[%s21567_s19 + $0x758] sm:$0xff] }
 0x91f   : > { %12792 = vmatpush1.bf16.msra.mxu1 %v17618_v24  ;;  %12802 = vmatprep.subr.bf16.mxu0 %v17373_v25  ;;  %v17429_v24 = vcombine.high %v11079_v13, %v11083_v20  ;;  %v17557_v25 = vcombine.high %v11207_v21, %v11211_v22  ;;  %v11259_v58 = vld [vmem:[%s21567_s19 + $0x778] sm:$0xff] }
 0x920   : > { %12843 = vmatprep.subr.bf16.mxu1 %v17501_v26  ;;  %v11087_v26 = vld [vmem:[%s21567_s19 + $0x218] sm:$0xff] }
 0x921   : > { %12753 = vmatmul.mubr.bf16.vlgmr.msra.gmra.mrb[12].mxu0 %v22906_v52  ;;  %v11139_v13 = vld [vmem:[%s21567_s19 + $0x3b8] sm:$0xff] }
 0x922   : > { %12794 = vmatmul.mubr.bf16.vlgmr.msra.gmra.mrb[12].mxu1 %v22908_v61  ;;  %12803 = vmatpush1.bf16.msra.mxu0 %v17372_v30  ;;  %v11219_v30 = vld [vmem:[%s21567_s19 + $0x638] sm:$0xff] }
 0x923   : > { %12834 = vmatprep.mubr.bf16.mxu0 %v22902_v59  ;;  %12844 = vmatpush1.bf16.msra.mxu1 %v17500_v32  ;;  %v17516_v59 = vcombine.low %v11167_v37, %v11171_v38  ;;  %v17437_v32 = vcombine.high %v11087_v26, %v11091_v48  ;;  %v11227_v37 = vld [vmem:[%s21567_s19 + $0x678] sm:$0xff]  ;;  %v17436_v38 = vcombine.low %v11087_v26, %v11091_v48 }
 0x924   : > { %12875 = vmatprep.mubr.bf16.mxu1 %v22904_v51  ;;  %12804 = vmatprep.subr.bf16.mxu0 %v17381_v33  ;;  %v17525_v51 = vcombine.high %v11175_v53, %v11179_v12  ;;  %v17565_v33 = vcombine.high %v11215_v50, %v11219_v30  ;;  %v11235_v53 = vld [vmem:[%s21567_s19 + $0x6b8] sm:$0xff]  ;;  %v17444_v12 = vcombine.low %v11095_v34, %v11099_v35 }
 0x925   : > { %12845 = vmatprep.subr.bf16.mxu1 %v17509_v36  ;;  %v11223_v36 = vld [vmem:[%s21567_s19 + $0x658] sm:$0xff] }
 0x926   : > { %12805 = vmatpush1.bf16.msra.mxu0 %v17380_v39  ;;  %v17564_v39 = vcombine.low %v11215_v50, %v11219_v30  ;;  %v11263_v20 = vld [vmem:[%s21567_s19 + $0x798] sm:$0xff] }
 0x927   : > { %12846 = vmatpush1.bf16.msra.mxu1 %v17508_v41  ;;  %12806 = vmatprep.subr.bf16.mxu0 %v17389_v42  ;;  %v17445_v41 = vcombine.high %v11095_v34, %v11099_v35  ;;  %v17573_v42 = vcombine.high %v11223_v36, %v11227_v37  ;;  %v11267_v21 = vld [vmem:[%s21567_s19 + $0x7b8] sm:$0xff] }
 0x928   : > { %12847 = vmatprep.subr.bf16.mxu1 %v17517_v44  ;;  %v11103_v44 = vld [vmem:[%s21567_s19 + $0x298] sm:$0xff] }
 0x929   : > { %v17452_v54 = vcombine.low %v11103_v44, %v11107_v45  ;;  %v11147_v26 = vld [vmem:[%s21567_s19 + $0x3f8] sm:$0xff] }
 0x92a   : > { %12807 = vmatpush1.bf16.msra.mxu0 %v17388_v43  ;;  %v17572_v43 = vcombine.low %v11223_v36, %v11227_v37  ;;  %v11271_v48 = vld [vmem:[%s21567_s19 + $0x7d8] sm:$0xff]  ;;  %v11012_v36 = vld [vmem:[#allocation3] sm:$0xff] }
 0x92b   : > { %12848 = vmatpush1.bf16.msra.mxu1 %v17516_v59  ;;  %12808 = vmatprep.subr.bf16.mxu0 %v17397_v9  ;;  %v17453_v59 = vcombine.high %v11103_v44, %v11107_v45  ;;  %v17581_v9 = vcombine.high %v11231_v40, %v11235_v53  ;;  %v11275_v50 = vld [vmem:[%s21567_s19 + $0x7f8] sm:$0xff] }
 0x92c   : > { %12849 = vmatprep.subr.bf16.mxu1 %v17525_v51  ;;  %v11111_v51 = vld [vmem:[%s21567_s19 + $0x2d8] sm:$0xff]  ;;  %v17620_v34 = vcombine.low %v11271_v48, %v11275_v50 }
 0x92d   : > { %v17460_v10 = vcombine.low %v11111_v51, %v11115_v55 }
 0x92e   : > { %12809 = vmatpush1.bf16.msra.mxu0 %v17396_v3  ;;  %v17580_v3 = vcombine.low %v11231_v40, %v11235_v53 }
 0x92f   : > { %12850 = vmatpush1.bf16.msra.mxu1 %v17524_v4  ;;  %12810 = vmatprep.subr.bf16.mxu0 %v17405_v56  ;;  %v17461_v4 = vcombine.high %v11111_v51, %v11115_v55  ;;  %v17589_v56 = vcombine.high %v11239_v46, %v11243_v57 }
 0x930   : > { %12851 = vmatprep.subr.bf16.mxu1 %v17533_v5  ;;  %v11119_v5 = vld [vmem:[%s21567_s19 + $0x318] sm:$0xff] }
 0x931   : > { %v17468_v14 = vcombine.low %v11119_v5, %v11123_v7 }
 0x932   : > { %12811 = vmatpush1.bf16.msra.mxu0 %v17404_v1  ;;  %v17588_v1 = vcombine.low %v11239_v46, %v11243_v57  ;;  %v11015_v46 = vld [vmem:[#allocation3 + $0x18] sm:$0xff] }
 0x933   : > { %12852 = vmatpush1.bf16.msra.mxu1 %v17532_v63  ;;  %12812 = vmatprep.subr.bf16.mxu0 %v17413_v0  ;;  %v17469_v63 = vcombine.high %v11119_v5, %v11123_v7  ;;  %v17597_v0 = vcombine.high %v11247_v60, %v11251_v8 }
 0x934   : > { %12853 = vmatprep.subr.bf16.mxu1 %v17541_v6  ;;  %v11127_v6 = vld [vmem:[%s21567_s19 + $0x358] sm:$0xff] }
 0x935   : > { %v17476_v22 = vcombine.low %v11127_v6, %v11131_v2 }
 0x936   : > { %12813 = vmatpush1.bf16.msra.mxu0 %v17412_v16  ;;  %v17596_v16 = vcombine.low %v11247_v60, %v11251_v8 }
 0x937   : > { %12854 = vmatpush1.bf16.msra.mxu1 %v17540_v11  ;;  %12814 = vmatprep.subr.bf16.mxu0 %v17421_v17  ;;  %v17477_v11 = vcombine.high %v11127_v6, %v11131_v2  ;;  %v17605_v17 = vcombine.high %v11255_v62, %v11259_v58  ;;  %v11017_v6 = vld [vmem:[#allocation3 + $0x28] sm:$0xff] }
 0x938   : > { %12855 = vmatprep.subr.bf16.mxu1 %v17549_v19  ;;  %v11135_v19 = vld [vmem:[%s21567_s19 + $0x398] sm:$0xff] }
 0x939   : > { %v17484_v30 = vcombine.low %v11135_v19, %v11139_v13 }
 0x93a   : > { %12815 = vmatpush1.bf16.msra.mxu0 %v17420_v15  ;;  %v17604_v15 = vcombine.low %v11255_v62, %v11259_v58 }
 0x93b   : > { %12856 = vmatpush1.bf16.msra.mxu1 %v17548_v23  ;;  %12816 = vmatprep.subr.bf16.mxu0 %v17429_v24  ;;  %v17485_v23 = vcombine.high %v11135_v19, %v11139_v13  ;;  %v17613_v24 = vcombine.high %v11263_v20, %v11267_v21 }
 0x93c   : > { %12857 = vmatprep.subr.bf16.mxu1 %v17557_v25  ;;  %v11143_v25 = vld [vmem:[%s21567_s19 + $0x3d8] sm:$0xff] }
 0x93e   : > { %12817 = vmatpush1.bf16.msra.mxu0 %v17428_v31  ;;  %v17612_v31 = vcombine.low %v11263_v20, %v11267_v21  ;;  %v11018_v20 = vld [vmem:[#allocation3 + $0x30] sm:$0xff] }
 0x93f   : > { %12858 = vmatpush1.bf16.msra.mxu1 %v17556_v18  ;;  %12818 = vmatprep.subr.bf16.mxu0 %v17437_v32  ;;  %v17493_v18 = vcombine.high %v11143_v25, %v11147_v26  ;;  %v17621_v32 = vcombine.high %v11271_v48, %v11275_v50 }
 0x940   : > { %12859 = vmatprep.subr.bf16.mxu1 %v17565_v33  ;;  %v17492_v33 = vcombine.low %v11143_v25, %v11147_v26 }
 0x942   : > { %12819 = vmatpush1.bf16.msra.mxu0 %v17436_v38 }
 0x943   : > { %12860 = vmatpush1.bf16.msra.mxu1 %v17564_v39  ;;  %12820 = vmatprep.subr.bf16.mxu0 %v17445_v41  ;;  %v11013_v41 = vld [vmem:[#allocation3 + $0x8] sm:$0xff] }
 0x944   : > { %12861 = vmatprep.subr.bf16.mxu1 %v17573_v42 }
 0x946   : > { %12821 = vmatpush1.bf16.msra.mxu0 %v17444_v12 }
 0x947   : > { %12862 = vmatpush1.bf16.msra.mxu1 %v17572_v43  ;;  %12822 = vmatprep.subr.bf16.mxu0 %v17453_v59 }
 0x948   : > { %12863 = vmatprep.subr.bf16.mxu1 %v17581_v9 }
 0x94a   : > { %12823 = vmatpush1.bf16.msra.mxu0 %v17452_v54 }
 0x94b   : > { %12864 = vmatpush1.bf16.msra.mxu1 %v17580_v3  ;;  %12824 = vmatprep.subr.bf16.mxu0 %v17461_v4 }
 0x94c   : > { %12865 = vmatprep.subr.bf16.mxu1 %v17589_v56 }
 0x94e   : > { %12825 = vmatpush1.bf16.msra.mxu0 %v17460_v10  ;;  %v11016_v10 = vld [vmem:[#allocation3 + $0x20] sm:$0xff] }
 0x94f   : > { %12866 = vmatpush1.bf16.msra.mxu1 %v17588_v1  ;;  %12826 = vmatprep.subr.bf16.mxu0 %v17469_v63 }
 0x950   : > { %12867 = vmatprep.subr.bf16.mxu1 %v17597_v0 }
 0x952   : > { %12827 = vmatpush1.bf16.msra.mxu0 %v17468_v14 }
 0x953   : > { %12868 = vmatpush1.bf16.msra.mxu1 %v17596_v16  ;;  %12828 = vmatprep.subr.bf16.mxu0 %v17477_v11 }
 0x954   : > { %12869 = vmatprep.subr.bf16.mxu1 %v17605_v17 }
 0x956   : > { %12829 = vmatpush1.bf16.msra.mxu0 %v17476_v22 }
 0x957   : > { %12870 = vmatpush1.bf16.msra.mxu1 %v17604_v15  ;;  %12830 = vmatprep.subr.bf16.mxu0 %v17485_v23  ;;  %v11019_v23 = vld [vmem:[#allocation3 + $0x38] sm:$0xff] }
 0x958   : > { %12871 = vmatprep.subr.bf16.mxu1 %v17613_v24 }
 0x95a   : > { %12831 = vmatpush1.bf16.msra.mxu0 %v17484_v30 }
 0x95b   : > { %12872 = vmatpush1.bf16.msra.mxu1 %v17612_v31  ;;  %12832 = vmatprep.subr.bf16.mxu0 %v17493_v18 }
 0x95c   : > { %12873 = vmatprep.subr.bf16.mxu1 %v17621_v32  ;;  %v19990_v32 = vld [vmem:[#allocation16 + $0x4] ss:$16 sps:$4 sm:$0xff] (!%p17622_p12)  }
 0x95e   : > { %12833 = vmatpush1.bf16.msra.mxu0 %v17492_v33  ;;  %v19992_v33 = vld [vmem:[#allocation16 + $0xc] ss:$16 sps:$4 sm:$0xff] (!%p17622_p12)  }
 0x95f   : > { %12874 = vmatpush1.bf16.msra.mxu1 %v17620_v34  ;;  %14536 = vmatprep.subr.bf16.mxu0 (!%p17622_p12), %v19990_v32  ;;  %v19994_v34 = vld [vmem:[#allocation16] ss:$16 sps:$4 sm:$0xff] (!%p17622_p12)  }
 0x960   : > { %14700 = vmatprep.subr.bf16.mxu1 (!%p17622_p12), %v19992_v33  ;;  %v20072_v33 = vld [vmem:[#allocation16 + $0x1a0] ss:$16 sps:$4 sm:$0xff] (!%p17622_p12)  }
 0x961   : > { %12835 = vmatmul.mubr.bf16.vlgmr.msra.gmra.mrb[16].mxu0 %v22906_v52  ;;  %v11014_v52 = vld [vmem:[#allocation3 + $0x10] sm:$0xff] }
 0x962   : > { %12876 = vmatmul.mubr.bf16.vlgmr.msra.gmra.mrb[16].mxu1 %v22908_v61  ;;  %14537 = vmatpush1.bf16.msra.mxu0 (!%p17622_p12), %v19994_v34  ;;  %v20073_v34 = vld [vmem:[#allocation16 + $0x1a8] ss:$16 sps:$4 sm:$0xff] (!%p17622_p12)  }
 0x974   : > { %v12590_v35 = vpop.f32.mrb[4].mxu0  ;;  %v12631_v37 = vpop.f32.mrb[4].mxu1 }
 0x975   : > { %v12632_v38 = vadd.f32 %v12631_v37, %v12590_v35  ;;  %v12592_v39 = vpop.f32.mrb[5].mxu0  ;;  %v12633_v42 = vpop.f32.mrb[5].mxu1  ;;  %v19995_v35 = vld [vmem:[#allocation16 + $0x8] ss:$16 sps:$4 sm:$0xff] (!%p17622_p12)   ;;  %v19998_v37 = vld [vmem:[#allocation16 + $0x2c] ss:$16 sps:$4 sm:$0xff] (!%p17622_p12)  }
 0x976   : > { %v12634_v44 = vadd.f32 %v12633_v42, %v12592_v39  ;;  %v12594_v45 = vpop.f32.mrb[6].mxu0  ;;  %v12635_v40 = vpop.f32.mrb[6].mxu1  ;;  %14701 = vmatpush1.bf16.msra.mxu1 (!%p17622_p12), %v19995_v35  ;;  %v20001_v39 = vld [vmem:[#allocation16 + $0x28] ss:$16 sps:$4 sm:$0xff] (!%p17622_p12)   ;;  %v20004_v42 = vld [vmem:[#allocation16 + $0x4c] ss:$16 sps:$4 sm:$0xff] (!%p17622_p12)  }
 0x977   : > { %v12884_v53 = vadd.f32 %v12632_v38, %v11012_v36  ;;  %v12595_v12 = vpop.f32.mrb[7].mxu0  ;;  %v12636_v43 = vpop.f32.mrb[7].mxu1  ;;  %v19996_v36 = vld [vmem:[#allocation16 + $0x24] ss:$16 sps:$4 sm:$0xff] (!%p17622_p12)   ;;  %v20000_v38 = vld [vmem:[#allocation16 + $0x20] ss:$16 sps:$4 sm:$0xff] (!%p17622_p12)   ;;  %14702 = vmatprep.subr.bf16.mxu1 (!%p17622_p12), %v19998_v37 }
 0x978   : > { %v12885_v59 = vadd.f32 %v12634_v44, %v11013_v41  ;;  %14538 = vmatprep.subr.bf16.mxu0 (!%p17622_p12), %v19996_v36  ;;  %v20002_v41 = vld [vmem:[#allocation16 + $0x44] ss:$16 sps:$4 sm:$0xff] (!%p17622_p12)   ;;  %v20006_v44 = vld [vmem:[#allocation16 + $0x40] ss:$16 sps:$4 sm:$0xff] (!%p17622_p12)   ;;  %v20007_v45 = vld [vmem:[#allocation16 + $0x48] ss:$16 sps:$4 sm:$0xff] (!%p17622_p12)  }
 0x979   : > { %12892 = vst [vmem:[#allocation3] sm:$0xff] %v12884_v53  ;;  %14539 = vmatpush1.bf16.msra.mxu0 (!%p17622_p12), %v20000_v38  ;;  %v20008_v40 = vld [vmem:[#allocation16 + $0x64] ss:$16 sps:$4 sm:$0xff] (!%p17622_p12)   ;;  %v20010_v53 = vld [vmem:[#allocation16 + $0x6c] ss:$16 sps:$4 sm:$0xff] (!%p17622_p12)  }
 0x97a   : > { %12893 = vst [vmem:[#allocation3 + $0x8] sm:$0xff] %v12885_v59  ;;  %14703 = vmatpush1.bf16.msra.mxu1 (!%p17622_p12), %v20001_v39  ;;  %14540 = vmatprep.subr.bf16.mxu0 (!%p17622_p12), %v20002_v41  ;;  %v20012_v12 = vld [vmem:[#allocation16 + $0x60] ss:$16 sps:$4 sm:$0xff] (!%p17622_p12)   ;;  %v20013_v43 = vld [vmem:[#allocation16 + $0x68] ss:$16 sps:$4 sm:$0xff] (!%p17622_p12)  }
 0x97b   : > { %14704 = vmatprep.subr.bf16.mxu1 (!%p17622_p12), %v20004_v42  ;;  %v20014_v59 = vld [vmem:[#allocation16 + $0x84] ss:$16 sps:$4 sm:$0xff] (!%p17622_p12)   ;;  %v20076_v38 = vld [vmem:[#allocation16 + $0x1cc] ss:$16 sps:$4 sm:$0xff] (!%p17622_p12)   ;;  %v20078_v39 = vld [vmem:[#allocation16 + $0x1c0] ss:$16 sps:$4 sm:$0xff] (!%p17622_p12)  }
 0x97c   : > { %v20074_v36 = vld [vmem:[#allocation16 + $0x1c4] ss:$16 sps:$4 sm:$0xff] (!%p17622_p12)   ;;  %v20079_v42 = vld [vmem:[#allocation16 + $0x1c8] ss:$16 sps:$4 sm:$0xff] (!%p17622_p12)  }
 0x97d   : > { %14541 = vmatpush1.bf16.msra.mxu0 (!%p17622_p12), %v20006_v44  ;;  %v20080_v44 = vld [vmem:[#allocation16 + $0x1e4] ss:$16 sps:$4 sm:$0xff] (!%p17622_p12)  }
 0x97e   : > { %14705 = vmatpush1.bf16.msra.mxu1 (!%p17622_p12), %v20007_v45  ;;  %14542 = vmatprep.subr.bf16.mxu0 (!%p17622_p12), %v20008_v40  ;;  %v20082_v45 = vld [vmem:[#allocation16 + $0x1ec] ss:$16 sps:$4 sm:$0xff] (!%p17622_p12)   ;;  %v20084_v40 = vld [vmem:[#allocation16 + $0x1e0] ss:$16 sps:$4 sm:$0xff] (!%p17622_p12)  }
 0x97f   : > { %14706 = vmatprep.subr.bf16.mxu1 (!%p17622_p12), %v20010_v53 }
 0x980   : > { %v12904_v37 = vld [vmem:[#allocation3] sm:$0xff] (!%p17622_p12) }
 0x981   : > { %14543 = vmatpush1.bf16.msra.mxu0 (!%p17622_p12), %v20012_v12  ;;  %v20085_v12 = vld [vmem:[#allocation16 + $0x1e8] ss:$16 sps:$4 sm:$0xff] (!%p17622_p12)  }
 0x982   : > { %14707 = vmatpush1.bf16.msra.mxu1 (!%p17622_p12), %v20013_v43  ;;  %14544 = vmatprep.subr.bf16.mxu0 (!%p17622_p12), %v20014_v59  ;;  %v20088_v43 = vld [vmem:[#allocation16 + $0x204] ss:$16 sps:$4 sm:$0xff] (!%p17622_p12)   ;;  %v20091_v59 = vld [vmem:[#allocation16 + $0x20c] ss:$16 sps:$4 sm:$0xff] (!%p17622_p12)  }
 0x9b4   : > { %v12672_v9 = vpop.f32.mrb[8].mxu0  ;;  %v12713_v51 = vpop.f32.mrb[8].mxu1 }
 0x9b5   : > { %v12714_v61 = vadd.f32 %v12713_v51, %v12672_v9  ;;  %v12674_v55 = vpop.f32.mrb[9].mxu0  ;;  %v12715_v57 = vpop.f32.mrb[9].mxu1  ;;  %v20016_v9 = vld [vmem:[#allocation16 + $0x8c] ss:$16 sps:$4 sm:$0xff] (!%p17622_p12)   ;;  %v20019_v51 = vld [vmem:[#allocation16 + $0x88] ss:$16 sps:$4 sm:$0xff] (!%p17622_p12)  }
 0x9b6   : > { %v12716_v54 = vadd.f32 %v12715_v57, %v12674_v55  ;;  %v12676_v3 = vpop.f32.mrb[10].mxu0  ;;  %v12717_v4 = vpop.f32.mrb[10].mxu1  ;;  %14708 = vmatprep.subr.bf16.mxu1 (!%p17622_p12), %v20016_v9  ;;  %v20022_v55 = vld [vmem:[#allocation16 + $0xac] ss:$16 sps:$4 sm:$0xff] (!%p17622_p12)   ;;  %v20025_v57 = vld [vmem:[#allocation16 + $0xa8] ss:$16 sps:$4 sm:$0xff] (!%p17622_p12)  }
 0x9b7   : > { %v12886_v56 = vadd.f32 %v12714_v61, %v11014_v52  ;;  %v12677_v5 = vpop.f32.mrb[11].mxu0  ;;  %v12718_v7 = vpop.f32.mrb[11].mxu1  ;;  %v20018_v52 = vld [vmem:[#allocation16 + $0x80] ss:$16 sps:$4 sm:$0xff] (!%p17622_p12)   ;;  %v20020_v61 = vld [vmem:[#allocation16 + $0xa4] ss:$16 sps:$4 sm:$0xff] (!%p17622_p12)   ;;  %14709 = vmatpush1.bf16.msra.mxu1 (!%p17622_p12), %v20019_v51 }
 0x9b8   : > { %v12887_v60 = vadd.f32 %v12716_v54, %v11015_v46  ;;  %v20024_v46 = vld [vmem:[#allocation16 + $0xa0] ss:$16 sps:$4 sm:$0xff] (!%p17622_p12)   ;;  %14545 = vmatpush1.bf16.msra.mxu0 (!%p17622_p12), %v20018_v52  ;;  %v20026_v54 = vld [vmem:[#allocation16 + $0xc4] ss:$16 sps:$4 sm:$0xff] (!%p17622_p12)   ;;  %14710 = vmatprep.subr.bf16.mxu1 (!%p17622_p12), %v20022_v55  ;;  %v20028_v3 = vld [vmem:[#allocation16 + $0xcc] ss:$16 sps:$4 sm:$0xff] (!%p17622_p12)  }
 0x9b9   : > { %12894 = vst [vmem:[#allocation3 + $0x10] sm:$0xff] %v12886_v56  ;;  %14546 = vmatprep.subr.bf16.mxu0 (!%p17622_p12), %v20020_v61  ;;  %v20030_v4 = vld [vmem:[#allocation16 + $0xc0] ss:$16 sps:$4 sm:$0xff] (!%p17622_p12)   ;;  %v20031_v56 = vld [vmem:[#allocation16 + $0xc8] ss:$16 sps:$4 sm:$0xff] (!%p17622_p12)  }
 0x9ba   : > { %12895 = vst [vmem:[#allocation3 + $0x18] sm:$0xff] %v12887_v60  ;;  %v20032_v5 = vld [vmem:[#allocation16 + $0xe4] ss:$16 sps:$4 sm:$0xff] (!%p17622_p12)   ;;  %v20034_v7 = vld [vmem:[#allocation16 + $0xec] ss:$16 sps:$4 sm:$0xff] (!%p17622_p12)  }
 0x9bb   : > { %14711 = vmatpush1.bf16.msra.mxu1 (!%p17622_p12), %v20025_v57  ;;  %v20036_v60 = vld [vmem:[#allocation16 + $0xe0] ss:$16 sps:$4 sm:$0xff] (!%p17622_p12)   ;;  %v20089_v51 = vld [vmem:[#allocation16 + $0x208] ss:$16 sps:$4 sm:$0xff] (!%p17622_p12)   ;;  %v20094_v61 = vld [vmem:[#allocation16 + $0x224] ss:$16 sps:$4 sm:$0xff] (!%p17622_p12)  }
 0x9bc   : > { %14547 = vmatpush1.bf16.msra.mxu0 (!%p17622_p12), %v20024_v46  ;;  %14712 = vmatprep.subr.bf16.mxu1 (!%p17622_p12), %v20028_v3  ;;  %v20086_v9 = vld [vmem:[#allocation16 + $0x200] ss:$16 sps:$4 sm:$0xff] (!%p17622_p12)   ;;  %v20097_v55 = vld [vmem:[#allocation16 + $0x22c] ss:$16 sps:$4 sm:$0xff] (!%p17622_p12)   ;;  %v20095_v57 = vld [vmem:[#allocation16 + $0x228] ss:$16 sps:$4 sm:$0xff] (!%p17622_p12)  }
 0x9bd   : > { %14548 = vmatprep.subr.bf16.mxu0 (!%p17622_p12), %v20026_v54  ;;  %v20092_v46 = vld [vmem:[#allocation16 + $0x220] ss:$16 sps:$4 sm:$0xff] (!%p17622_p12)   ;;  %v20100_v54 = vld [vmem:[#allocation16 + $0x244] ss:$16 sps:$4 sm:$0xff] (!%p17622_p12)   ;;  %v20103_v3 = vld [vmem:[#allocation16 + $0x24c] ss:$16 sps:$4 sm:$0xff] (!%p17622_p12)  }
 0x9bf   : > { %14713 = vmatpush1.bf16.msra.mxu1 (!%p17622_p12), %v20031_v56  ;;  %v20101_v56 = vld [vmem:[#allocation16 + $0x248] ss:$16 sps:$4 sm:$0xff] (!%p17622_p12)  }
 0x9c0   : > { %14549 = vmatpush1.bf16.msra.mxu0 (!%p17622_p12), %v20030_v4  ;;  %14714 = vmatprep.subr.bf16.mxu1 (!%p17622_p12), %v20034_v7  ;;  %v20098_v4 = vld [vmem:[#allocation16 + $0x240] ss:$16 sps:$4 sm:$0xff] (!%p17622_p12)   ;;  %v20109_v7 = vld [vmem:[#allocation16 + $0x26c] ss:$16 sps:$4 sm:$0xff] (!%p17622_p12)  }
 0x9c1   : > { %14550 = vmatprep.subr.bf16.mxu0 (!%p17622_p12), %v20032_v5  ;;  %v20106_v5 = vld [vmem:[#allocation16 + $0x264] ss:$16 sps:$4 sm:$0xff] (!%p17622_p12)  }
 0x9c4   : > { %14551 = vmatpush1.bf16.msra.mxu0 (!%p17622_p12), %v20036_v60  ;;  %v20104_v60 = vld [vmem:[#allocation16 + $0x260] ss:$16 sps:$4 sm:$0xff] (!%p17622_p12)  }
 0x9f4   : > { %v12754_v8 = vpop.f32.mrb[12].mxu0 }
 0x9f5   : > { %v12795_v1 = vpop.f32.mrb[12].mxu1  ;;  %v12756_v63 = vpop.f32.mrb[13].mxu0 }
 0x9f6   : > { %v12796_v0 = vadd.f32 %v12795_v1, %v12754_v8  ;;  %v12797_v2 = vpop.f32.mrb[13].mxu1  ;;  %v12758_v62 = vpop.f32.mrb[14].mxu0  ;;  %v20037_v8 = vld [vmem:[#allocation16 + $0xe8] ss:$16 sps:$4 sm:$0xff] (!%p17622_p12)   ;;  %v20040_v1 = vld [vmem:[#allocation16 + $0x10c] ss:$16 sps:$4 sm:$0xff] (!%p17622_p12)  }
 0x9f7   : > { %v12798_v58 = vadd.f32 %v12797_v2, %v12756_v63  ;;  %v12799_v14 = vpop.f32.mrb[14].mxu1  ;;  %v12759_v16 = vpop.f32.mrb[15].mxu0  ;;  %v20042_v63 = vld [vmem:[#allocation16 + $0x100] ss:$16 sps:$4 sm:$0xff] (!%p17622_p12)   ;;  %14715 = vmatpush1.bf16.msra.mxu1 (!%p17622_p12), %v20037_v8  ;;  %v20046_v2 = vld [vmem:[#allocation16 + $0x12c] ss:$16 sps:$4 sm:$0xff] (!%p17622_p12)  }
 0x9f8   : > { %v12888_v11 = vadd.f32 %v12796_v0, %v11016_v10  ;;  %v12800_v17 = vpop.f32.mrb[15].mxu1  ;;  %v20038_v10 = vld [vmem:[#allocation16 + $0x104] ss:$16 sps:$4 sm:$0xff] (!%p17622_p12)   ;;  %v20043_v0 = vld [vmem:[#allocation16 + $0x108] ss:$16 sps:$4 sm:$0xff] (!%p17622_p12)   ;;  %14716 = vmatprep.subr.bf16.mxu1 (!%p17622_p12), %v20040_v1 }
 0x9f9   : > { %v12889_v19 = vadd.f32 %v12798_v58, %v11017_v6  ;;  %v20044_v6 = vld [vmem:[#allocation16 + $0x124] ss:$16 sps:$4 sm:$0xff] (!%p17622_p12)   ;;  %14552 = vmatprep.subr.bf16.mxu0 (!%p17622_p12), %v20038_v10  ;;  %v20048_v62 = vld [vmem:[#allocation16 + $0x120] ss:$16 sps:$4 sm:$0xff] (!%p17622_p12)   ;;  %v20049_v58 = vld [vmem:[#allocation16 + $0x128] ss:$16 sps:$4 sm:$0xff] (!%p17622_p12)  }
 0x9fa   : > { %12896 = vst [vmem:[#allocation3 + $0x20] sm:$0xff] %v12888_v11  ;;  %14553 = vmatpush1.bf16.msra.mxu0 (!%p17622_p12), %v20042_v63  ;;  %v20050_v14 = vld [vmem:[#allocation16 + $0x144] ss:$16 sps:$4 sm:$0xff] (!%p17622_p12)   ;;  %v20052_v16 = vld [vmem:[#allocation16 + $0x14c] ss:$16 sps:$4 sm:$0xff] (!%p17622_p12)  }
 0x9fb   : > { %12897 = vst [vmem:[#allocation3 + $0x28] sm:$0xff] %v12889_v19  ;;  %14717 = vmatpush1.bf16.msra.mxu1 (!%p17622_p12), %v20043_v0  ;;  %14554 = vmatprep.subr.bf16.mxu0 (!%p17622_p12), %v20044_v6  ;;  %v20054_v11 = vld [vmem:[#allocation16 + $0x140] ss:$16 sps:$4 sm:$0xff] (!%p17622_p12)   ;;  %v20055_v17 = vld [vmem:[#allocation16 + $0x148] ss:$16 sps:$4 sm:$0xff] (!%p17622_p12)  }
 0x9fc   : > { %14718 = vmatprep.subr.bf16.mxu1 (!%p17622_p12), %v20046_v2  ;;  %v20056_v19 = vld [vmem:[#allocation16 + $0x164] ss:$16 sps:$4 sm:$0xff] (!%p17622_p12)   ;;  %v20107_v8 = vld [vmem:[#allocation16 + $0x268] ss:$16 sps:$4 sm:$0xff] (!%p17622_p12)   ;;  %v20115_v1 = vld [vmem:[#allocation16 + $0x28c] ss:$16 sps:$4 sm:$0xff] (!%p17622_p12)  }
 0x9fd   : > { %v20112_v10 = vld [vmem:[#allocation16 + $0x284] ss:$16 sps:$4 sm:$0xff] (!%p17622_p12)   ;;  %v20110_v63 = vld [vmem:[#allocation16 + $0x280] ss:$16 sps:$4 sm:$0xff] (!%p17622_p12)   ;;  %v20113_v0 = vld [vmem:[#allocation16 + $0x288] ss:$16 sps:$4 sm:$0xff] (!%p17622_p12)  }
 0x9fe   : > { %14555 = vmatpush1.bf16.msra.mxu0 (!%p17622_p12), %v20048_v62  ;;  %v20118_v6 = vld [vmem:[#allocation16 + $0x2a4] ss:$16 sps:$4 sm:$0xff] (!%p17622_p12)   ;;  %v20121_v2 = vld [vmem:[#allocation16 + $0x2ac] ss:$16 sps:$4 sm:$0xff] (!%p17622_p12)   ;;  %v20116_v62 = vld [vmem:[#allocation16 + $0x2a0] ss:$16 sps:$4 sm:$0xff] (!%p17622_p12)  }
 0x9ff   : > { %14719 = vmatpush1.bf16.msra.mxu1 (!%p17622_p12), %v20049_v58  ;;  %14556 = vmatprep.subr.bf16.mxu0 (!%p17622_p12), %v20050_v14  ;;  %v20119_v14 = vld [vmem:[#allocation16 + $0x2a8] ss:$16 sps:$4 sm:$0xff] (!%p17622_p12)  }
 0xa00   : > { %14720 = vmatprep.subr.bf16.mxu1 (!%p17622_p12), %v20052_v16  ;;  %v20124_v16 = vld [vmem:[#allocation16 + $0x2c4] ss:$16 sps:$4 sm:$0xff] (!%p17622_p12)  }
 0xa02   : > { %14557 = vmatpush1.bf16.msra.mxu0 (!%p17622_p12), %v20054_v11  ;;  %v20127_v11 = vld [vmem:[#allocation16 + $0x2cc] ss:$16 sps:$4 sm:$0xff] (!%p17622_p12)  }
 0xa03   : > { %14721 = vmatpush1.bf16.msra.mxu1 (!%p17622_p12), %v20055_v17  ;;  %14558 = vmatprep.subr.bf16.mxu0 (!%p17622_p12), %v20056_v19  ;;  %v12907_v17 = vld [vmem:[#allocation3 + $0x18] sm:$0xff] (!%p17622_p12) }
 0xa04   : > { %v20122_v19 = vld [vmem:[#allocation16 + $0x2c0] ss:$16 sps:$4 sm:$0xff] (!%p17622_p12)  }
 0xa34   : > { %v12836_v13 = vpop.f32.mrb[16].mxu0 }
 0xa35   : > { %v12877_v21 = vpop.f32.mrb[16].mxu1  ;;  %v12838_v22 = vpop.f32.mrb[17].mxu0  ;;  %12903 = sbr.rel (%p17622_p12) target bundleno = 4203 (0x106b), region = 164 }
 0xa36   : > { %v12878_v15 = vadd.f32 %v12877_v21, %v12836_v13  ;;  %v12879_v24 = vpop.f32.mrb[17].mxu1  ;;  %v12840_v25 = vpop.f32.mrb[18].mxu0  ;;  %v20058_v13 = vld [vmem:[#allocation16 + $0x16c] ss:$16 sps:$4 sm:$0xff] (!%p17622_p12)  }
 0xa37   : > { %v12880_v26 = vadd.f32 %v12879_v24, %v12838_v22  ;;  %v12881_v48 = vpop.f32.mrb[18].mxu1  ;;  %v12841_v50 = vpop.f32.mrb[19].mxu0  ;;  %v23111_v21 = vld [vmem:[#allocation15] sm:$0xff] (!%p17622_p12)  ;;  %v20060_v22 = vld [vmem:[#allocation16 + $0x160] ss:$16 sps:$4 sm:$0xff] (!%p17622_p12)   ;;  %14722 = vmatprep.subr.bf16.mxu1 (!%p17622_p12), %v20058_v13 }
 0xa38   : > { %v12890_v30 = vadd.f32 %v12878_v15, %v11018_v20  ;;  %v12882_v31 = vpop.f32.mrb[19].mxu1  ;;  %v12905_v20 = vld [vmem:[#allocation3 + $0x8] sm:$0xff] (!%p17622_p12)  ;;  %v20061_v15 = vld [vmem:[#allocation16 + $0x168] ss:$16 sps:$4 sm:$0xff] (!%p17622_p12)   ;;  %14559 = vmatpush1.bf16.msra.mxu0 (!%p17622_p12), %v20060_v22  ;;  %v12917_v35 = vrot.slane (!%p17622_p12), %v23111_v21, %v22882_v47  ;;  %v12929_v58 = vrot.slane (!%p17622_p12), %v23111_v21, %v22892_v49 }
 0xa39   : > { %v12891_v18 = vadd.f32 %v12880_v26, %v11019_v23  ;;  %v12921_v23 = vrot.slane (!%p17622_p12), %v23111_v21, %v22889_v29  ;;  %v20062_v24 = vld [vmem:[#allocation16 + $0x184] ss:$16 sps:$4 sm:$0xff] (!%p17622_p12)   ;;  %v20064_v25 = vld [vmem:[#allocation16 + $0x18c] ss:$16 sps:$4 sm:$0xff] (!%p17622_p12)   ;;  %v20066_v48 = vld [vmem:[#allocation16 + $0x180] ss:$16 sps:$4 sm:$0xff] (!%p17622_p12)   ;;  %14723 = vmatpush1.bf16.msra.mxu1 (!%p17622_p12), %v20061_v15 }
 0xa3a   : > { %12898 = vst [vmem:[#allocation3 + $0x30] sm:$0xff] %v12890_v30  ;;  %v20067_v50 = vld [vmem:[#allocation16 + $0x188] ss:$16 sps:$4 sm:$0xff] (!%p17622_p12)   ;;  %v20068_v30 = vld [vmem:[#allocation16 + $0x1a4] ss:$16 sps:$4 sm:$0xff] (!%p17622_p12)   ;;  %14560 = vmatprep.subr.bf16.mxu0 (!%p17622_p12), %v20062_v24  ;;  %14724 = vmatprep.subr.bf16.mxu1 (!%p17622_p12), %v20064_v25  ;;  %v12954_v41 = vadd.f32 (!%p17622_p12), %v12917_v35, %v12904_v37  ;;  %v12957_v13 = vadd.f32 (!%p17622_p12), %v12929_v58, %v12907_v17 }
 0xa3b   : > { %12899 = vst [vmem:[#allocation3 + $0x38] sm:$0xff] %v12891_v18  ;;  %v12955_v26 = vadd.f32 (!%p17622_p12), %v12921_v23, %v12905_v20  ;;  %v20070_v18 = vld [vmem:[#allocation16 + $0x1ac] ss:$16 sps:$4 sm:$0xff] (!%p17622_p12)   ;;  %v20125_v20 = vld [vmem:[#allocation16 + $0x2c8] ss:$16 sps:$4 sm:$0xff] (!%p17622_p12)  }
 0xa3c   : > { %14561 = vmatpush1.bf16.msra.mxu0 %v20066_v48  ;;  %v12962_v53 = vmax.f32 %v12954_v41, 0.0  ;;  %v20130_v22 = vld [vmem:[#allocation16 + $0x2e4] ss:$16 sps:$4 sm:$0xff]   ;;  %v20133_v15 = vld [vmem:[#allocation16 + $0x2ec] ss:$16 sps:$4 sm:$0xff]   ;;  %v12965_v23 = vmax.f32 %v12957_v13, 0.0 }
 0xa3d   : > { %v12963_v31 = vmax.f32 %v12955_v26, 0.0  ;;  %14725 = vmatpush1.bf16.msra.mxu1 %v20067_v50  ;;  %14562 = vmatprep.subr.bf16.mxu0 %v20068_v30  ;;  %v20128_v24 = vld [vmem:[#allocation16 + $0x2e0] ss:$16 sps:$4 sm:$0xff]   ;;  %v20131_v26 = vld [vmem:[#allocation16 + $0x2e8] ss:$16 sps:$4 sm:$0xff]  }
 0xa3e   : > { %14726 = vmatprep.subr.bf16.mxu1 %v20070_v18  ;;  %v12970_v52 = vpack.c.bf16 %v12962_v53, %v12962_v53  ;;  %v12973_v25 = vpack.c.bf16 %v12965_v23, %v12965_v23  ;;  %v20136_v48 = vld [vmem:[#allocation16 + $0x304] ss:$16 sps:$4 sm:$0xff]   ;;  %v20139_v50 = vld [vmem:[#allocation16 + $0x30c] ss:$16 sps:$4 sm:$0xff]   ;;  %v20134_v30 = vld [vmem:[#allocation16 + $0x300] ss:$16 sps:$4 sm:$0xff]  }
 0xa3f   : > { %v12971_v32 = vpack.c.bf16 %v12963_v31, %v12963_v31  ;;  %v20137_v31 = vld [vmem:[#allocation16 + $0x308] ss:$16 sps:$4 sm:$0xff]   ;;  %v20142_v18 = vld [vmem:[#allocation16 + $0x324] ss:$16 sps:$4 sm:$0xff]   ;;  %v20146_v37 = vld [vmem:[#allocation16 + $0x340] ss:$16 sps:$4 sm:$0xff]  }
 0xa40   : > { %14563 = vmatpush1.bf16.msra.mxu0 %v20072_v33  ;;  %v20140_v33 = vld [vmem:[#allocation16 + $0x320] ss:$16 sps:$4 sm:$0xff]   ;;  %v20148_v35 = vld [vmem:[#allocation16 + $0x344] ss:$16 sps:$4 sm:$0xff]   ;;  %v20157_v41 = vld [vmem:[#allocation16 + $0x36c] ss:$16 sps:$4 sm:$0xff]  }
 0xa41   : > { %14568 = vmatprep.mubr.bf16.mxu0 %v12971_v32  ;;  %14732 = vmatprep.mubr.bf16.mxu1 %v12971_v32  ;;  %v20145_v32 = vld [vmem:[#allocation16 + $0x32c] ss:$16 sps:$4 sm:$0xff]   ;;  %v20158_v53 = vld [vmem:[#allocation16 + $0x380] ss:$16 sps:$4 sm:$0xff]   ;;  %v20191_v17 = vld [vmem:[#allocation16 + $0x428] ss:$16 sps:$4 sm:$0xff]  }
 0xa42   : > { %14727 = vmatpush1.bf16.msra.mxu1 %v20073_v34  ;;  %14564 = vmatprep.subr.bf16.mxu0 %v20074_v36  ;;  %v20143_v34 = vld [vmem:[#allocation16 + $0x328] ss:$16 sps:$4 sm:$0xff]   ;;  %v20151_v36 = vld [vmem:[#allocation16 + $0x34c] ss:$16 sps:$4 sm:$0xff]   ;;  %v20202_v23 = vld [vmem:[#allocation16 + $0x464] ss:$16 sps:$4 sm:$0xff]  }
 0xa43   : > { %14728 = vmatprep.subr.bf16.mxu1 %v20076_v38  ;;  %v20149_v38 = vld [vmem:[#allocation16 + $0x348] ss:$16 sps:$4 sm:$0xff]   ;;  %v20193_v58 = vld [vmem:[#allocation16 + $0x42c] ss:$16 sps:$4 sm:$0xff]  }
 0xa44   : > { %14565 = vmatpush1.bf16.msra.mxu0 %v20078_v39  ;;  %v20154_v39 = vld [vmem:[#allocation16 + $0x364] ss:$16 sps:$4 sm:$0xff]  }
 0xa45   : > { %14566 = vmatprep.subr.bf16.mxu0 %v20080_v44  ;;  %v20155_v44 = vld [vmem:[#allocation16 + $0x368] ss:$16 sps:$4 sm:$0xff]  }
 0xa46   : > { %14729 = vmatpush1.bf16.msra.mxu1 %v20079_v42  ;;  %v20152_v42 = vld [vmem:[#allocation16 + $0x360] ss:$16 sps:$4 sm:$0xff]  }
 0xa47   : > { %14730 = vmatprep.subr.bf16.mxu1 %v20082_v45  ;;  %v20160_v45 = vld [vmem:[#allocation16 + $0x384] ss:$16 sps:$4 sm:$0xff]  }
 0xa48   : > { %14567 = vmatpush1.bf16.msra.mxu0 %v20084_v40  ;;  %v20163_v40 = vld [vmem:[#allocation16 + $0x38c] ss:$16 sps:$4 sm:$0xff]  }
 0xa49   : > { %14577 = vmatprep.subr.bf16.mxu0 %v20088_v43  ;;  %v20166_v43 = vld [vmem:[#allocation16 + $0x3a4] ss:$16 sps:$4 sm:$0xff]  }
 0xa4a   : > { %14731 = vmatpush1.bf16.msra.mxu1 %v20085_v12  ;;  %v20161_v12 = vld [vmem:[#allocation16 + $0x388] ss:$16 sps:$4 sm:$0xff]  }
 0xa4b   : > { %14741 = vmatprep.subr.bf16.mxu1 %v20091_v59  ;;  %14569 = vmatmul.mubr.bf16.vlgmr.msra.gmra.mrb[0].mxu0 %v12970_v52  ;;  %v20169_v59 = vld [vmem:[#allocation16 + $0x3ac] ss:$16 sps:$4 sm:$0xff]  }
 0xa4c   : > { %14578 = vmatpush1.bf16.msra.mxu0 %v20086_v9  ;;  %14609 = vmatprep.mubr.bf16.mxu0 %v12973_v25  ;;  %v20164_v9 = vld [vmem:[#allocation16 + $0x3a0] ss:$16 sps:$4 sm:$0xff]  }
 0xa4d   : > { %14733 = vmatmul.mubr.bf16.vlgmr.msra.gmra.mrb[0].mxu1 %v12970_v52  ;;  %14579 = vmatprep.subr.bf16.mxu0 %v20094_v61  ;;  %v20167_v52 = vld [vmem:[#allocation16 + $0x3a8] ss:$16 sps:$4 sm:$0xff]  }
 0xa4e   : > { %14742 = vmatpush1.bf16.msra.mxu1 %v20089_v51  ;;  %14773 = vmatprep.mubr.bf16.mxu1 %v12973_v25  ;;  %v12925_v51 = vrot.slane %v23111_v21, %v22885_v28  ;;  %v12906_v61 = vld [vmem:[#allocation3 + $0x10] sm:$0xff]  ;;  %v20200_v25 = vld [vmem:[#allocation16 + $0x460] ss:$16 sps:$4 sm:$0xff]  }
 0xa4f   : > { %14743 = vmatprep.subr.bf16.mxu1 %v20097_v55  ;;  %v20172_v55 = vld [vmem:[#allocation16 + $0x3c4] ss:$16 sps:$4 sm:$0xff]  }
 0xa50   : > { %14580 = vmatpush1.bf16.msra.mxu0 %v20092_v46  ;;  %v20175_v46 = vld [vmem:[#allocation16 + $0x3cc] ss:$16 sps:$4 sm:$0xff]  }
 0xa51   : > { %14581 = vmatprep.subr.bf16.mxu0 %v20100_v54  ;;  %v12956_v54 = vadd.f32 %v12925_v51, %v12906_v61  ;;  %v20244_v51 = vld [vmem:[#allocation16 + $0x544] ss:$16 sps:$4 sm:$0xff]   ;;  %v20247_v61 = vld [vmem:[#allocation16 + $0x54c] ss:$16 sps:$4 sm:$0xff]  }
 0xa52   : > { %14744 = vmatpush1.bf16.msra.mxu1 %v20095_v57  ;;  %v20170_v57 = vld [vmem:[#allocation16 + $0x3c0] ss:$16 sps:$4 sm:$0xff]  }
 0xa53   : > { %14745 = vmatprep.subr.bf16.mxu1 %v20103_v3  ;;  %v20173_v3 = vld [vmem:[#allocation16 + $0x3c8] ss:$16 sps:$4 sm:$0xff]  }
 0xa54   : > { %14582 = vmatpush1.bf16.msra.mxu0 %v20098_v4  ;;  %v20178_v4 = vld [vmem:[#allocation16 + $0x3e4] ss:$16 sps:$4 sm:$0xff]  }
 0xa55   : > { %14583 = vmatprep.subr.bf16.mxu0 %v20106_v5  ;;  %v12936_v5 = vsub.s32 5, %v22879_v27 }
 0xa56   : > { %14746 = vmatpush1.bf16.msra.mxu1 %v20101_v56  ;;  %v20181_v56 = vld [vmem:[#allocation16 + $0x3ec] ss:$16 sps:$4 sm:$0xff]  }
 0xa57   : > { %14747 = vmatprep.subr.bf16.mxu1 %v20109_v7  ;;  %v20176_v7 = vld [vmem:[#allocation16 + $0x3e0] ss:$16 sps:$4 sm:$0xff]  }
 0xa58   : > { %14584 = vmatpush1.bf16.msra.mxu0 %v20104_v60  ;;  %v12964_v60 = vmax.f32 %v12956_v54, 0.0  ;;  %v20253_v54 = vld [vmem:[#allocation16 + $0x56c] ss:$16 sps:$4 sm:$0xff]  }
 0xa59   : > { %14585 = vmatprep.subr.bf16.mxu0 %v20112_v10  ;;  %v20184_v10 = vld [vmem:[#allocation16 + $0x404] ss:$16 sps:$4 sm:$0xff]  }
 0xa5a   : > { %14748 = vmatpush1.bf16.msra.mxu1 %v20107_v8  ;;  %v20179_v8 = vld [vmem:[#allocation16 + $0x3e8] ss:$16 sps:$4 sm:$0xff]  }
 0xa5b   : > { %14749 = vmatprep.subr.bf16.mxu1 %v20115_v1  ;;  %v20187_v1 = vld [vmem:[#allocation16 + $0x40c] ss:$16 sps:$4 sm:$0xff]  }
 0xa5c   : > { %14586 = vmatpush1.bf16.msra.mxu0 %v20110_v63  ;;  %v12937_v63 = vrot.slane %v23111_v21, %v12936_v5  ;;  %v20199_v21 = vld [vmem:[#allocation16 + $0x44c] ss:$16 sps:$4 sm:$0xff]  }
 0xa5d   : > { %14587 = vmatprep.subr.bf16.mxu0 %v20118_v6  ;;  %v12972_v6 = vpack.c.bf16 %v12964_v60, %v12964_v60  ;;  %v20259_v5 = vld [vmem:[#allocation16 + $0x58c] ss:$16 sps:$4 sm:$0xff]   ;;  %v12932_v60 = vsub.s32 4, %v22879_v27 }
 0xa5e   : > { %14750 = vmatpush1.bf16.msra.mxu1 %v20113_v0  ;;  %v20182_v0 = vld [vmem:[#allocation16 + $0x400] ss:$16 sps:$4 sm:$0xff]  }
 0xa5f   : > { %14751 = vmatprep.subr.bf16.mxu1 %v20121_v2  ;;  %v20185_v2 = vld [vmem:[#allocation16 + $0x408] ss:$16 sps:$4 sm:$0xff]  }
 0xa60   : > { %14588 = vmatpush1.bf16.msra.mxu0 %v20116_v62  ;;  %v20190_v62 = vld [vmem:[#allocation16 + $0x424] ss:$16 sps:$4 sm:$0xff]  }
 0xa61   : > { %14589 = vmatprep.subr.bf16.mxu0 %v20124_v16 }
 0xa62   : > { %14752 = vmatpush1.bf16.msra.mxu1 %v20119_v14  ;;  %v12909_v14 = vld [vmem:[#allocation3 + $0x28] sm:$0xff] }
 0xa63   : > { %14753 = vmatprep.subr.bf16.mxu1 %v20127_v11  ;;  %v12959_v16 = vadd.f32 %v12937_v63, %v12909_v14  ;;  %v20188_v11 = vld [vmem:[#allocation16 + $0x420] ss:$16 sps:$4 sm:$0xff]   ;;  %v20268_v14 = vld [vmem:[#allocation16 + $0x5c4] ss:$16 sps:$4 sm:$0xff]  }
 0xa64   : > { %14590 = vmatpush1.bf16.msra.mxu0 %v20122_v19  ;;  %v20196_v19 = vld [vmem:[#allocation16 + $0x444] ss:$16 sps:$4 sm:$0xff]   ;;  %v20260_v63 = vld [vmem:[#allocation16 + $0x5a0] ss:$16 sps:$4 sm:$0xff]  }
 0xa65   : > { %14591 = vmatprep.subr.bf16.mxu0 %v20130_v22  ;;  %v12967_v13 = vmax.f32 %v12959_v16, 0.0  ;;  %v20194_v22 = vld [vmem:[#allocation16 + $0x440] ss:$16 sps:$4 sm:$0xff]   ;;  %v20271_v16 = vld [vmem:[#allocation16 + $0x5cc] ss:$16 sps:$4 sm:$0xff]  }
 0xa66   : > { %14754 = vmatpush1.bf16.msra.mxu1 %v20125_v20 }
 0xa67   : > { %14755 = vmatprep.subr.bf16.mxu1 %v20133_v15  ;;  %v12975_v20 = vpack.c.bf16 %v12967_v13, %v12967_v13  ;;  %v20197_v15 = vld [vmem:[#allocation16 + $0x448] ss:$16 sps:$4 sm:$0xff]   ;;  %v12911_v13 = vld [vmem:[#allocation3 + $0x38] sm:$0xff] }
 0xa68   : > { %14592 = vmatpush1.bf16.msra.mxu0 %v20128_v24  ;;  %v20205_v24 = vld [vmem:[#allocation16 + $0x46c] ss:$16 sps:$4 sm:$0xff]  }
 0xa69   : > { %14593 = vmatprep.subr.bf16.mxu0 %v20136_v48  ;;  %v20208_v48 = vld [vmem:[#allocation16 + $0x484] ss:$16 sps:$4 sm:$0xff]  }
 0xa6a   : > { %14756 = vmatpush1.bf16.msra.mxu1 %v20131_v26  ;;  %v20203_v26 = vld [vmem:[#allocation16 + $0x468] ss:$16 sps:$4 sm:$0xff]  }
 0xa6b   : > { %14757 = vmatprep.subr.bf16.mxu1 %v20139_v50  ;;  %v20211_v50 = vld [vmem:[#allocation16 + $0x48c] ss:$16 sps:$4 sm:$0xff]  }
 0xa6c   : > { %14594 = vmatpush1.bf16.msra.mxu0 %v20134_v30  ;;  %v20206_v30 = vld [vmem:[#allocation16 + $0x480] ss:$16 sps:$4 sm:$0xff]  }
 0xa6d   : > { %14595 = vmatprep.subr.bf16.mxu0 %v20142_v18  ;;  %v20214_v18 = vld [vmem:[#allocation16 + $0x4a4] ss:$16 sps:$4 sm:$0xff]  }
 0xa6e   : > { %14758 = vmatpush1.bf16.msra.mxu1 %v20137_v31  ;;  %v20209_v31 = vld [vmem:[#allocation16 + $0x488] ss:$16 sps:$4 sm:$0xff]  }
 0xa6f   : > { %14759 = vmatprep.subr.bf16.mxu1 %v20145_v32  ;;  %v20217_v32 = vld [vmem:[#allocation16 + $0x4ac] ss:$16 sps:$4 sm:$0xff]  }
 0xa70   : > { %14596 = vmatpush1.bf16.msra.mxu0 %v20140_v33  ;;  %v20212_v33 = vld [vmem:[#allocation16 + $0x4a0] ss:$16 sps:$4 sm:$0xff]  }
 0xa71   : > { %14597 = vmatprep.subr.bf16.mxu0 %v20148_v35  ;;  %v20220_v35 = vld [vmem:[#allocation16 + $0x4c4] ss:$16 sps:$4 sm:$0xff]  }
 0xa72   : > { %14760 = vmatpush1.bf16.msra.mxu1 %v20143_v34  ;;  %v20215_v34 = vld [vmem:[#allocation16 + $0x4a8] ss:$16 sps:$4 sm:$0xff]  }
 0xa73   : > { %14761 = vmatprep.subr.bf16.mxu1 %v20151_v36  ;;  %v20223_v36 = vld [vmem:[#allocation16 + $0x4cc] ss:$16 sps:$4 sm:$0xff]  }
 0xa74   : > { %14598 = vmatpush1.bf16.msra.mxu0 %v20146_v37  ;;  %v20218_v37 = vld [vmem:[#allocation16 + $0x4c0] ss:$16 sps:$4 sm:$0xff]  }
 0xa75   : > { %14599 = vmatprep.subr.bf16.mxu0 %v20154_v39  ;;  %v20226_v39 = vld [vmem:[#allocation16 + $0x4e4] ss:$16 sps:$4 sm:$0xff]  }
 0xa76   : > { %14762 = vmatpush1.bf16.msra.mxu1 %v20149_v38  ;;  %v20221_v38 = vld [vmem:[#allocation16 + $0x4c8] ss:$16 sps:$4 sm:$0xff]  }
 0xa77   : > { %14763 = vmatprep.subr.bf16.mxu1 %v20157_v41  ;;  %v20229_v41 = vld [vmem:[#allocation16 + $0x4ec] ss:$16 sps:$4 sm:$0xff]  }
 0xa78   : > { %14600 = vmatpush1.bf16.msra.mxu0 %v20152_v42  ;;  %v20224_v42 = vld [vmem:[#allocation16 + $0x4e0] ss:$16 sps:$4 sm:$0xff]  }
 0xa79   : > { %14601 = vmatprep.subr.bf16.mxu0 %v20160_v45  ;;  %v20232_v45 = vld [vmem:[#allocation16 + $0x504] ss:$16 sps:$4 sm:$0xff]  }
 0xa7a   : > { %14764 = vmatpush1.bf16.msra.mxu1 %v20155_v44  ;;  %v20227_v44 = vld [vmem:[#allocation16 + $0x4e8] ss:$16 sps:$4 sm:$0xff]  }
 0xa7b   : > { %14765 = vmatprep.subr.bf16.mxu1 %v20163_v40  ;;  %v20235_v40 = vld [vmem:[#allocation16 + $0x50c] ss:$16 sps:$4 sm:$0xff]  }
 0xa7c   : > { %14602 = vmatpush1.bf16.msra.mxu0 %v20158_v53  ;;  %v20230_v53 = vld [vmem:[#allocation16 + $0x500] ss:$16 sps:$4 sm:$0xff]  }
 0xa7d   : > { %14603 = vmatprep.subr.bf16.mxu0 %v20166_v43  ;;  %v20238_v43 = vld [vmem:[#allocation16 + $0x524] ss:$16 sps:$4 sm:$0xff]  }
 0xa7e   : > { %14766 = vmatpush1.bf16.msra.mxu1 %v20161_v12  ;;  %v20233_v12 = vld [vmem:[#allocation16 + $0x508] ss:$16 sps:$4 sm:$0xff]  }
 0xa7f   : > { %14767 = vmatprep.subr.bf16.mxu1 %v20169_v59  ;;  %v20241_v59 = vld [vmem:[#allocation16 + $0x52c] ss:$16 sps:$4 sm:$0xff]  }
 0xa80   : > { %14604 = vmatpush1.bf16.msra.mxu0 %v20164_v9  ;;  %v20236_v9 = vld [vmem:[#allocation16 + $0x520] ss:$16 sps:$4 sm:$0xff]  }
 0xa81   : > { %14605 = vmatprep.subr.bf16.mxu0 %v20172_v55  ;;  %v20242_v55 = vld [vmem:[#allocation16 + $0x540] ss:$16 sps:$4 sm:$0xff]  }
 0xa82   : > { %14768 = vmatpush1.bf16.msra.mxu1 %v20167_v52  ;;  %v20239_v52 = vld [vmem:[#allocation16 + $0x528] ss:$16 sps:$4 sm:$0xff]  }
 0xa83   : > { %14769 = vmatprep.subr.bf16.mxu1 %v20175_v46  ;;  %v20245_v46 = vld [vmem:[#allocation16 + $0x548] ss:$16 sps:$4 sm:$0xff]  }
 0xa84   : > { %14606 = vmatpush1.bf16.msra.mxu0 %v20170_v57  ;;  %v20250_v57 = vld [vmem:[#allocation16 + $0x564] ss:$16 sps:$4 sm:$0xff]  }
 0xa85   : > { %14607 = vmatprep.subr.bf16.mxu0 %v20178_v4  ;;  %v20251_v4 = vld [vmem:[#allocation16 + $0x568] ss:$16 sps:$4 sm:$0xff]  }
 0xa86   : > { %14770 = vmatpush1.bf16.msra.mxu1 %v20173_v3  ;;  %v20248_v3 = vld [vmem:[#allocation16 + $0x560] ss:$16 sps:$4 sm:$0xff]  }
 0xa87   : > { %14771 = vmatprep.subr.bf16.mxu1 %v20181_v56  ;;  %v20256_v56 = vld [vmem:[#allocation16 + $0x584] ss:$16 sps:$4 sm:$0xff]  }
 0xa88   : > { %14608 = vmatpush1.bf16.msra.mxu0 %v20176_v7  ;;  %v20254_v7 = vld [vmem:[#allocation16 + $0x580] ss:$16 sps:$4 sm:$0xff]  }
 0xa89   : > { %14618 = vmatprep.subr.bf16.mxu0 %v20184_v10  ;;  %v20262_v10 = vld [vmem:[#allocation16 + $0x5a4] ss:$16 sps:$4 sm:$0xff]  }
 0xa8a   : > { %14772 = vmatpush1.bf16.msra.mxu1 %v20179_v8  ;;  %v20257_v8 = vld [vmem:[#allocation16 + $0x588] ss:$16 sps:$4 sm:$0xff]  }
 0xa8b   : > { %14782 = vmatprep.subr.bf16.mxu1 %v20187_v1  ;;  %14610 = vmatmul.mubr.bf16.vlgmr.msra.gmra.mrb[0].mxu0 %v12972_v6  ;;  %v20265_v1 = vld [vmem:[#allocation16 + $0x5ac] ss:$16 sps:$4 sm:$0xff]  }
 0xa8c   : > { %14619 = vmatpush1.bf16.msra.mxu0 %v20182_v0  ;;  %14650 = vmatprep.mubr.bf16.mxu0 %v12975_v20  ;;  %v12944_v0 = vsub.s32 7, %v22879_v27 }
 0xa8d   : > { %14774 = vmatmul.mubr.bf16.vlgmr.msra.gmra.mrb[0].mxu1 %v12972_v6  ;;  %14620 = vmatprep.subr.bf16.mxu0 %v20190_v62  ;;  %v20263_v6 = vld [vmem:[#allocation16 + $0x5a8] ss:$16 sps:$4 sm:$0xff]  }
 0xa8e   : > { %14783 = vmatpush1.bf16.msra.mxu1 %v20185_v2  ;;  %14814 = vmatprep.mubr.bf16.mxu1 %v12975_v20  ;;  %v23125_v2 = vld [vmem:[#allocation15] sm:$0xff]  ;;  %v20274_v20 = vld [vmem:[#allocation16 + $0x5e4] ss:$16 sps:$4 sm:$0xff]  }
 0xa8f   : > { %14784 = vmatprep.subr.bf16.mxu1 %v20193_v58  ;;  %v12933_v62 = vrot.slane %v23125_v2, %v12932_v60  ;;  %v12908_v58 = vld [vmem:[#allocation3 + $0x20] sm:$0xff] }
 0xa90   : > { %14621 = vmatpush1.bf16.msra.mxu0 %v20188_v11  ;;  %v20266_v11 = vld [vmem:[#allocation16 + $0x5c0] ss:$16 sps:$4 sm:$0xff]   ;;  %v20331_v60 = vld [vmem:[#allocation16 + $0x70c] ss:$16 sps:$4 sm:$0xff]  }
 0xa91   : > { %14622 = vmatprep.subr.bf16.mxu0 %v20196_v19  ;;  %v12958_v19 = vadd.f32 %v12933_v62, %v12908_v58  ;;  %v20340_v62 = vld [vmem:[#allocation16 + $0x744] ss:$16 sps:$4 sm:$0xff]   ;;  %v20343_v58 = vld [vmem:[#allocation16 + $0x74c] ss:$16 sps:$4 sm:$0xff]  }
 0xa92   : > { %14785 = vmatpush1.bf16.msra.mxu1 %v20191_v17  ;;  %v12945_v17 = vrot.slane %v23125_v2, %v12944_v0  ;;  %v20332_v0 = vld [vmem:[#allocation16 + $0x720] ss:$16 sps:$4 sm:$0xff]  }
 0xa93   : > { %14786 = vmatprep.subr.bf16.mxu1 %v20199_v21  ;;  %v20269_v21 = vld [vmem:[#allocation16 + $0x5c8] ss:$16 sps:$4 sm:$0xff]  }
 0xa94   : > { %14623 = vmatpush1.bf16.msra.mxu0 %v20194_v22  ;;  %v20277_v22 = vld [vmem:[#allocation16 + $0x5ec] ss:$16 sps:$4 sm:$0xff]  }
 0xa95   : > { %14624 = vmatprep.subr.bf16.mxu0 %v20202_v23  ;;  %v20272_v23 = vld [vmem:[#allocation16 + $0x5e0] ss:$16 sps:$4 sm:$0xff]  }
 0xa96   : > { %14787 = vmatpush1.bf16.msra.mxu1 %v20197_v15  ;;  %v12961_v15 = vadd.f32 %v12945_v17, %v12911_v13  ;;  %v20349_v17 = vld [vmem:[#allocation16 + $0x76c] ss:$16 sps:$4 sm:$0xff]   ;;  %v20347_v13 = vld [vmem:[#allocation16 + $0x768] ss:$16 sps:$4 sm:$0xff]  }
 0xa97   : > { %14788 = vmatprep.subr.bf16.mxu1 %v20205_v24  ;;  %v12966_v24 = vmax.f32 %v12958_v19, 0.0  ;;  %v20344_v19 = vld [vmem:[#allocation16 + $0x760] ss:$16 sps:$4 sm:$0xff]  }
 0xa98   : > { %14625 = vmatpush1.bf16.msra.mxu0 %v20200_v25  ;;  %v20275_v25 = vld [vmem:[#allocation16 + $0x5e8] ss:$16 sps:$4 sm:$0xff]  }
 0xa99   : > { %14626 = vmatprep.subr.bf16.mxu0 %v20208_v48  ;;  %v20283_v48 = vld [vmem:[#allocation16 + $0x60c] ss:$16 sps:$4 sm:$0xff]  }
 0xa9a   : > { %14789 = vmatpush1.bf16.msra.mxu1 %v20203_v26  ;;  %v20280_v26 = vld [vmem:[#allocation16 + $0x604] ss:$16 sps:$4 sm:$0xff]  }
 0xa9b   : > { %14790 = vmatprep.subr.bf16.mxu1 %v20211_v50  ;;  %v20278_v50 = vld [vmem:[#allocation16 + $0x600] ss:$16 sps:$4 sm:$0xff]  }
 0xa9c   : > { %14627 = vmatpush1.bf16.msra.mxu0 %v20206_v30  ;;  %v12969_v30 = vmax.f32 %v12961_v15, 0.0  ;;  %v20350_v15 = vld [vmem:[#allocation16 + $0x780] ss:$16 sps:$4 sm:$0xff]  }
 0xa9d   : > { %14628 = vmatprep.subr.bf16.mxu0 %v20214_v18  ;;  %v12974_v18 = vpack.c.bf16 %v12966_v24, %v12966_v24  ;;  %v20358_v24 = vld [vmem:[#allocation16 + $0x7a4] ss:$16 sps:$4 sm:$0xff]  }
 0xa9e   : > { %14791 = vmatpush1.bf16.msra.mxu1 %v20209_v31  ;;  %v20281_v31 = vld [vmem:[#allocation16 + $0x608] ss:$16 sps:$4 sm:$0xff]  }
 0xa9f   : > { %14792 = vmatprep.subr.bf16.mxu1 %v20217_v32  ;;  %v20286_v32 = vld [vmem:[#allocation16 + $0x624] ss:$16 sps:$4 sm:$0xff]  }
 0xaa0   : > { %14629 = vmatpush1.bf16.msra.mxu0 %v20212_v33  ;;  %v20289_v33 = vld [vmem:[#allocation16 + $0x62c] ss:$16 sps:$4 sm:$0xff]  }
 0xaa1   : > { %14630 = vmatprep.subr.bf16.mxu0 %v20220_v35  ;;  %v20287_v35 = vld [vmem:[#allocation16 + $0x628] ss:$16 sps:$4 sm:$0xff]  }
 0xaa2   : > { %14793 = vmatpush1.bf16.msra.mxu1 %v20215_v34  ;;  %v20284_v34 = vld [vmem:[#allocation16 + $0x620] ss:$16 sps:$4 sm:$0xff]  }
 0xaa3   : > { %14794 = vmatprep.subr.bf16.mxu1 %v20223_v36  ;;  %v12977_v36 = vpack.c.bf16 %v12969_v30, %v12969_v30  ;;  %v12910_v30 = vld [vmem:[#allocation3 + $0x30] sm:$0xff] }
 0xaa4   : > { %14631 = vmatpush1.bf16.msra.mxu0 %v20218_v37  ;;  %v20292_v37 = vld [vmem:[#allocation16 + $0x644] ss:$16 sps:$4 sm:$0xff]  }
 0xaa5   : > { %14632 = vmatprep.subr.bf16.mxu0 %v20226_v39  ;;  %v20290_v39 = vld [vmem:[#allocation16 + $0x640] ss:$16 sps:$4 sm:$0xff]  }
 0xaa6   : > { %14795 = vmatpush1.bf16.msra.mxu1 %v20221_v38  ;;  %v20295_v38 = vld [vmem:[#allocation16 + $0x64c] ss:$16 sps:$4 sm:$0xff]  }
 0xaa7   : > { %14796 = vmatprep.subr.bf16.mxu1 %v20229_v41  ;;  %v20293_v41 = vld [vmem:[#allocation16 + $0x648] ss:$16 sps:$4 sm:$0xff]  }
 0xaa8   : > { %14633 = vmatpush1.bf16.msra.mxu0 %v20224_v42  ;;  %v20298_v42 = vld [vmem:[#allocation16 + $0x664] ss:$16 sps:$4 sm:$0xff]  }
 0xaa9   : > { %14634 = vmatprep.subr.bf16.mxu0 %v20232_v45  ;;  %v20296_v45 = vld [vmem:[#allocation16 + $0x660] ss:$16 sps:$4 sm:$0xff]  }
 0xaaa   : > { %14797 = vmatpush1.bf16.msra.mxu1 %v20227_v44  ;;  %v20301_v44 = vld [vmem:[#allocation16 + $0x66c] ss:$16 sps:$4 sm:$0xff]  }
 0xaab   : > { %14798 = vmatprep.subr.bf16.mxu1 %v20235_v40  ;;  %v20299_v40 = vld [vmem:[#allocation16 + $0x668] ss:$16 sps:$4 sm:$0xff]  }
 0xaac   : > { %14635 = vmatpush1.bf16.msra.mxu0 %v20230_v53  ;;  %v20304_v53 = vld [vmem:[#allocation16 + $0x684] ss:$16 sps:$4 sm:$0xff]  }
 0xaad   : > { %14636 = vmatprep.subr.bf16.mxu0 %v20238_v43  ;;  %v20302_v43 = vld [vmem:[#allocation16 + $0x680] ss:$16 sps:$4 sm:$0xff]  }
 0xaae   : > { %14799 = vmatpush1.bf16.msra.mxu1 %v20233_v12  ;;  %v20307_v12 = vld [vmem:[#allocation16 + $0x68c] ss:$16 sps:$4 sm:$0xff]  }
 0xaaf   : > { %14800 = vmatprep.subr.bf16.mxu1 %v20241_v59  ;;  %v20305_v59 = vld [vmem:[#allocation16 + $0x688] ss:$16 sps:$4 sm:$0xff]  }
 0xab0   : > { %14637 = vmatpush1.bf16.msra.mxu0 %v20236_v9  ;;  %v20310_v9 = vld [vmem:[#allocation16 + $0x6a4] ss:$16 sps:$4 sm:$0xff]  }
 0xab1   : > { %14638 = vmatprep.subr.bf16.mxu0 %v20244_v51  ;;  %v20308_v51 = vld [vmem:[#allocation16 + $0x6a0] ss:$16 sps:$4 sm:$0xff]  }
 0xab2   : > { %14801 = vmatpush1.bf16.msra.mxu1 %v20239_v52  ;;  %v20313_v52 = vld [vmem:[#allocation16 + $0x6ac] ss:$16 sps:$4 sm:$0xff]  }
 0xab3   : > { %14802 = vmatprep.subr.bf16.mxu1 %v20247_v61  ;;  %v20311_v61 = vld [vmem:[#allocation16 + $0x6a8] ss:$16 sps:$4 sm:$0xff]  }
 0xab4   : > { %14639 = vmatpush1.bf16.msra.mxu0 %v20242_v55  ;;  %v20316_v55 = vld [vmem:[#allocation16 + $0x6c4] ss:$16 sps:$4 sm:$0xff]  }
 0xab5   : > { %14640 = vmatprep.subr.bf16.mxu0 %v20250_v57  ;;  %v20314_v57 = vld [vmem:[#allocation16 + $0x6c0] ss:$16 sps:$4 sm:$0xff]  }
 0xab6   : > { %14803 = vmatpush1.bf16.msra.mxu1 %v20245_v46  ;;  %v20319_v46 = vld [vmem:[#allocation16 + $0x6cc] ss:$16 sps:$4 sm:$0xff]  }
 0xab7   : > { %14804 = vmatprep.subr.bf16.mxu1 %v20253_v54  ;;  %v20317_v54 = vld [vmem:[#allocation16 + $0x6c8] ss:$16 sps:$4 sm:$0xff]  }
 0xab8   : > { %14641 = vmatpush1.bf16.msra.mxu0 %v20248_v3  ;;  %v20322_v3 = vld [vmem:[#allocation16 + $0x6e4] ss:$16 sps:$4 sm:$0xff]  }
 0xab9   : > { %14642 = vmatprep.subr.bf16.mxu0 %v20256_v56  ;;  %v20320_v56 = vld [vmem:[#allocation16 + $0x6e0] ss:$16 sps:$4 sm:$0xff]  }
 0xaba   : > { %14805 = vmatpush1.bf16.msra.mxu1 %v20251_v4  ;;  %v20325_v4 = vld [vmem:[#allocation16 + $0x6ec] ss:$16 sps:$4 sm:$0xff]  }
 0xabb   : > { %14806 = vmatprep.subr.bf16.mxu1 %v20259_v5  ;;  %v20323_v5 = vld [vmem:[#allocation16 + $0x6e8] ss:$16 sps:$4 sm:$0xff]  }
 0xabc   : > { %14643 = vmatpush1.bf16.msra.mxu0 %v20254_v7  ;;  %v20328_v7 = vld [vmem:[#allocation16 + $0x704] ss:$16 sps:$4 sm:$0xff]  }
 0xabd   : > { %14644 = vmatprep.subr.bf16.mxu0 %v20262_v10  ;;  %v20329_v10 = vld [vmem:[#allocation16 + $0x708] ss:$16 sps:$4 sm:$0xff]  }
 0xabe   : > { %14807 = vmatpush1.bf16.msra.mxu1 %v20257_v8  ;;  %v20326_v8 = vld [vmem:[#allocation16 + $0x700] ss:$16 sps:$4 sm:$0xff]  }
 0xabf   : > { %14808 = vmatprep.subr.bf16.mxu1 %v20265_v1  ;;  %v20334_v1 = vld [vmem:[#allocation16 + $0x724] ss:$16 sps:$4 sm:$0xff]  }
 0xac0   : > { %14645 = vmatpush1.bf16.msra.mxu0 %v20260_v63  ;;  %v20337_v63 = vld [vmem:[#allocation16 + $0x72c] ss:$16 sps:$4 sm:$0xff]  }
 0xac1   : > { %14646 = vmatprep.subr.bf16.mxu0 %v20268_v14  ;;  %v20338_v14 = vld [vmem:[#allocation16 + $0x740] ss:$16 sps:$4 sm:$0xff]  }
 0xac2   : > { %14809 = vmatpush1.bf16.msra.mxu1 %v20263_v6  ;;  %v20335_v6 = vld [vmem:[#allocation16 + $0x728] ss:$16 sps:$4 sm:$0xff]  }
 0xac3   : > { %14810 = vmatprep.subr.bf16.mxu1 %v20271_v16  ;;  %v20341_v16 = vld [vmem:[#allocation16 + $0x748] ss:$16 sps:$4 sm:$0xff]  }
 0xac4   : > { %14647 = vmatpush1.bf16.msra.mxu0 %v20266_v11  ;;  %v20346_v11 = vld [vmem:[#allocation16 + $0x764] ss:$16 sps:$4 sm:$0xff]  }
 0xac5   : > { %14648 = vmatprep.subr.bf16.mxu0 %v20274_v20  ;;  %v20355_v20 = vld [vmem:[#allocation16 + $0x78c] ss:$16 sps:$4 sm:$0xff]  }
 0xac6   : > { %14811 = vmatpush1.bf16.msra.mxu1 %v20269_v21  ;;  %v20352_v21 = vld [vmem:[#allocation16 + $0x784] ss:$16 sps:$4 sm:$0xff]  }
 0xac7   : > { %14812 = vmatprep.subr.bf16.mxu1 %v20277_v22  ;;  %v12940_v22 = vsub.s32 6, %v22879_v27 }
 0xac8   : > { %14649 = vmatpush1.bf16.msra.mxu0 %v20272_v23  ;;  %v20353_v23 = vld [vmem:[#allocation16 + $0x788] ss:$16 sps:$4 sm:$0xff]  }
 0xac9   : > { %14659 = vmatprep.subr.bf16.mxu0 %v20280_v26  ;;  %v12941_v26 = vrot.slane %v23125_v2, %v12940_v22  ;;  %v20368_v2 = vld [vmem:[#allocation16 + $0x7e0] ss:$16 sps:$4 sm:$0xff]  }
 0xaca   : > { %14813 = vmatpush1.bf16.msra.mxu1 %v20275_v25  ;;  %v20361_v25 = vld [vmem:[#allocation16 + $0x7ac] ss:$16 sps:$4 sm:$0xff]  }
 0xacb   : > { %14823 = vmatprep.subr.bf16.mxu1 %v20283_v48  ;;  %14651 = vmatmul.mubr.bf16.vlgmr.msra.gmra.mrb[0].mxu0 %v12974_v18  ;;  %v20356_v48 = vld [vmem:[#allocation16 + $0x7a0] ss:$16 sps:$4 sm:$0xff]   ;;  %v12960_v27 = vadd.f32 %v12941_v26, %v12910_v30 }
 0xacc   : > { %14660 = vmatpush1.bf16.msra.mxu0 %v20278_v50  ;;  %14691 = vmatprep.mubr.bf16.mxu0 %v12977_v36  ;;  %v20359_v50 = vld [vmem:[#allocation16 + $0x7a8] ss:$16 sps:$4 sm:$0xff]   ;;  %v20477_v22 = vld [vmem:[#allocation22 + $0x18] sm:$0xff]  }
 0xacd   : > { %14815 = vmatmul.mubr.bf16.vlgmr.msra.gmra.mrb[0].mxu1 %v12974_v18  ;;  %14661 = vmatprep.subr.bf16.mxu0 %v20286_v32  ;;  %v20367_v18 = vld [vmem:[#allocation16 + $0x7cc] ss:$16 sps:$4 sm:$0xff]   ;;  %v20362_v32 = vld [vmem:[#allocation16 + $0x7c0] ss:$16 sps:$4 sm:$0xff]  }
 0xace   : > { %14824 = vmatpush1.bf16.msra.mxu1 %v20281_v31  ;;  %14855 = vmatprep.mubr.bf16.mxu1 %v12977_v36  ;;  %v20364_v31 = vld [vmem:[#allocation16 + $0x7c4] ss:$16 sps:$4 sm:$0xff]   ;;  %v12968_v36 = vmax.f32 %v12960_v27, 0.0  ;;  %v23131_v26 = vld [vmem:[#allocation18] sm:$0xf] }
 0xacf   : > { %14825 = vmatprep.subr.bf16.mxu1 %v20289_v33  ;;  %v20365_v33 = vld [vmem:[#allocation16 + $0x7c8] ss:$16 sps:$4 sm:$0xff]   ;;  %v13251_v30 = vrot.slane %v23131_v26, %v22892_v49 }
 0xad0   : > { %14662 = vmatpush1.bf16.msra.mxu0 %v20284_v34  ;;  %v20370_v34 = vld [vmem:[#allocation16 + $0x7e4] ss:$16 sps:$4 sm:$0xff]  }
 0xad1   : > { %14663 = vmatprep.subr.bf16.mxu0 %v20292_v37  ;;  %v20371_v37 = vld [vmem:[#allocation16 + $0x7e8] ss:$16 sps:$4 sm:$0xff]  }
 0xad2   : > { %14826 = vmatpush1.bf16.msra.mxu1 %v20287_v35  ;;  %v20373_v35 = vld [vmem:[#allocation16 + $0x7ec] ss:$16 sps:$4 sm:$0xff]  }
 0xad3   : > { %14827 = vmatprep.subr.bf16.mxu1 %v20295_v38  ;;  %v20376_v38 = vld [vmem:[#allocation19 + $0x4] ss:$8 sps:$4 sm:$0xff]  }
 0xad4   : > { %14664 = vmatpush1.bf16.msra.mxu0 %v20290_v39  ;;  %v12976_v39 = vpack.c.bf16 %v12968_v36, %v12968_v36 }
 0xad5   : > { %14665 = vmatprep.subr.bf16.mxu0 %v20298_v42  ;;  %v20379_v42 = vld [vmem:[#allocation19 + $0x14] ss:$8 sps:$4 sm:$0xff]  }
 0xad6   : > { %14828 = vmatpush1.bf16.msra.mxu1 %v20293_v41  ;;  %v20374_v41 = vld [vmem:[#allocation19] ss:$8 sps:$4 sm:$0xff]  }
 0xad7   : > { %14829 = vmatprep.subr.bf16.mxu1 %v20301_v44  ;;  %v20377_v44 = vld [vmem:[#allocation19 + $0x10] ss:$8 sps:$4 sm:$0xff]  }
 0xad8   : > { %14666 = vmatpush1.bf16.msra.mxu0 %v20296_v45  ;;  %v20382_v45 = vld [vmem:[#allocation19 + $0x24] ss:$8 sps:$4 sm:$0xff]  }
 0xad9   : > { %14667 = vmatprep.subr.bf16.mxu0 %v20304_v53  ;;  %v20385_v53 = vld [vmem:[#allocation19 + $0x34] ss:$8 sps:$4 sm:$0xff]  }
 0xada   : > { %14830 = vmatpush1.bf16.msra.mxu1 %v20299_v40  ;;  %v20380_v40 = vld [vmem:[#allocation19 + $0x20] ss:$8 sps:$4 sm:$0xff]  }
 0xadb   : > { %14831 = vmatprep.subr.bf16.mxu1 %v20307_v12  ;;  %v20383_v12 = vld [vmem:[#allocation19 + $0x30] ss:$8 sps:$4 sm:$0xff]  }
 0xadc   : > { %14668 = vmatpush1.bf16.msra.mxu0 %v20302_v43  ;;  %v20388_v43 = vld [vmem:[#allocation19 + $0x44] ss:$8 sps:$4 sm:$0xff]  }
 0xadd   : > { %14669 = vmatprep.subr.bf16.mxu0 %v20310_v9  ;;  %v20391_v9 = vld [vmem:[#allocation19 + $0x54] ss:$8 sps:$4 sm:$0xff]  }
 0xade   : > { %14832 = vmatpush1.bf16.msra.mxu1 %v20305_v59  ;;  %v20386_v59 = vld [vmem:[#allocation19 + $0x40] ss:$8 sps:$4 sm:$0xff]  }
 0xadf   : > { %14833 = vmatprep.subr.bf16.mxu1 %v20313_v52  ;;  %v20389_v52 = vld [vmem:[#allocation19 + $0x50] ss:$8 sps:$4 sm:$0xff]  }
 0xae0   : > { %14670 = vmatpush1.bf16.msra.mxu0 %v20308_v51  ;;  %v20394_v51 = vld [vmem:[#allocation19 + $0x64] ss:$8 sps:$4 sm:$0xff]  }
 0xae1   : > { %14671 = vmatprep.subr.bf16.mxu0 %v20316_v55  ;;  %v20397_v55 = vld [vmem:[#allocation19 + $0x74] ss:$8 sps:$4 sm:$0xff]  }
 0xae2   : > { %14834 = vmatpush1.bf16.msra.mxu1 %v20311_v61  ;;  %v20392_v61 = vld [vmem:[#allocation19 + $0x60] ss:$8 sps:$4 sm:$0xff]  }
 0xae3   : > { %14835 = vmatprep.subr.bf16.mxu1 %v20319_v46  ;;  %v20395_v46 = vld [vmem:[#allocation19 + $0x70] ss:$8 sps:$4 sm:$0xff]  }
 0xae4   : > { %14672 = vmatpush1.bf16.msra.mxu0 %v20314_v57  ;;  %v20400_v57 = vld [vmem:[#allocation19 + $0x84] ss:$8 sps:$4 sm:$0xff]  }
 0xae5   : > { %14673 = vmatprep.subr.bf16.mxu0 %v20322_v3  ;;  %v20403_v3 = vld [vmem:[#allocation19 + $0x94] ss:$8 sps:$4 sm:$0xff]  }
 0xae6   : > { %14836 = vmatpush1.bf16.msra.mxu1 %v20317_v54  ;;  %v20398_v54 = vld [vmem:[#allocation19 + $0x80] ss:$8 sps:$4 sm:$0xff]  }
 0xae7   : > { %14837 = vmatprep.subr.bf16.mxu1 %v20325_v4  ;;  %v20401_v4 = vld [vmem:[#allocation19 + $0x90] ss:$8 sps:$4 sm:$0xff]  }
 0xae8   : > { %14674 = vmatpush1.bf16.msra.mxu0 %v20320_v56  ;;  %v20406_v56 = vld [vmem:[#allocation19 + $0xa4] ss:$8 sps:$4 sm:$0xff]  }
 0xae9   : > { %14675 = vmatprep.subr.bf16.mxu0 %v20328_v7  ;;  %v20409_v7 = vld [vmem:[#allocation19 + $0xb4] ss:$8 sps:$4 sm:$0xff]  }
 0xaea   : > { %14838 = vmatpush1.bf16.msra.mxu1 %v20323_v5  ;;  %v20404_v5 = vld [vmem:[#allocation19 + $0xa0] ss:$8 sps:$4 sm:$0xff]  }
 0xaeb   : > { %14839 = vmatprep.subr.bf16.mxu1 %v20331_v60  ;;  %v20407_v60 = vld [vmem:[#allocation19 + $0xb0] ss:$8 sps:$4 sm:$0xff]  }
 0xaec   : > { %14676 = vmatpush1.bf16.msra.mxu0 %v20326_v8  ;;  %v20412_v8 = vld [vmem:[#allocation19 + $0xc4] ss:$8 sps:$4 sm:$0xff]  }
 0xaed   : > { %14677 = vmatprep.subr.bf16.mxu0 %v20334_v1  ;;  %v20415_v1 = vld [vmem:[#allocation19 + $0xd4] ss:$8 sps:$4 sm:$0xff]  }
 0xaee   : > { %14840 = vmatpush1.bf16.msra.mxu1 %v20329_v10  ;;  %v20410_v10 = vld [vmem:[#allocation19 + $0xc0] ss:$8 sps:$4 sm:$0xff]  }
 0xaef   : > { %14841 = vmatprep.subr.bf16.mxu1 %v20337_v63  ;;  %v20413_v63 = vld [vmem:[#allocation19 + $0xd0] ss:$8 sps:$4 sm:$0xff]  }
 0xaf0   : > { %14678 = vmatpush1.bf16.msra.mxu0 %v20332_v0  ;;  %v20418_v0 = vld [vmem:[#allocation19 + $0xe4] ss:$8 sps:$4 sm:$0xff]  }
 0xaf1   : > { %14679 = vmatprep.subr.bf16.mxu0 %v20340_v62  ;;  %v20421_v62 = vld [vmem:[#allocation19 + $0xf4] ss:$8 sps:$4 sm:$0xff]  }
 0xaf2   : > { %14842 = vmatpush1.bf16.msra.mxu1 %v20335_v6  ;;  %v20416_v6 = vld [vmem:[#allocation19 + $0xe0] ss:$8 sps:$4 sm:$0xff]  }
 0xaf3   : > { %14843 = vmatprep.subr.bf16.mxu1 %v20343_v58  ;;  %v20419_v58 = vld [vmem:[#allocation19 + $0xf0] ss:$8 sps:$4 sm:$0xff]  }
 0xaf4   : > { %14680 = vmatpush1.bf16.msra.mxu0 %v20338_v14  ;;  %v20424_v14 = vld [vmem:[#allocation19 + $0x104] ss:$8 sps:$4 sm:$0xff]  }
 0xaf5   : > { %14681 = vmatprep.subr.bf16.mxu0 %v20346_v11  ;;  %v20471_v11 = vld [vmem:[#allocation22] sm:$0xff]  }
 0xaf6   : > { %14844 = vmatpush1.bf16.msra.mxu1 %v20341_v16  ;;  %v20470_v16 = vld [vmem:[#allocation22 + $0x40] sm:$0xff]  }
 0xaf7   : > { %14845 = vmatprep.subr.bf16.mxu1 %v20349_v17  ;;  %v20472_v17 = vld [vmem:[#allocation22 + $0x48] sm:$0xff]  }
 0xaf8   : > { %14682 = vmatpush1.bf16.msra.mxu0 %v20344_v19  ;;  %v20473_v19 = vld [vmem:[#allocation22 + $0x8] sm:$0xff]  }
 0xaf9   : > { %14683 = vmatprep.subr.bf16.mxu0 %v20352_v21  ;;  %v20475_v21 = vld [vmem:[#allocation22 + $0x10] sm:$0xff]  }
 0xafa   : > { %14846 = vmatpush1.bf16.msra.mxu1 %v20347_v13  ;;  %v20474_v13 = vld [vmem:[#allocation22 + $0x50] sm:$0xff]  }
 0xafb   : > { %14847 = vmatprep.subr.bf16.mxu1 %v20355_v20  ;;  %v20476_v20 = vld [vmem:[#allocation22 + $0x58] sm:$0xff]  }
 0xafc   : > { %14684 = vmatpush1.bf16.msra.mxu0 %v20350_v15  ;;  %v20478_v15 = vld [vmem:[#allocation22 + $0x60] sm:$0xff]  }
 0xafd   : > { %14685 = vmatprep.subr.bf16.mxu0 %v20358_v24  ;;  %v20480_v24 = vld [vmem:[#allocation22 + $0x68] sm:$0xff]  }
 0xafe   : > { %14848 = vmatpush1.bf16.msra.mxu1 %v20353_v23  ;;  %v20479_v23 = vld [vmem:[#allocation22 + $0x20] sm:$0xff]  }
 0xaff   : > { %14849 = vmatprep.subr.bf16.mxu1 %v20361_v25  ;;  %v20481_v25 = vld [vmem:[#allocation22 + $0x28] sm:$0xff]  }
 0xb00   : > { %14686 = vmatpush1.bf16.msra.mxu0 %v20356_v48  ;;  %v13239_v48 = vrot.slane %v23131_v26, %v22882_v47 }
 0xb01   : > { %14687 = vmatprep.subr.bf16.mxu0 %v20364_v31 }
 0xb02   : > { %14850 = vmatpush1.bf16.msra.mxu1 %v20359_v50  ;;  %v13243_v50 = vrot.slane %v23131_v26, %v22889_v29 }
 0xb03   : > { %14851 = vmatprep.subr.bf16.mxu1 %v20367_v18 }
 0xb04   : > { %14688 = vmatpush1.bf16.msra.mxu0 %v20362_v32 }
 0xb05   : > { %14689 = vmatprep.subr.bf16.mxu0 %v20370_v34 }
 0xb06   : > { %14852 = vmatpush1.bf16.msra.mxu1 %v20365_v33 }
 0xb07   : > { %14853 = vmatprep.subr.bf16.mxu1 %v20373_v35 }
 0xb08   : > { %14690 = vmatpush1.bf16.msra.mxu0 %v20368_v2 }
 0xb09   : > { %15268 = vmatprep.subr.bf16.mxu0 %v20376_v38 }
 0xb0a   : > { %14854 = vmatpush1.bf16.msra.mxu1 %v20371_v37 }
 0xb0b   : > { %14692 = vmatmul.mubr.bf16.vlgmr.msra.gmra.mrb[0].mxu0 %v12976_v39  ;;  %18001 = vmatprep.subr.bf16.mxu1 %v20470_v16  ;;  %v20466_v16 = vld [vmem:[#allocation19 + $0x1e4] ss:$8 sps:$4 sm:$0xff]  }
 0xb0c   : > { %15269 = vmatpush1.bf16.msra.mxu0 %v20374_v41 }
 0xb0d   : > { %14856 = vmatmul.mubr.bf16.vlgmr.msra.gmra.mrb[0].mxu1 %v12976_v39  ;;  %15270 = vmatprep.subr.bf16.mxu0 %v20379_v42 }
 0xb0e   : > { %18002 = vmatpush3.bf16.msra.mxu1 %v20471_v11  ;;  %v20464_v11 = vld [vmem:[#allocation19 + $0x1e0] ss:$8 sps:$4 sm:$0xff]  }
 0xb0f   : > { %18003 = vmatprep.subr.bf16.mxu1 %v20472_v17 }
 0xb10   : > { %15271 = vmatpush1.bf16.msra.mxu0 %v20377_v44 }
 0xb11   : > { %15272 = vmatprep.subr.bf16.mxu0 %v20382_v45  ;;  %v20422_v45 = vld [vmem:[#allocation19 + $0x100] ss:$8 sps:$4 sm:$0xff]  }
 0xb12   : > { %18004 = vmatpush3.bf16.msra.mxu1 %v20473_v19  ;;  %v20469_v19 = vld [vmem:[#allocation19 + $0x1f4] ss:$8 sps:$4 sm:$0xff]  }
 0xb13   : > { %18005 = vmatprep.subr.bf16.mxu1 %v20474_v13  ;;  %v20467_v13 = vld [vmem:[#allocation19 + $0x1f0] ss:$8 sps:$4 sm:$0xff]  }
 0xb14   : > { %15273 = vmatpush1.bf16.msra.mxu0 %v20380_v40 }
 0xb15   : > { %15274 = vmatprep.subr.bf16.mxu0 %v20385_v53  ;;  %v20427_v53 = vld [vmem:[#allocation19 + $0x114] ss:$8 sps:$4 sm:$0xff]  }
 0xb16   : > { %18006 = vmatpush3.bf16.msra.mxu1 %v20475_v21 }
 0xb17   : > { %18007 = vmatprep.subr.bf16.mxu1 %v20476_v20 }
 0xb18   : > { %15275 = vmatpush1.bf16.msra.mxu0 %v20383_v12  ;;  %v20425_v12 = vld [vmem:[#allocation19 + $0x110] ss:$8 sps:$4 sm:$0xff]  }
 0xb19   : > { %15276 = vmatprep.subr.bf16.mxu0 %v20388_v43  ;;  %v20430_v43 = vld [vmem:[#allocation19 + $0x124] ss:$8 sps:$4 sm:$0xff]  }
 0xb1a   : > { %18008 = vmatpush3.bf16.msra.mxu1 %v20477_v22  ;;  %v20482_v22 = vld [vmem:[#allocation22 + $0x70] sm:$0xff]  }
 0xb1b   : > { %18009 = vmatprep.subr.bf16.mxu1 %v20478_v15  ;;  %v20483_v15 = vld [vmem:[#allocation22 + $0x30] sm:$0xff]  }
 0xb1c   : > { %15277 = vmatpush1.bf16.msra.mxu0 %v20386_v59  ;;  %v20428_v59 = vld [vmem:[#allocation19 + $0x120] ss:$8 sps:$4 sm:$0xff]  }
 0xb1d   : > { %15278 = vmatprep.subr.bf16.mxu0 %v20391_v9  ;;  %v20433_v9 = vld [vmem:[#allocation19 + $0x134] ss:$8 sps:$4 sm:$0xff]  }
 0xb1e   : > { %18010 = vmatpush3.bf16.msra.mxu1 %v20479_v23  ;;  %v20485_v23 = vld [vmem:[#allocation22 + $0x38] sm:$0xff]  }
 0xb1f   : > { %18011 = vmatprep.subr.bf16.mxu1 %v20480_v24  ;;  %v21022_v24 = vmov 0.0  }
 0xb20   : > { %15279 = vmatpush1.bf16.msra.mxu0 %v20389_v52  ;;  %v20431_v52 = vld [vmem:[#allocation19 + $0x130] ss:$8 sps:$4 sm:$0xff]  }
 0xb21   : > { %15280 = vmatprep.subr.bf16.mxu0 %v20394_v51  ;;  %v20436_v51 = vld [vmem:[#allocation19 + $0x144] ss:$8 sps:$4 sm:$0xff]  }
 0xb22   : > { %18012 = vmatpush3.bf16.msra.mxu1 %v20481_v25  ;;  %v14936_v25 = vld [vmem:[#allocation21] sm:$0x3] }
 0xb23   : > { %18013 = vmatprep.subr.bf16.mxu1 %v20482_v22 }
 0xb24   : > { %15281 = vmatpush1.bf16.msra.mxu0 %v20392_v61  ;;  %v20434_v61 = vld [vmem:[#allocation19 + $0x140] ss:$8 sps:$4 sm:$0xff]  }
 0xb25   : > { %15282 = vmatprep.subr.bf16.mxu0 %v20397_v55  ;;  %v20439_v55 = vld [vmem:[#allocation19 + $0x154] ss:$8 sps:$4 sm:$0xff]  }
 0xb26   : > { %18014 = vmatpush3.bf16.msra.mxu1 %v20483_v15 }
 0xb28   : > { %15283 = vmatpush1.bf16.msra.mxu0 %v20395_v46  ;;  %v20437_v46 = vld [vmem:[#allocation19 + $0x150] ss:$8 sps:$4 sm:$0xff]  }
 0xb29   : > { %15284 = vmatprep.subr.bf16.mxu0 %v20400_v57  ;;  %v20442_v57 = vld [vmem:[#allocation19 + $0x164] ss:$8 sps:$4 sm:$0xff]  }
 0xb2c   : > { %15285 = vmatpush1.bf16.msra.mxu0 %v20398_v54  ;;  %v20440_v54 = vld [vmem:[#allocation19 + $0x160] ss:$8 sps:$4 sm:$0xff]  }
 0xb2d   : > { %15286 = vmatprep.subr.bf16.mxu0 %v20403_v3  ;;  %v20445_v3 = vld [vmem:[#allocation19 + $0x174] ss:$8 sps:$4 sm:$0xff]  }
 0xb30   : > { %15287 = vmatpush1.bf16.msra.mxu0 %v20401_v4  ;;  %v20443_v4 = vld [vmem:[#allocation19 + $0x170] ss:$8 sps:$4 sm:$0xff]  }
 0xb31   : > { %15288 = vmatprep.subr.bf16.mxu0 %v20406_v56  ;;  %v20448_v56 = vld [vmem:[#allocation19 + $0x184] ss:$8 sps:$4 sm:$0xff]  }
 0xb34   : > { %15289 = vmatpush1.bf16.msra.mxu0 %v20404_v5  ;;  %v20446_v5 = vld [vmem:[#allocation19 + $0x180] ss:$8 sps:$4 sm:$0xff]  }
 0xb35   : > { %15290 = vmatprep.subr.bf16.mxu0 %v20409_v7  ;;  %v20451_v7 = vld [vmem:[#allocation19 + $0x194] ss:$8 sps:$4 sm:$0xff]  }
 0xb38   : > { %15291 = vmatpush1.bf16.msra.mxu0 %v20407_v60  ;;  %v20449_v60 = vld [vmem:[#allocation19 + $0x190] ss:$8 sps:$4 sm:$0xff]  }
 0xb39   : > { %15292 = vmatprep.subr.bf16.mxu0 %v20412_v8  ;;  %v20454_v8 = vld [vmem:[#allocation19 + $0x1a4] ss:$8 sps:$4 sm:$0xff]  }
 0xb3c   : > { %15293 = vmatpush1.bf16.msra.mxu0 %v20410_v10  ;;  %v20452_v10 = vld [vmem:[#allocation19 + $0x1a0] ss:$8 sps:$4 sm:$0xff]  }
 0xb3d   : > { %15294 = vmatprep.subr.bf16.mxu0 %v20415_v1  ;;  %v20457_v1 = vld [vmem:[#allocation19 + $0x1b4] ss:$8 sps:$4 sm:$0xff]  }
 0xb40   : > { %15295 = vmatpush1.bf16.msra.mxu0 %v20413_v63  ;;  %v20455_v63 = vld [vmem:[#allocation19 + $0x1b0] ss:$8 sps:$4 sm:$0xff]  }
 0xb41   : > { %15296 = vmatprep.subr.bf16.mxu0 %v20418_v0  ;;  %v20460_v0 = vld [vmem:[#allocation19 + $0x1c4] ss:$8 sps:$4 sm:$0xff]  }
 0xb44   : > { %15297 = vmatpush1.bf16.msra.mxu0 %v20416_v6  ;;  %v20458_v6 = vld [vmem:[#allocation19 + $0x1c0] ss:$8 sps:$4 sm:$0xff]  }
 0xb45   : > { %15298 = vmatprep.subr.bf16.mxu0 %v20421_v62  ;;  %v20463_v62 = vld [vmem:[#allocation19 + $0x1d4] ss:$8 sps:$4 sm:$0xff]  }
 0xb48   : > { %15299 = vmatpush1.bf16.msra.mxu0 %v20419_v58  ;;  %v20461_v58 = vld [vmem:[#allocation19 + $0x1d0] ss:$8 sps:$4 sm:$0xff]  }
 0xb49   : > { %15309 = vmatprep.subr.bf16.mxu0 %v20424_v14  ;;  %v13247_v14 = vrot.slane %v23131_v26, %v22885_v28  ;;  %v20484_v28 = vld [vmem:[#allocation22 + $0x78] sm:$0xff]   ;;  %v14941_v26 = vrot.slane %v14936_v25, %v22882_v47  ;;  %v20487_v47 = vld [vmem:[%s23337_s24 + $0x8] sm:$0xff]  }
 0xb4a   : > { %18015 = vmatprep.subr.bf16.mxu1 %v20484_v28 }
 0xb4b   : > { %18016 = vmatpush3.bf16.msra.mxu1 %v20485_v23 }
 0xb4c   : > { %18040 = vmatprep.subr.bf16.mxu1 %v21022_v24 }
 0xbde   : > { %v14693_v31 = vpop.f32.mrb[0].mxu0 }
 0xbdf   : > { %v18204_v27 = vadd.f32 %v14693_v31, %v13239_v48  ;;  %v14695_v32 = vpop.f32.mrb[1].mxu0  ;;  %v14945_v48 = vrot.slane %v14936_v25, %v22889_v29  ;;  %v20488_v29 = vld [vmem:[%s23337_s24 + $0x10] sm:$0xff]  }
 0xbe0   : > { %v23139_v18 = vpop.f32.mrb[0].mxu1  ;;  %v18205_v34 = vadd.f32 %v14695_v32, %v13243_v50  ;;  %v14697_v36 = vpop.f32.mrb[2].mxu0 }
 0xbe1   : > { %v14859_v33 = vpop.f32.mrb[1].mxu1  ;;  %v14864_v37 = vmax.f32 %v18204_v27, 0.0  ;;  %v14698_v38 = vpop.f32.mrb[3].mxu0  ;;  %v18206_v17 = vadd.f32 %v23139_v18, %v13247_v14  ;;  %v20486_v36 = vld [vmem:[%s23337_s24] sm:$0xff]  }
 0xbe2   : > { %v18207_v35 = vadd.f32 %v14859_v33, %v13251_v30  ;;  %v14861_v2 = vpop.f32.mrb[2].mxu1  ;;  %v14865_v41 = vmax.f32 %v18205_v34, 0.0  ;;  %v20490_v38 = vld [vmem:[%s23337_s24 + $0x20] sm:$0xff]  }
 0xbe3   : > { %v14862_v39 = vpop.f32.mrb[3].mxu1  ;;  %v14868_v40 = vpack.c.bf16 %v14864_v37, %v14864_v37  ;;  %v14866_v21 = vmax.f32 %v18206_v17, 0.0  ;;  %v20489_v37 = vld [vmem:[%s23337_s24 + $0x18] sm:$0xff]  }
 0xbe4   : > { %v14867_v42 = vmax.f32 %v18207_v35, 0.0  ;;  %v14869_v44 = vpack.c.bf16 %v14865_v41, %v14865_v41  ;;  %v20491_v39 = vld [vmem:[%s23337_s24 + $0x28] sm:$0xff]   ;;  %v20492_v41 = vld [vmem:[%s23337_s24 + $0x30] sm:$0xff]  }
 0xbe5   : > { %v14870_v20 = vpack.c.bf16 %v14866_v21, %v14866_v21 }
 0xbe6   : > { %v14871_v49 = vpack.c.bf16 %v14867_v42, %v14867_v42  ;;  %15300 = vmatprep.mubr.bf16.mxu0 %v14869_v44  ;;  %v20493_v42 = vld [vmem:[%s23337_s24 + $0x38] sm:$0xff]  }
 0xbe7   : > { %15301 = vmatmul.mubr.bf16.vlgmr.msra.gmra.mrb[4].mxu0 %v14868_v40 }
 0xbe8   : > { %15310 = vmatpush1.bf16.msra.mxu0 %v20422_v45  ;;  %15341 = vmatprep.mubr.bf16.mxu0 %v14871_v49  ;;  %v17943_v45 = vld [vmem:[#allocation24] ss:$0 sm:$0xff] }
 0xbe9   : > { %15311 = vmatprep.subr.bf16.mxu0 %v20427_v53 }
 0xbec   : > { %15312 = vmatpush1.bf16.msra.mxu0 %v20425_v12 }
 0xbed   : > { %15313 = vmatprep.subr.bf16.mxu0 %v20430_v43 }
 0xbf0   : > { %15314 = vmatpush1.bf16.msra.mxu0 %v20428_v59 }
 0xbf1   : > { %15315 = vmatprep.subr.bf16.mxu0 %v20433_v9  ;;  %v20494_v9 = vld [vmem:[%s23338_s20] sm:$0xff]  }
 0xbf4   : > { %15316 = vmatpush1.bf16.msra.mxu0 %v20431_v52 }
 0xbf5   : > { %15317 = vmatprep.subr.bf16.mxu0 %v20436_v51  ;;  %v20495_v51 = vld [vmem:[%s23339_s27 + $0x8] sm:$0xff]  }
 0xbf8   : > { %15318 = vmatpush1.bf16.msra.mxu0 %v20434_v61  ;;  %v20496_v61 = vld [vmem:[%s23339_s27 + $0x10] sm:$0xff]  }
 0xbf9   : > { %15319 = vmatprep.subr.bf16.mxu0 %v20439_v55  ;;  %v20497_v55 = vld [vmem:[%s23339_s27 + $0x18] sm:$0xff]  }
 0xbfc   : > { %15320 = vmatpush1.bf16.msra.mxu0 %v20437_v46  ;;  %v17960_v46 = vld [vmem:[#allocation25] ss:$0 sm:$0xff] }
 0xbfd   : > { %15321 = vmatprep.subr.bf16.mxu0 %v20442_v57 }
 0xc00   : > { %15322 = vmatpush1.bf16.msra.mxu0 %v20440_v54 }
 0xc01   : > { %15323 = vmatprep.subr.bf16.mxu0 %v20445_v3 }
 0xc04   : > { %15324 = vmatpush1.bf16.msra.mxu0 %v20443_v4 }
 0xc05   : > { %15325 = vmatprep.subr.bf16.mxu0 %v20448_v56 }
 0xc08   : > { %15326 = vmatpush1.bf16.msra.mxu0 %v20446_v5 }
 0xc09   : > { %15327 = vmatprep.subr.bf16.mxu0 %v20451_v7  ;;  %v20498_v7 = vld [vmem:[%s23340_s4] sm:$0xff]  }
 0xc0c   : > { %15328 = vmatpush1.bf16.msra.mxu0 %v20449_v60 }
 0xc0d   : > { %15329 = vmatprep.subr.bf16.mxu0 %v20454_v8  ;;  %v20499_v8 = vld [vmem:[%s23340_s4 + $0x8] sm:$0xff]  }
 0xc10   : > { %15330 = vmatpush1.bf16.msra.mxu0 %v20452_v10  ;;  %v17969_v10 = vld [vmem:[#allocation27] ss:$0 sm:$0xff] }
 0xc11   : > { %15331 = vmatprep.subr.bf16.mxu0 %v20457_v1 }
 0xc14   : > { %15332 = vmatpush1.bf16.msra.mxu0 %v20455_v63 }
 0xc15   : > { %15333 = vmatprep.subr.bf16.mxu0 %v20460_v0 }
 0xc18   : > { %15334 = vmatpush1.bf16.msra.mxu0 %v20458_v6 }
 0xc19   : > { %15335 = vmatprep.subr.bf16.mxu0 %v20463_v62 }
 0xc1c   : > { %15336 = vmatpush1.bf16.msra.mxu0 %v20461_v58 }
 0xc1d   : > { %15337 = vmatprep.subr.bf16.mxu0 %v20466_v16  ;;  %v17975_v16 = vld [vmem:[#allocation4] ss:$0 sm:$0xff] }
 0xc20   : > { %15338 = vmatpush1.bf16.msra.mxu0 %v20464_v11 }
 0xc21   : > { %15339 = vmatprep.subr.bf16.mxu0 %v20469_v19 }
 0xc24   : > { %15340 = vmatpush1.bf16.msra.mxu0 %v20467_v13 }
 0xc27   : > { %15342 = vmatmul.mubr.bf16.vlgmr.msra.gmra.mrb[4].mxu0 %v14870_v20 }
 0xcfa   : > { %v15343_v50 = vpop.f32.mrb[4].mxu0 }
 0xcfb   : > { %v18208_v30 = vadd.f32 %v15343_v50, %v14941_v26  ;;  %v15345_v31 = vpop.f32.mrb[5].mxu0 }
 0xcfc   : > { %v18209_v18 = vadd.f32 %v15345_v31, %v14945_v48  ;;  %v15347_v27 = vpop.f32.mrb[6].mxu0 }
 0xcfd   : > { %v15350_v32 = vmax.f32 %v18208_v30, 0.0  ;;  %v15348_v33 = vpop.f32.mrb[7].mxu0 }
 0xcfe   : > { %v15351_v34 = vmax.f32 %v18209_v18, 0.0 }
 0xcff   : > { %v15352_v2 = vpack.c.bf16 %v15350_v32, %v15350_v32 }
 0xd00   : > { %v15353_v35 = vpack.c.bf16 %v15351_v34, %v15351_v34 }
 0xd02   : > { %15521 = vmatprep.mubr.bf16.mxu1 %v15353_v35 }
 0xd03   : > { %15522 = vmatmul.mubr.bf16.vlgmr.msra.gmra.mrb[4].mxu1 %v15352_v2 }
 0xd04   : > { %18041 = vmatpush3.bf16.msra.mxu1 %v20486_v36  ;;  %18056 = vmatprep.mubr.msk.bf16.mxu1 %vm21023_vm0, %v21022_v24 }
 0xd05   : > { %18042 = vmatprep.subr.bf16.mxu1 %v21022_v24 }
 0xd08   : > { %18043 = vmatpush3.bf16.msra.mxu1 %v20487_v47 }
 0xd09   : > { %18044 = vmatprep.subr.bf16.mxu1 %v21022_v24 }
 0xd0c   : > { %18045 = vmatpush3.bf16.msra.mxu1 %v20488_v29 }
 0xd0d   : > { %18046 = vmatprep.subr.bf16.mxu1 %v21022_v24 }
 0xd10   : > { %18047 = vmatpush3.bf16.msra.mxu1 %v20489_v37 }
 0xd11   : > { %18048 = vmatprep.subr.bf16.mxu1 %v21022_v24 }
 0xd14   : > { %18049 = vmatpush3.bf16.msra.mxu1 %v20490_v38 }
 0xd15   : > { %18050 = vmatprep.subr.bf16.mxu1 %v21022_v24 }
 0xd18   : > { %18051 = vmatpush3.bf16.msra.mxu1 %v20491_v39 }
 0xd19   : > { %18052 = vmatprep.subr.bf16.mxu1 %v21022_v24 }
 0xd1c   : > { %18053 = vmatpush3.bf16.msra.mxu1 %v20492_v41 }
 0xd1d   : > { %18054 = vmatprep.subr.bf16.mxu1 %v21022_v24 }
 0xd20   : > { %18055 = vmatpush3.bf16.msra.mxu1 %v20493_v42 }
 0xd21   : > { %18060 = vmatprep.subr.bf16.mxu1 %v21022_v24 }
 0xdd6   : > { %v18017_v44 = vpop.f32.mrb[4].mxu1 }
 0xdd7   : > { %v18018_v40 = vpop.f32.mrb[5].mxu1 }
 0xdd8   : > { %v18019_v53 = vadd.f32 %v18018_v40, %v18017_v44  ;;  %v18020_v49 = vpop.f32.mrb[6].mxu1 }
 0xdd9   : > { %v18021_v12 = vpop.f32.mrb[7].mxu1 }
 0xdda   : > { %v15524_v43 = vadd.f32 %v18019_v53, %v17943_v45 }
 0xddc   : > { %v15529_v59 = vmax.f32 %v15524_v43, 0.0 }
 0xdde   : > { %v15530_v52 = vpack.c.bf16 %v15529_v59, %v15529_v59 }
 0xde0   : > { %18057 = vmatmul.mubr.bf16.vlgmr.msra.gmra.mrb[8].mxu1 %v15530_v52 }
 0xde1   : > { %18061 = vmatpush3.bf16.msra.mxu1 %v20494_v9  ;;  %18068 = vmatprep.mubr.msk.bf16.mxu1 %vm21023_vm0, %v21022_v24 }
 0xde2   : > { %18062 = vmatprep.subr.bf16.mxu1 %v21022_v24 }
 0xde5   : > { %18063 = vmatpush3.bf16.msra.mxu1 %v20495_v51 }
 0xde6   : > { %18064 = vmatprep.subr.bf16.mxu1 %v21022_v24 }
 0xde9   : > { %18065 = vmatpush3.bf16.msra.mxu1 %v20496_v61 }
 0xdea   : > { %18066 = vmatprep.subr.bf16.mxu1 %v21022_v24 }
 0xded   : > { %18067 = vmatpush3.bf16.msra.mxu1 %v20497_v55 }
 0xdee   : > { %18072 = vmatprep.subr.bf16.mxu1 %v21022_v24 }
 0xeb3   : > { %v15636_v57 = vpop.f32.mrb[8].mxu1 }
 0xeb4   : > { %v15637_v54 = vadd.f32 %v17960_v46, %v15636_v57  ;;  %v18058_v3 = vpop.f32.mrb[9].mxu1 }
 0xeb5   : > { %v15639_v4 = vpop.f32.mrb[10].mxu1 }
 0xeb6   : > { %v15642_v56 = vmax.f32 %v15637_v54, 0.0  ;;  %v18059_v5 = vpop.f32.mrb[11].mxu1 }
 0xeb8   : > { %v15643_v60 = vpack.c.bf16 %v15642_v56, %v15642_v56 }
 0xeba   : > { %18069 = vmatmul.mubr.msk.bf16.vlgmr.msra.gmra.mrb[12].mxu1 %vm15683_vm1, %v15643_v60 }
 0xebb   : > { %18073 = vmatpush3.bf16.msra.mxu1 %v20498_v7  ;;  %18076 = vmatprep.mubr.msk.bf16.mxu1 %vm21023_vm0, %v21022_v24 }
 0xebc   : > { %18074 = vmatprep.subr.bf16.mxu1 %v21022_v24 }
 0xebf   : > { %18075 = vmatpush3.bf16.msra.mxu1 %v20499_v8 }
 0xf8d   : > { %v15721_v1 = vpop.f32.mrb[12].mxu1 }
 0xf8e   : > { %v15722_v63 = vadd.f32 %v17969_v10, %v15721_v1  ;;  %v18070_v0 = vpop.f32.mrb[13].mxu1 }
 0xf8f   : > { %v15724_v6 = vpop.f32.mrb[14].mxu1 }
 0xf90   : > { %v15727_v62 = vmax.f32 %v15722_v63, 0.0  ;;  %v18071_v58 = vpop.f32.mrb[15].mxu1 }
 0xf92   : > { %v15728_v14 = vpack.c.bf16 %v15727_v62, %v15727_v62 }
 0xf94   : > { %18077 = vmatmul.mubr.msk.bf16.vlgmr.msra.gmra.mrb[16].mxu1 %vm15752_vm2, %v15728_v14 }
0x1067   : > { %v15790_v11 = vpop.f32.mrb[16].mxu1 }
0x1068   : > { %v15791_v17 = vadd.f32 %v17975_v16, %v15790_v11  ;;  %v18078_v19 = vpop.f32.mrb[17].mxu1 }
0x1069   : > { %v15793_v13 = vpop.f32.mrb[18].mxu1 }
0x106a   : > { %15797 = vst.msk [vmem:[%s23341_s13] sm:$0xff] %vm15796_vm3, %v15791_v17  ;;  %v18079_v21 = vpop.f32.mrb[19].mxu1 }
0x106b PF: > { %s23342_s22 = sld [smem:[#allocation39_spill]]  ;;  %s23343_s14 = sld [smem:[#allocation37_spill]] }
0x106c   : > { %s23344_s1 = sld [smem:[#allocation40_spill]]  ;;  %s23345_s20 = smov %s20985_s21 }
0x1071   : > { %p40_p4 = scmp.ge.s32.totalorder %s23342_s22, 6   ;;  %s23346_s21 = smov %s23343_s14 }
0x1073   :  { %42 = sbr.rel (!%p40_p4) target bundleno = 27 (0x1b), region = 213 }
0x107a   :  { %15809 = vsyncpa [#allocation6], 1 }
0x107b   :  { %15811 = vsyncpa [#allocation6 + $0x1], 1 }
0x107c   :  { %15812 = vsyncpa [#allocation8], 1 }
0x107d   :  { %15813 = vsyncpa [#allocation11], 1 }
0x107e   :  { %15815 = vsyncpa [#allocation11 + $0x1], 1 }
0x107f   :  { %15816 = vsyncpa [#allocation14], 1 }
0x1080   :  { %15818 = vsyncpa [#allocation14 + $0x1], 1 }
0x1081   :  { %15819 = vsyncpa [#allocation17], 1 }
0x1082   :  { %15820 = vsyncpa [#allocation20], 1 }
0x1083   :  { %15821 = vsyncpa [#allocation23], 1 }
0x1084   :  { %15822 = vsyncpa [#allocation26], 1 }

</bundles_post_ra>
